<compile_context>
chip_gen: v7x
topology: tpu7x:2x2x1
jax: 0.10.0
libtpu: 0.0.40
codegen_flags: <defaults>
</compile_context>

<pallas_src>
import numpy as np

import jax
import jax.numpy as jnp
from jax.experimental import pallas as pl
from jax.experimental.pallas import tpu as pltpu


# ============================================================================
# Host-side prepacking (numpy, one time).
# A row of an activation map is stored lane-major as (w, c) -> w*C + c.
# Each conv layer becomes three per-tap matrices M[i] with
#     out_row[ho] = sum_i  in_row[hi(ho, i)] @ M[i]  + bias_row
# ============================================================================
def _pack_conv_taps(w, win, p, wo):
    """Stride-2 Conv2d weight (Cout, Cin, 3, 3) -> (3, win*Cin, wo*Cout)."""
    cout, cin = w.shape[0], w.shape[1]
    m = np.zeros((3, win * cin, wo * cout), np.float32)
    for i in range(3):
        for j in range(3):
            for o in range(wo):
                wi = 2 * o + j - p
                if 0 <= wi < win:
                    m[i, wi * cin:(wi + 1) * cin, o * cout:(o + 1) * cout] = w[:, :, i, j].T
    return m


def _pack_convT_taps(w, win, p, wout):
    """Stride-2 ConvTranspose2d weight (Cin, Cout, 3, 3) -> (3, win*Cin, wout*Cout)."""
    cin, cout = w.shape[0], w.shape[1]
    m = np.zeros((3, win * cin, wout * cout), np.float32)
    for i in range(3):
        for j in range(3):
            for wi in range(win):
                o = 2 * wi + j - p
                if 0 <= o < wout:
                    m[i, wi * cin:(wi + 1) * cin, o * cout:(o + 1) * cout] = w[:, :, i, j]
    return m


def _pack_conv1_rows(w, hin=28, win=28, p=1, ho_n=14, wo_n=14):
    """First Conv2d (nf, 1, 3, 3) applied straight to the flat (B, 784) input:
    one dense (784, wo_n*nf) matrix per output row (K=784 keeps the MXU fed;
    no row-splitting of the input is needed inside the kernel)."""
    cout = w.shape[0]
    m = np.zeros((ho_n, hin * win, wo_n * cout), np.float32)
    for ho in range(ho_n):
        for i in range(3):
            hi = 2 * ho + i - p
            if not 0 <= hi < hin:
                continue
            for j in range(3):
                for o in range(wo_n):
                    wi = 2 * o + j - p
                    if 0 <= wi < win:
                        m[ho, hi * win + wi, o * cout:(o + 1) * cout] = w[:, 0, i, j]
    return m


def _pack_ct3_scatter(w, hin=14, win=14, p=1, hout=28, wout=28):
    """Last ConvTranspose2d (nf, 1, 3, 3), scattered straight into the flat (B, 784)
    output: one (win*nf, 784) matrix per *input* row (lane-dense N = 784)."""
    cin = w.shape[0]
    g = np.zeros((hin, win * cin, hout * wout), np.float32)
    for hi in range(hin):
        for i in range(3):
            ho = 2 * hi + i - p
            if not 0 <= ho < hout:
                continue
            for j in range(3):
                for wi in range(win):
                    wo = 2 * wi + j - p
                    if 0 <= wo < wout:
                        g[hi, wi * cin:(wi + 1) * cin, ho * wout + wo] = w[:, 0, i, j]
    return g


# ============================================================================
# Parameters: PyTorch layouts (Conv2d OIHW, ConvTranspose2d IOHW, Linear (out, in)).
# ============================================================================
def init_params(key, nf, encoded_space_dim):
    def u(k, shape, fan_in):
        bound = 1.0 / np.sqrt(float(fan_in))
        return jax.random.uniform(k, shape, jnp.float32, -bound, bound)

    ks = iter(jax.random.split(key, 20))
    p = {}
    p["e_conv1_w"] = u(next(ks), (nf, 1, 3, 3), 9)
    p["e_conv1_b"] = u(next(ks), (nf,), 9)
    p["e_conv2_w"] = u(next(ks), (2 * nf, nf, 3, 3), nf * 9)
    p["e_conv2_b"] = u(next(ks), (2 * nf,), nf * 9)
    p["e_conv3_w"] = u(next(ks), (4 * nf, 2 * nf, 3, 3), 2 * nf * 9)
    p["e_conv3_b"] = u(next(ks), (4 * nf,), 2 * nf * 9)
    p["e_fc1_w"] = u(next(ks), (64, 4 * nf * 9), 4 * nf * 9)
    p["e_fc1_b"] = u(next(ks), (64,), 4 * nf * 9)
    p["e_fc2_w"] = u(next(ks), (encoded_space_dim, 64), 64)
    p["e_fc2_b"] = u(next(ks), (encoded_space_dim,), 64)
    p["d_fc1_w"] = u(next(ks), (64, encoded_space_dim), encoded_space_dim)
    p["d_fc1_b"] = u(next(ks), (64,), encoded_space_dim)
    p["d_fc2_w"] = u(next(ks), (4 * nf * 9, 64), 64)
    p["d_fc2_b"] = u(next(ks), (4 * nf * 9,), 64)
    p["d_ct1_w"] = u(next(ks), (4 * nf, 2 * nf, 3, 3), 4 * nf * 9)
    p["d_ct1_b"] = u(next(ks), (2 * nf,), 2 * nf * 9)
    p["d_ct2_w"] = u(next(ks), (2 * nf, nf, 3, 3), 2 * nf * 9)
    p["d_ct2_b"] = u(next(ks), (nf,), nf * 9)
    p["d_ct3_w"] = u(next(ks), (nf, 1, 3, 3), nf * 9)
    p["d_ct3_b"] = u(next(ks), (1,), 9)
    return p


def prepare_params(raw, nf):
    """One-time prepack of PyTorch-layout params into bf16 matmul form (f32 biases)."""
    r = {k: np.asarray(v, np.float32) for k, v in raw.items()}
    c4 = 4 * nf

    m1 = _pack_conv1_rows(r["e_conv1_w"])
    c1 = np.tile(r["e_conv1_b"], 14)[None, :]
    m2 = _pack_conv_taps(r["e_conv2_w"], win=14, p=1, wo=7)
    c2 = np.tile(r["e_conv2_b"], 7)[None, :]
    m3 = _pack_conv_taps(r["e_conv3_w"], win=7, p=0, wo=3)
    c3 = np.tile(r["e_conv3_b"], 3)[None, :]

    # e_fc1: PyTorch Flatten order (c, h, w) -> this kernel's (h, w, c) row layout,
    # split into one block per spatial row h (no in-kernel concatenation needed).
    wf1 = (r["e_fc1_w"].T.reshape(c4, 3, 3, 64).transpose(1, 2, 0, 3)
           .reshape(3, 3 * c4, 64))
    bf1 = r["e_fc1_b"][None, :]

    # Fold e_fc2 . d_fc1 in f32 (no nonlinearity in between; z is never returned).
    wf23 = r["e_fc2_w"].T @ r["d_fc1_w"].T
    bf23 = (r["e_fc2_b"] @ r["d_fc1_w"].T + r["d_fc1_b"])[None, :]

    # d_fc2: split per Unflatten row h, columns reordered (c, h, w) -> (w, c).
    w4 = r["d_fc2_w"].T.reshape(64, c4, 3, 3)
    b4 = r["d_fc2_b"].reshape(c4, 3, 3)
    wf4 = np.stack([w4[:, :, h, :].transpose(0, 2, 1).reshape(64, 3 * c4)
                    for h in range(3)])
    bf4 = np.stack([b4[:, h, :].T.reshape(1, 3 * c4) for h in range(3)])

    d1 = _pack_convT_taps(r["d_ct1_w"], win=3, p=0, wout=7)
    e1 = np.tile(r["d_ct1_b"], 7)[None, :]
    d2 = _pack_convT_taps(r["d_ct2_w"], win=7, p=1, wout=14)
    e2 = np.tile(r["d_ct2_b"], 14)[None, :]
    g3 = _pack_ct3_scatter(r["d_ct3_w"])
    e3 = np.full((1, 28 * 28), float(r["d_ct3_b"][0]), np.float32)

    bf = lambda a: jnp.asarray(a, jnp.bfloat16)
    f32 = lambda a: jnp.asarray(a, jnp.float32)
    return {
        "m1": bf(m1), "c1": f32(c1), "m2": bf(m2), "c2": f32(c2),
        "m3": bf(m3), "c3": f32(c3),
        "wf1": bf(wf1), "bf1": f32(bf1), "wf23": bf(wf23), "bf23": f32(bf23),
        "wf4": bf(wf4), "bf4": f32(bf4),
        "d1": bf(d1), "e1": f32(e1), "d2": bf(d2), "e2": f32(e2),
        "g3": bf(g3), "e3": f32(e3),
    }


_W_ORDER = ("m1", "c1", "m2", "c2", "m3", "c3", "wf1", "bf1", "wf23", "bf23",
            "wf4", "bf4", "d1", "e1", "d2", "e2", "g3", "e3")


# ============================================================================
# The fused Pallas kernel: whole encoder + decoder on one batch tile.
# Only uses: ref loads, static leading-dim ref indexing, jnp.dot (bf16 MXU,
# f32 accumulation), adds / maximum / casts.  No HBM im2col, no dilated zeros.
# ============================================================================
def _autoencoder_kernel(x_ref,
                        m1_ref, c1_ref, m2_ref, c2_ref, m3_ref, c3_ref,
                        wf1_ref, bf1_ref, wf23_ref, bf23_ref, wf4_ref, bf4_ref,
                        d1_ref, e1_ref, d2_ref, e2_ref, g3_ref, e3_ref,
                        out_ref):
    f32, bf16 = jnp.float32, jnp.bfloat16
    tb = x_ref.shape[0]

    def mm(a, w):
        return jnp.dot(a.astype(bf16), w, preferred_element_type=f32)

    def conv_rows(rows, m_ref, b_ref, p, n_out, relu=True):
        """Stride-2 Conv2d: out[ho] = sum_i rows[2ho+i-p] @ M[i] + b (OOB rows skipped)."""
        h_in = len(rows)
        bias = b_ref[...]
        out = []
        for ho in range(n_out):
            acc = None
            for i in range(3):
                hi = 2 * ho + i - p
                if 0 <= hi < h_in:
                    t = mm(rows[hi], m_ref[i])
                    acc = t if acc is None else acc + t
            acc = acc + bias
            out.append(jnp.maximum(acc, 0.0) if relu else acc)
        return out

    def convT_rows(rows, m_ref, b_ref, p, n_out, relu=True):
        """Stride-2 ConvTranspose2d, phase-decomposed: only the 1-2 input rows that
        actually contribute to each output row are multiplied."""
        h_in = len(rows)
        bias = b_ref[...]
        out = []
        for ho in range(n_out):
            acc = None
            for i in range(3):
                num = ho + p - i
                if num % 2 == 0 and 0 <= num // 2 < h_in:
                    t = mm(rows[num // 2], m_ref[i])
                    acc = t if acc is None else acc + t
            if acc is None:
                acc = jnp.zeros((tb, bias.shape[-1]), f32)
            acc = acc + bias
            out.append(jnp.maximum(acc, 0.0) if relu else acc)
        return out

    x = x_ref[...]                                        # (tb, 784) bf16, lane-dense

    # -- encoder --
    # Conv2d(1, nf, 3, s=2, p=1) + ReLU: one dense matmul per output row off the
    # flat input (in-VMEM im2col, K = 784).
    c1 = c1_ref[...]
    rows = [jnp.maximum(mm(x, m1_ref[ho]) + c1, 0.0) for ho in range(14)]  # 14 x (tb, 14*nf)
    rows = conv_rows(rows, m2_ref, c2_ref, p=1, n_out=7)   # Conv2d(nf, 2nf)  + ReLU -> 7x7
    rows = conv_rows(rows, m3_ref, c3_ref, p=0, n_out=3)   # Conv2d(2nf, 4nf) + ReLU -> 3x3

    # -- FC bottleneck (Flatten / Linear stack / Unflatten), fully in-VMEM --
    h = None
    for hh in range(3):                                    # Flatten + Linear(288, 64)
        t = mm(rows[hh], wf1_ref[hh])
        h = t if h is None else h + t
    h = jnp.maximum(h + bf1_ref[...], 0.0)                 # ReLU
    # Linear(64, esd) . Linear(esd, 64) folded at prepack, then ReLU.
    h = jnp.maximum(mm(h, wf23_ref[...]) + bf23_ref[...], 0.0)
    # Linear(64, 288) + ReLU, emitted directly as the 3 Unflatten rows.
    rows = [jnp.maximum(mm(h, wf4_ref[hh]) + bf4_ref[hh], 0.0) for hh in range(3)]

    # -- decoder --
    rows = convT_rows(rows, d1_ref, e1_ref, p=0, n_out=7)   # ConvT(4nf, 2nf) + ReLU -> 7x7
    rows = convT_rows(rows, d2_ref, e2_ref, p=1, n_out=14)  # ConvT(2nf, nf)  + ReLU -> 14x14

    # ConvT(nf, 1, 3, s=2, p=1, op=1), linear output: scatter each input row's
    # contribution straight into the flat lane-dense (tb, 784) f32 output.
    acc = jnp.zeros((tb, 28 * 28), f32)
    for hi in range(14):
        acc = acc + mm(rows[hi], g3_ref[hi])
    out_ref[...] = acc + e3_ref[...]


# ============================================================================
# Wrapper: batch-tiled 'parallel' grid, weights resident via constant index maps.
# ============================================================================
def autoencoder_forward(x, params, *, batch_tile_cap=256):
    B, C, H, W = x.shape
    assert (C, H, W) == (1, 28, 28), "module is defined for 1x28x28 inputs"
    hw = H * W
    xf = x.reshape(B, hw).astype(jnp.bfloat16)            # lane-dense input slab

    nt = pl.cdiv(B, batch_tile_cap)
    if nt == 1 and B >= 64:
        nt = 2                                             # v7x: use both TensorCores
    tb = max(8, -(-(-(-B // nt)) // 8) * 8)                # ceil(B/nt) rounded up to 8
    bp = tb * nt
    if bp != B:
        xf = jnp.pad(xf, ((0, bp - B), (0, 0)))            # at most nt*7 extra rows

    w_args = [params[k] for k in _W_ORDER]

    def resident(a):
        return pl.BlockSpec(a.shape, lambda i, _nd=a.ndim: (0,) * _nd)

    out = pl.pallas_call(
        _autoencoder_kernel,
        out_shape=jax.ShapeDtypeStruct((bp, hw), jnp.float32),
        grid=(nt,),
        in_specs=[pl.BlockSpec((tb, hw), lambda i: (i, 0))]
                 + [resident(a) for a in w_args],
        out_specs=pl.BlockSpec((tb, hw), lambda i: (i, 0)),
        compiler_params=pltpu.CompilerParams(
            dimension_semantics=("parallel",),
            vmem_limit_bytes=48 * 1024 * 1024),
    )(xf, *w_args)

    if bp != B:
        out = out[:B]
    return out.reshape(B, 1, 28, 28)


# ============================================================================
# Pure-JAX f32 reference (PyTorch semantics) for a correctness sanity check.
# ============================================================================
def reference_forward(x, raw, nf):
    hp = jax.lax.Precision.HIGHEST
    relu = jax.nn.relu

    def conv(h, w, b, stride, pad):
        y = jax.lax.conv_general_dilated(
            h, w, window_strides=(stride, stride),
            padding=[(pad, pad), (pad, pad)],
            dimension_numbers=("NCHW", "OIHW", "NCHW"), precision=hp)
        return y + b.reshape(1, -1, 1, 1)

    def convT(h, w, b, stride, pad, opad):
        wt = jnp.flip(w, (2, 3)).transpose(1, 0, 2, 3)     # (Cin,Cout,3,3)->(Cout,Cin,3,3)
        y = jax.lax.conv_general_dilated(
            h, wt, window_strides=(1, 1),
            padding=[(2 - pad, 2 - pad + opad), (2 - pad, 2 - pad + opad)],
            lhs_dilation=(stride, stride),
            dimension_numbers=("NCHW", "OIHW", "NCHW"), precision=hp)
        return y + b.reshape(1, -1, 1, 1)

    B = x.shape[0]
    h = relu(conv(x, raw["e_conv1_w"], raw["e_conv1_b"], 2, 1))
    h = relu(conv(h, raw["e_conv2_w"], raw["e_conv2_b"], 2, 1))
    h = relu(conv(h, raw["e_conv3_w"], raw["e_conv3_b"], 2, 0))
    h = h.reshape(B, -1)
    h = relu(h @ raw["e_fc1_w"].T + raw["e_fc1_b"])
    z = h @ raw["e_fc2_w"].T + raw["e_fc2_b"]
    h = relu(z @ raw["d_fc1_w"].T + raw["d_fc1_b"])
    h = relu(h @ raw["d_fc2_w"].T + raw["d_fc2_b"])
    h = h.reshape(B, 4 * nf, 3, 3)
    h = relu(convT(h, raw["d_ct1_w"], raw["d_ct1_b"], 2, 0, 0))
    h = relu(convT(h, raw["d_ct2_w"], raw["d_ct2_b"], 2, 1, 1))
    h = convT(h, raw["d_ct3_w"], raw["d_ct3_b"], 2, 1, 1)
    return h


if __name__ == "__main__":
    nf = 8
    encoded_space_dim = 4
    B = 2

    key = jax.random.PRNGKey(0)
    kx, kp = jax.random.split(key)
    x = jax.random.normal(kx, (B, 1, 28, 28), jnp.float32)
    raw = init_params(kp, nf, encoded_space_dim)
    params = prepare_params(raw, nf)                       # one-time bf16 prepack

    fwd = jax.jit(autoencoder_forward)
    out = jax.block_until_ready(fwd(x, params))

    assert out.shape == (B, 1, 28, 28), out.shape
    assert out.dtype == jnp.float32
    assert bool(jnp.all(jnp.isfinite(out)))

    # Numerical sanity check vs. an f32 reference (tolerance covers bf16 weights/acts).
    with jax.default_matmul_precision("float32"):
        ref = reference_forward(x, raw, nf)
    assert bool(jnp.allclose(out, ref, rtol=0.05, atol=0.015)), (
        float(jnp.max(jnp.abs(out - ref))))

    print("KERNEL_OK")
</pallas_src>

<mosaic_0001>
module attributes {stable_mosaic.version = 11 : i64} {
  func.func @_autoencoder_kernel(%arg0: i32, %arg1: memref<8x784xbf16, #tpu.memory_space<vmem>>, %arg2: memref<14x784x112xbf16, #tpu.memory_space<vmem>>, %arg3: memref<1x112xf32, #tpu.memory_space<vmem>>, %arg4: memref<3x112x112xbf16, #tpu.memory_space<vmem>>, %arg5: memref<1x112xf32, #tpu.memory_space<vmem>>, %arg6: memref<3x112x96xbf16, #tpu.memory_space<vmem>>, %arg7: memref<1x96xf32, #tpu.memory_space<vmem>>, %arg8: memref<3x96x64xbf16, #tpu.memory_space<vmem>>, %arg9: memref<1x64xf32, #tpu.memory_space<vmem>>, %arg10: memref<64x64xbf16, #tpu.memory_space<vmem>>, %arg11: memref<1x64xf32, #tpu.memory_space<vmem>>, %arg12: memref<3x64x96xbf16, #tpu.memory_space<vmem>>, %arg13: memref<3x1x96xf32, #tpu.memory_space<vmem>>, %arg14: memref<3x96x112xbf16, #tpu.memory_space<vmem>>, %arg15: memref<1x112xf32, #tpu.memory_space<vmem>>, %arg16: memref<3x112x112xbf16, #tpu.memory_space<vmem>>, %arg17: memref<1x112xf32, #tpu.memory_space<vmem>>, %arg18: memref<14x112x784xbf16, #tpu.memory_space<vmem>>, %arg19: memref<1x784xf32, #tpu.memory_space<vmem>>, %arg20: memref<8x784xf32, #tpu.memory_space<vmem>>) attributes {dimension_semantics = [#tpu.dimension_semantics<parallel>], iteration_bounds = array<i64: 1>, scalar_prefetch = 0 : i64, scratch_operands = 0 : i64, tpu.core_type = #tpu.core_type<tc>, window_params = [{transform_indices = @transform_0, window_bounds = array<i64: 8, 784>}, {pipeline_mode = #tpu.pipeline_mode<synchronous>, transform_indices = @transform_1, window_bounds = array<i64: 14, 784, 112>}, {pipeline_mode = #tpu.pipeline_mode<synchronous>, transform_indices = @transform_2, window_bounds = array<i64: 1, 112>}, {pipeline_mode = #tpu.pipeline_mode<synchronous>, transform_indices = @transform_3, window_bounds = array<i64: 3, 112, 112>}, {pipeline_mode = #tpu.pipeline_mode<synchronous>, transform_indices = @transform_4, window_bounds = array<i64: 1, 112>}, {pipeline_mode = #tpu.pipeline_mode<synchronous>, transform_indices = @transform_5, window_bounds = array<i64: 3, 112, 96>}, {pipeline_mode = #tpu.pipeline_mode<synchronous>, transform_indices = @transform_6, window_bounds = array<i64: 1, 96>}, {pipeline_mode = #tpu.pipeline_mode<synchronous>, transform_indices = @transform_7, window_bounds = array<i64: 3, 96, 64>}, {pipeline_mode = #tpu.pipeline_mode<synchronous>, transform_indices = @transform_8, window_bounds = array<i64: 1, 64>}, {pipeline_mode = #tpu.pipeline_mode<synchronous>, transform_indices = @transform_9, window_bounds = array<i64: 64, 64>}, {pipeline_mode = #tpu.pipeline_mode<synchronous>, transform_indices = @transform_10, window_bounds = array<i64: 1, 64>}, {pipeline_mode = #tpu.pipeline_mode<synchronous>, transform_indices = @transform_11, window_bounds = array<i64: 3, 64, 96>}, {pipeline_mode = #tpu.pipeline_mode<synchronous>, transform_indices = @transform_12, window_bounds = array<i64: 3, 1, 96>}, {pipeline_mode = #tpu.pipeline_mode<synchronous>, transform_indices = @transform_13, window_bounds = array<i64: 3, 96, 112>}, {pipeline_mode = #tpu.pipeline_mode<synchronous>, transform_indices = @transform_14, window_bounds = array<i64: 1, 112>}, {pipeline_mode = #tpu.pipeline_mode<synchronous>, transform_indices = @transform_15, window_bounds = array<i64: 3, 112, 112>}, {pipeline_mode = #tpu.pipeline_mode<synchronous>, transform_indices = @transform_16, window_bounds = array<i64: 1, 112>}, {pipeline_mode = #tpu.pipeline_mode<synchronous>, transform_indices = @transform_17, window_bounds = array<i64: 14, 112, 784>}, {pipeline_mode = #tpu.pipeline_mode<synchronous>, transform_indices = @transform_18, window_bounds = array<i64: 1, 784>}, {transform_indices = @transform_19, window_bounds = array<i64: 8, 784>}]} {
    %c0 = arith.constant 0 : index
    %c0_0 = arith.constant 0 : index
    %0 = vector.load %arg1[%c0, %c0_0] : memref<8x784xbf16, #tpu.memory_space<vmem>>, vector<8x784xbf16>
    %c0_1 = arith.constant 0 : index
    %c0_2 = arith.constant 0 : index
    %1 = vector.load %arg3[%c0_1, %c0_2] : memref<1x112xf32, #tpu.memory_space<vmem>>, vector<1x112xf32>
    %c0_3 = arith.constant 0 : index
    %c0_4 = arith.constant 0 : index
    %c0_5 = arith.constant 0 : index
    %2 = vector.load %arg2[%c0_3, %c0_4, %c0_5] : memref<14x784x112xbf16, #tpu.memory_space<vmem>>, vector<1x784x112xbf16>
    %3 = vector.shape_cast %2 : vector<1x784x112xbf16> to vector<784x112xbf16>
    %cst = arith.constant dense<0.000000e+00> : vector<8x112xf32>
    %4 = tpu.matmul %0, %3, %cst {dimension_numbers = #tpu.dot_dimension_numbers<[1], [0], [0], [1], [0, 0, 1, 1], [], []>} : vector<8x784xbf16>, vector<784x112xbf16>, vector<8x112xf32> -> vector<8x112xf32>
    %5 = vector.broadcast %1 : vector<1x112xf32> to vector<8x112xf32>
    %6 = arith.addf %4, %5 : vector<8x112xf32>
    %cst_6 = arith.constant 0.000000e+00 : f32
    %7 = vector.broadcast %cst_6 : f32 to vector<8x112xf32>
    %8 = arith.maximumf %6, %7 : vector<8x112xf32>
    %c1 = arith.constant 1 : index
    %c0_7 = arith.constant 0 : index
    %c0_8 = arith.constant 0 : index
    %9 = vector.load %arg2[%c1, %c0_7, %c0_8] : memref<14x784x112xbf16, #tpu.memory_space<vmem>>, vector<1x784x112xbf16>
    %10 = vector.shape_cast %9 : vector<1x784x112xbf16> to vector<784x112xbf16>
    %cst_9 = arith.constant dense<0.000000e+00> : vector<8x112xf32>
    %11 = tpu.matmul %0, %10, %cst_9 {dimension_numbers = #tpu.dot_dimension_numbers<[1], [0], [0], [1], [0, 0, 1, 1], [], []>} : vector<8x784xbf16>, vector<784x112xbf16>, vector<8x112xf32> -> vector<8x112xf32>
    %12 = vector.broadcast %1 : vector<1x112xf32> to vector<8x112xf32>
    %13 = arith.addf %11, %12 : vector<8x112xf32>
    %cst_10 = arith.constant 0.000000e+00 : f32
    %14 = vector.broadcast %cst_10 : f32 to vector<8x112xf32>
    %15 = arith.maximumf %13, %14 : vector<8x112xf32>
    %c2 = arith.constant 2 : index
    %c0_11 = arith.constant 0 : index
    %c0_12 = arith.constant 0 : index
    %16 = vector.load %arg2[%c2, %c0_11, %c0_12] : memref<14x784x112xbf16, #tpu.memory_space<vmem>>, vector<1x784x112xbf16>
    %17 = vector.shape_cast %16 : vector<1x784x112xbf16> to vector<784x112xbf16>
    %cst_13 = arith.constant dense<0.000000e+00> : vector<8x112xf32>
    %18 = tpu.matmul %0, %17, %cst_13 {dimension_numbers = #tpu.dot_dimension_numbers<[1], [0], [0], [1], [0, 0, 1, 1], [], []>} : vector<8x784xbf16>, vector<784x112xbf16>, vector<8x112xf32> -> vector<8x112xf32>
    %19 = vector.broadcast %1 : vector<1x112xf32> to vector<8x112xf32>
    %20 = arith.addf %18, %19 : vector<8x112xf32>
    %cst_14 = arith.constant 0.000000e+00 : f32
    %21 = vector.broadcast %cst_14 : f32 to vector<8x112xf32>
    %22 = arith.maximumf %20, %21 : vector<8x112xf32>
    %c3 = arith.constant 3 : index
    %c0_15 = arith.constant 0 : index
    %c0_16 = arith.constant 0 : index
    %23 = vector.load %arg2[%c3, %c0_15, %c0_16] : memref<14x784x112xbf16, #tpu.memory_space<vmem>>, vector<1x784x112xbf16>
    %24 = vector.shape_cast %23 : vector<1x784x112xbf16> to vector<784x112xbf16>
    %cst_17 = arith.constant dense<0.000000e+00> : vector<8x112xf32>
    %25 = tpu.matmul %0, %24, %cst_17 {dimension_numbers = #tpu.dot_dimension_numbers<[1], [0], [0], [1], [0, 0, 1, 1], [], []>} : vector<8x784xbf16>, vector<784x112xbf16>, vector<8x112xf32> -> vector<8x112xf32>
    %26 = vector.broadcast %1 : vector<1x112xf32> to vector<8x112xf32>
    %27 = arith.addf %25, %26 : vector<8x112xf32>
    %cst_18 = arith.constant 0.000000e+00 : f32
    %28 = vector.broadcast %cst_18 : f32 to vector<8x112xf32>
    %29 = arith.maximumf %27, %28 : vector<8x112xf32>
    %c4 = arith.constant 4 : index
    %c0_19 = arith.constant 0 : index
    %c0_20 = arith.constant 0 : index
    %30 = vector.load %arg2[%c4, %c0_19, %c0_20] : memref<14x784x112xbf16, #tpu.memory_space<vmem>>, vector<1x784x112xbf16>
    %31 = vector.shape_cast %30 : vector<1x784x112xbf16> to vector<784x112xbf16>
    %cst_21 = arith.constant dense<0.000000e+00> : vector<8x112xf32>
    %32 = tpu.matmul %0, %31, %cst_21 {dimension_numbers = #tpu.dot_dimension_numbers<[1], [0], [0], [1], [0, 0, 1, 1], [], []>} : vector<8x784xbf16>, vector<784x112xbf16>, vector<8x112xf32> -> vector<8x112xf32>
    %33 = vector.broadcast %1 : vector<1x112xf32> to vector<8x112xf32>
    %34 = arith.addf %32, %33 : vector<8x112xf32>
    %cst_22 = arith.constant 0.000000e+00 : f32
    %35 = vector.broadcast %cst_22 : f32 to vector<8x112xf32>
    %36 = arith.maximumf %34, %35 : vector<8x112xf32>
    %c5 = arith.constant 5 : index
    %c0_23 = arith.constant 0 : index
    %c0_24 = arith.constant 0 : index
    %37 = vector.load %arg2[%c5, %c0_23, %c0_24] : memref<14x784x112xbf16, #tpu.memory_space<vmem>>, vector<1x784x112xbf16>
    %38 = vector.shape_cast %37 : vector<1x784x112xbf16> to vector<784x112xbf16>
    %cst_25 = arith.constant dense<0.000000e+00> : vector<8x112xf32>
    %39 = tpu.matmul %0, %38, %cst_25 {dimension_numbers = #tpu.dot_dimension_numbers<[1], [0], [0], [1], [0, 0, 1, 1], [], []>} : vector<8x784xbf16>, vector<784x112xbf16>, vector<8x112xf32> -> vector<8x112xf32>
    %40 = vector.broadcast %1 : vector<1x112xf32> to vector<8x112xf32>
    %41 = arith.addf %39, %40 : vector<8x112xf32>
    %cst_26 = arith.constant 0.000000e+00 : f32
    %42 = vector.broadcast %cst_26 : f32 to vector<8x112xf32>
    %43 = arith.maximumf %41, %42 : vector<8x112xf32>
    %c6 = arith.constant 6 : index
    %c0_27 = arith.constant 0 : index
    %c0_28 = arith.constant 0 : index
    %44 = vector.load %arg2[%c6, %c0_27, %c0_28] : memref<14x784x112xbf16, #tpu.memory_space<vmem>>, vector<1x784x112xbf16>
    %45 = vector.shape_cast %44 : vector<1x784x112xbf16> to vector<784x112xbf16>
    %cst_29 = arith.constant dense<0.000000e+00> : vector<8x112xf32>
    %46 = tpu.matmul %0, %45, %cst_29 {dimension_numbers = #tpu.dot_dimension_numbers<[1], [0], [0], [1], [0, 0, 1, 1], [], []>} : vector<8x784xbf16>, vector<784x112xbf16>, vector<8x112xf32> -> vector<8x112xf32>
    %47 = vector.broadcast %1 : vector<1x112xf32> to vector<8x112xf32>
    %48 = arith.addf %46, %47 : vector<8x112xf32>
    %cst_30 = arith.constant 0.000000e+00 : f32
    %49 = vector.broadcast %cst_30 : f32 to vector<8x112xf32>
    %50 = arith.maximumf %48, %49 : vector<8x112xf32>
    %c7 = arith.constant 7 : index
    %c0_31 = arith.constant 0 : index
    %c0_32 = arith.constant 0 : index
    %51 = vector.load %arg2[%c7, %c0_31, %c0_32] : memref<14x784x112xbf16, #tpu.memory_space<vmem>>, vector<1x784x112xbf16>
    %52 = vector.shape_cast %51 : vector<1x784x112xbf16> to vector<784x112xbf16>
    %cst_33 = arith.constant dense<0.000000e+00> : vector<8x112xf32>
    %53 = tpu.matmul %0, %52, %cst_33 {dimension_numbers = #tpu.dot_dimension_numbers<[1], [0], [0], [1], [0, 0, 1, 1], [], []>} : vector<8x784xbf16>, vector<784x112xbf16>, vector<8x112xf32> -> vector<8x112xf32>
    %54 = vector.broadcast %1 : vector<1x112xf32> to vector<8x112xf32>
    %55 = arith.addf %53, %54 : vector<8x112xf32>
    %cst_34 = arith.constant 0.000000e+00 : f32
    %56 = vector.broadcast %cst_34 : f32 to vector<8x112xf32>
    %57 = arith.maximumf %55, %56 : vector<8x112xf32>
    %c8 = arith.constant 8 : index
    %c0_35 = arith.constant 0 : index
    %c0_36 = arith.constant 0 : index
    %58 = vector.load %arg2[%c8, %c0_35, %c0_36] : memref<14x784x112xbf16, #tpu.memory_space<vmem>>, vector<1x784x112xbf16>
    %59 = vector.shape_cast %58 : vector<1x784x112xbf16> to vector<784x112xbf16>
    %cst_37 = arith.constant dense<0.000000e+00> : vector<8x112xf32>
    %60 = tpu.matmul %0, %59, %cst_37 {dimension_numbers = #tpu.dot_dimension_numbers<[1], [0], [0], [1], [0, 0, 1, 1], [], []>} : vector<8x784xbf16>, vector<784x112xbf16>, vector<8x112xf32> -> vector<8x112xf32>
    %61 = vector.broadcast %1 : vector<1x112xf32> to vector<8x112xf32>
    %62 = arith.addf %60, %61 : vector<8x112xf32>
    %cst_38 = arith.constant 0.000000e+00 : f32
    %63 = vector.broadcast %cst_38 : f32 to vector<8x112xf32>
    %64 = arith.maximumf %62, %63 : vector<8x112xf32>
    %c9 = arith.constant 9 : index
    %c0_39 = arith.constant 0 : index
    %c0_40 = arith.constant 0 : index
    %65 = vector.load %arg2[%c9, %c0_39, %c0_40] : memref<14x784x112xbf16, #tpu.memory_space<vmem>>, vector<1x784x112xbf16>
    %66 = vector.shape_cast %65 : vector<1x784x112xbf16> to vector<784x112xbf16>
    %cst_41 = arith.constant dense<0.000000e+00> : vector<8x112xf32>
    %67 = tpu.matmul %0, %66, %cst_41 {dimension_numbers = #tpu.dot_dimension_numbers<[1], [0], [0], [1], [0, 0, 1, 1], [], []>} : vector<8x784xbf16>, vector<784x112xbf16>, vector<8x112xf32> -> vector<8x112xf32>
    %68 = vector.broadcast %1 : vector<1x112xf32> to vector<8x112xf32>
    %69 = arith.addf %67, %68 : vector<8x112xf32>
    %cst_42 = arith.constant 0.000000e+00 : f32
    %70 = vector.broadcast %cst_42 : f32 to vector<8x112xf32>
    %71 = arith.maximumf %69, %70 : vector<8x112xf32>
    %c10 = arith.constant 10 : index
    %c0_43 = arith.constant 0 : index
    %c0_44 = arith.constant 0 : index
    %72 = vector.load %arg2[%c10, %c0_43, %c0_44] : memref<14x784x112xbf16, #tpu.memory_space<vmem>>, vector<1x784x112xbf16>
    %73 = vector.shape_cast %72 : vector<1x784x112xbf16> to vector<784x112xbf16>
    %cst_45 = arith.constant dense<0.000000e+00> : vector<8x112xf32>
    %74 = tpu.matmul %0, %73, %cst_45 {dimension_numbers = #tpu.dot_dimension_numbers<[1], [0], [0], [1], [0, 0, 1, 1], [], []>} : vector<8x784xbf16>, vector<784x112xbf16>, vector<8x112xf32> -> vector<8x112xf32>
    %75 = vector.broadcast %1 : vector<1x112xf32> to vector<8x112xf32>
    %76 = arith.addf %74, %75 : vector<8x112xf32>
    %cst_46 = arith.constant 0.000000e+00 : f32
    %77 = vector.broadcast %cst_46 : f32 to vector<8x112xf32>
    %78 = arith.maximumf %76, %77 : vector<8x112xf32>
    %c11 = arith.constant 11 : index
    %c0_47 = arith.constant 0 : index
    %c0_48 = arith.constant 0 : index
    %79 = vector.load %arg2[%c11, %c0_47, %c0_48] : memref<14x784x112xbf16, #tpu.memory_space<vmem>>, vector<1x784x112xbf16>
    %80 = vector.shape_cast %79 : vector<1x784x112xbf16> to vector<784x112xbf16>
    %cst_49 = arith.constant dense<0.000000e+00> : vector<8x112xf32>
    %81 = tpu.matmul %0, %80, %cst_49 {dimension_numbers = #tpu.dot_dimension_numbers<[1], [0], [0], [1], [0, 0, 1, 1], [], []>} : vector<8x784xbf16>, vector<784x112xbf16>, vector<8x112xf32> -> vector<8x112xf32>
    %82 = vector.broadcast %1 : vector<1x112xf32> to vector<8x112xf32>
    %83 = arith.addf %81, %82 : vector<8x112xf32>
    %cst_50 = arith.constant 0.000000e+00 : f32
    %84 = vector.broadcast %cst_50 : f32 to vector<8x112xf32>
    %85 = arith.maximumf %83, %84 : vector<8x112xf32>
    %c12 = arith.constant 12 : index
    %c0_51 = arith.constant 0 : index
    %c0_52 = arith.constant 0 : index
    %86 = vector.load %arg2[%c12, %c0_51, %c0_52] : memref<14x784x112xbf16, #tpu.memory_space<vmem>>, vector<1x784x112xbf16>
    %87 = vector.shape_cast %86 : vector<1x784x112xbf16> to vector<784x112xbf16>
    %cst_53 = arith.constant dense<0.000000e+00> : vector<8x112xf32>
    %88 = tpu.matmul %0, %87, %cst_53 {dimension_numbers = #tpu.dot_dimension_numbers<[1], [0], [0], [1], [0, 0, 1, 1], [], []>} : vector<8x784xbf16>, vector<784x112xbf16>, vector<8x112xf32> -> vector<8x112xf32>
    %89 = vector.broadcast %1 : vector<1x112xf32> to vector<8x112xf32>
    %90 = arith.addf %88, %89 : vector<8x112xf32>
    %cst_54 = arith.constant 0.000000e+00 : f32
    %91 = vector.broadcast %cst_54 : f32 to vector<8x112xf32>
    %92 = arith.maximumf %90, %91 : vector<8x112xf32>
    %c13 = arith.constant 13 : index
    %c0_55 = arith.constant 0 : index
    %c0_56 = arith.constant 0 : index
    %93 = vector.load %arg2[%c13, %c0_55, %c0_56] : memref<14x784x112xbf16, #tpu.memory_space<vmem>>, vector<1x784x112xbf16>
    %94 = vector.shape_cast %93 : vector<1x784x112xbf16> to vector<784x112xbf16>
    %cst_57 = arith.constant dense<0.000000e+00> : vector<8x112xf32>
    %95 = tpu.matmul %0, %94, %cst_57 {dimension_numbers = #tpu.dot_dimension_numbers<[1], [0], [0], [1], [0, 0, 1, 1], [], []>} : vector<8x784xbf16>, vector<784x112xbf16>, vector<8x112xf32> -> vector<8x112xf32>
    %96 = vector.broadcast %1 : vector<1x112xf32> to vector<8x112xf32>
    %97 = arith.addf %95, %96 : vector<8x112xf32>
    %cst_58 = arith.constant 0.000000e+00 : f32
    %98 = vector.broadcast %cst_58 : f32 to vector<8x112xf32>
    %99 = arith.maximumf %97, %98 : vector<8x112xf32>
    %c0_59 = arith.constant 0 : index
    %c0_60 = arith.constant 0 : index
    %100 = vector.load %arg5[%c0_59, %c0_60] : memref<1x112xf32, #tpu.memory_space<vmem>>, vector<1x112xf32>
    %c1_61 = arith.constant 1 : index
    %c0_62 = arith.constant 0 : index
    %c0_63 = arith.constant 0 : index
    %101 = vector.load %arg4[%c1_61, %c0_62, %c0_63] : memref<3x112x112xbf16, #tpu.memory_space<vmem>>, vector<1x112x112xbf16>
    %102 = vector.shape_cast %101 : vector<1x112x112xbf16> to vector<112x112xbf16>
    %103 = arith.truncf %8 : vector<8x112xf32> to vector<8x112xbf16>
    %cst_64 = arith.constant dense<0.000000e+00> : vector<8x112xf32>
    %104 = tpu.matmul %103, %102, %cst_64 {dimension_numbers = #tpu.dot_dimension_numbers<[1], [0], [0], [1], [0, 0, 1, 1], [], []>} : vector<8x112xbf16>, vector<112x112xbf16>, vector<8x112xf32> -> vector<8x112xf32>
    %c2_65 = arith.constant 2 : index
    %c0_66 = arith.constant 0 : index
    %c0_67 = arith.constant 0 : index
    %105 = vector.load %arg4[%c2_65, %c0_66, %c0_67] : memref<3x112x112xbf16, #tpu.memory_space<vmem>>, vector<1x112x112xbf16>
    %106 = vector.shape_cast %105 : vector<1x112x112xbf16> to vector<112x112xbf16>
    %107 = arith.truncf %15 : vector<8x112xf32> to vector<8x112xbf16>
    %cst_68 = arith.constant dense<0.000000e+00> : vector<8x112xf32>
    %108 = tpu.matmul %107, %106, %cst_68 {dimension_numbers = #tpu.dot_dimension_numbers<[1], [0], [0], [1], [0, 0, 1, 1], [], []>} : vector<8x112xbf16>, vector<112x112xbf16>, vector<8x112xf32> -> vector<8x112xf32>
    %109 = arith.addf %104, %108 : vector<8x112xf32>
    %110 = vector.broadcast %100 : vector<1x112xf32> to vector<8x112xf32>
    %111 = arith.addf %109, %110 : vector<8x112xf32>
    %cst_69 = arith.constant 0.000000e+00 : f32
    %112 = vector.broadcast %cst_69 : f32 to vector<8x112xf32>
    %113 = arith.maximumf %111, %112 : vector<8x112xf32>
    %c0_70 = arith.constant 0 : index
    %c0_71 = arith.constant 0 : index
    %c0_72 = arith.constant 0 : index
    %114 = vector.load %arg4[%c0_70, %c0_71, %c0_72] : memref<3x112x112xbf16, #tpu.memory_space<vmem>>, vector<1x112x112xbf16>
    %115 = vector.shape_cast %114 : vector<1x112x112xbf16> to vector<112x112xbf16>
    %116 = arith.truncf %15 : vector<8x112xf32> to vector<8x112xbf16>
    %cst_73 = arith.constant dense<0.000000e+00> : vector<8x112xf32>
    %117 = tpu.matmul %116, %115, %cst_73 {dimension_numbers = #tpu.dot_dimension_numbers<[1], [0], [0], [1], [0, 0, 1, 1], [], []>} : vector<8x112xbf16>, vector<112x112xbf16>, vector<8x112xf32> -> vector<8x112xf32>
    %c1_74 = arith.constant 1 : index
    %c0_75 = arith.constant 0 : index
    %c0_76 = arith.constant 0 : index
    %118 = vector.load %arg4[%c1_74, %c0_75, %c0_76] : memref<3x112x112xbf16, #tpu.memory_space<vmem>>, vector<1x112x112xbf16>
    %119 = vector.shape_cast %118 : vector<1x112x112xbf16> to vector<112x112xbf16>
    %120 = arith.truncf %22 : vector<8x112xf32> to vector<8x112xbf16>
    %cst_77 = arith.constant dense<0.000000e+00> : vector<8x112xf32>
    %121 = tpu.matmul %120, %119, %cst_77 {dimension_numbers = #tpu.dot_dimension_numbers<[1], [0], [0], [1], [0, 0, 1, 1], [], []>} : vector<8x112xbf16>, vector<112x112xbf16>, vector<8x112xf32> -> vector<8x112xf32>
    %122 = arith.addf %117, %121 : vector<8x112xf32>
    %c2_78 = arith.constant 2 : index
    %c0_79 = arith.constant 0 : index
    %c0_80 = arith.constant 0 : index
    %123 = vector.load %arg4[%c2_78, %c0_79, %c0_80] : memref<3x112x112xbf16, #tpu.memory_space<vmem>>, vector<1x112x112xbf16>
    %124 = vector.shape_cast %123 : vector<1x112x112xbf16> to vector<112x112xbf16>
    %125 = arith.truncf %29 : vector<8x112xf32> to vector<8x112xbf16>
    %cst_81 = arith.constant dense<0.000000e+00> : vector<8x112xf32>
    %126 = tpu.matmul %125, %124, %cst_81 {dimension_numbers = #tpu.dot_dimension_numbers<[1], [0], [0], [1], [0, 0, 1, 1], [], []>} : vector<8x112xbf16>, vector<112x112xbf16>, vector<8x112xf32> -> vector<8x112xf32>
    %127 = arith.addf %122, %126 : vector<8x112xf32>
    %128 = vector.broadcast %100 : vector<1x112xf32> to vector<8x112xf32>
    %129 = arith.addf %127, %128 : vector<8x112xf32>
    %cst_82 = arith.constant 0.000000e+00 : f32
    %130 = vector.broadcast %cst_82 : f32 to vector<8x112xf32>
    %131 = arith.maximumf %129, %130 : vector<8x112xf32>
    %c0_83 = arith.constant 0 : index
    %c0_84 = arith.constant 0 : index
    %c0_85 = arith.constant 0 : index
    %132 = vector.load %arg4[%c0_83, %c0_84, %c0_85] : memref<3x112x112xbf16, #tpu.memory_space<vmem>>, vector<1x112x112xbf16>
    %133 = vector.shape_cast %132 : vector<1x112x112xbf16> to vector<112x112xbf16>
    %134 = arith.truncf %29 : vector<8x112xf32> to vector<8x112xbf16>
    %cst_86 = arith.constant dense<0.000000e+00> : vector<8x112xf32>
    %135 = tpu.matmul %134, %133, %cst_86 {dimension_numbers = #tpu.dot_dimension_numbers<[1], [0], [0], [1], [0, 0, 1, 1], [], []>} : vector<8x112xbf16>, vector<112x112xbf16>, vector<8x112xf32> -> vector<8x112xf32>
    %c1_87 = arith.constant 1 : index
    %c0_88 = arith.constant 0 : index
    %c0_89 = arith.constant 0 : index
    %136 = vector.load %arg4[%c1_87, %c0_88, %c0_89] : memref<3x112x112xbf16, #tpu.memory_space<vmem>>, vector<1x112x112xbf16>
    %137 = vector.shape_cast %136 : vector<1x112x112xbf16> to vector<112x112xbf16>
    %138 = arith.truncf %36 : vector<8x112xf32> to vector<8x112xbf16>
    %cst_90 = arith.constant dense<0.000000e+00> : vector<8x112xf32>
    %139 = tpu.matmul %138, %137, %cst_90 {dimension_numbers = #tpu.dot_dimension_numbers<[1], [0], [0], [1], [0, 0, 1, 1], [], []>} : vector<8x112xbf16>, vector<112x112xbf16>, vector<8x112xf32> -> vector<8x112xf32>
    %140 = arith.addf %135, %139 : vector<8x112xf32>
    %c2_91 = arith.constant 2 : index
    %c0_92 = arith.constant 0 : index
    %c0_93 = arith.constant 0 : index
    %141 = vector.load %arg4[%c2_91, %c0_92, %c0_93] : memref<3x112x112xbf16, #tpu.memory_space<vmem>>, vector<1x112x112xbf16>
    %142 = vector.shape_cast %141 : vector<1x112x112xbf16> to vector<112x112xbf16>
    %143 = arith.truncf %43 : vector<8x112xf32> to vector<8x112xbf16>
    %cst_94 = arith.constant dense<0.000000e+00> : vector<8x112xf32>
    %144 = tpu.matmul %143, %142, %cst_94 {dimension_numbers = #tpu.dot_dimension_numbers<[1], [0], [0], [1], [0, 0, 1, 1], [], []>} : vector<8x112xbf16>, vector<112x112xbf16>, vector<8x112xf32> -> vector<8x112xf32>
    %145 = arith.addf %140, %144 : vector<8x112xf32>
    %146 = vector.broadcast %100 : vector<1x112xf32> to vector<8x112xf32>
    %147 = arith.addf %145, %146 : vector<8x112xf32>
    %cst_95 = arith.constant 0.000000e+00 : f32
    %148 = vector.broadcast %cst_95 : f32 to vector<8x112xf32>
    %149 = arith.maximumf %147, %148 : vector<8x112xf32>
    %c0_96 = arith.constant 0 : index
    %c0_97 = arith.constant 0 : index
    %c0_98 = arith.constant 0 : index
    %150 = vector.load %arg4[%c0_96, %c0_97, %c0_98] : memref<3x112x112xbf16, #tpu.memory_space<vmem>>, vector<1x112x112xbf16>
    %151 = vector.shape_cast %150 : vector<1x112x112xbf16> to vector<112x112xbf16>
    %152 = arith.truncf %43 : vector<8x112xf32> to vector<8x112xbf16>
    %cst_99 = arith.constant dense<0.000000e+00> : vector<8x112xf32>
    %153 = tpu.matmul %152, %151, %cst_99 {dimension_numbers = #tpu.dot_dimension_numbers<[1], [0], [0], [1], [0, 0, 1, 1], [], []>} : vector<8x112xbf16>, vector<112x112xbf16>, vector<8x112xf32> -> vector<8x112xf32>
    %c1_100 = arith.constant 1 : index
    %c0_101 = arith.constant 0 : index
    %c0_102 = arith.constant 0 : index
    %154 = vector.load %arg4[%c1_100, %c0_101, %c0_102] : memref<3x112x112xbf16, #tpu.memory_space<vmem>>, vector<1x112x112xbf16>
    %155 = vector.shape_cast %154 : vector<1x112x112xbf16> to vector<112x112xbf16>
    %156 = arith.truncf %50 : vector<8x112xf32> to vector<8x112xbf16>
    %cst_103 = arith.constant dense<0.000000e+00> : vector<8x112xf32>
    %157 = tpu.matmul %156, %155, %cst_103 {dimension_numbers = #tpu.dot_dimension_numbers<[1], [0], [0], [1], [0, 0, 1, 1], [], []>} : vector<8x112xbf16>, vector<112x112xbf16>, vector<8x112xf32> -> vector<8x112xf32>
    %158 = arith.addf %153, %157 : vector<8x112xf32>
    %c2_104 = arith.constant 2 : index
    %c0_105 = arith.constant 0 : index
    %c0_106 = arith.constant 0 : index
    %159 = vector.load %arg4[%c2_104, %c0_105, %c0_106] : memref<3x112x112xbf16, #tpu.memory_space<vmem>>, vector<1x112x112xbf16>
    %160 = vector.shape_cast %159 : vector<1x112x112xbf16> to vector<112x112xbf16>
    %161 = arith.truncf %57 : vector<8x112xf32> to vector<8x112xbf16>
    %cst_107 = arith.constant dense<0.000000e+00> : vector<8x112xf32>
    %162 = tpu.matmul %161, %160, %cst_107 {dimension_numbers = #tpu.dot_dimension_numbers<[1], [0], [0], [1], [0, 0, 1, 1], [], []>} : vector<8x112xbf16>, vector<112x112xbf16>, vector<8x112xf32> -> vector<8x112xf32>
    %163 = arith.addf %158, %162 : vector<8x112xf32>
    %164 = vector.broadcast %100 : vector<1x112xf32> to vector<8x112xf32>
    %165 = arith.addf %163, %164 : vector<8x112xf32>
    %cst_108 = arith.constant 0.000000e+00 : f32
    %166 = vector.broadcast %cst_108 : f32 to vector<8x112xf32>
    %167 = arith.maximumf %165, %166 : vector<8x112xf32>
    %c0_109 = arith.constant 0 : index
    %c0_110 = arith.constant 0 : index
    %c0_111 = arith.constant 0 : index
    %168 = vector.load %arg4[%c0_109, %c0_110, %c0_111] : memref<3x112x112xbf16, #tpu.memory_space<vmem>>, vector<1x112x112xbf16>
    %169 = vector.shape_cast %168 : vector<1x112x112xbf16> to vector<112x112xbf16>
    %170 = arith.truncf %57 : vector<8x112xf32> to vector<8x112xbf16>
    %cst_112 = arith.constant dense<0.000000e+00> : vector<8x112xf32>
    %171 = tpu.matmul %170, %169, %cst_112 {dimension_numbers = #tpu.dot_dimension_numbers<[1], [0], [0], [1], [0, 0, 1, 1], [], []>} : vector<8x112xbf16>, vector<112x112xbf16>, vector<8x112xf32> -> vector<8x112xf32>
    %c1_113 = arith.constant 1 : index
    %c0_114 = arith.constant 0 : index
    %c0_115 = arith.constant 0 : index
    %172 = vector.load %arg4[%c1_113, %c0_114, %c0_115] : memref<3x112x112xbf16, #tpu.memory_space<vmem>>, vector<1x112x112xbf16>
    %173 = vector.shape_cast %172 : vector<1x112x112xbf16> to vector<112x112xbf16>
    %174 = arith.truncf %64 : vector<8x112xf32> to vector<8x112xbf16>
    %cst_116 = arith.constant dense<0.000000e+00> : vector<8x112xf32>
    %175 = tpu.matmul %174, %173, %cst_116 {dimension_numbers = #tpu.dot_dimension_numbers<[1], [0], [0], [1], [0, 0, 1, 1], [], []>} : vector<8x112xbf16>, vector<112x112xbf16>, vector<8x112xf32> -> vector<8x112xf32>
    %176 = arith.addf %171, %175 : vector<8x112xf32>
    %c2_117 = arith.constant 2 : index
    %c0_118 = arith.constant 0 : index
    %c0_119 = arith.constant 0 : index
    %177 = vector.load %arg4[%c2_117, %c0_118, %c0_119] : memref<3x112x112xbf16, #tpu.memory_space<vmem>>, vector<1x112x112xbf16>
    %178 = vector.shape_cast %177 : vector<1x112x112xbf16> to vector<112x112xbf16>
    %179 = arith.truncf %71 : vector<8x112xf32> to vector<8x112xbf16>
    %cst_120 = arith.constant dense<0.000000e+00> : vector<8x112xf32>
    %180 = tpu.matmul %179, %178, %cst_120 {dimension_numbers = #tpu.dot_dimension_numbers<[1], [0], [0], [1], [0, 0, 1, 1], [], []>} : vector<8x112xbf16>, vector<112x112xbf16>, vector<8x112xf32> -> vector<8x112xf32>
    %181 = arith.addf %176, %180 : vector<8x112xf32>
    %182 = vector.broadcast %100 : vector<1x112xf32> to vector<8x112xf32>
    %183 = arith.addf %181, %182 : vector<8x112xf32>
    %cst_121 = arith.constant 0.000000e+00 : f32
    %184 = vector.broadcast %cst_121 : f32 to vector<8x112xf32>
    %185 = arith.maximumf %183, %184 : vector<8x112xf32>
    %c0_122 = arith.constant 0 : index
    %c0_123 = arith.constant 0 : index
    %c0_124 = arith.constant 0 : index
    %186 = vector.load %arg4[%c0_122, %c0_123, %c0_124] : memref<3x112x112xbf16, #tpu.memory_space<vmem>>, vector<1x112x112xbf16>
    %187 = vector.shape_cast %186 : vector<1x112x112xbf16> to vector<112x112xbf16>
    %188 = arith.truncf %71 : vector<8x112xf32> to vector<8x112xbf16>
    %cst_125 = arith.constant dense<0.000000e+00> : vector<8x112xf32>
    %189 = tpu.matmul %188, %187, %cst_125 {dimension_numbers = #tpu.dot_dimension_numbers<[1], [0], [0], [1], [0, 0, 1, 1], [], []>} : vector<8x112xbf16>, vector<112x112xbf16>, vector<8x112xf32> -> vector<8x112xf32>
    %c1_126 = arith.constant 1 : index
    %c0_127 = arith.constant 0 : index
    %c0_128 = arith.constant 0 : index
    %190 = vector.load %arg4[%c1_126, %c0_127, %c0_128] : memref<3x112x112xbf16, #tpu.memory_space<vmem>>, vector<1x112x112xbf16>
    %191 = vector.shape_cast %190 : vector<1x112x112xbf16> to vector<112x112xbf16>
    %192 = arith.truncf %78 : vector<8x112xf32> to vector<8x112xbf16>
    %cst_129 = arith.constant dense<0.000000e+00> : vector<8x112xf32>
    %193 = tpu.matmul %192, %191, %cst_129 {dimension_numbers = #tpu.dot_dimension_numbers<[1], [0], [0], [1], [0, 0, 1, 1], [], []>} : vector<8x112xbf16>, vector<112x112xbf16>, vector<8x112xf32> -> vector<8x112xf32>
    %194 = arith.addf %189, %193 : vector<8x112xf32>
    %c2_130 = arith.constant 2 : index
    %c0_131 = arith.constant 0 : index
    %c0_132 = arith.constant 0 : index
    %195 = vector.load %arg4[%c2_130, %c0_131, %c0_132] : memref<3x112x112xbf16, #tpu.memory_space<vmem>>, vector<1x112x112xbf16>
    %196 = vector.shape_cast %195 : vector<1x112x112xbf16> to vector<112x112xbf16>
    %197 = arith.truncf %85 : vector<8x112xf32> to vector<8x112xbf16>
    %cst_133 = arith.constant dense<0.000000e+00> : vector<8x112xf32>
    %198 = tpu.matmul %197, %196, %cst_133 {dimension_numbers = #tpu.dot_dimension_numbers<[1], [0], [0], [1], [0, 0, 1, 1], [], []>} : vector<8x112xbf16>, vector<112x112xbf16>, vector<8x112xf32> -> vector<8x112xf32>
    %199 = arith.addf %194, %198 : vector<8x112xf32>
    %200 = vector.broadcast %100 : vector<1x112xf32> to vector<8x112xf32>
    %201 = arith.addf %199, %200 : vector<8x112xf32>
    %cst_134 = arith.constant 0.000000e+00 : f32
    %202 = vector.broadcast %cst_134 : f32 to vector<8x112xf32>
    %203 = arith.maximumf %201, %202 : vector<8x112xf32>
    %c0_135 = arith.constant 0 : index
    %c0_136 = arith.constant 0 : index
    %c0_137 = arith.constant 0 : index
    %204 = vector.load %arg4[%c0_135, %c0_136, %c0_137] : memref<3x112x112xbf16, #tpu.memory_space<vmem>>, vector<1x112x112xbf16>
    %205 = vector.shape_cast %204 : vector<1x112x112xbf16> to vector<112x112xbf16>
    %206 = arith.truncf %85 : vector<8x112xf32> to vector<8x112xbf16>
    %cst_138 = arith.constant dense<0.000000e+00> : vector<8x112xf32>
    %207 = tpu.matmul %206, %205, %cst_138 {dimension_numbers = #tpu.dot_dimension_numbers<[1], [0], [0], [1], [0, 0, 1, 1], [], []>} : vector<8x112xbf16>, vector<112x112xbf16>, vector<8x112xf32> -> vector<8x112xf32>
    %c1_139 = arith.constant 1 : index
    %c0_140 = arith.constant 0 : index
    %c0_141 = arith.constant 0 : index
    %208 = vector.load %arg4[%c1_139, %c0_140, %c0_141] : memref<3x112x112xbf16, #tpu.memory_space<vmem>>, vector<1x112x112xbf16>
    %209 = vector.shape_cast %208 : vector<1x112x112xbf16> to vector<112x112xbf16>
    %210 = arith.truncf %92 : vector<8x112xf32> to vector<8x112xbf16>
    %cst_142 = arith.constant dense<0.000000e+00> : vector<8x112xf32>
    %211 = tpu.matmul %210, %209, %cst_142 {dimension_numbers = #tpu.dot_dimension_numbers<[1], [0], [0], [1], [0, 0, 1, 1], [], []>} : vector<8x112xbf16>, vector<112x112xbf16>, vector<8x112xf32> -> vector<8x112xf32>
    %212 = arith.addf %207, %211 : vector<8x112xf32>
    %c2_143 = arith.constant 2 : index
    %c0_144 = arith.constant 0 : index
    %c0_145 = arith.constant 0 : index
    %213 = vector.load %arg4[%c2_143, %c0_144, %c0_145] : memref<3x112x112xbf16, #tpu.memory_space<vmem>>, vector<1x112x112xbf16>
    %214 = vector.shape_cast %213 : vector<1x112x112xbf16> to vector<112x112xbf16>
    %215 = arith.truncf %99 : vector<8x112xf32> to vector<8x112xbf16>
    %cst_146 = arith.constant dense<0.000000e+00> : vector<8x112xf32>
    %216 = tpu.matmul %215, %214, %cst_146 {dimension_numbers = #tpu.dot_dimension_numbers<[1], [0], [0], [1], [0, 0, 1, 1], [], []>} : vector<8x112xbf16>, vector<112x112xbf16>, vector<8x112xf32> -> vector<8x112xf32>
    %217 = arith.addf %212, %216 : vector<8x112xf32>
    %218 = vector.broadcast %100 : vector<1x112xf32> to vector<8x112xf32>
    %219 = arith.addf %217, %218 : vector<8x112xf32>
    %cst_147 = arith.constant 0.000000e+00 : f32
    %220 = vector.broadcast %cst_147 : f32 to vector<8x112xf32>
    %221 = arith.maximumf %219, %220 : vector<8x112xf32>
    %c0_148 = arith.constant 0 : index
    %c0_149 = arith.constant 0 : index
    %222 = vector.load %arg7[%c0_148, %c0_149] : memref<1x96xf32, #tpu.memory_space<vmem>>, vector<1x96xf32>
    %c0_150 = arith.constant 0 : index
    %c0_151 = arith.constant 0 : index
    %c0_152 = arith.constant 0 : index
    %223 = vector.load %arg6[%c0_150, %c0_151, %c0_152] : memref<3x112x96xbf16, #tpu.memory_space<vmem>>, vector<1x112x96xbf16>
    %224 = vector.shape_cast %223 : vector<1x112x96xbf16> to vector<112x96xbf16>
    %225 = arith.truncf %113 : vector<8x112xf32> to vector<8x112xbf16>
    %cst_153 = arith.constant dense<0.000000e+00> : vector<8x96xf32>
    %226 = tpu.matmul %225, %224, %cst_153 {dimension_numbers = #tpu.dot_dimension_numbers<[1], [0], [0], [1], [0, 0, 1, 1], [], []>} : vector<8x112xbf16>, vector<112x96xbf16>, vector<8x96xf32> -> vector<8x96xf32>
    %c1_154 = arith.constant 1 : index
    %c0_155 = arith.constant 0 : index
    %c0_156 = arith.constant 0 : index
    %227 = vector.load %arg6[%c1_154, %c0_155, %c0_156] : memref<3x112x96xbf16, #tpu.memory_space<vmem>>, vector<1x112x96xbf16>
    %228 = vector.shape_cast %227 : vector<1x112x96xbf16> to vector<112x96xbf16>
    %229 = arith.truncf %131 : vector<8x112xf32> to vector<8x112xbf16>
    %cst_157 = arith.constant dense<0.000000e+00> : vector<8x96xf32>
    %230 = tpu.matmul %229, %228, %cst_157 {dimension_numbers = #tpu.dot_dimension_numbers<[1], [0], [0], [1], [0, 0, 1, 1], [], []>} : vector<8x112xbf16>, vector<112x96xbf16>, vector<8x96xf32> -> vector<8x96xf32>
    %231 = arith.addf %226, %230 : vector<8x96xf32>
    %c2_158 = arith.constant 2 : index
    %c0_159 = arith.constant 0 : index
    %c0_160 = arith.constant 0 : index
    %232 = vector.load %arg6[%c2_158, %c0_159, %c0_160] : memref<3x112x96xbf16, #tpu.memory_space<vmem>>, vector<1x112x96xbf16>
    %233 = vector.shape_cast %232 : vector<1x112x96xbf16> to vector<112x96xbf16>
    %234 = arith.truncf %149 : vector<8x112xf32> to vector<8x112xbf16>
    %cst_161 = arith.constant dense<0.000000e+00> : vector<8x96xf32>
    %235 = tpu.matmul %234, %233, %cst_161 {dimension_numbers = #tpu.dot_dimension_numbers<[1], [0], [0], [1], [0, 0, 1, 1], [], []>} : vector<8x112xbf16>, vector<112x96xbf16>, vector<8x96xf32> -> vector<8x96xf32>
    %236 = arith.addf %231, %235 : vector<8x96xf32>
    %237 = vector.broadcast %222 : vector<1x96xf32> to vector<8x96xf32>
    %238 = arith.addf %236, %237 : vector<8x96xf32>
    %cst_162 = arith.constant 0.000000e+00 : f32
    %239 = vector.broadcast %cst_162 : f32 to vector<8x96xf32>
    %240 = arith.maximumf %238, %239 : vector<8x96xf32>
    %c0_163 = arith.constant 0 : index
    %c0_164 = arith.constant 0 : index
    %c0_165 = arith.constant 0 : index
    %241 = vector.load %arg6[%c0_163, %c0_164, %c0_165] : memref<3x112x96xbf16, #tpu.memory_space<vmem>>, vector<1x112x96xbf16>
    %242 = vector.shape_cast %241 : vector<1x112x96xbf16> to vector<112x96xbf16>
    %243 = arith.truncf %149 : vector<8x112xf32> to vector<8x112xbf16>
    %cst_166 = arith.constant dense<0.000000e+00> : vector<8x96xf32>
    %244 = tpu.matmul %243, %242, %cst_166 {dimension_numbers = #tpu.dot_dimension_numbers<[1], [0], [0], [1], [0, 0, 1, 1], [], []>} : vector<8x112xbf16>, vector<112x96xbf16>, vector<8x96xf32> -> vector<8x96xf32>
    %c1_167 = arith.constant 1 : index
    %c0_168 = arith.constant 0 : index
    %c0_169 = arith.constant 0 : index
    %245 = vector.load %arg6[%c1_167, %c0_168, %c0_169] : memref<3x112x96xbf16, #tpu.memory_space<vmem>>, vector<1x112x96xbf16>
    %246 = vector.shape_cast %245 : vector<1x112x96xbf16> to vector<112x96xbf16>
    %247 = arith.truncf %167 : vector<8x112xf32> to vector<8x112xbf16>
    %cst_170 = arith.constant dense<0.000000e+00> : vector<8x96xf32>
    %248 = tpu.matmul %247, %246, %cst_170 {dimension_numbers = #tpu.dot_dimension_numbers<[1], [0], [0], [1], [0, 0, 1, 1], [], []>} : vector<8x112xbf16>, vector<112x96xbf16>, vector<8x96xf32> -> vector<8x96xf32>
    %249 = arith.addf %244, %248 : vector<8x96xf32>
    %c2_171 = arith.constant 2 : index
    %c0_172 = arith.constant 0 : index
    %c0_173 = arith.constant 0 : index
    %250 = vector.load %arg6[%c2_171, %c0_172, %c0_173] : memref<3x112x96xbf16, #tpu.memory_space<vmem>>, vector<1x112x96xbf16>
    %251 = vector.shape_cast %250 : vector<1x112x96xbf16> to vector<112x96xbf16>
    %252 = arith.truncf %185 : vector<8x112xf32> to vector<8x112xbf16>
    %cst_174 = arith.constant dense<0.000000e+00> : vector<8x96xf32>
    %253 = tpu.matmul %252, %251, %cst_174 {dimension_numbers = #tpu.dot_dimension_numbers<[1], [0], [0], [1], [0, 0, 1, 1], [], []>} : vector<8x112xbf16>, vector<112x96xbf16>, vector<8x96xf32> -> vector<8x96xf32>
    %254 = arith.addf %249, %253 : vector<8x96xf32>
    %255 = vector.broadcast %222 : vector<1x96xf32> to vector<8x96xf32>
    %256 = arith.addf %254, %255 : vector<8x96xf32>
    %cst_175 = arith.constant 0.000000e+00 : f32
    %257 = vector.broadcast %cst_175 : f32 to vector<8x96xf32>
    %258 = arith.maximumf %256, %257 : vector<8x96xf32>
    %c0_176 = arith.constant 0 : index
    %c0_177 = arith.constant 0 : index
    %c0_178 = arith.constant 0 : index
    %259 = vector.load %arg6[%c0_176, %c0_177, %c0_178] : memref<3x112x96xbf16, #tpu.memory_space<vmem>>, vector<1x112x96xbf16>
    %260 = vector.shape_cast %259 : vector<1x112x96xbf16> to vector<112x96xbf16>
    %261 = arith.truncf %185 : vector<8x112xf32> to vector<8x112xbf16>
    %cst_179 = arith.constant dense<0.000000e+00> : vector<8x96xf32>
    %262 = tpu.matmul %261, %260, %cst_179 {dimension_numbers = #tpu.dot_dimension_numbers<[1], [0], [0], [1], [0, 0, 1, 1], [], []>} : vector<8x112xbf16>, vector<112x96xbf16>, vector<8x96xf32> -> vector<8x96xf32>
    %c1_180 = arith.constant 1 : index
    %c0_181 = arith.constant 0 : index
    %c0_182 = arith.constant 0 : index
    %263 = vector.load %arg6[%c1_180, %c0_181, %c0_182] : memref<3x112x96xbf16, #tpu.memory_space<vmem>>, vector<1x112x96xbf16>
    %264 = vector.shape_cast %263 : vector<1x112x96xbf16> to vector<112x96xbf16>
    %265 = arith.truncf %203 : vector<8x112xf32> to vector<8x112xbf16>
    %cst_183 = arith.constant dense<0.000000e+00> : vector<8x96xf32>
    %266 = tpu.matmul %265, %264, %cst_183 {dimension_numbers = #tpu.dot_dimension_numbers<[1], [0], [0], [1], [0, 0, 1, 1], [], []>} : vector<8x112xbf16>, vector<112x96xbf16>, vector<8x96xf32> -> vector<8x96xf32>
    %267 = arith.addf %262, %266 : vector<8x96xf32>
    %c2_184 = arith.constant 2 : index
    %c0_185 = arith.constant 0 : index
    %c0_186 = arith.constant 0 : index
    %268 = vector.load %arg6[%c2_184, %c0_185, %c0_186] : memref<3x112x96xbf16, #tpu.memory_space<vmem>>, vector<1x112x96xbf16>
    %269 = vector.shape_cast %268 : vector<1x112x96xbf16> to vector<112x96xbf16>
    %270 = arith.truncf %221 : vector<8x112xf32> to vector<8x112xbf16>
    %cst_187 = arith.constant dense<0.000000e+00> : vector<8x96xf32>
    %271 = tpu.matmul %270, %269, %cst_187 {dimension_numbers = #tpu.dot_dimension_numbers<[1], [0], [0], [1], [0, 0, 1, 1], [], []>} : vector<8x112xbf16>, vector<112x96xbf16>, vector<8x96xf32> -> vector<8x96xf32>
    %272 = arith.addf %267, %271 : vector<8x96xf32>
    %273 = vector.broadcast %222 : vector<1x96xf32> to vector<8x96xf32>
    %274 = arith.addf %272, %273 : vector<8x96xf32>
    %cst_188 = arith.constant 0.000000e+00 : f32
    %275 = vector.broadcast %cst_188 : f32 to vector<8x96xf32>
    %276 = arith.maximumf %274, %275 : vector<8x96xf32>
    %c0_189 = arith.constant 0 : index
    %c0_190 = arith.constant 0 : index
    %c0_191 = arith.constant 0 : index
    %277 = vector.load %arg8[%c0_189, %c0_190, %c0_191] : memref<3x96x64xbf16, #tpu.memory_space<vmem>>, vector<1x96x64xbf16>
    %278 = vector.shape_cast %277 : vector<1x96x64xbf16> to vector<96x64xbf16>
    %279 = arith.truncf %240 : vector<8x96xf32> to vector<8x96xbf16>
    %cst_192 = arith.constant dense<0.000000e+00> : vector<8x64xf32>
    %280 = tpu.matmul %279, %278, %cst_192 {dimension_numbers = #tpu.dot_dimension_numbers<[1], [0], [0], [1], [0, 0, 1, 1], [], []>} : vector<8x96xbf16>, vector<96x64xbf16>, vector<8x64xf32> -> vector<8x64xf32>
    %c1_193 = arith.constant 1 : index
    %c0_194 = arith.constant 0 : index
    %c0_195 = arith.constant 0 : index
    %281 = vector.load %arg8[%c1_193, %c0_194, %c0_195] : memref<3x96x64xbf16, #tpu.memory_space<vmem>>, vector<1x96x64xbf16>
    %282 = vector.shape_cast %281 : vector<1x96x64xbf16> to vector<96x64xbf16>
    %283 = arith.truncf %258 : vector<8x96xf32> to vector<8x96xbf16>
    %cst_196 = arith.constant dense<0.000000e+00> : vector<8x64xf32>
    %284 = tpu.matmul %283, %282, %cst_196 {dimension_numbers = #tpu.dot_dimension_numbers<[1], [0], [0], [1], [0, 0, 1, 1], [], []>} : vector<8x96xbf16>, vector<96x64xbf16>, vector<8x64xf32> -> vector<8x64xf32>
    %285 = arith.addf %280, %284 : vector<8x64xf32>
    %c2_197 = arith.constant 2 : index
    %c0_198 = arith.constant 0 : index
    %c0_199 = arith.constant 0 : index
    %286 = vector.load %arg8[%c2_197, %c0_198, %c0_199] : memref<3x96x64xbf16, #tpu.memory_space<vmem>>, vector<1x96x64xbf16>
    %287 = vector.shape_cast %286 : vector<1x96x64xbf16> to vector<96x64xbf16>
    %288 = arith.truncf %276 : vector<8x96xf32> to vector<8x96xbf16>
    %cst_200 = arith.constant dense<0.000000e+00> : vector<8x64xf32>
    %289 = tpu.matmul %288, %287, %cst_200 {dimension_numbers = #tpu.dot_dimension_numbers<[1], [0], [0], [1], [0, 0, 1, 1], [], []>} : vector<8x96xbf16>, vector<96x64xbf16>, vector<8x64xf32> -> vector<8x64xf32>
    %290 = arith.addf %285, %289 : vector<8x64xf32>
    %c0_201 = arith.constant 0 : index
    %c0_202 = arith.constant 0 : index
    %291 = vector.load %arg9[%c0_201, %c0_202] : memref<1x64xf32, #tpu.memory_space<vmem>>, vector<1x64xf32>
    %292 = vector.broadcast %291 : vector<1x64xf32> to vector<8x64xf32>
    %293 = arith.addf %290, %292 : vector<8x64xf32>
    %cst_203 = arith.constant 0.000000e+00 : f32
    %294 = vector.broadcast %cst_203 : f32 to vector<8x64xf32>
    %295 = arith.maximumf %293, %294 : vector<8x64xf32>
    %c0_204 = arith.constant 0 : index
    %c0_205 = arith.constant 0 : index
    %296 = vector.load %arg10[%c0_204, %c0_205] : memref<64x64xbf16, #tpu.memory_space<vmem>>, vector<64x64xbf16>
    %297 = arith.truncf %295 : vector<8x64xf32> to vector<8x64xbf16>
    %cst_206 = arith.constant dense<0.000000e+00> : vector<8x64xf32>
    %298 = tpu.matmul %297, %296, %cst_206 {dimension_numbers = #tpu.dot_dimension_numbers<[1], [0], [0], [1], [0, 0, 1, 1], [], []>} : vector<8x64xbf16>, vector<64x64xbf16>, vector<8x64xf32> -> vector<8x64xf32>
    %c0_207 = arith.constant 0 : index
    %c0_208 = arith.constant 0 : index
    %299 = vector.load %arg11[%c0_207, %c0_208] : memref<1x64xf32, #tpu.memory_space<vmem>>, vector<1x64xf32>
    %300 = vector.broadcast %299 : vector<1x64xf32> to vector<8x64xf32>
    %301 = arith.addf %298, %300 : vector<8x64xf32>
    %cst_209 = arith.constant 0.000000e+00 : f32
    %302 = vector.broadcast %cst_209 : f32 to vector<8x64xf32>
    %303 = arith.maximumf %301, %302 : vector<8x64xf32>
    %c0_210 = arith.constant 0 : index
    %c0_211 = arith.constant 0 : index
    %c0_212 = arith.constant 0 : index
    %304 = vector.load %arg12[%c0_210, %c0_211, %c0_212] : memref<3x64x96xbf16, #tpu.memory_space<vmem>>, vector<1x64x96xbf16>
    %305 = vector.shape_cast %304 : vector<1x64x96xbf16> to vector<64x96xbf16>
    %306 = arith.truncf %303 : vector<8x64xf32> to vector<8x64xbf16>
    %cst_213 = arith.constant dense<0.000000e+00> : vector<8x96xf32>
    %307 = tpu.matmul %306, %305, %cst_213 {dimension_numbers = #tpu.dot_dimension_numbers<[1], [0], [0], [1], [0, 0, 1, 1], [], []>} : vector<8x64xbf16>, vector<64x96xbf16>, vector<8x96xf32> -> vector<8x96xf32>
    %c0_214 = arith.constant 0 : index
    %c0_215 = arith.constant 0 : index
    %c0_216 = arith.constant 0 : index
    %308 = vector.load %arg13[%c0_214, %c0_215, %c0_216] : memref<3x1x96xf32, #tpu.memory_space<vmem>>, vector<1x1x96xf32>
    %309 = vector.shape_cast %308 : vector<1x1x96xf32> to vector<1x96xf32>
    %310 = vector.broadcast %309 : vector<1x96xf32> to vector<8x96xf32>
    %311 = arith.addf %307, %310 : vector<8x96xf32>
    %cst_217 = arith.constant 0.000000e+00 : f32
    %312 = vector.broadcast %cst_217 : f32 to vector<8x96xf32>
    %313 = arith.maximumf %311, %312 : vector<8x96xf32>
    %c1_218 = arith.constant 1 : index
    %c0_219 = arith.constant 0 : index
    %c0_220 = arith.constant 0 : index
    %314 = vector.load %arg12[%c1_218, %c0_219, %c0_220] : memref<3x64x96xbf16, #tpu.memory_space<vmem>>, vector<1x64x96xbf16>
    %315 = vector.shape_cast %314 : vector<1x64x96xbf16> to vector<64x96xbf16>
    %316 = arith.truncf %303 : vector<8x64xf32> to vector<8x64xbf16>
    %cst_221 = arith.constant dense<0.000000e+00> : vector<8x96xf32>
    %317 = tpu.matmul %316, %315, %cst_221 {dimension_numbers = #tpu.dot_dimension_numbers<[1], [0], [0], [1], [0, 0, 1, 1], [], []>} : vector<8x64xbf16>, vector<64x96xbf16>, vector<8x96xf32> -> vector<8x96xf32>
    %c1_222 = arith.constant 1 : index
    %c0_223 = arith.constant 0 : index
    %c0_224 = arith.constant 0 : index
    %318 = vector.load %arg13[%c1_222, %c0_223, %c0_224] : memref<3x1x96xf32, #tpu.memory_space<vmem>>, vector<1x1x96xf32>
    %319 = vector.shape_cast %318 : vector<1x1x96xf32> to vector<1x96xf32>
    %320 = vector.broadcast %319 : vector<1x96xf32> to vector<8x96xf32>
    %321 = arith.addf %317, %320 : vector<8x96xf32>
    %cst_225 = arith.constant 0.000000e+00 : f32
    %322 = vector.broadcast %cst_225 : f32 to vector<8x96xf32>
    %323 = arith.maximumf %321, %322 : vector<8x96xf32>
    %c2_226 = arith.constant 2 : index
    %c0_227 = arith.constant 0 : index
    %c0_228 = arith.constant 0 : index
    %324 = vector.load %arg12[%c2_226, %c0_227, %c0_228] : memref<3x64x96xbf16, #tpu.memory_space<vmem>>, vector<1x64x96xbf16>
    %325 = vector.shape_cast %324 : vector<1x64x96xbf16> to vector<64x96xbf16>
    %326 = arith.truncf %303 : vector<8x64xf32> to vector<8x64xbf16>
    %cst_229 = arith.constant dense<0.000000e+00> : vector<8x96xf32>
    %327 = tpu.matmul %326, %325, %cst_229 {dimension_numbers = #tpu.dot_dimension_numbers<[1], [0], [0], [1], [0, 0, 1, 1], [], []>} : vector<8x64xbf16>, vector<64x96xbf16>, vector<8x96xf32> -> vector<8x96xf32>
    %c2_230 = arith.constant 2 : index
    %c0_231 = arith.constant 0 : index
    %c0_232 = arith.constant 0 : index
    %328 = vector.load %arg13[%c2_230, %c0_231, %c0_232] : memref<3x1x96xf32, #tpu.memory_space<vmem>>, vector<1x1x96xf32>
    %329 = vector.shape_cast %328 : vector<1x1x96xf32> to vector<1x96xf32>
    %330 = vector.broadcast %329 : vector<1x96xf32> to vector<8x96xf32>
    %331 = arith.addf %327, %330 : vector<8x96xf32>
    %cst_233 = arith.constant 0.000000e+00 : f32
    %332 = vector.broadcast %cst_233 : f32 to vector<8x96xf32>
    %333 = arith.maximumf %331, %332 : vector<8x96xf32>
    %c0_234 = arith.constant 0 : index
    %c0_235 = arith.constant 0 : index
    %334 = vector.load %arg15[%c0_234, %c0_235] : memref<1x112xf32, #tpu.memory_space<vmem>>, vector<1x112xf32>
    %c0_236 = arith.constant 0 : index
    %c0_237 = arith.constant 0 : index
    %c0_238 = arith.constant 0 : index
    %335 = vector.load %arg14[%c0_236, %c0_237, %c0_238] : memref<3x96x112xbf16, #tpu.memory_space<vmem>>, vector<1x96x112xbf16>
    %336 = vector.shape_cast %335 : vector<1x96x112xbf16> to vector<96x112xbf16>
    %337 = arith.truncf %313 : vector<8x96xf32> to vector<8x96xbf16>
    %cst_239 = arith.constant dense<0.000000e+00> : vector<8x112xf32>
    %338 = tpu.matmul %337, %336, %cst_239 {dimension_numbers = #tpu.dot_dimension_numbers<[1], [0], [0], [1], [0, 0, 1, 1], [], []>} : vector<8x96xbf16>, vector<96x112xbf16>, vector<8x112xf32> -> vector<8x112xf32>
    %339 = vector.broadcast %334 : vector<1x112xf32> to vector<8x112xf32>
    %340 = arith.addf %338, %339 : vector<8x112xf32>
    %cst_240 = arith.constant 0.000000e+00 : f32
    %341 = vector.broadcast %cst_240 : f32 to vector<8x112xf32>
    %342 = arith.maximumf %340, %341 : vector<8x112xf32>
    %c1_241 = arith.constant 1 : index
    %c0_242 = arith.constant 0 : index
    %c0_243 = arith.constant 0 : index
    %343 = vector.load %arg14[%c1_241, %c0_242, %c0_243] : memref<3x96x112xbf16, #tpu.memory_space<vmem>>, vector<1x96x112xbf16>
    %344 = vector.shape_cast %343 : vector<1x96x112xbf16> to vector<96x112xbf16>
    %345 = arith.truncf %313 : vector<8x96xf32> to vector<8x96xbf16>
    %cst_244 = arith.constant dense<0.000000e+00> : vector<8x112xf32>
    %346 = tpu.matmul %345, %344, %cst_244 {dimension_numbers = #tpu.dot_dimension_numbers<[1], [0], [0], [1], [0, 0, 1, 1], [], []>} : vector<8x96xbf16>, vector<96x112xbf16>, vector<8x112xf32> -> vector<8x112xf32>
    %347 = vector.broadcast %334 : vector<1x112xf32> to vector<8x112xf32>
    %348 = arith.addf %346, %347 : vector<8x112xf32>
    %cst_245 = arith.constant 0.000000e+00 : f32
    %349 = vector.broadcast %cst_245 : f32 to vector<8x112xf32>
    %350 = arith.maximumf %348, %349 : vector<8x112xf32>
    %c0_246 = arith.constant 0 : index
    %c0_247 = arith.constant 0 : index
    %c0_248 = arith.constant 0 : index
    %351 = vector.load %arg14[%c0_246, %c0_247, %c0_248] : memref<3x96x112xbf16, #tpu.memory_space<vmem>>, vector<1x96x112xbf16>
    %352 = vector.shape_cast %351 : vector<1x96x112xbf16> to vector<96x112xbf16>
    %353 = arith.truncf %323 : vector<8x96xf32> to vector<8x96xbf16>
    %cst_249 = arith.constant dense<0.000000e+00> : vector<8x112xf32>
    %354 = tpu.matmul %353, %352, %cst_249 {dimension_numbers = #tpu.dot_dimension_numbers<[1], [0], [0], [1], [0, 0, 1, 1], [], []>} : vector<8x96xbf16>, vector<96x112xbf16>, vector<8x112xf32> -> vector<8x112xf32>
    %c2_250 = arith.constant 2 : index
    %c0_251 = arith.constant 0 : index
    %c0_252 = arith.constant 0 : index
    %355 = vector.load %arg14[%c2_250, %c0_251, %c0_252] : memref<3x96x112xbf16, #tpu.memory_space<vmem>>, vector<1x96x112xbf16>
    %356 = vector.shape_cast %355 : vector<1x96x112xbf16> to vector<96x112xbf16>
    %357 = arith.truncf %313 : vector<8x96xf32> to vector<8x96xbf16>
    %cst_253 = arith.constant dense<0.000000e+00> : vector<8x112xf32>
    %358 = tpu.matmul %357, %356, %cst_253 {dimension_numbers = #tpu.dot_dimension_numbers<[1], [0], [0], [1], [0, 0, 1, 1], [], []>} : vector<8x96xbf16>, vector<96x112xbf16>, vector<8x112xf32> -> vector<8x112xf32>
    %359 = arith.addf %354, %358 : vector<8x112xf32>
    %360 = vector.broadcast %334 : vector<1x112xf32> to vector<8x112xf32>
    %361 = arith.addf %359, %360 : vector<8x112xf32>
    %cst_254 = arith.constant 0.000000e+00 : f32
    %362 = vector.broadcast %cst_254 : f32 to vector<8x112xf32>
    %363 = arith.maximumf %361, %362 : vector<8x112xf32>
    %c1_255 = arith.constant 1 : index
    %c0_256 = arith.constant 0 : index
    %c0_257 = arith.constant 0 : index
    %364 = vector.load %arg14[%c1_255, %c0_256, %c0_257] : memref<3x96x112xbf16, #tpu.memory_space<vmem>>, vector<1x96x112xbf16>
    %365 = vector.shape_cast %364 : vector<1x96x112xbf16> to vector<96x112xbf16>
    %366 = arith.truncf %323 : vector<8x96xf32> to vector<8x96xbf16>
    %cst_258 = arith.constant dense<0.000000e+00> : vector<8x112xf32>
    %367 = tpu.matmul %366, %365, %cst_258 {dimension_numbers = #tpu.dot_dimension_numbers<[1], [0], [0], [1], [0, 0, 1, 1], [], []>} : vector<8x96xbf16>, vector<96x112xbf16>, vector<8x112xf32> -> vector<8x112xf32>
    %368 = vector.broadcast %334 : vector<1x112xf32> to vector<8x112xf32>
    %369 = arith.addf %367, %368 : vector<8x112xf32>
    %cst_259 = arith.constant 0.000000e+00 : f32
    %370 = vector.broadcast %cst_259 : f32 to vector<8x112xf32>
    %371 = arith.maximumf %369, %370 : vector<8x112xf32>
    %c0_260 = arith.constant 0 : index
    %c0_261 = arith.constant 0 : index
    %c0_262 = arith.constant 0 : index
    %372 = vector.load %arg14[%c0_260, %c0_261, %c0_262] : memref<3x96x112xbf16, #tpu.memory_space<vmem>>, vector<1x96x112xbf16>
    %373 = vector.shape_cast %372 : vector<1x96x112xbf16> to vector<96x112xbf16>
    %374 = arith.truncf %333 : vector<8x96xf32> to vector<8x96xbf16>
    %cst_263 = arith.constant dense<0.000000e+00> : vector<8x112xf32>
    %375 = tpu.matmul %374, %373, %cst_263 {dimension_numbers = #tpu.dot_dimension_numbers<[1], [0], [0], [1], [0, 0, 1, 1], [], []>} : vector<8x96xbf16>, vector<96x112xbf16>, vector<8x112xf32> -> vector<8x112xf32>
    %c2_264 = arith.constant 2 : index
    %c0_265 = arith.constant 0 : index
    %c0_266 = arith.constant 0 : index
    %376 = vector.load %arg14[%c2_264, %c0_265, %c0_266] : memref<3x96x112xbf16, #tpu.memory_space<vmem>>, vector<1x96x112xbf16>
    %377 = vector.shape_cast %376 : vector<1x96x112xbf16> to vector<96x112xbf16>
    %378 = arith.truncf %323 : vector<8x96xf32> to vector<8x96xbf16>
    %cst_267 = arith.constant dense<0.000000e+00> : vector<8x112xf32>
    %379 = tpu.matmul %378, %377, %cst_267 {dimension_numbers = #tpu.dot_dimension_numbers<[1], [0], [0], [1], [0, 0, 1, 1], [], []>} : vector<8x96xbf16>, vector<96x112xbf16>, vector<8x112xf32> -> vector<8x112xf32>
    %380 = arith.addf %375, %379 : vector<8x112xf32>
    %381 = vector.broadcast %334 : vector<1x112xf32> to vector<8x112xf32>
    %382 = arith.addf %380, %381 : vector<8x112xf32>
    %cst_268 = arith.constant 0.000000e+00 : f32
    %383 = vector.broadcast %cst_268 : f32 to vector<8x112xf32>
    %384 = arith.maximumf %382, %383 : vector<8x112xf32>
    %c1_269 = arith.constant 1 : index
    %c0_270 = arith.constant 0 : index
    %c0_271 = arith.constant 0 : index
    %385 = vector.load %arg14[%c1_269, %c0_270, %c0_271] : memref<3x96x112xbf16, #tpu.memory_space<vmem>>, vector<1x96x112xbf16>
    %386 = vector.shape_cast %385 : vector<1x96x112xbf16> to vector<96x112xbf16>
    %387 = arith.truncf %333 : vector<8x96xf32> to vector<8x96xbf16>
    %cst_272 = arith.constant dense<0.000000e+00> : vector<8x112xf32>
    %388 = tpu.matmul %387, %386, %cst_272 {dimension_numbers = #tpu.dot_dimension_numbers<[1], [0], [0], [1], [0, 0, 1, 1], [], []>} : vector<8x96xbf16>, vector<96x112xbf16>, vector<8x112xf32> -> vector<8x112xf32>
    %389 = vector.broadcast %334 : vector<1x112xf32> to vector<8x112xf32>
    %390 = arith.addf %388, %389 : vector<8x112xf32>
    %cst_273 = arith.constant 0.000000e+00 : f32
    %391 = vector.broadcast %cst_273 : f32 to vector<8x112xf32>
    %392 = arith.maximumf %390, %391 : vector<8x112xf32>
    %c2_274 = arith.constant 2 : index
    %c0_275 = arith.constant 0 : index
    %c0_276 = arith.constant 0 : index
    %393 = vector.load %arg14[%c2_274, %c0_275, %c0_276] : memref<3x96x112xbf16, #tpu.memory_space<vmem>>, vector<1x96x112xbf16>
    %394 = vector.shape_cast %393 : vector<1x96x112xbf16> to vector<96x112xbf16>
    %395 = arith.truncf %333 : vector<8x96xf32> to vector<8x96xbf16>
    %cst_277 = arith.constant dense<0.000000e+00> : vector<8x112xf32>
    %396 = tpu.matmul %395, %394, %cst_277 {dimension_numbers = #tpu.dot_dimension_numbers<[1], [0], [0], [1], [0, 0, 1, 1], [], []>} : vector<8x96xbf16>, vector<96x112xbf16>, vector<8x112xf32> -> vector<8x112xf32>
    %397 = vector.broadcast %334 : vector<1x112xf32> to vector<8x112xf32>
    %398 = arith.addf %396, %397 : vector<8x112xf32>
    %cst_278 = arith.constant 0.000000e+00 : f32
    %399 = vector.broadcast %cst_278 : f32 to vector<8x112xf32>
    %400 = arith.maximumf %398, %399 : vector<8x112xf32>
    %c0_279 = arith.constant 0 : index
    %c0_280 = arith.constant 0 : index
    %401 = vector.load %arg17[%c0_279, %c0_280] : memref<1x112xf32, #tpu.memory_space<vmem>>, vector<1x112xf32>
    %c1_281 = arith.constant 1 : index
    %c0_282 = arith.constant 0 : index
    %c0_283 = arith.constant 0 : index
    %402 = vector.load %arg16[%c1_281, %c0_282, %c0_283] : memref<3x112x112xbf16, #tpu.memory_space<vmem>>, vector<1x112x112xbf16>
    %403 = vector.shape_cast %402 : vector<1x112x112xbf16> to vector<112x112xbf16>
    %404 = arith.truncf %342 : vector<8x112xf32> to vector<8x112xbf16>
    %cst_284 = arith.constant dense<0.000000e+00> : vector<8x112xf32>
    %405 = tpu.matmul %404, %403, %cst_284 {dimension_numbers = #tpu.dot_dimension_numbers<[1], [0], [0], [1], [0, 0, 1, 1], [], []>} : vector<8x112xbf16>, vector<112x112xbf16>, vector<8x112xf32> -> vector<8x112xf32>
    %406 = vector.broadcast %401 : vector<1x112xf32> to vector<8x112xf32>
    %407 = arith.addf %405, %406 : vector<8x112xf32>
    %cst_285 = arith.constant 0.000000e+00 : f32
    %408 = vector.broadcast %cst_285 : f32 to vector<8x112xf32>
    %409 = arith.maximumf %407, %408 : vector<8x112xf32>
    %c0_286 = arith.constant 0 : index
    %c0_287 = arith.constant 0 : index
    %c0_288 = arith.constant 0 : index
    %410 = vector.load %arg16[%c0_286, %c0_287, %c0_288] : memref<3x112x112xbf16, #tpu.memory_space<vmem>>, vector<1x112x112xbf16>
    %411 = vector.shape_cast %410 : vector<1x112x112xbf16> to vector<112x112xbf16>
    %412 = arith.truncf %350 : vector<8x112xf32> to vector<8x112xbf16>
    %cst_289 = arith.constant dense<0.000000e+00> : vector<8x112xf32>
    %413 = tpu.matmul %412, %411, %cst_289 {dimension_numbers = #tpu.dot_dimension_numbers<[1], [0], [0], [1], [0, 0, 1, 1], [], []>} : vector<8x112xbf16>, vector<112x112xbf16>, vector<8x112xf32> -> vector<8x112xf32>
    %c2_290 = arith.constant 2 : index
    %c0_291 = arith.constant 0 : index
    %c0_292 = arith.constant 0 : index
    %414 = vector.load %arg16[%c2_290, %c0_291, %c0_292] : memref<3x112x112xbf16, #tpu.memory_space<vmem>>, vector<1x112x112xbf16>
    %415 = vector.shape_cast %414 : vector<1x112x112xbf16> to vector<112x112xbf16>
    %416 = arith.truncf %342 : vector<8x112xf32> to vector<8x112xbf16>
    %cst_293 = arith.constant dense<0.000000e+00> : vector<8x112xf32>
    %417 = tpu.matmul %416, %415, %cst_293 {dimension_numbers = #tpu.dot_dimension_numbers<[1], [0], [0], [1], [0, 0, 1, 1], [], []>} : vector<8x112xbf16>, vector<112x112xbf16>, vector<8x112xf32> -> vector<8x112xf32>
    %418 = arith.addf %413, %417 : vector<8x112xf32>
    %419 = vector.broadcast %401 : vector<1x112xf32> to vector<8x112xf32>
    %420 = arith.addf %418, %419 : vector<8x112xf32>
    %cst_294 = arith.constant 0.000000e+00 : f32
    %421 = vector.broadcast %cst_294 : f32 to vector<8x112xf32>
    %422 = arith.maximumf %420, %421 : vector<8x112xf32>
    %c1_295 = arith.constant 1 : index
    %c0_296 = arith.constant 0 : index
    %c0_297 = arith.constant 0 : index
    %423 = vector.load %arg16[%c1_295, %c0_296, %c0_297] : memref<3x112x112xbf16, #tpu.memory_space<vmem>>, vector<1x112x112xbf16>
    %424 = vector.shape_cast %423 : vector<1x112x112xbf16> to vector<112x112xbf16>
    %425 = arith.truncf %350 : vector<8x112xf32> to vector<8x112xbf16>
    %cst_298 = arith.constant dense<0.000000e+00> : vector<8x112xf32>
    %426 = tpu.matmul %425, %424, %cst_298 {dimension_numbers = #tpu.dot_dimension_numbers<[1], [0], [0], [1], [0, 0, 1, 1], [], []>} : vector<8x112xbf16>, vector<112x112xbf16>, vector<8x112xf32> -> vector<8x112xf32>
    %427 = vector.broadcast %401 : vector<1x112xf32> to vector<8x112xf32>
    %428 = arith.addf %426, %427 : vector<8x112xf32>
    %cst_299 = arith.constant 0.000000e+00 : f32
    %429 = vector.broadcast %cst_299 : f32 to vector<8x112xf32>
    %430 = arith.maximumf %428, %429 : vector<8x112xf32>
    %c0_300 = arith.constant 0 : index
    %c0_301 = arith.constant 0 : index
    %c0_302 = arith.constant 0 : index
    %431 = vector.load %arg16[%c0_300, %c0_301, %c0_302] : memref<3x112x112xbf16, #tpu.memory_space<vmem>>, vector<1x112x112xbf16>
    %432 = vector.shape_cast %431 : vector<1x112x112xbf16> to vector<112x112xbf16>
    %433 = arith.truncf %363 : vector<8x112xf32> to vector<8x112xbf16>
    %cst_303 = arith.constant dense<0.000000e+00> : vector<8x112xf32>
    %434 = tpu.matmul %433, %432, %cst_303 {dimension_numbers = #tpu.dot_dimension_numbers<[1], [0], [0], [1], [0, 0, 1, 1], [], []>} : vector<8x112xbf16>, vector<112x112xbf16>, vector<8x112xf32> -> vector<8x112xf32>
    %c2_304 = arith.constant 2 : index
    %c0_305 = arith.constant 0 : index
    %c0_306 = arith.constant 0 : index
    %435 = vector.load %arg16[%c2_304, %c0_305, %c0_306] : memref<3x112x112xbf16, #tpu.memory_space<vmem>>, vector<1x112x112xbf16>
    %436 = vector.shape_cast %435 : vector<1x112x112xbf16> to vector<112x112xbf16>
    %437 = arith.truncf %350 : vector<8x112xf32> to vector<8x112xbf16>
    %cst_307 = arith.constant dense<0.000000e+00> : vector<8x112xf32>
    %438 = tpu.matmul %437, %436, %cst_307 {dimension_numbers = #tpu.dot_dimension_numbers<[1], [0], [0], [1], [0, 0, 1, 1], [], []>} : vector<8x112xbf16>, vector<112x112xbf16>, vector<8x112xf32> -> vector<8x112xf32>
    %439 = arith.addf %434, %438 : vector<8x112xf32>
    %440 = vector.broadcast %401 : vector<1x112xf32> to vector<8x112xf32>
    %441 = arith.addf %439, %440 : vector<8x112xf32>
    %cst_308 = arith.constant 0.000000e+00 : f32
    %442 = vector.broadcast %cst_308 : f32 to vector<8x112xf32>
    %443 = arith.maximumf %441, %442 : vector<8x112xf32>
    %c1_309 = arith.constant 1 : index
    %c0_310 = arith.constant 0 : index
    %c0_311 = arith.constant 0 : index
    %444 = vector.load %arg16[%c1_309, %c0_310, %c0_311] : memref<3x112x112xbf16, #tpu.memory_space<vmem>>, vector<1x112x112xbf16>
    %445 = vector.shape_cast %444 : vector<1x112x112xbf16> to vector<112x112xbf16>
    %446 = arith.truncf %363 : vector<8x112xf32> to vector<8x112xbf16>
    %cst_312 = arith.constant dense<0.000000e+00> : vector<8x112xf32>
    %447 = tpu.matmul %446, %445, %cst_312 {dimension_numbers = #tpu.dot_dimension_numbers<[1], [0], [0], [1], [0, 0, 1, 1], [], []>} : vector<8x112xbf16>, vector<112x112xbf16>, vector<8x112xf32> -> vector<8x112xf32>
    %448 = vector.broadcast %401 : vector<1x112xf32> to vector<8x112xf32>
    %449 = arith.addf %447, %448 : vector<8x112xf32>
    %cst_313 = arith.constant 0.000000e+00 : f32
    %450 = vector.broadcast %cst_313 : f32 to vector<8x112xf32>
    %451 = arith.maximumf %449, %450 : vector<8x112xf32>
    %c0_314 = arith.constant 0 : index
    %c0_315 = arith.constant 0 : index
    %c0_316 = arith.constant 0 : index
    %452 = vector.load %arg16[%c0_314, %c0_315, %c0_316] : memref<3x112x112xbf16, #tpu.memory_space<vmem>>, vector<1x112x112xbf16>
    %453 = vector.shape_cast %452 : vector<1x112x112xbf16> to vector<112x112xbf16>
    %454 = arith.truncf %371 : vector<8x112xf32> to vector<8x112xbf16>
    %cst_317 = arith.constant dense<0.000000e+00> : vector<8x112xf32>
    %455 = tpu.matmul %454, %453, %cst_317 {dimension_numbers = #tpu.dot_dimension_numbers<[1], [0], [0], [1], [0, 0, 1, 1], [], []>} : vector<8x112xbf16>, vector<112x112xbf16>, vector<8x112xf32> -> vector<8x112xf32>
    %c2_318 = arith.constant 2 : index
    %c0_319 = arith.constant 0 : index
    %c0_320 = arith.constant 0 : index
    %456 = vector.load %arg16[%c2_318, %c0_319, %c0_320] : memref<3x112x112xbf16, #tpu.memory_space<vmem>>, vector<1x112x112xbf16>
    %457 = vector.shape_cast %456 : vector<1x112x112xbf16> to vector<112x112xbf16>
    %458 = arith.truncf %363 : vector<8x112xf32> to vector<8x112xbf16>
    %cst_321 = arith.constant dense<0.000000e+00> : vector<8x112xf32>
    %459 = tpu.matmul %458, %457, %cst_321 {dimension_numbers = #tpu.dot_dimension_numbers<[1], [0], [0], [1], [0, 0, 1, 1], [], []>} : vector<8x112xbf16>, vector<112x112xbf16>, vector<8x112xf32> -> vector<8x112xf32>
    %460 = arith.addf %455, %459 : vector<8x112xf32>
    %461 = vector.broadcast %401 : vector<1x112xf32> to vector<8x112xf32>
    %462 = arith.addf %460, %461 : vector<8x112xf32>
    %cst_322 = arith.constant 0.000000e+00 : f32
    %463 = vector.broadcast %cst_322 : f32 to vector<8x112xf32>
    %464 = arith.maximumf %462, %463 : vector<8x112xf32>
    %c1_323 = arith.constant 1 : index
    %c0_324 = arith.constant 0 : index
    %c0_325 = arith.constant 0 : index
    %465 = vector.load %arg16[%c1_323, %c0_324, %c0_325] : memref<3x112x112xbf16, #tpu.memory_space<vmem>>, vector<1x112x112xbf16>
    %466 = vector.shape_cast %465 : vector<1x112x112xbf16> to vector<112x112xbf16>
    %467 = arith.truncf %371 : vector<8x112xf32> to vector<8x112xbf16>
    %cst_326 = arith.constant dense<0.000000e+00> : vector<8x112xf32>
    %468 = tpu.matmul %467, %466, %cst_326 {dimension_numbers = #tpu.dot_dimension_numbers<[1], [0], [0], [1], [0, 0, 1, 1], [], []>} : vector<8x112xbf16>, vector<112x112xbf16>, vector<8x112xf32> -> vector<8x112xf32>
    %469 = vector.broadcast %401 : vector<1x112xf32> to vector<8x112xf32>
    %470 = arith.addf %468, %469 : vector<8x112xf32>
    %cst_327 = arith.constant 0.000000e+00 : f32
    %471 = vector.broadcast %cst_327 : f32 to vector<8x112xf32>
    %472 = arith.maximumf %470, %471 : vector<8x112xf32>
    %c0_328 = arith.constant 0 : index
    %c0_329 = arith.constant 0 : index
    %c0_330 = arith.constant 0 : index
    %473 = vector.load %arg16[%c0_328, %c0_329, %c0_330] : memref<3x112x112xbf16, #tpu.memory_space<vmem>>, vector<1x112x112xbf16>
    %474 = vector.shape_cast %473 : vector<1x112x112xbf16> to vector<112x112xbf16>
    %475 = arith.truncf %384 : vector<8x112xf32> to vector<8x112xbf16>
    %cst_331 = arith.constant dense<0.000000e+00> : vector<8x112xf32>
    %476 = tpu.matmul %475, %474, %cst_331 {dimension_numbers = #tpu.dot_dimension_numbers<[1], [0], [0], [1], [0, 0, 1, 1], [], []>} : vector<8x112xbf16>, vector<112x112xbf16>, vector<8x112xf32> -> vector<8x112xf32>
    %c2_332 = arith.constant 2 : index
    %c0_333 = arith.constant 0 : index
    %c0_334 = arith.constant 0 : index
    %477 = vector.load %arg16[%c2_332, %c0_333, %c0_334] : memref<3x112x112xbf16, #tpu.memory_space<vmem>>, vector<1x112x112xbf16>
    %478 = vector.shape_cast %477 : vector<1x112x112xbf16> to vector<112x112xbf16>
    %479 = arith.truncf %371 : vector<8x112xf32> to vector<8x112xbf16>
    %cst_335 = arith.constant dense<0.000000e+00> : vector<8x112xf32>
    %480 = tpu.matmul %479, %478, %cst_335 {dimension_numbers = #tpu.dot_dimension_numbers<[1], [0], [0], [1], [0, 0, 1, 1], [], []>} : vector<8x112xbf16>, vector<112x112xbf16>, vector<8x112xf32> -> vector<8x112xf32>
    %481 = arith.addf %476, %480 : vector<8x112xf32>
    %482 = vector.broadcast %401 : vector<1x112xf32> to vector<8x112xf32>
    %483 = arith.addf %481, %482 : vector<8x112xf32>
    %cst_336 = arith.constant 0.000000e+00 : f32
    %484 = vector.broadcast %cst_336 : f32 to vector<8x112xf32>
    %485 = arith.maximumf %483, %484 : vector<8x112xf32>
    %c1_337 = arith.constant 1 : index
    %c0_338 = arith.constant 0 : index
    %c0_339 = arith.constant 0 : index
    %486 = vector.load %arg16[%c1_337, %c0_338, %c0_339] : memref<3x112x112xbf16, #tpu.memory_space<vmem>>, vector<1x112x112xbf16>
    %487 = vector.shape_cast %486 : vector<1x112x112xbf16> to vector<112x112xbf16>
    %488 = arith.truncf %384 : vector<8x112xf32> to vector<8x112xbf16>
    %cst_340 = arith.constant dense<0.000000e+00> : vector<8x112xf32>
    %489 = tpu.matmul %488, %487, %cst_340 {dimension_numbers = #tpu.dot_dimension_numbers<[1], [0], [0], [1], [0, 0, 1, 1], [], []>} : vector<8x112xbf16>, vector<112x112xbf16>, vector<8x112xf32> -> vector<8x112xf32>
    %490 = vector.broadcast %401 : vector<1x112xf32> to vector<8x112xf32>
    %491 = arith.addf %489, %490 : vector<8x112xf32>
    %cst_341 = arith.constant 0.000000e+00 : f32
    %492 = vector.broadcast %cst_341 : f32 to vector<8x112xf32>
    %493 = arith.maximumf %491, %492 : vector<8x112xf32>
    %c0_342 = arith.constant 0 : index
    %c0_343 = arith.constant 0 : index
    %c0_344 = arith.constant 0 : index
    %494 = vector.load %arg16[%c0_342, %c0_343, %c0_344] : memref<3x112x112xbf16, #tpu.memory_space<vmem>>, vector<1x112x112xbf16>
    %495 = vector.shape_cast %494 : vector<1x112x112xbf16> to vector<112x112xbf16>
    %496 = arith.truncf %392 : vector<8x112xf32> to vector<8x112xbf16>
    %cst_345 = arith.constant dense<0.000000e+00> : vector<8x112xf32>
    %497 = tpu.matmul %496, %495, %cst_345 {dimension_numbers = #tpu.dot_dimension_numbers<[1], [0], [0], [1], [0, 0, 1, 1], [], []>} : vector<8x112xbf16>, vector<112x112xbf16>, vector<8x112xf32> -> vector<8x112xf32>
    %c2_346 = arith.constant 2 : index
    %c0_347 = arith.constant 0 : index
    %c0_348 = arith.constant 0 : index
    %498 = vector.load %arg16[%c2_346, %c0_347, %c0_348] : memref<3x112x112xbf16, #tpu.memory_space<vmem>>, vector<1x112x112xbf16>
    %499 = vector.shape_cast %498 : vector<1x112x112xbf16> to vector<112x112xbf16>
    %500 = arith.truncf %384 : vector<8x112xf32> to vector<8x112xbf16>
    %cst_349 = arith.constant dense<0.000000e+00> : vector<8x112xf32>
    %501 = tpu.matmul %500, %499, %cst_349 {dimension_numbers = #tpu.dot_dimension_numbers<[1], [0], [0], [1], [0, 0, 1, 1], [], []>} : vector<8x112xbf16>, vector<112x112xbf16>, vector<8x112xf32> -> vector<8x112xf32>
    %502 = arith.addf %497, %501 : vector<8x112xf32>
    %503 = vector.broadcast %401 : vector<1x112xf32> to vector<8x112xf32>
    %504 = arith.addf %502, %503 : vector<8x112xf32>
    %cst_350 = arith.constant 0.000000e+00 : f32
    %505 = vector.broadcast %cst_350 : f32 to vector<8x112xf32>
    %506 = arith.maximumf %504, %505 : vector<8x112xf32>
    %c1_351 = arith.constant 1 : index
    %c0_352 = arith.constant 0 : index
    %c0_353 = arith.constant 0 : index
    %507 = vector.load %arg16[%c1_351, %c0_352, %c0_353] : memref<3x112x112xbf16, #tpu.memory_space<vmem>>, vector<1x112x112xbf16>
    %508 = vector.shape_cast %507 : vector<1x112x112xbf16> to vector<112x112xbf16>
    %509 = arith.truncf %392 : vector<8x112xf32> to vector<8x112xbf16>
    %cst_354 = arith.constant dense<0.000000e+00> : vector<8x112xf32>
    %510 = tpu.matmul %509, %508, %cst_354 {dimension_numbers = #tpu.dot_dimension_numbers<[1], [0], [0], [1], [0, 0, 1, 1], [], []>} : vector<8x112xbf16>, vector<112x112xbf16>, vector<8x112xf32> -> vector<8x112xf32>
    %511 = vector.broadcast %401 : vector<1x112xf32> to vector<8x112xf32>
    %512 = arith.addf %510, %511 : vector<8x112xf32>
    %cst_355 = arith.constant 0.000000e+00 : f32
    %513 = vector.broadcast %cst_355 : f32 to vector<8x112xf32>
    %514 = arith.maximumf %512, %513 : vector<8x112xf32>
    %c0_356 = arith.constant 0 : index
    %c0_357 = arith.constant 0 : index
    %c0_358 = arith.constant 0 : index
    %515 = vector.load %arg16[%c0_356, %c0_357, %c0_358] : memref<3x112x112xbf16, #tpu.memory_space<vmem>>, vector<1x112x112xbf16>
    %516 = vector.shape_cast %515 : vector<1x112x112xbf16> to vector<112x112xbf16>
    %517 = arith.truncf %400 : vector<8x112xf32> to vector<8x112xbf16>
    %cst_359 = arith.constant dense<0.000000e+00> : vector<8x112xf32>
    %518 = tpu.matmul %517, %516, %cst_359 {dimension_numbers = #tpu.dot_dimension_numbers<[1], [0], [0], [1], [0, 0, 1, 1], [], []>} : vector<8x112xbf16>, vector<112x112xbf16>, vector<8x112xf32> -> vector<8x112xf32>
    %c2_360 = arith.constant 2 : index
    %c0_361 = arith.constant 0 : index
    %c0_362 = arith.constant 0 : index
    %519 = vector.load %arg16[%c2_360, %c0_361, %c0_362] : memref<3x112x112xbf16, #tpu.memory_space<vmem>>, vector<1x112x112xbf16>
    %520 = vector.shape_cast %519 : vector<1x112x112xbf16> to vector<112x112xbf16>
    %521 = arith.truncf %392 : vector<8x112xf32> to vector<8x112xbf16>
    %cst_363 = arith.constant dense<0.000000e+00> : vector<8x112xf32>
    %522 = tpu.matmul %521, %520, %cst_363 {dimension_numbers = #tpu.dot_dimension_numbers<[1], [0], [0], [1], [0, 0, 1, 1], [], []>} : vector<8x112xbf16>, vector<112x112xbf16>, vector<8x112xf32> -> vector<8x112xf32>
    %523 = arith.addf %518, %522 : vector<8x112xf32>
    %524 = vector.broadcast %401 : vector<1x112xf32> to vector<8x112xf32>
    %525 = arith.addf %523, %524 : vector<8x112xf32>
    %cst_364 = arith.constant 0.000000e+00 : f32
    %526 = vector.broadcast %cst_364 : f32 to vector<8x112xf32>
    %527 = arith.maximumf %525, %526 : vector<8x112xf32>
    %c1_365 = arith.constant 1 : index
    %c0_366 = arith.constant 0 : index
    %c0_367 = arith.constant 0 : index
    %528 = vector.load %arg16[%c1_365, %c0_366, %c0_367] : memref<3x112x112xbf16, #tpu.memory_space<vmem>>, vector<1x112x112xbf16>
    %529 = vector.shape_cast %528 : vector<1x112x112xbf16> to vector<112x112xbf16>
    %530 = arith.truncf %400 : vector<8x112xf32> to vector<8x112xbf16>
    %cst_368 = arith.constant dense<0.000000e+00> : vector<8x112xf32>
    %531 = tpu.matmul %530, %529, %cst_368 {dimension_numbers = #tpu.dot_dimension_numbers<[1], [0], [0], [1], [0, 0, 1, 1], [], []>} : vector<8x112xbf16>, vector<112x112xbf16>, vector<8x112xf32> -> vector<8x112xf32>
    %532 = vector.broadcast %401 : vector<1x112xf32> to vector<8x112xf32>
    %533 = arith.addf %531, %532 : vector<8x112xf32>
    %cst_369 = arith.constant 0.000000e+00 : f32
    %534 = vector.broadcast %cst_369 : f32 to vector<8x112xf32>
    %535 = arith.maximumf %533, %534 : vector<8x112xf32>
    %c2_370 = arith.constant 2 : index
    %c0_371 = arith.constant 0 : index
    %c0_372 = arith.constant 0 : index
    %536 = vector.load %arg16[%c2_370, %c0_371, %c0_372] : memref<3x112x112xbf16, #tpu.memory_space<vmem>>, vector<1x112x112xbf16>
    %537 = vector.shape_cast %536 : vector<1x112x112xbf16> to vector<112x112xbf16>
    %538 = arith.truncf %400 : vector<8x112xf32> to vector<8x112xbf16>
    %cst_373 = arith.constant dense<0.000000e+00> : vector<8x112xf32>
    %539 = tpu.matmul %538, %537, %cst_373 {dimension_numbers = #tpu.dot_dimension_numbers<[1], [0], [0], [1], [0, 0, 1, 1], [], []>} : vector<8x112xbf16>, vector<112x112xbf16>, vector<8x112xf32> -> vector<8x112xf32>
    %540 = vector.broadcast %401 : vector<1x112xf32> to vector<8x112xf32>
    %541 = arith.addf %539, %540 : vector<8x112xf32>
    %cst_374 = arith.constant 0.000000e+00 : f32
    %542 = vector.broadcast %cst_374 : f32 to vector<8x112xf32>
    %543 = arith.maximumf %541, %542 : vector<8x112xf32>
    %cst_375 = arith.constant 0.000000e+00 : f32
    %544 = vector.broadcast %cst_375 : f32 to vector<8x784xf32>
    %c0_376 = arith.constant 0 : index
    %c0_377 = arith.constant 0 : index
    %c0_378 = arith.constant 0 : index
    %545 = vector.load %arg18[%c0_376, %c0_377, %c0_378] : memref<14x112x784xbf16, #tpu.memory_space<vmem>>, vector<1x112x784xbf16>
    %546 = vector.shape_cast %545 : vector<1x112x784xbf16> to vector<112x784xbf16>
    %547 = arith.truncf %409 : vector<8x112xf32> to vector<8x112xbf16>
    %cst_379 = arith.constant dense<0.000000e+00> : vector<8x784xf32>
    %548 = tpu.matmul %547, %546, %cst_379 {dimension_numbers = #tpu.dot_dimension_numbers<[1], [0], [0], [1], [0, 0, 1, 1], [], []>} : vector<8x112xbf16>, vector<112x784xbf16>, vector<8x784xf32> -> vector<8x784xf32>
    %549 = arith.addf %544, %548 : vector<8x784xf32>
    %c1_380 = arith.constant 1 : index
    %c0_381 = arith.constant 0 : index
    %c0_382 = arith.constant 0 : index
    %550 = vector.load %arg18[%c1_380, %c0_381, %c0_382] : memref<14x112x784xbf16, #tpu.memory_space<vmem>>, vector<1x112x784xbf16>
    %551 = vector.shape_cast %550 : vector<1x112x784xbf16> to vector<112x784xbf16>
    %552 = arith.truncf %422 : vector<8x112xf32> to vector<8x112xbf16>
    %cst_383 = arith.constant dense<0.000000e+00> : vector<8x784xf32>
    %553 = tpu.matmul %552, %551, %cst_383 {dimension_numbers = #tpu.dot_dimension_numbers<[1], [0], [0], [1], [0, 0, 1, 1], [], []>} : vector<8x112xbf16>, vector<112x784xbf16>, vector<8x784xf32> -> vector<8x784xf32>
    %554 = arith.addf %549, %553 : vector<8x784xf32>
    %c2_384 = arith.constant 2 : index
    %c0_385 = arith.constant 0 : index
    %c0_386 = arith.constant 0 : index
    %555 = vector.load %arg18[%c2_384, %c0_385, %c0_386] : memref<14x112x784xbf16, #tpu.memory_space<vmem>>, vector<1x112x784xbf16>
    %556 = vector.shape_cast %555 : vector<1x112x784xbf16> to vector<112x784xbf16>
    %557 = arith.truncf %430 : vector<8x112xf32> to vector<8x112xbf16>
    %cst_387 = arith.constant dense<0.000000e+00> : vector<8x784xf32>
    %558 = tpu.matmul %557, %556, %cst_387 {dimension_numbers = #tpu.dot_dimension_numbers<[1], [0], [0], [1], [0, 0, 1, 1], [], []>} : vector<8x112xbf16>, vector<112x784xbf16>, vector<8x784xf32> -> vector<8x784xf32>
    %559 = arith.addf %554, %558 : vector<8x784xf32>
    %c3_388 = arith.constant 3 : index
    %c0_389 = arith.constant 0 : index
    %c0_390 = arith.constant 0 : index
    %560 = vector.load %arg18[%c3_388, %c0_389, %c0_390] : memref<14x112x784xbf16, #tpu.memory_space<vmem>>, vector<1x112x784xbf16>
    %561 = vector.shape_cast %560 : vector<1x112x784xbf16> to vector<112x784xbf16>
    %562 = arith.truncf %443 : vector<8x112xf32> to vector<8x112xbf16>
    %cst_391 = arith.constant dense<0.000000e+00> : vector<8x784xf32>
    %563 = tpu.matmul %562, %561, %cst_391 {dimension_numbers = #tpu.dot_dimension_numbers<[1], [0], [0], [1], [0, 0, 1, 1], [], []>} : vector<8x112xbf16>, vector<112x784xbf16>, vector<8x784xf32> -> vector<8x784xf32>
    %564 = arith.addf %559, %563 : vector<8x784xf32>
    %c4_392 = arith.constant 4 : index
    %c0_393 = arith.constant 0 : index
    %c0_394 = arith.constant 0 : index
    %565 = vector.load %arg18[%c4_392, %c0_393, %c0_394] : memref<14x112x784xbf16, #tpu.memory_space<vmem>>, vector<1x112x784xbf16>
    %566 = vector.shape_cast %565 : vector<1x112x784xbf16> to vector<112x784xbf16>
    %567 = arith.truncf %451 : vector<8x112xf32> to vector<8x112xbf16>
    %cst_395 = arith.constant dense<0.000000e+00> : vector<8x784xf32>
    %568 = tpu.matmul %567, %566, %cst_395 {dimension_numbers = #tpu.dot_dimension_numbers<[1], [0], [0], [1], [0, 0, 1, 1], [], []>} : vector<8x112xbf16>, vector<112x784xbf16>, vector<8x784xf32> -> vector<8x784xf32>
    %569 = arith.addf %564, %568 : vector<8x784xf32>
    %c5_396 = arith.constant 5 : index
    %c0_397 = arith.constant 0 : index
    %c0_398 = arith.constant 0 : index
    %570 = vector.load %arg18[%c5_396, %c0_397, %c0_398] : memref<14x112x784xbf16, #tpu.memory_space<vmem>>, vector<1x112x784xbf16>
    %571 = vector.shape_cast %570 : vector<1x112x784xbf16> to vector<112x784xbf16>
    %572 = arith.truncf %464 : vector<8x112xf32> to vector<8x112xbf16>
    %cst_399 = arith.constant dense<0.000000e+00> : vector<8x784xf32>
    %573 = tpu.matmul %572, %571, %cst_399 {dimension_numbers = #tpu.dot_dimension_numbers<[1], [0], [0], [1], [0, 0, 1, 1], [], []>} : vector<8x112xbf16>, vector<112x784xbf16>, vector<8x784xf32> -> vector<8x784xf32>
    %574 = arith.addf %569, %573 : vector<8x784xf32>
    %c6_400 = arith.constant 6 : index
    %c0_401 = arith.constant 0 : index
    %c0_402 = arith.constant 0 : index
    %575 = vector.load %arg18[%c6_400, %c0_401, %c0_402] : memref<14x112x784xbf16, #tpu.memory_space<vmem>>, vector<1x112x784xbf16>
    %576 = vector.shape_cast %575 : vector<1x112x784xbf16> to vector<112x784xbf16>
    %577 = arith.truncf %472 : vector<8x112xf32> to vector<8x112xbf16>
    %cst_403 = arith.constant dense<0.000000e+00> : vector<8x784xf32>
    %578 = tpu.matmul %577, %576, %cst_403 {dimension_numbers = #tpu.dot_dimension_numbers<[1], [0], [0], [1], [0, 0, 1, 1], [], []>} : vector<8x112xbf16>, vector<112x784xbf16>, vector<8x784xf32> -> vector<8x784xf32>
    %579 = arith.addf %574, %578 : vector<8x784xf32>
    %c7_404 = arith.constant 7 : index
    %c0_405 = arith.constant 0 : index
    %c0_406 = arith.constant 0 : index
    %580 = vector.load %arg18[%c7_404, %c0_405, %c0_406] : memref<14x112x784xbf16, #tpu.memory_space<vmem>>, vector<1x112x784xbf16>
    %581 = vector.shape_cast %580 : vector<1x112x784xbf16> to vector<112x784xbf16>
    %582 = arith.truncf %485 : vector<8x112xf32> to vector<8x112xbf16>
    %cst_407 = arith.constant dense<0.000000e+00> : vector<8x784xf32>
    %583 = tpu.matmul %582, %581, %cst_407 {dimension_numbers = #tpu.dot_dimension_numbers<[1], [0], [0], [1], [0, 0, 1, 1], [], []>} : vector<8x112xbf16>, vector<112x784xbf16>, vector<8x784xf32> -> vector<8x784xf32>
    %584 = arith.addf %579, %583 : vector<8x784xf32>
    %c8_408 = arith.constant 8 : index
    %c0_409 = arith.constant 0 : index
    %c0_410 = arith.constant 0 : index
    %585 = vector.load %arg18[%c8_408, %c0_409, %c0_410] : memref<14x112x784xbf16, #tpu.memory_space<vmem>>, vector<1x112x784xbf16>
    %586 = vector.shape_cast %585 : vector<1x112x784xbf16> to vector<112x784xbf16>
    %587 = arith.truncf %493 : vector<8x112xf32> to vector<8x112xbf16>
    %cst_411 = arith.constant dense<0.000000e+00> : vector<8x784xf32>
    %588 = tpu.matmul %587, %586, %cst_411 {dimension_numbers = #tpu.dot_dimension_numbers<[1], [0], [0], [1], [0, 0, 1, 1], [], []>} : vector<8x112xbf16>, vector<112x784xbf16>, vector<8x784xf32> -> vector<8x784xf32>
    %589 = arith.addf %584, %588 : vector<8x784xf32>
    %c9_412 = arith.constant 9 : index
    %c0_413 = arith.constant 0 : index
    %c0_414 = arith.constant 0 : index
    %590 = vector.load %arg18[%c9_412, %c0_413, %c0_414] : memref<14x112x784xbf16, #tpu.memory_space<vmem>>, vector<1x112x784xbf16>
    %591 = vector.shape_cast %590 : vector<1x112x784xbf16> to vector<112x784xbf16>
    %592 = arith.truncf %506 : vector<8x112xf32> to vector<8x112xbf16>
    %cst_415 = arith.constant dense<0.000000e+00> : vector<8x784xf32>
    %593 = tpu.matmul %592, %591, %cst_415 {dimension_numbers = #tpu.dot_dimension_numbers<[1], [0], [0], [1], [0, 0, 1, 1], [], []>} : vector<8x112xbf16>, vector<112x784xbf16>, vector<8x784xf32> -> vector<8x784xf32>
    %594 = arith.addf %589, %593 : vector<8x784xf32>
    %c10_416 = arith.constant 10 : index
    %c0_417 = arith.constant 0 : index
    %c0_418 = arith.constant 0 : index
    %595 = vector.load %arg18[%c10_416, %c0_417, %c0_418] : memref<14x112x784xbf16, #tpu.memory_space<vmem>>, vector<1x112x784xbf16>
    %596 = vector.shape_cast %595 : vector<1x112x784xbf16> to vector<112x784xbf16>
    %597 = arith.truncf %514 : vector<8x112xf32> to vector<8x112xbf16>
    %cst_419 = arith.constant dense<0.000000e+00> : vector<8x784xf32>
    %598 = tpu.matmul %597, %596, %cst_419 {dimension_numbers = #tpu.dot_dimension_numbers<[1], [0], [0], [1], [0, 0, 1, 1], [], []>} : vector<8x112xbf16>, vector<112x784xbf16>, vector<8x784xf32> -> vector<8x784xf32>
    %599 = arith.addf %594, %598 : vector<8x784xf32>
    %c11_420 = arith.constant 11 : index
    %c0_421 = arith.constant 0 : index
    %c0_422 = arith.constant 0 : index
    %600 = vector.load %arg18[%c11_420, %c0_421, %c0_422] : memref<14x112x784xbf16, #tpu.memory_space<vmem>>, vector<1x112x784xbf16>
    %601 = vector.shape_cast %600 : vector<1x112x784xbf16> to vector<112x784xbf16>
    %602 = arith.truncf %527 : vector<8x112xf32> to vector<8x112xbf16>
    %cst_423 = arith.constant dense<0.000000e+00> : vector<8x784xf32>
    %603 = tpu.matmul %602, %601, %cst_423 {dimension_numbers = #tpu.dot_dimension_numbers<[1], [0], [0], [1], [0, 0, 1, 1], [], []>} : vector<8x112xbf16>, vector<112x784xbf16>, vector<8x784xf32> -> vector<8x784xf32>
    %604 = arith.addf %599, %603 : vector<8x784xf32>
    %c12_424 = arith.constant 12 : index
    %c0_425 = arith.constant 0 : index
    %c0_426 = arith.constant 0 : index
    %605 = vector.load %arg18[%c12_424, %c0_425, %c0_426] : memref<14x112x784xbf16, #tpu.memory_space<vmem>>, vector<1x112x784xbf16>
    %606 = vector.shape_cast %605 : vector<1x112x784xbf16> to vector<112x784xbf16>
    %607 = arith.truncf %535 : vector<8x112xf32> to vector<8x112xbf16>
    %cst_427 = arith.constant dense<0.000000e+00> : vector<8x784xf32>
    %608 = tpu.matmul %607, %606, %cst_427 {dimension_numbers = #tpu.dot_dimension_numbers<[1], [0], [0], [1], [0, 0, 1, 1], [], []>} : vector<8x112xbf16>, vector<112x784xbf16>, vector<8x784xf32> -> vector<8x784xf32>
    %609 = arith.addf %604, %608 : vector<8x784xf32>
    %c13_428 = arith.constant 13 : index
    %c0_429 = arith.constant 0 : index
    %c0_430 = arith.constant 0 : index
    %610 = vector.load %arg18[%c13_428, %c0_429, %c0_430] : memref<14x112x784xbf16, #tpu.memory_space<vmem>>, vector<1x112x784xbf16>
    %611 = vector.shape_cast %610 : vector<1x112x784xbf16> to vector<112x784xbf16>
    %612 = arith.truncf %543 : vector<8x112xf32> to vector<8x112xbf16>
    %cst_431 = arith.constant dense<0.000000e+00> : vector<8x784xf32>
    %613 = tpu.matmul %612, %611, %cst_431 {dimension_numbers = #tpu.dot_dimension_numbers<[1], [0], [0], [1], [0, 0, 1, 1], [], []>} : vector<8x112xbf16>, vector<112x784xbf16>, vector<8x784xf32> -> vector<8x784xf32>
    %614 = arith.addf %609, %613 : vector<8x784xf32>
    %c0_432 = arith.constant 0 : index
    %c0_433 = arith.constant 0 : index
    %615 = vector.load %arg19[%c0_432, %c0_433] : memref<1x784xf32, #tpu.memory_space<vmem>>, vector<1x784xf32>
    %616 = vector.broadcast %615 : vector<1x784xf32> to vector<8x784xf32>
    %617 = arith.addf %614, %616 : vector<8x784xf32>
    %c0_434 = arith.constant 0 : index
    %c0_435 = arith.constant 0 : index
    %618 = vector.load %arg20[%c0_434, %c0_435] : memref<8x784xf32, #tpu.memory_space<vmem>>, vector<8x784xf32>
    tpu.vector_store %arg20[%c0_434, %c0_435], %617 {strides = array<i32>} : memref<8x784xf32, #tpu.memory_space<vmem>>, vector<8x784xf32>,
    return
  }
  func.func @transform_0(%arg0: i32) -> (i32, i32) {
    %c0_i32 = arith.constant 0 : i32
    %c0_i32_0 = arith.constant 0 : i32
    return %arg0, %c0_i32 : i32, i32
  }
  func.func @transform_1(%arg0: i32) -> (i32, i32, i32) {
    %c0_i32 = arith.constant 0 : i32
    %c0_i32_0 = arith.constant 0 : i32
    %c0_i32_1 = arith.constant 0 : i32
    %c0_i32_2 = arith.constant 0 : i32
    return %c0_i32, %c0_i32_0, %c0_i32_1 : i32, i32, i32
  }
  func.func @transform_2(%arg0: i32) -> (i32, i32) {
    %c0_i32 = arith.constant 0 : i32
    %c0_i32_0 = arith.constant 0 : i32
    %c0_i32_1 = arith.constant 0 : i32
    return %c0_i32, %c0_i32_0 : i32, i32
  }
  func.func @transform_3(%arg0: i32) -> (i32, i32, i32) {
    %c0_i32 = arith.constant 0 : i32
    %c0_i32_0 = arith.constant 0 : i32
    %c0_i32_1 = arith.constant 0 : i32
    %c0_i32_2 = arith.constant 0 : i32
    return %c0_i32, %c0_i32_0, %c0_i32_1 : i32, i32, i32
  }
  func.func @transform_4(%arg0: i32) -> (i32, i32) {
    %c0_i32 = arith.constant 0 : i32
    %c0_i32_0 = arith.constant 0 : i32
    %c0_i32_1 = arith.constant 0 : i32
    return %c0_i32, %c0_i32_0 : i32, i32
  }
  func.func @transform_5(%arg0: i32) -> (i32, i32, i32) {
    %c0_i32 = arith.constant 0 : i32
    %c0_i32_0 = arith.constant 0 : i32
    %c0_i32_1 = arith.constant 0 : i32
    %c0_i32_2 = arith.constant 0 : i32
    return %c0_i32, %c0_i32_0, %c0_i32_1 : i32, i32, i32
  }
  func.func @transform_6(%arg0: i32) -> (i32, i32) {
    %c0_i32 = arith.constant 0 : i32
    %c0_i32_0 = arith.constant 0 : i32
    %c0_i32_1 = arith.constant 0 : i32
    return %c0_i32, %c0_i32_0 : i32, i32
  }
  func.func @transform_7(%arg0: i32) -> (i32, i32, i32) {
    %c0_i32 = arith.constant 0 : i32
    %c0_i32_0 = arith.constant 0 : i32
    %c0_i32_1 = arith.constant 0 : i32
    %c0_i32_2 = arith.constant 0 : i32
    return %c0_i32, %c0_i32_0, %c0_i32_1 : i32, i32, i32
  }
  func.func @transform_8(%arg0: i32) -> (i32, i32) {
    %c0_i32 = arith.constant 0 : i32
    %c0_i32_0 = arith.constant 0 : i32
    %c0_i32_1 = arith.constant 0 : i32
    return %c0_i32, %c0_i32_0 : i32, i32
  }
  func.func @transform_9(%arg0: i32) -> (i32, i32) {
    %c0_i32 = arith.constant 0 : i32
    %c0_i32_0 = arith.constant 0 : i32
    %c0_i32_1 = arith.constant 0 : i32
    return %c0_i32, %c0_i32_0 : i32, i32
  }
  func.func @transform_10(%arg0: i32) -> (i32, i32) {
    %c0_i32 = arith.constant 0 : i32
    %c0_i32_0 = arith.constant 0 : i32
    %c0_i32_1 = arith.constant 0 : i32
    return %c0_i32, %c0_i32_0 : i32, i32
  }
  func.func @transform_11(%arg0: i32) -> (i32, i32, i32) {
    %c0_i32 = arith.constant 0 : i32
    %c0_i32_0 = arith.constant 0 : i32
    %c0_i32_1 = arith.constant 0 : i32
    %c0_i32_2 = arith.constant 0 : i32
    return %c0_i32, %c0_i32_0, %c0_i32_1 : i32, i32, i32
  }
  func.func @transform_12(%arg0: i32) -> (i32, i32, i32) {
    %c0_i32 = arith.constant 0 : i32
    %c0_i32_0 = arith.constant 0 : i32
    %c0_i32_1 = arith.constant 0 : i32
    %c0_i32_2 = arith.constant 0 : i32
    return %c0_i32, %c0_i32_0, %c0_i32_1 : i32, i32, i32
  }
  func.func @transform_13(%arg0: i32) -> (i32, i32, i32) {
    %c0_i32 = arith.constant 0 : i32
    %c0_i32_0 = arith.constant 0 : i32
    %c0_i32_1 = arith.constant 0 : i32
    %c0_i32_2 = arith.constant 0 : i32
    return %c0_i32, %c0_i32_0, %c0_i32_1 : i32, i32, i32
  }
  func.func @transform_14(%arg0: i32) -> (i32, i32) {
    %c0_i32 = arith.constant 0 : i32
    %c0_i32_0 = arith.constant 0 : i32
    %c0_i32_1 = arith.constant 0 : i32
    return %c0_i32, %c0_i32_0 : i32, i32
  }
  func.func @transform_15(%arg0: i32) -> (i32, i32, i32) {
    %c0_i32 = arith.constant 0 : i32
    %c0_i32_0 = arith.constant 0 : i32
    %c0_i32_1 = arith.constant 0 : i32
    %c0_i32_2 = arith.constant 0 : i32
    return %c0_i32, %c0_i32_0, %c0_i32_1 : i32, i32, i32
  }
  func.func @transform_16(%arg0: i32) -> (i32, i32) {
    %c0_i32 = arith.constant 0 : i32
    %c0_i32_0 = arith.constant 0 : i32
    %c0_i32_1 = arith.constant 0 : i32
    return %c0_i32, %c0_i32_0 : i32, i32
  }
  func.func @transform_17(%arg0: i32) -> (i32, i32, i32) {
    %c0_i32 = arith.constant 0 : i32
    %c0_i32_0 = arith.constant 0 : i32
    %c0_i32_1 = arith.constant 0 : i32
    %c0_i32_2 = arith.constant 0 : i32
    return %c0_i32, %c0_i32_0, %c0_i32_1 : i32, i32, i32
  }
  func.func @transform_18(%arg0: i32) -> (i32, i32) {
    %c0_i32 = arith.constant 0 : i32
    %c0_i32_0 = arith.constant 0 : i32
    %c0_i32_1 = arith.constant 0 : i32
    return %c0_i32, %c0_i32_0 : i32, i32
  }
  func.func @transform_19(%arg0: i32) -> (i32, i32) {
    %c0_i32 = arith.constant 0 : i32
    %c0_i32_0 = arith.constant 0 : i32
    return %arg0, %c0_i32 : i32, i32
  }
}

</mosaic_0001>

<bundles_post_ra>
// kernel: autoencoder_forward.1
= control target key start
LH: loop header
LB: loop body
LE: loop exit
PB: predicated region body
PF: predicated region fallthrough
CT: control target
= control target key end

     0   :  { %s28261_s0 = inlined_call_operand.vmem [shape: bf16[8,784], index: 0, kind: input, shape index: {}]   ;;  %s28262_s1 = inlined_call_operand.hbm [shape: bf16[14,784,112], index: 1, kind: input, shape index: {}]   ;;  %s28263_s2 = inlined_call_operand.hbm [shape: f32[1,112], index: 2, kind: input, shape index: {}]   ;;  %s28264_s3 = inlined_call_operand.hbm [shape: bf16[3,112,112], index: 3, kind: input, shape index: {}]   ;;  %s28265_s4 = inlined_call_operand.hbm [shape: f32[1,112], index: 4, kind: input, shape index: {}]   ;;  %s28266_s5 = inlined_call_operand.vmem [shape: bf16[3,112,96], index: 5, kind: input, shape index: {}]   ;;  %s28267_s6 = inlined_call_operand.hbm [shape: f32[1,96], index: 6, kind: input, shape index: {}]   ;;  %s28268_s7 = inlined_call_operand.vmem [shape: bf16[3,96,64], index: 7, kind: input, shape index: {}]   ;;  %s28269_s8 = inlined_call_operand.hbm [shape: f32[1,64], index: 8, kind: input, shape index: {}]   ;;  %s28270_s9 = inlined_call_operand.hbm [shape: bf16[64,64], index: 9, kind: input, shape index: {}]   ;;  %s28271_s10 = inlined_call_operand.hbm [shape: f32[1,64], index: 10, kind: input, shape index: {}]   ;;  %s28272_s11 = inlined_call_operand.hbm [shape: bf16[3,64,96], index: 11, kind: input, shape index: {}]   ;;  %s28273_s12 = inlined_call_operand.hbm [shape: f32[3,1,96], index: 12, kind: input, shape index: {}]   ;;  %s28274_s13 = inlined_call_operand.hbm [shape: bf16[3,96,112], index: 13, kind: input, shape index: {}]   ;;  %s28275_s14 = inlined_call_operand.hbm [shape: f32[1,112], index: 14, kind: input, shape index: {}]   ;;  %s28276_s15 = inlined_call_operand.hbm [shape: bf16[3,112,112], index: 15, kind: input, shape index: {}]   ;;  %s28277_s16 = inlined_call_operand.hbm [shape: f32[1,112], index: 16, kind: input, shape index: {}]   ;;  %s28278_s17 = inlined_call_operand.hbm [shape: bf16[14,112,784], index: 17, kind: input, shape index: {}]   ;;  %s28279_s18 = inlined_call_operand.hbm [shape: f32[1,784], index: 18, kind: input, shape index: {}]   ;;  %s28280_s19 = inlined_call_operand.vmem [shape: f32[8,784], index: 19, kind: output, shape index: {}]  }
   0x1   :  { %28285 = sst [smem:[#allocation36_spill]] %s28261_s0 }
   0x2   :  { %28286 = sst [smem:[#allocation37_spill]] %s28262_s1 }
   0x3   :  { %28287 = sst [smem:[#allocation38_spill]] %s28263_s2 }
   0x4   :  { %28288 = sst [smem:[#allocation39_spill]] %s28264_s3 }
   0x5   :  { %24 = vsyncpa [#allocation3], 0 }
   0x6   :  { %25 = vsyncpa [#allocation5], 0 }
   0x7   :  { %26 = vsyncpa [#allocation8], 0 }
   0x8   :  { %27 = vsyncpa [#allocation11], 0 }
   0x9   :  { %28 = vsyncpa [#allocation14], 0 }
   0xa   :  { %29 = vsyncpa [#allocation17], 0 }
   0xb   :  { %30 = vsyncpa [#allocation20], 0 }
   0xc   :  { %31 = vsyncpa [#allocation23], 0 }
   0xd   :  { %32 = vsyncpa [#allocation26], 0  ;;  %s25602_s0 = smov [#allocation4]   ;;  %s25603_s20 = smov [#allocation7]  }
   0xe   :  { %s53_s30 = sshll.u32 %s25602_s0, 4  ;;  %s75_s21 = sshll.u32 %s25603_s20, 4  ;;  %s54_s30 = int_to_ptr.vmem [resolvable:$true] %s53_s30  ;;  %s76_s21 = int_to_ptr.vmem [resolvable:$true] %s75_s21 }
   0xf   :  { %s28289_s2 = sld [smem:[#allocation38_spill]] }
  0x15   :  { %s25232_s23 = scalar_lea.hbm %s28289_s2, 16 }
  0x16   :  { %p25233_p0 = scmp.ne.s32.totalorder %s28289_s2, %s25232_s23  ;;  %p25236_p1 = scmp.lt.u32.totalorder %s25232_s23, %s28289_s2 }
  0x18   :  { %p25238_p2 = pnand %p25236_p1, %p25233_p0 }
  0x1a   :  { %25241 = shalt.err (!%p25238_p2)
}
  0x1b   :  { %s25242_s27 = scalar_lea.vmem %s54_s30, 16  ;;  %s25246_s28 = scalar_lea.vmem %s54_s30, 32 }
  0x1c   :  { %p25243_p3 = scmp.ne.s32.totalorder %s54_s30, %s25242_s27  ;;  %p25247_p4 = scmp.lt.s32.totalorder %s54_s30, %s54_s30 }
  0x1d   :  { %p25248_p5 = scmp.lt.s32.totalorder %s25246_s28, %s25242_s27 }
  0x1f   :  { %p25249_p6 = por %p25248_p5, %p25247_p4 }
  0x21   :  { %p25250_p7 = pnand %p25249_p6, %p25243_p3 }
  0x23   :  { %25253 = shalt.err (!%p25250_p7)
}
  0x24   :  { %56 = dma.hbm_to_vmem [thread:$0]  %s28289_s2, 16, %s54_s30, [#allocation5]  }
  0x25   :  { %s25254_s22 = scalar_lea.hbm %s28265_s4, 16 }
  0x26   :  { %p25255_p8 = scmp.ne.s32.totalorder %s28265_s4, %s25254_s22  ;;  %p25258_p9 = scmp.lt.u32.totalorder %s25254_s22, %s28265_s4 }
  0x28   :  { %p25260_p10 = pnand %p25258_p9, %p25255_p8 }
  0x2a   :  { %25263 = shalt.err (!%p25260_p10)
}
  0x2b   :  { %s25264_s26 = scalar_lea.vmem %s76_s21, 16  ;;  %s25268_s27 = scalar_lea.vmem %s76_s21, 32 }
  0x2c   :  { %p25265_p11 = scmp.ne.s32.totalorder %s76_s21, %s25264_s26  ;;  %p25269_p12 = scmp.lt.s32.totalorder %s76_s21, %s76_s21 }
  0x2d   :  { %p25270_p13 = scmp.lt.s32.totalorder %s25268_s27, %s25264_s26 }
  0x2f   :  { %p25271_p0 = por %p25270_p13, %p25269_p12 }
  0x31   :  { %p25272_p1 = pnand %p25271_p0, %p25265_p11 }
  0x33   :  { %25275 = shalt.err (!%p25272_p1)
}
  0x34   :  { %78 = dma.hbm_to_vmem [thread:$0]  %s28265_s4, 16, %s76_s21, [#allocation8]  }
  0x35   :  { %s25604_s28 = smov [#allocation10]   ;;  %s25605_s0 = smov [#allocation13]  }
  0x36   :  { %s99_s29 = sshll.u32 %s25604_s28, 4  ;;  %s121_s20 = sshll.u32 %s25605_s0, 4  ;;  %s100_s29 = int_to_ptr.vmem [resolvable:$true] %s99_s29  ;;  %s122_s20 = int_to_ptr.vmem [resolvable:$true] %s121_s20 }
  0x37   :  { %s25276_s24 = scalar_lea.hbm %s28269_s8, 16 }
  0x38   :  { %p25277_p2 = scmp.ne.s32.totalorder %s28269_s8, %s25276_s24  ;;  %p25280_p3 = scmp.lt.u32.totalorder %s25276_s24, %s28269_s8 }
  0x3a   :  { %p25282_p4 = pnand %p25280_p3, %p25277_p2 }
  0x3c   :  { %25285 = shalt.err (!%p25282_p4)
}
  0x3d   :  { %s25286_s4 = scalar_lea.vmem %s100_s29, 16  ;;  %s25290_s21 = scalar_lea.vmem %s100_s29, 32 }
  0x3e   :  { %p25287_p5 = scmp.ne.s32.totalorder %s100_s29, %s25286_s4  ;;  %p25291_p6 = scmp.lt.s32.totalorder %s100_s29, %s100_s29 }
  0x3f   :  { %p25292_p7 = scmp.lt.s32.totalorder %s25290_s21, %s25286_s4 }
  0x41   :  { %p25293_p8 = por %p25292_p7, %p25291_p6 }
  0x43   :  { %p25294_p9 = pnand %p25293_p8, %p25287_p5 }
  0x45   :  { %25297 = shalt.err (!%p25294_p9)
}
  0x46   :  { %102 = dma.hbm_to_vmem [thread:$0]  %s28269_s8, 16, %s100_s29, [#allocation11]  }
  0x47   :  { %s25298_s0 = scalar_lea.hbm %s28271_s10, 16 }
  0x48   :  { %p25299_p10 = scmp.ne.s32.totalorder %s28271_s10, %s25298_s0  ;;  %p25302_p11 = scmp.lt.u32.totalorder %s25298_s0, %s28271_s10 }
  0x4a   :  { %p25304_p12 = pnand %p25302_p11, %p25299_p10 }
  0x4c   :  { %25307 = shalt.err (!%p25304_p12)
}
  0x4d   :  { %s25308_s25 = scalar_lea.vmem %s122_s20, 16  ;;  %s25312_s3 = scalar_lea.vmem %s122_s20, 32 }
  0x4e   :  { %p25309_p13 = scmp.ne.s32.totalorder %s122_s20, %s25308_s25  ;;  %p25313_p0 = scmp.lt.s32.totalorder %s122_s20, %s122_s20 }
  0x4f   :  { %p25314_p1 = scmp.lt.s32.totalorder %s25312_s3, %s25308_s25 }
  0x51   :  { %p25315_p2 = por %p25314_p1, %p25313_p0 }
  0x53   :  { %p25316_p3 = pnand %p25315_p2, %p25309_p13 }
  0x55   :  { %25319 = shalt.err (!%p25316_p3)
}
  0x56   :  { %124 = dma.hbm_to_vmem [thread:$0]  %s28271_s10, 16, %s122_s20, [#allocation14]  }
  0x57   :  { %s25606_s26 = smov [#allocation16]   ;;  %s25320_s30 = scalar_lea.hbm %s28273_s12, 48 }
  0x58   :  { %s142_s4 = sshll.u32 %s25606_s26, 4  ;;  %p25321_p4 = scmp.ne.s32.totalorder %s28273_s12, %s25320_s30  ;;  %s143_s4 = int_to_ptr.vmem [resolvable:$true] %s142_s4 }
  0x59   :  { %p25324_p5 = scmp.lt.u32.totalorder %s25320_s30, %s28273_s12 }
  0x5b   :  { %p25326_p6 = pnand %p25324_p5, %p25321_p4 }
  0x5d   :  { %25329 = shalt.err (!%p25326_p6)
}
  0x5e   :  { %s25330_s22 = scalar_lea.vmem %s143_s4, 48  ;;  %s25334_s10 = scalar_lea.vmem %s143_s4, 64 }
  0x5f   :  { %p25331_p7 = scmp.ne.s32.totalorder %s143_s4, %s25330_s22  ;;  %p25335_p8 = scmp.lt.s32.totalorder %s143_s4, %s143_s4 }
  0x60   :  { %p25336_p9 = scmp.lt.s32.totalorder %s25334_s10, %s25330_s22 }
  0x62   :  { %p25337_p10 = por %p25336_p9, %p25335_p8 }
  0x64   :  { %p25338_p11 = pnand %p25337_p10, %p25331_p7 }
  0x66   :  { %25341 = shalt.err (!%p25338_p11)
}
  0x67   :  { %s25607_s20 = smov 16   ;;  %s25608_s24 = smov 1  }
  0x68   :  { %148 = dma.hbm_to_vmem [thread:$0]  %s28273_s12, 48, %s143_s4, [#allocation17], %s25607_s20, %s25607_s20, %s25608_s24  }
  0x69   :  { %s25609_s3 = smov [#allocation19]   ;;  %s25610_s29 = smov [#allocation22]  }
  0x6a   :  { %s167_s8 = sshll.u32 %s25609_s3, 4  ;;  %s189_s26 = sshll.u32 %s25610_s29, 4  ;;  %s168_s8 = int_to_ptr.vmem [resolvable:$true] %s167_s8  ;;  %s190_s26 = int_to_ptr.vmem [resolvable:$true] %s189_s26 }
  0x6b   :  { %s25342_s30 = scalar_lea.hbm %s28275_s14, 16 }
  0x6c   :  { %p25343_p12 = scmp.ne.s32.totalorder %s28275_s14, %s25342_s30  ;;  %p25346_p13 = scmp.lt.u32.totalorder %s25342_s30, %s28275_s14 }
  0x6e   :  { %p25348_p0 = pnand %p25346_p13, %p25343_p12 }
  0x70   :  { %25351 = shalt.err (!%p25348_p0)
}
  0x71   :  { %s25352_s12 = scalar_lea.vmem %s168_s8, 16  ;;  %s25356_s4 = scalar_lea.vmem %s168_s8, 32 }
  0x72   :  { %p25353_p1 = scmp.ne.s32.totalorder %s168_s8, %s25352_s12  ;;  %p25357_p2 = scmp.lt.s32.totalorder %s168_s8, %s168_s8 }
  0x73   :  { %p25358_p3 = scmp.lt.s32.totalorder %s25356_s4, %s25352_s12 }
  0x75   :  { %p25359_p4 = por %p25358_p3, %p25357_p2 }
  0x77   :  { %p25360_p5 = pnand %p25359_p4, %p25353_p1 }
  0x79   :  { %25363 = shalt.err (!%p25360_p5)
}
  0x7a   :  { %170 = dma.hbm_to_vmem [thread:$0]  %s28275_s14, 16, %s168_s8, [#allocation20]  }
  0x7b   :  { %s25364_s23 = scalar_lea.hbm %s28277_s16, 16 }
  0x7c   :  { %p25365_p6 = scmp.ne.s32.totalorder %s28277_s16, %s25364_s23  ;;  %p25368_p7 = scmp.lt.u32.totalorder %s25364_s23, %s28277_s16 }
  0x7e   :  { %p25370_p8 = pnand %p25368_p7, %p25365_p6 }
  0x80   :  { %25373 = shalt.err (!%p25370_p8)
}
  0x81   :  { %s25374_s27 = scalar_lea.vmem %s190_s26, 16  ;;  %s25378_s30 = scalar_lea.vmem %s190_s26, 32 }
  0x82   :  { %p25375_p9 = scmp.ne.s32.totalorder %s190_s26, %s25374_s27  ;;  %p25379_p10 = scmp.lt.s32.totalorder %s190_s26, %s190_s26 }
  0x83   :  { %p25380_p11 = scmp.lt.s32.totalorder %s25378_s30, %s25374_s27 }
  0x85   :  { %p25381_p12 = por %p25380_p11, %p25379_p10 }
  0x87   :  { %p25382_p13 = pnand %p25381_p12, %p25375_p9 }
  0x89   :  { %25385 = shalt.err (!%p25382_p13)
}
  0x8a   :  { %192 = dma.hbm_to_vmem [thread:$0]  %s28277_s16, 16, %s190_s26, [#allocation23]  }
  0x8b   :  { %s25611_s2 = smov [#allocation2]   ;;  %s28290_s12 = sld [smem:[#allocation37_spill]] }
  0x8c   :  { %s40_s28 = sshll.u32 %s25611_s2, 4  ;;  %s41_s28 = int_to_ptr.vmem [resolvable:$true] %s40_s28 }
  0x91   :  { %s25386_s4 = scalar_lea.hbm %s28290_s12, 87808 }
  0x92   :  { %p25387_p0 = scmp.ne.s32.totalorder %s28290_s12, %s25386_s4  ;;  %p25390_p1 = scmp.lt.u32.totalorder %s25386_s4, %s28290_s12 }
  0x94   :  { %p25392_p2 = pnand %p25390_p1, %p25387_p0 }
  0x96   :  { %25395 = shalt.err (!%p25392_p2)
}
  0x97   :  { %s25396_s23 = scalar_lea.vmem %s41_s28, 87808  ;;  %p25401_p4 = scmp.lt.s32.totalorder %s41_s28, %s41_s28 }
  0x98   :  { %p25397_p3 = scmp.ne.s32.totalorder %s41_s28, %s25396_s23  ;;  %p25402_p5 = scmp.lt.s32.totalorder %s25396_s23, %s25396_s23 }
  0x9a   :  { %p25403_p6 = por %p25402_p5, %p25401_p4 }
  0x9c   :  { %p25404_p7 = pnand %p25403_p6, %p25397_p3 }
  0x9e   :  { %25407 = shalt.err (!%p25404_p7)
}
  0x9f   :  { %s25612_s16 = smov 64   ;;  %s25613_s26 = smov 4  }
  0xa0   :  { %46 = dma.hbm_to_vmem [thread:$0]  %s28290_s12, 87808, %s41_s28, [#allocation3], %s25612_s16, %s25612_s16, %s25613_s26  }
  0xa1   :  { %s25614_s29 = smov [#allocation6]   ;;  %s25615_s27 = smov [#allocation9]  }
  0xa2   :  { %s62_s21 = sshll.u32 %s25614_s29, 4  ;;  %s87_s30 = sshll.u32 %s25615_s27, 4  ;;  %s63_s21 = int_to_ptr.vmem [resolvable:$true] %s62_s21  ;;  %s88_s30 = int_to_ptr.vmem [resolvable:$true] %s87_s30 }
  0xa3   :  { %s28291_s2 = sld [smem:[#allocation39_spill]] }
  0xa9   :  { %s25408_s0 = scalar_lea.hbm %s28291_s2, 2688 }
  0xaa   :  { %p25409_p8 = scmp.ne.s32.totalorder %s28291_s2, %s25408_s0  ;;  %p25412_p9 = scmp.lt.u32.totalorder %s25408_s0, %s28291_s2 }
  0xac   :  { %p25414_p10 = pnand %p25412_p9, %p25409_p8 }
  0xae   :  { %25417 = shalt.err (!%p25414_p10)
}
  0xaf   :  { %s25418_s28 = scalar_lea.vmem %s63_s21, 2688  ;;  %p25423_p12 = scmp.lt.s32.totalorder %s63_s21, %s63_s21 }
  0xb0   :  { %p25419_p11 = scmp.ne.s32.totalorder %s63_s21, %s25418_s28  ;;  %p25424_p13 = scmp.lt.s32.totalorder %s25418_s28, %s25418_s28 }
  0xb2   :  { %p25425_p0 = por %p25424_p13, %p25423_p12 }
  0xb4   :  { %p25426_p1 = pnand %p25425_p0, %p25419_p11 }
  0xb6   :  { %25429 = shalt.err (!%p25426_p1)
}
  0xb7   :  { %68 = dma.hbm_to_vmem [thread:$0]  %s28291_s2, 2688, %s63_s21, [#allocation5], %s25612_s16, %s25612_s16, %s25613_s26  }
  0xb8   :  { %s25430_s25 = scalar_lea.hbm %s28267_s6, 16 }
  0xb9   :  { %p25431_p2 = scmp.ne.s32.totalorder %s28267_s6, %s25430_s25  ;;  %p25434_p3 = scmp.lt.u32.totalorder %s25430_s25, %s28267_s6 }
  0xbb   :  { %p25436_p4 = pnand %p25434_p3, %p25431_p2 }
  0xbd   :  { %25439 = shalt.err (!%p25436_p4)
}
  0xbe   :  { %s25440_s8 = scalar_lea.vmem %s88_s30, 16  ;;  %s25444_s0 = scalar_lea.vmem %s88_s30, 32 }
  0xbf   :  { %p25441_p5 = scmp.ne.s32.totalorder %s88_s30, %s25440_s8  ;;  %p25445_p6 = scmp.lt.s32.totalorder %s88_s30, %s88_s30 }
  0xc0   :  { %p25446_p7 = scmp.lt.s32.totalorder %s25444_s0, %s25440_s8 }
  0xc2   :  { %p25447_p8 = por %p25446_p7, %p25445_p6 }
  0xc4   :  { %p25448_p9 = pnand %p25447_p8, %p25441_p5 }
  0xc6   :  { %25451 = shalt.err (!%p25448_p9)
}
  0xc7   :  { %90 = dma.hbm_to_vmem [thread:$0]  %s28267_s6, 16, %s88_s30, [#allocation8]  }
  0xc8   :  { %s25616_s1 = smov [#allocation12]   ;;  %s25617_s22 = smov [#allocation15]  }
  0xc9   :  { %s108_s4 = sshll.u32 %s25616_s1, 4  ;;  %s130_s10 = sshll.u32 %s25617_s22, 4  ;;  %s109_s4 = int_to_ptr.vmem [resolvable:$true] %s108_s4  ;;  %s25853_s10 = int_to_ptr.vmem [resolvable:$true] %s130_s10 }
  0xca   :  { %s25452_s20 = scalar_lea.hbm %s28270_s9, 512 }
  0xcb   :  { %p25453_p10 = scmp.ne.s32.totalorder %s28270_s9, %s25452_s20  ;;  %p25456_p11 = scmp.lt.u32.totalorder %s25452_s20, %s28270_s9 }
  0xcd   :  { %p25458_p12 = pnand %p25456_p11, %p25453_p10 }
  0xcf   :  { %25461 = shalt.err (!%p25458_p12)
}
  0xd0   :  { %s25462_s6 = scalar_lea.vmem %s109_s4, 512  ;;  %p25467_p0 = scmp.lt.s32.totalorder %s109_s4, %s109_s4 }
  0xd1   :  { %p25463_p13 = scmp.ne.s32.totalorder %s109_s4, %s25462_s6  ;;  %p25468_p1 = scmp.lt.s32.totalorder %s25462_s6, %s25462_s6 }
  0xd3   :  { %p25469_p2 = por %p25468_p1, %p25467_p0 }
  0xd5   :  { %p25470_p3 = pnand %p25469_p2, %p25463_p13 }
  0xd7   :  { %25473 = shalt.err (!%p25470_p3)
}
  0xd8   :  { %114 = dma.hbm_to_vmem [thread:$0]  %s28270_s9, 512, %s109_s4, [#allocation11], %s25612_s16, %s25612_s16, %s25613_s26  }
  0xd9   :  { %s25474_s8 = scalar_lea.hbm %s28272_s11, 1536 }
  0xda   :  { %p25475_p4 = scmp.ne.s32.totalorder %s28272_s11, %s25474_s8  ;;  %p25478_p5 = scmp.lt.u32.totalorder %s25474_s8, %s28272_s11 }
  0xdc   :  { %p25480_p6 = pnand %p25478_p5, %p25475_p4 }
  0xde   :  { %25483 = shalt.err (!%p25480_p6)
}
  0xdf   :  { %s25484_s22 = scalar_lea.vmem %s25853_s10, 1536  ;;  %p25489_p8 = scmp.lt.s32.totalorder %s25853_s10, %s25853_s10 }
  0xe0   :  { %p25485_p7 = scmp.ne.s32.totalorder %s25853_s10, %s25484_s22  ;;  %p25490_p9 = scmp.lt.s32.totalorder %s25484_s22, %s25484_s22 }
  0xe2   :  { %p25491_p10 = por %p25490_p9, %p25489_p8 }
  0xe4   :  { %p25492_p11 = pnand %p25491_p10, %p25485_p7 }
  0xe6   :  { %25495 = shalt.err (!%p25492_p11)
}
  0xe7   :  { %136 = dma.hbm_to_vmem [thread:$0]  %s28272_s11, 1536, %s25853_s10, [#allocation14], %s25612_s16, %s25612_s16, %s25613_s26  }
  0xe8   :  { %s25618_s28 = smov [#allocation18]   ;;  %s25619_s20 = smov [#allocation21]  }
  0xe9   :  { %s154_s12 = sshll.u32 %s25618_s28, 4  ;;  %s176_s24 = sshll.u32 %s25619_s20, 4  ;;  %s155_s12 = int_to_ptr.vmem [resolvable:$true] %s154_s12  ;;  %s25890_s24 = int_to_ptr.vmem [resolvable:$true] %s176_s24 }
  0xea   :  { %s25496_s3 = scalar_lea.hbm %s28274_s13, 2304 }
  0xeb   :  { %p25497_p12 = scmp.ne.s32.totalorder %s28274_s13, %s25496_s3  ;;  %p25500_p13 = scmp.lt.u32.totalorder %s25496_s3, %s28274_s13 }
  0xed   :  { %p25502_p0 = pnand %p25500_p13, %p25497_p12 }
  0xef   :  { %25505 = shalt.err (!%p25502_p0)
}
  0xf0   :  { %s25506_s11 = scalar_lea.vmem %s155_s12, 2304  ;;  %p25511_p2 = scmp.lt.s32.totalorder %s155_s12, %s155_s12 }
  0xf1   :  { %p25507_p1 = scmp.ne.s32.totalorder %s155_s12, %s25506_s11  ;;  %p25512_p3 = scmp.lt.s32.totalorder %s25506_s11, %s25506_s11 }
  0xf3   :  { %p25513_p4 = por %p25512_p3, %p25511_p2 }
  0xf5   :  { %p25514_p5 = pnand %p25513_p4, %p25507_p1 }
  0xf7   :  { %25517 = shalt.err (!%p25514_p5)
}
  0xf8   :  { %160 = dma.hbm_to_vmem [thread:$0]  %s28274_s13, 2304, %s155_s12, [#allocation17], %s25612_s16, %s25612_s16, %s25613_s26  }
  0xf9   :  { %s25518_s21 = scalar_lea.hbm %s28276_s15, 2688 }
  0xfa   :  { %p25519_p6 = scmp.ne.s32.totalorder %s28276_s15, %s25518_s21  ;;  %p25522_p7 = scmp.lt.u32.totalorder %s25518_s21, %s28276_s15 }
  0xfc   :  { %p25524_p8 = pnand %p25522_p7, %p25519_p6 }
  0xfe   :  { %25527 = shalt.err (!%p25524_p8)
}
  0xff   :  { %s25528_s4 = scalar_lea.vmem %s25890_s24, 2688  ;;  %p25533_p10 = scmp.lt.s32.totalorder %s25890_s24, %s25890_s24 }
 0x100   :  { %p25529_p9 = scmp.ne.s32.totalorder %s25890_s24, %s25528_s4  ;;  %p25534_p11 = scmp.lt.s32.totalorder %s25528_s4, %s25528_s4 }
 0x102   :  { %p25535_p12 = por %p25534_p11, %p25533_p10 }
 0x104   :  { %p25536_p13 = pnand %p25535_p12, %p25529_p9 }
 0x106   :  { %25539 = shalt.err (!%p25536_p13)
}
 0x107   :  { %182 = dma.hbm_to_vmem [thread:$0]  %s28276_s15, 2688, %s25890_s24, [#allocation20], %s25612_s16, %s25612_s16, %s25613_s26  }
 0x108   :  { %s25620_s12 = smov [#allocation24]   ;;  %s25540_s3 = scalar_lea.hbm %s28278_s17, 87808 }
 0x109   :  { %s198_s20 = sshll.u32 %s25620_s12, 4  ;;  %p25541_p0 = scmp.ne.s32.totalorder %s28278_s17, %s25540_s3  ;;  %s199_s20 = int_to_ptr.vmem [resolvable:$true] %s198_s20 }
 0x10a   :  { %p25544_p1 = scmp.lt.u32.totalorder %s25540_s3, %s28278_s17 }
 0x10c   :  { %p25546_p2 = pnand %p25544_p1, %p25541_p0 }
 0x10e   :  { %25549 = shalt.err (!%p25546_p2)
}
 0x10f   :  { %s25550_s11 = scalar_lea.vmem %s199_s20, 87808  ;;  %p25555_p4 = scmp.lt.s32.totalorder %s199_s20, %s199_s20 }
 0x110   :  { %p25551_p3 = scmp.ne.s32.totalorder %s199_s20, %s25550_s11  ;;  %p25556_p5 = scmp.lt.s32.totalorder %s25550_s11, %s25550_s11 }
 0x112   :  { %p25557_p6 = por %p25556_p5, %p25555_p4 }
 0x114   :  { %p25558_p7 = pnand %p25557_p6, %p25551_p3 }
 0x116   :  { %25561 = shalt.err (!%p25558_p7)
}
 0x117   :  { %s25621_s15 = smov 448   ;;  %s25622_s16 = smov 28  }
 0x118   :  { %204 = dma.hbm_to_vmem [thread:$0]  %s28278_s17, 87808, %s199_s20, [#allocation23], %s25621_s15, %s25621_s15, %s25622_s16  }
 0x119   :  { %s25623_s10 = smov [#allocation25]   ;;  %s25562_s21 = scalar_lea.hbm %s28279_s18, 112 }
 0x11a   :  { %s211_s14 = sshll.u32 %s25623_s10, 4  ;;  %p25563_p8 = scmp.ne.s32.totalorder %s28279_s18, %s25562_s21  ;;  %s212_s14 = int_to_ptr.vmem [resolvable:$true] %s211_s14 }
 0x11b   :  { %p25566_p9 = scmp.lt.u32.totalorder %s25562_s21, %s28279_s18 }
 0x11d   :  { %p25568_p10 = pnand %p25566_p9, %p25563_p8 }
 0x11f   :  { %25571 = shalt.err (!%p25568_p10)
}
 0x120   :  { %s25572_s4 = scalar_lea.vmem %s212_s14, 112  ;;  %s25576_s17 = scalar_lea.vmem %s212_s14, 128 }
 0x121   :  { %p25573_p11 = scmp.ne.s32.totalorder %s212_s14, %s25572_s4  ;;  %p25577_p12 = scmp.lt.s32.totalorder %s212_s14, %s212_s14 }
 0x122   :  { %p25578_p13 = scmp.lt.s32.totalorder %s25576_s17, %s25572_s4 }
 0x124   :  { %p25579_p0 = por %p25578_p13, %p25577_p12 }
 0x126   :  { %p25580_p1 = pnand %p25579_p0, %p25573_p11 }
 0x128   :  { %25583 = shalt.err (!%p25580_p1)
}
 0x129   :  { %214 = dma.hbm_to_vmem [thread:$0]  %s28279_s18, 112, %s212_s14, [#allocation26]  }
 0x12a   :  { %25584 = dma.done.wait [#allocation3], 87808  }
 0x12b   :  { %25585 = vsyncadd [#allocation3], 4294879488 }
 0x12c   :  { %25586 = dma.done.wait [#allocation5], 2704  }
 0x12d   :  { %25587 = vsyncadd [#allocation5], 4294964592 }
 0x12e   :  { %25588 = dma.done.wait [#allocation8], 32  }
 0x12f   :  { %25589 = vsyncadd [#allocation8], 4294967264 }
 0x130   :  { %25590 = dma.done.wait [#allocation11], 528  }
 0x131   :  { %25591 = vsyncadd [#allocation11], 4294966768 }
 0x132   :  { %25592 = dma.done.wait [#allocation14], 1552  }
 0x133   :  { %25593 = vsyncadd [#allocation14], 4294965744 }
 0x134   :  { %25594 = dma.done.wait [#allocation17], 2352  }
 0x135   :  { %25595 = vsyncadd [#allocation17], 4294964944 }
 0x136   :  { %25596 = dma.done.wait [#allocation20], 2704  }
 0x137   :  { %25597 = vsyncadd [#allocation20], 4294964592 }
 0x138   :  { %25598 = dma.done.wait [#allocation23], 87824  }
 0x139   :  { %25599 = vsyncadd [#allocation23], 4294879472 }
 0x13a   :  { %25600 = dma.done.wait [#allocation26], 112  }
 0x13b   :  { %25601 = vsyncadd [#allocation26], 4294967184  ;;  %v23412_v0 = vld [vmem:[#allocation2 + $0x40] sm:$0xff]   ;;  %v23416_v4 = vld [vmem:[#allocation2 + $0x48] sm:$0xff]   ;;  %s28292_s20 = sld [smem:[#allocation36_spill]]  ;;  %vm25625_vm0 = vmmov 0  }
 0x13c   :  { %v23413_v1 = vld [vmem:[#allocation2 + $0xc0] sm:$0xff]   ;;  %20369 = vmatprep.subr.bf16.mxu0 %v23412_v0  ;;  %v23417_v5 = vld [vmem:[#allocation2 + $0xc8] sm:$0xff]   ;;  %v23420_v8 = vld [vmem:[#allocation2 + $0x50] sm:$0xff]   ;;  %vm691_vm1 = vcmask 130048   ;;  %vm8133_vm2 = vcmask 916480   ;;  %vm9749_vm3 = vcmask 785408  }
 0x13d   :  { %v23414_v2 = vld [vmem:[#allocation2] sm:$0xff]   ;;  %20391 = vmatprep.subr.bf16.mxu1 %v23413_v1  ;;  %v23418_v6 = vld [vmem:[#allocation2 + $0x8] sm:$0xff]   ;;  %v23421_v9 = vld [vmem:[#allocation2 + $0xd0] sm:$0xff]   ;;  %vm10015_vm4 = vcmask 523264  }
 0x13e   :  { %v23415_v3 = vld [vmem:[#allocation2 + $0x80] sm:$0xff]   ;;  %20370 = vmatpush3.bf16.msra.mxu0 %v23414_v2  ;;  %v23419_v7 = vld [vmem:[#allocation2 + $0x88] sm:$0xff]   ;;  %v23422_v10 = vld [vmem:[#allocation2 + $0x10] sm:$0xff]  }
 0x13f   :  { %20392 = vmatpush3.bf16.msra.mxu1 %v23415_v3  ;;  %20371 = vmatprep.subr.bf16.mxu0 %v23416_v4  ;;  %v23423_v11 = vld [vmem:[#allocation2 + $0x90] sm:$0xff]   ;;  %v23424_v12 = vld [vmem:[#allocation2 + $0x58] sm:$0xff]   ;;  %v23428_v16 = vld [vmem:[#allocation2 + $0x60] sm:$0xff]  }
 0x140   :  { %20393 = vmatprep.subr.bf16.mxu1 %v23417_v5  ;;  %v23425_v13 = vld [vmem:[#allocation2 + $0xd8] sm:$0xff]   ;;  %v23429_v17 = vld [vmem:[#allocation2 + $0xe0] sm:$0xff]   ;;  %v23432_v20 = vld [vmem:[#allocation2 + $0x68] sm:$0xff]  }
 0x141   :  { %v23426_v14 = vld [vmem:[#allocation2 + $0x18] sm:$0xff]   ;;  %v23430_v18 = vld [vmem:[#allocation2 + $0x20] sm:$0xff]   ;;  %v23433_v21 = vld [vmem:[#allocation2 + $0xe8] sm:$0xff]  }
 0x142   :  { %20372 = vmatpush3.bf16.msra.mxu0 %v23418_v6  ;;  %v23427_v15 = vld [vmem:[#allocation2 + $0x98] sm:$0xff]   ;;  %v23431_v19 = vld [vmem:[#allocation2 + $0xa0] sm:$0xff]   ;;  %v23434_v22 = vld [vmem:[#allocation2 + $0x28] sm:$0xff]  }
 0x143   :  { %20394 = vmatpush3.bf16.msra.mxu1 %v23419_v7  ;;  %20373 = vmatprep.subr.bf16.mxu0 %v23420_v8  ;;  %v23435_v23 = vld [vmem:[#allocation2 + $0xa8] sm:$0xff]   ;;  %v23436_v24 = vld [vmem:[#allocation2 + $0x70] sm:$0xff]   ;;  %v23440_v28 = vld [vmem:[#allocation2 + $0x78] sm:$0xff]  }
 0x144   :  { %20395 = vmatprep.subr.bf16.mxu1 %v23421_v9  ;;  %v23437_v25 = vld [vmem:[#allocation2 + $0xf0] sm:$0xff]   ;;  %v23441_v29 = vld [vmem:[#allocation2 + $0xf8] sm:$0xff]   ;;  %v264_v32 = vld [vmem:[%s28292_s20] sm:$0xff] }
 0x145   :  { %v23438_v26 = vld [vmem:[#allocation2 + $0x30] sm:$0xff]   ;;  %v23442_v30 = vld [vmem:[#allocation2 + $0x38] sm:$0xff]   ;;  %v265_v33 = vld [vmem:[%s28292_s20 + $0x8] sm:$0xff]  ;;  %v25957_v34 = vcombine.high %v264_v32, %v264_v32  ;;  %v25959_v35 = vcombine.low %v264_v32, %v264_v32 }
 0x146   :  { %20374 = vmatpush3.bf16.msra.mxu0 %v23422_v10  ;;  %v23439_v27 = vld [vmem:[#allocation2 + $0xb0] sm:$0xff]   ;;  %v23443_v31 = vld [vmem:[#allocation2 + $0xb8] sm:$0xff]   ;;  %v25961_v36 = vcombine.high %v265_v33, %v265_v33  ;;  %v23447_v37 = vld [vmem:[#allocation2 + $0x140] sm:$0xff]   ;;  %v25963_v38 = vcombine.low %v265_v33, %v265_v33 }
 0x147   :  { %20396 = vmatpush3.bf16.msra.mxu1 %v23423_v11  ;;  %20375 = vmatprep.subr.bf16.mxu0 %v23424_v12  ;;  %v23448_v39 = vld [vmem:[#allocation2 + $0x1c8] sm:$0xff]   ;;  %v23450_v40 = vld [vmem:[#allocation2 + $0x100] sm:$0xff]   ;;  %v23453_v43 = vld [vmem:[#allocation2 + $0x1d0] sm:$0xff]   ;;  %v25624_v11 = vmov 0.0  }
 0x148   :  { %20397 = vmatprep.subr.bf16.mxu1 %v23425_v13  ;;  %727 = vmatprep.mubr.bf16.mxu0 %v25957_v34  ;;  %v23451_v41 = vld [vmem:[#allocation2 + $0x188] sm:$0xff]   ;;  %v23455_v45 = vld [vmem:[#allocation2 + $0x190] sm:$0xff]   ;;  %v23457_v47 = vld [vmem:[#allocation2 + $0x1d8] sm:$0xff]  }
 0x149   :  { %767 = vmatprep.mubr.bf16.mxu1 %v25961_v36  ;;  %v23452_v42 = vld [vmem:[#allocation2 + $0x148] sm:$0xff]   ;;  %v23456_v46 = vld [vmem:[#allocation2 + $0x150] sm:$0xff]   ;;  %v23459_v49 = vld [vmem:[#allocation2 + $0x198] sm:$0xff]  }
 0x14a   :  { %20376 = vmatpush3.bf16.msra.mxu0 %v23426_v14  ;;  %v23454_v44 = vld [vmem:[#allocation2 + $0x108] sm:$0xff]   ;;  %v23458_v48 = vld [vmem:[#allocation2 + $0x110] sm:$0xff]   ;;  %v23460_v50 = vld [vmem:[#allocation2 + $0x158] sm:$0xff]  }
 0x14b   :  { %20398 = vmatpush3.bf16.msra.mxu1 %v23427_v15  ;;  %20377 = vmatprep.subr.bf16.mxu0 %v23428_v16  ;;  %v23461_v51 = vld [vmem:[#allocation2 + $0x1e0] sm:$0xff]   ;;  %v23462_v52 = vld [vmem:[#allocation2 + $0x118] sm:$0xff]   ;;  %v23465_v55 = vld [vmem:[#allocation2 + $0x1e8] sm:$0xff]  }
 0x14c   :  { %20399 = vmatprep.subr.bf16.mxu1 %v23429_v17  ;;  %v23463_v53 = vld [vmem:[#allocation2 + $0x1a0] sm:$0xff]   ;;  %v23467_v57 = vld [vmem:[#allocation2 + $0x1a8] sm:$0xff]   ;;  %v23469_v59 = vld [vmem:[#allocation2 + $0x1f0] sm:$0xff]  }
 0x14d   :  { %v23464_v54 = vld [vmem:[#allocation2 + $0x160] sm:$0xff]   ;;  %v23468_v58 = vld [vmem:[#allocation2 + $0x168] sm:$0xff]   ;;  %v23471_v61 = vld [vmem:[#allocation2 + $0x1b0] sm:$0xff]  }
 0x14e   :  { %20378 = vmatpush3.bf16.msra.mxu0 %v23430_v18  ;;  %v23466_v56 = vld [vmem:[#allocation2 + $0x120] sm:$0xff]   ;;  %v23470_v60 = vld [vmem:[#allocation2 + $0x128] sm:$0xff]   ;;  %v23472_v62 = vld [vmem:[#allocation2 + $0x170] sm:$0xff]  }
 0x14f   :  { %20400 = vmatpush3.bf16.msra.mxu1 %v23431_v19  ;;  %20379 = vmatprep.subr.bf16.mxu0 %v23432_v20  ;;  %v23473_v63 = vld [vmem:[#allocation2 + $0x1f8] sm:$0xff]   ;;  %v23474_v0 = vld [vmem:[#allocation2 + $0x130] sm:$0xff]   ;;  %v23477_v3 = vld [vmem:[#allocation2 + $0x200] sm:$0xff]  }
 0x150   :  { %20401 = vmatprep.subr.bf16.mxu1 %v23433_v21  ;;  %v23475_v1 = vld [vmem:[#allocation2 + $0x1b8] sm:$0xff]   ;;  %v23479_v5 = vld [vmem:[#allocation2 + $0x1c0] sm:$0xff]   ;;  %v266_v6 = vld [vmem:[%s28292_s20 + $0x10] sm:$0xff] }
 0x151   :  { %v23476_v2 = vld [vmem:[#allocation2 + $0x178] sm:$0xff]   ;;  %v25973_v7 = vcombine.high %v266_v6, %v266_v6  ;;  %v25975_v8 = vcombine.low %v266_v6, %v266_v6  ;;  %v23482_v9 = vld [vmem:[#allocation2 + $0x2c8] sm:$0xff]   ;;  %v23483_v10 = vld [vmem:[#allocation2 + $0x180] sm:$0xff]  }
 0x152   :  { %20380 = vmatpush3.bf16.msra.mxu0 %v23434_v22  ;;  %v23478_v4 = vld [vmem:[#allocation2 + $0x138] sm:$0xff]   ;;  %v23484_v12 = vld [vmem:[#allocation2 + $0x288] sm:$0xff]   ;;  %v23485_v13 = vld [vmem:[#allocation2 + $0x2d0] sm:$0xff]  }
 0x153   :  { %20402 = vmatpush3.bf16.msra.mxu1 %v23435_v23  ;;  %20381 = vmatprep.subr.bf16.mxu0 %v23436_v24  ;;  %v23486_v14 = vld [vmem:[#allocation2 + $0x290] sm:$0xff]   ;;  %v23487_v15 = vld [vmem:[#allocation2 + $0x248] sm:$0xff]   ;;  %v25986_v16 = vld [vmem:[%s28292_s20 + $0x18] ss:$0 sps:$4 sm:$0xff]  }
 0x154   :  { %20403 = vmatprep.subr.bf16.mxu1 %v23437_v25  ;;  %v23489_v17 = vld [vmem:[#allocation2 + $0x208] sm:$0xff]   ;;  %v23490_v18 = vld [vmem:[#allocation2 + $0x2d8] sm:$0xff]   ;;  %v23492_v20 = vld [vmem:[#allocation2 + $0x250] sm:$0xff]  }
 0x155   :  { %v23491_v19 = vld [vmem:[#allocation2 + $0x298] sm:$0xff]   ;;  %v23493_v21 = vld [vmem:[#allocation2 + $0x210] sm:$0xff]   ;;  %v23494_v22 = vld [vmem:[#allocation2 + $0x2e0] sm:$0xff]  }
 0x156   :  { %20382 = vmatpush3.bf16.msra.mxu0 %v23438_v26  ;;  %v23495_v23 = vld [vmem:[#allocation2 + $0x2a0] sm:$0xff]   ;;  %v23496_v24 = vld [vmem:[#allocation2 + $0x258] sm:$0xff]   ;;  %v23498_v26 = vld [vmem:[#allocation2 + $0x2e8] sm:$0xff]  }
 0x157   :  { %20404 = vmatpush3.bf16.msra.mxu1 %v23439_v27  ;;  %20383 = vmatprep.subr.bf16.mxu0 %v23440_v28  ;;  %v23497_v25 = vld [vmem:[#allocation2 + $0x218] sm:$0xff]   ;;  %v23499_v27 = vld [vmem:[#allocation2 + $0x2a8] sm:$0xff]   ;;  %v23500_v28 = vld [vmem:[#allocation2 + $0x260] sm:$0xff]  }
 0x158   :  { %20405 = vmatprep.subr.bf16.mxu1 %v23441_v29  ;;  %v23501_v29 = vld [vmem:[#allocation2 + $0x220] sm:$0xff]   ;;  %v23504_v32 = vld [vmem:[#allocation2 + $0x268] sm:$0xff]  }
 0x159   :  { %v23505_v33 = vld [vmem:[#allocation2 + $0x228] sm:$0xff]  }
 0x15a   :  { %20384 = vmatpush3.bf16.msra.mxu0 %v23442_v30  ;;  %v23502_v30 = vld [vmem:[#allocation2 + $0x2f0] sm:$0xff]   ;;  %v23539_v6 = vld [vmem:[#allocation2 + $0x408] sm:$0xff]  }
 0x15b   :  { %20406 = vmatpush3.bf16.msra.mxu1 %v23443_v31  ;;  %20413 = vmatprep.subr.bf16.mxu0 %v23447_v37  ;;  %v23503_v31 = vld [vmem:[#allocation2 + $0x2b0] sm:$0xff]   ;;  %v23506_v37 = vld [vmem:[#allocation2 + $0x2f8] sm:$0xff]  }
 0x15c   :  { %20437 = vmatprep.subr.bf16.mxu1 %v23448_v39  ;;  %v23507_v39 = vld [vmem:[#allocation2 + $0x2b8] sm:$0xff]  }
 0x15d   :  { %728 = vmatmul.mubr.bf16.vlgmr.msra.gmra.mrb[0].mxu0 %v25959_v35 }
 0x15e   :  { %768 = vmatmul.mubr.bf16.vlgmr.msra.gmra.mrb[0].mxu1 %v25963_v38  ;;  %20414 = vmatpush3.bf16.msra.mxu0 %v23450_v40  ;;  %v23508_v40 = vld [vmem:[#allocation2 + $0x270] sm:$0xff]  }
 0x15f   :  { %20438 = vmatpush3.bf16.msra.mxu1 %v23451_v41  ;;  %20415 = vmatprep.subr.bf16.mxu0 %v23452_v42  ;;  %v23509_v41 = vld [vmem:[#allocation2 + $0x230] sm:$0xff]   ;;  %v23510_v42 = vld [vmem:[#allocation2 + $0x300] sm:$0xff]  }
 0x160   :  { %1281 = vmatprep.mubr.bf16.mxu1 %v25957_v34  ;;  %20439 = vmatprep.subr.bf16.mxu1 %v23453_v43  ;;  %v23511_v43 = vld [vmem:[#allocation2 + $0x2c0] sm:$0xff]  }
 0x161   :  { %807 = vmatprep.mubr.bf16.mxu0 %v25973_v7 }
 0x162   :  { %20416 = vmatpush3.bf16.msra.mxu0 %v23454_v44  ;;  %v23512_v44 = vld [vmem:[#allocation2 + $0x278] sm:$0xff]  }
 0x163   :  { %20440 = vmatpush3.bf16.msra.mxu1 %v23455_v45  ;;  %20417 = vmatprep.subr.bf16.mxu0 %v23456_v46  ;;  %v23513_v45 = vld [vmem:[#allocation2 + $0x238] sm:$0xff]   ;;  %v23514_v46 = vld [vmem:[#allocation2 + $0x3d0] sm:$0xff]  }
 0x164   :  { %20441 = vmatprep.subr.bf16.mxu1 %v23457_v47  ;;  %v23515_v47 = vld [vmem:[#allocation2 + $0x390] sm:$0xff]  }
 0x166   :  { %20418 = vmatpush3.bf16.msra.mxu0 %v23458_v48  ;;  %v23516_v48 = vld [vmem:[#allocation2 + $0x280] sm:$0xff]  }
 0x167   :  { %20442 = vmatpush3.bf16.msra.mxu1 %v23459_v49  ;;  %20419 = vmatprep.subr.bf16.mxu0 %v23460_v50  ;;  %v23517_v49 = vld [vmem:[#allocation2 + $0x240] sm:$0xff]   ;;  %v23518_v50 = vld [vmem:[#allocation2 + $0x3d8] sm:$0xff]  }
 0x168   :  { %20443 = vmatprep.subr.bf16.mxu1 %v23461_v51  ;;  %v23519_v51 = vld [vmem:[#allocation2 + $0x398] sm:$0xff]  }
 0x16a   :  { %20420 = vmatpush3.bf16.msra.mxu0 %v23462_v52  ;;  %v23521_v52 = vld [vmem:[#allocation2 + $0x3e0] sm:$0xff]  }
 0x16b   :  { %20444 = vmatpush3.bf16.msra.mxu1 %v23463_v53  ;;  %20421 = vmatprep.subr.bf16.mxu0 %v23464_v54  ;;  %v23520_v53 = vld [vmem:[#allocation2 + $0x308] sm:$0xff]   ;;  %v23522_v54 = vld [vmem:[#allocation2 + $0x3a0] sm:$0xff]  }
 0x16c   :  { %20445 = vmatprep.subr.bf16.mxu1 %v23465_v55  ;;  %v23523_v55 = vld [vmem:[#allocation2 + $0x3e8] sm:$0xff]  }
 0x16e   :  { %20422 = vmatpush3.bf16.msra.mxu0 %v23466_v56  ;;  %v23525_v56 = vld [vmem:[#allocation2 + $0x350] sm:$0xff]  }
 0x16f   :  { %20446 = vmatpush3.bf16.msra.mxu1 %v23467_v57  ;;  %20423 = vmatprep.subr.bf16.mxu0 %v23468_v58  ;;  %v23524_v57 = vld [vmem:[#allocation2 + $0x3a8] sm:$0xff]   ;;  %v23527_v58 = vld [vmem:[#allocation2 + $0x3f0] sm:$0xff]  }
 0x170   :  { %20447 = vmatprep.subr.bf16.mxu1 %v23469_v59  ;;  %v23526_v59 = vld [vmem:[#allocation2 + $0x310] sm:$0xff]  }
 0x172   :  { %20424 = vmatpush3.bf16.msra.mxu0 %v23470_v60  ;;  %v23528_v60 = vld [vmem:[#allocation2 + $0x3b0] sm:$0xff]  }
 0x173   :  { %20448 = vmatpush3.bf16.msra.mxu1 %v23471_v61  ;;  %20425 = vmatprep.subr.bf16.mxu0 %v23472_v62  ;;  %v23529_v61 = vld [vmem:[#allocation2 + $0x358] sm:$0xff]  }
 0x174   :  { %20449 = vmatprep.subr.bf16.mxu1 %v23473_v63  ;;  %v23531_v62 = vld [vmem:[#allocation2 + $0x3f8] sm:$0xff]  }
 0x175   :  { %v23530_v63 = vld [vmem:[#allocation2 + $0x318] sm:$0xff]  }
 0x176   :  { %20426 = vmatpush3.bf16.msra.mxu0 %v23474_v0  ;;  %v23532_v0 = vld [vmem:[#allocation2 + $0x3b8] sm:$0xff]  }
 0x177   :  { %20450 = vmatpush3.bf16.msra.mxu1 %v23475_v1  ;;  %20427 = vmatprep.subr.bf16.mxu0 %v23476_v2  ;;  %v23533_v1 = vld [vmem:[#allocation2 + $0x360] sm:$0xff]  }
 0x178   :  { %20451 = vmatprep.subr.bf16.mxu1 %v23477_v3  ;;  %v23535_v2 = vld [vmem:[#allocation2 + $0x400] sm:$0xff]  }
 0x179   :  { %v23534_v3 = vld [vmem:[#allocation2 + $0x320] sm:$0xff]  }
 0x17a   :  { %20428 = vmatpush3.bf16.msra.mxu0 %v23478_v4  ;;  %v23536_v4 = vld [vmem:[#allocation2 + $0x3c0] sm:$0xff]  }
 0x17b   :  { %20452 = vmatpush3.bf16.msra.mxu1 %v23479_v5  ;;  %21929 = vmatprep.subr.bf16.mxu0 %v25624_v11  ;;  %v23537_v5 = vld [vmem:[#allocation2 + $0x368] sm:$0xff]  }
 0x17c   :  { %20481 = vmatprep.subr.bf16.mxu1 %v23482_v9  ;;  %v23538_v9 = vld [vmem:[#allocation2 + $0x328] sm:$0xff]  }
 0x17d   :  { %808 = vmatmul.mubr.bf16.vlgmr.msra.gmra.mrb[4].mxu0 %v25975_v8 }
 0x17e   :  { %1282 = vmatmul.mubr.bf16.vlgmr.msra.gmra.mrb[4].mxu1 %v25959_v35  ;;  %21930 = vmatpush3.bf16.msra.mxu0 %v23483_v10  ;;  %v23540_v10 = vld [vmem:[#allocation2 + $0x3c8] sm:$0xff]  }
 0x17f   :  { %20482 = vmatpush3.bf16.msra.mxu1 %v23484_v12  ;;  %21931 = vmatprep.mubr.msk.bf16.mxu0 %vm25625_vm0, %v25624_v11  ;;  %v23541_v12 = vld [vmem:[#allocation2 + $0x370] sm:$0xff]  }
 0x180   :  { %20483 = vmatprep.subr.bf16.mxu1 %v23485_v13  ;;  %20459 = vmatprep.subr.bf16.mxu0 %v23487_v15  ;;  %v23542_v13 = vld [vmem:[#allocation2 + $0x330] sm:$0xff]   ;;  %v23543_v15 = vld [vmem:[#allocation2 + $0x378] sm:$0xff]  }
 0x181   :  { %1361 = vmatprep.mubr.bf16.mxu1 %v25973_v7 }
 0x183   :  { %20484 = vmatpush3.bf16.msra.mxu1 %v23486_v14  ;;  %v23545_v14 = vld [vmem:[#allocation2 + $0x490] sm:$0xff]  }
 0x184   :  { %20485 = vmatprep.subr.bf16.mxu1 %v23490_v18  ;;  %v23544_v18 = vld [vmem:[#allocation2 + $0x338] sm:$0xff]  }
 0x185   :  { %21932 = vmatmul.mubr.msk.bf16.vlgmr.msra.gmra.mrb[8].mxu0 %vm691_vm1, %v25986_v16 }
 0x186   :  { %20460 = vmatpush3.bf16.msra.mxu0 %v23489_v17  ;;  %1321 = vmatprep.mubr.bf16.mxu0 %v25961_v36  ;;  %v23548_v17 = vld [vmem:[#allocation2 + $0x4d8] sm:$0xff]  }
 0x187   :  { %20486 = vmatpush3.bf16.msra.mxu1 %v23491_v19  ;;  %20461 = vmatprep.subr.bf16.mxu0 %v23492_v20  ;;  %v23546_v19 = vld [vmem:[#allocation2 + $0x380] sm:$0xff]  }
 0x188   :  { %20487 = vmatprep.subr.bf16.mxu1 %v23494_v22  ;;  %v23547_v20 = vld [vmem:[#allocation2 + $0x340] sm:$0xff]   ;;  %v23550_v22 = vld [vmem:[#allocation2 + $0x388] sm:$0xff]  }
 0x18a   :  { %20462 = vmatpush3.bf16.msra.mxu0 %v23493_v21  ;;  %v23549_v21 = vld [vmem:[#allocation2 + $0x498] sm:$0xff]  }
 0x18b   :  { %20488 = vmatpush3.bf16.msra.mxu1 %v23495_v23  ;;  %20463 = vmatprep.subr.bf16.mxu0 %v23496_v24  ;;  %v23552_v23 = vld [vmem:[#allocation2 + $0x4e0] sm:$0xff]   ;;  %v23551_v24 = vld [vmem:[#allocation2 + $0x348] sm:$0xff]  }
 0x18c   :  { %20489 = vmatprep.subr.bf16.mxu1 %v23498_v26  ;;  %v23554_v26 = vld [vmem:[#allocation2 + $0x450] sm:$0xff]  }
 0x18e   :  { %20464 = vmatpush3.bf16.msra.mxu0 %v23497_v25  ;;  %v23553_v25 = vld [vmem:[#allocation2 + $0x4a0] sm:$0xff]  }
 0x18f   :  { %20490 = vmatpush3.bf16.msra.mxu1 %v23499_v27  ;;  %20465 = vmatprep.subr.bf16.mxu0 %v23500_v28  ;;  %v23556_v27 = vld [vmem:[#allocation2 + $0x4e8] sm:$0xff]   ;;  %v23555_v28 = vld [vmem:[#allocation2 + $0x410] sm:$0xff]  }
 0x190   :  { %20491 = vmatprep.subr.bf16.mxu1 %v23502_v30  ;;  %v23558_v30 = vld [vmem:[#allocation2 + $0x458] sm:$0xff]  }
 0x192   :  { %20466 = vmatpush3.bf16.msra.mxu0 %v23501_v29  ;;  %v23557_v29 = vld [vmem:[#allocation2 + $0x4a8] sm:$0xff]  }
 0x193   :  { %20492 = vmatpush3.bf16.msra.mxu1 %v23503_v31  ;;  %20467 = vmatprep.subr.bf16.mxu0 %v23504_v32  ;;  %v23560_v31 = vld [vmem:[#allocation2 + $0x4f0] sm:$0xff]   ;;  %v23559_v32 = vld [vmem:[#allocation2 + $0x418] sm:$0xff]  }
 0x194   :  { %20493 = vmatprep.subr.bf16.mxu1 %v23506_v37  ;;  %v23564_v37 = vld [vmem:[#allocation2 + $0x4f8] sm:$0xff]  }
 0x196   :  { %20468 = vmatpush3.bf16.msra.mxu0 %v23505_v33  ;;  %v23562_v33 = vld [vmem:[#allocation2 + $0x460] sm:$0xff]  }
 0x197   :  { %20494 = vmatpush3.bf16.msra.mxu1 %v23507_v39  ;;  %20469 = vmatprep.subr.bf16.mxu0 %v23508_v40  ;;  %v23563_v39 = vld [vmem:[#allocation2 + $0x420] sm:$0xff]   ;;  %v23565_v40 = vld [vmem:[#allocation2 + $0x4b8] sm:$0xff]  }
 0x198   :  { %20495 = vmatprep.subr.bf16.mxu1 %v23510_v42  ;;  %v23568_v42 = vld [vmem:[#allocation2 + $0x500] sm:$0xff]  }
 0x19a   :  { %20470 = vmatpush3.bf16.msra.mxu0 %v23509_v41  ;;  %v23566_v41 = vld [vmem:[#allocation2 + $0x468] sm:$0xff]  }
 0x19b   :  { %20496 = vmatpush3.bf16.msra.mxu1 %v23511_v43  ;;  %20471 = vmatprep.subr.bf16.mxu0 %v23512_v44  ;;  %v23567_v43 = vld [vmem:[#allocation2 + $0x428] sm:$0xff]   ;;  %v23569_v44 = vld [vmem:[#allocation2 + $0x4c0] sm:$0xff]  }
 0x19c   :  { %20527 = vmatprep.subr.bf16.mxu1 %v23514_v46  ;;  %v23572_v46 = vld [vmem:[#allocation2 + $0x508] sm:$0xff]  }
 0x19e   :  { %1362 = vmatmul.mubr.bf16.vlgmr.msra.gmra.mrb[8].mxu1 %v25975_v8  ;;  %20472 = vmatpush3.bf16.msra.mxu0 %v23513_v45  ;;  %v23570_v45 = vld [vmem:[#allocation2 + $0x470] sm:$0xff]  }
 0x19f   :  { %20528 = vmatpush3.bf16.msra.mxu1 %v23515_v47  ;;  %20473 = vmatprep.subr.bf16.mxu0 %v23516_v48  ;;  %v23571_v47 = vld [vmem:[#allocation2 + $0x430] sm:$0xff]   ;;  %v23573_v48 = vld [vmem:[#allocation2 + $0x4c8] sm:$0xff]  }
 0x1a0   :  { %20529 = vmatprep.subr.bf16.mxu1 %v23518_v50  ;;  %1875 = vmatprep.mubr.bf16.mxu1 %v25961_v36  ;;  %v23576_v50 = vld [vmem:[#allocation2 + $0x510] sm:$0xff]  }
 0x1a2   :  { %20474 = vmatpush3.bf16.msra.mxu0 %v23517_v49  ;;  %v23574_v49 = vld [vmem:[#allocation2 + $0x478] sm:$0xff]  }
 0x1a3   :  { %20530 = vmatpush3.bf16.msra.mxu1 %v23519_v51  ;;  %21935 = vmatprep.subr.bf16.mxu0 %v25624_v11  ;;  %v23575_v51 = vld [vmem:[#allocation2 + $0x438] sm:$0xff]  }
 0x1a4   :  { %20531 = vmatprep.subr.bf16.mxu1 %v23521_v52  ;;  %v23577_v52 = vld [vmem:[#allocation2 + $0x4d0] sm:$0xff]  }
 0x1a5   :  { %1322 = vmatmul.mubr.bf16.vlgmr.msra.gmra.mrb[12].mxu0 %v25963_v38 }
 0x1a6   :  { %21936 = vmatpush3.bf16.msra.mxu0 %v23520_v53  ;;  %21937 = vmatprep.mubr.msk.bf16.mxu0 %vm25625_vm0, %v25624_v11  ;;  %v23578_v53 = vld [vmem:[#allocation2 + $0x480] sm:$0xff]  }
 0x1a7   :  { %20532 = vmatpush3.bf16.msra.mxu1 %v23522_v54  ;;  %20505 = vmatprep.subr.bf16.mxu0 %v23525_v56  ;;  %v23580_v54 = vld [vmem:[#allocation2 + $0x5d8] sm:$0xff]  }
 0x1a8   :  { %20533 = vmatprep.subr.bf16.mxu1 %v23523_v55  ;;  %v23579_v55 = vld [vmem:[#allocation2 + $0x440] sm:$0xff]   ;;  %v23581_v56 = vld [vmem:[#allocation2 + $0x598] sm:$0xff]  }
 0x1ab   :  { %20534 = vmatpush3.bf16.msra.mxu1 %v23524_v57  ;;  %v23582_v57 = vld [vmem:[#allocation2 + $0x488] sm:$0xff]  }
 0x1ac   :  { %20535 = vmatprep.subr.bf16.mxu1 %v23527_v58  ;;  %v23584_v58 = vld [vmem:[#allocation2 + $0x5e0] sm:$0xff]  }
 0x1ad   :  { %21938 = vmatmul.mubr.msk.bf16.vlgmr.msra.gmra.mrb[16].mxu0 %vm691_vm1, %v25986_v16 }
 0x1ae   :  { %20506 = vmatpush3.bf16.msra.mxu0 %v23526_v59  ;;  %1835 = vmatprep.mubr.bf16.mxu0 %v25957_v34  ;;  %v23583_v59 = vld [vmem:[#allocation2 + $0x448] sm:$0xff]  }
 0x1af   :  { %20536 = vmatpush3.bf16.msra.mxu1 %v23528_v60  ;;  %20507 = vmatprep.subr.bf16.mxu0 %v23529_v61  ;;  %v23585_v60 = vld [vmem:[#allocation2 + $0x5a0] sm:$0xff]   ;;  %v23586_v61 = vld [vmem:[#allocation2 + $0x558] sm:$0xff]  }
 0x1b0   :  { %20537 = vmatprep.subr.bf16.mxu1 %v23531_v62  ;;  %v23588_v62 = vld [vmem:[#allocation2 + $0x5e8] sm:$0xff]  }
 0x1b2   :  { %20508 = vmatpush3.bf16.msra.mxu0 %v23530_v63  ;;  %v23587_v63 = vld [vmem:[#allocation2 + $0x518] sm:$0xff]  }
 0x1b3   :  { %20538 = vmatpush3.bf16.msra.mxu1 %v23532_v0  ;;  %20509 = vmatprep.subr.bf16.mxu0 %v23533_v1  ;;  %v23589_v0 = vld [vmem:[#allocation2 + $0x5a8] sm:$0xff]   ;;  %v23590_v1 = vld [vmem:[#allocation2 + $0x560] sm:$0xff]  }
 0x1b4   :  { %20539 = vmatprep.subr.bf16.mxu1 %v23535_v2  ;;  %v23592_v2 = vld [vmem:[#allocation2 + $0x5f0] sm:$0xff]  }
 0x1b6   :  { %20510 = vmatpush3.bf16.msra.mxu0 %v23534_v3  ;;  %v23591_v3 = vld [vmem:[#allocation2 + $0x520] sm:$0xff]  }
 0x1b7   :  { %20540 = vmatpush3.bf16.msra.mxu1 %v23536_v4  ;;  %20511 = vmatprep.subr.bf16.mxu0 %v23537_v5  ;;  %v23593_v4 = vld [vmem:[#allocation2 + $0x5b0] sm:$0xff]   ;;  %v23594_v5 = vld [vmem:[#allocation2 + $0x568] sm:$0xff]  }
 0x1b8   :  { %20541 = vmatprep.subr.bf16.mxu1 %v23539_v6  ;;  %v23596_v6 = vld [vmem:[#allocation2 + $0x5f8] sm:$0xff]  }
 0x1ba   :  { %20512 = vmatpush3.bf16.msra.mxu0 %v23538_v9  ;;  %v23595_v9 = vld [vmem:[#allocation2 + $0x528] sm:$0xff]  }
 0x1bb   :  { %20542 = vmatpush3.bf16.msra.mxu1 %v23540_v10  ;;  %20513 = vmatprep.subr.bf16.mxu0 %v23541_v12  ;;  %v23597_v10 = vld [vmem:[#allocation2 + $0x5b8] sm:$0xff]   ;;  %v23598_v12 = vld [vmem:[#allocation2 + $0x570] sm:$0xff]  }
 0x1bc   :  { %21941 = vmatprep.subr.bf16.mxu1 %v25624_v11 }
 0x1be   :  { %1876 = vmatmul.mubr.bf16.vlgmr.msra.gmra.mrb[12].mxu1 %v25963_v38  ;;  %20514 = vmatpush3.bf16.msra.mxu0 %v23542_v13  ;;  %v23600_v13 = vld [vmem:[#allocation2 + $0x600] sm:$0xff]  }
 0x1bf   :  { %21942 = vmatpush3.bf16.msra.mxu1 %v23545_v14  ;;  %20515 = vmatprep.subr.bf16.mxu0 %v23543_v15  ;;  %v23599_v14 = vld [vmem:[#allocation2 + $0x530] sm:$0xff]   ;;  %v23601_v15 = vld [vmem:[#allocation2 + $0x5c0] sm:$0xff]  }
 0x1c0   :  { %21943 = vmatprep.mubr.msk.bf16.mxu1 %vm25625_vm0, %v25624_v11  ;;  %20573 = vmatprep.subr.bf16.mxu1 %v23548_v17  ;;  %v23602_v17 = vld [vmem:[#allocation2 + $0x578] sm:$0xff]  }
 0x1c2   :  { %20516 = vmatpush3.bf16.msra.mxu0 %v23544_v18  ;;  %v23604_v18 = vld [vmem:[#allocation2 + $0x608] sm:$0xff]  }
 0x1c3   :  { %20517 = vmatprep.subr.bf16.mxu0 %v23546_v19  ;;  %v23603_v19 = vld [vmem:[#allocation2 + $0x538] sm:$0xff]  }
 0x1c6   :  { %21944 = vmatmul.mubr.msk.bf16.vlgmr.msra.gmra.mrb[16].mxu1 %vm691_vm1, %v25986_v16  ;;  %20518 = vmatpush3.bf16.msra.mxu0 %v23547_v20  ;;  %v23561_v16 = vld [vmem:[#allocation2 + $0x4b0] sm:$0xff]   ;;  %v23605_v20 = vld [vmem:[#allocation2 + $0x5c8] sm:$0xff]  }
 0x1c7   :  { %20574 = vmatpush3.bf16.msra.mxu1 %v23549_v21  ;;  %20519 = vmatprep.subr.bf16.mxu0 %v23550_v22  ;;  %v23606_v21 = vld [vmem:[#allocation2 + $0x580] sm:$0xff]   ;;  %v23608_v22 = vld [vmem:[#allocation2 + $0x610] sm:$0xff]  }
 0x1c8   :  { %20575 = vmatprep.subr.bf16.mxu1 %v23552_v23  ;;  %2389 = vmatprep.mubr.bf16.mxu1 %v25957_v34  ;;  %v23607_v23 = vld [vmem:[#allocation2 + $0x540] sm:$0xff]  }
 0x1ca   :  { %20520 = vmatpush3.bf16.msra.mxu0 %v23551_v24  ;;  %v23609_v24 = vld [vmem:[#allocation2 + $0x5d0] sm:$0xff]  }
 0x1cb   :  { %20576 = vmatpush3.bf16.msra.mxu1 %v23553_v25  ;;  %20549 = vmatprep.subr.bf16.mxu0 %v23554_v26  ;;  %v23610_v25 = vld [vmem:[#allocation2 + $0x588] sm:$0xff]   ;;  %v23612_v26 = vld [vmem:[#allocation2 + $0x6e0] sm:$0xff]  }
 0x1cc   :  { %20577 = vmatprep.subr.bf16.mxu1 %v23556_v27  ;;  %v23611_v27 = vld [vmem:[#allocation2 + $0x548] sm:$0xff]  }
 0x1cd   :  { %1836 = vmatmul.mubr.bf16.vlgmr.msra.gmra.mrb[20].mxu0 %v25959_v35 }
 0x1ce   :  { %20550 = vmatpush3.bf16.msra.mxu0 %v23555_v28  ;;  %1915 = vmatprep.mubr.bf16.mxu0 %v25973_v7  ;;  %v23613_v28 = vld [vmem:[#allocation2 + $0x6a0] sm:$0xff]  }
 0x1cf   :  { %20578 = vmatpush3.bf16.msra.mxu1 %v23557_v29  ;;  %20551 = vmatprep.subr.bf16.mxu0 %v23558_v30  ;;  %v23614_v29 = vld [vmem:[#allocation2 + $0x590] sm:$0xff]   ;;  %v23616_v30 = vld [vmem:[#allocation2 + $0x6e8] sm:$0xff]  }
 0x1d0   :  { %20579 = vmatprep.subr.bf16.mxu1 %v23560_v31  ;;  %v23615_v31 = vld [vmem:[#allocation2 + $0x550] sm:$0xff]  }
 0x1d2   :  { %20552 = vmatpush3.bf16.msra.mxu0 %v23559_v32  ;;  %v23617_v32 = vld [vmem:[#allocation2 + $0x6a8] sm:$0xff]  }
 0x1d3   :  { %20580 = vmatpush3.bf16.msra.mxu1 %v23561_v16  ;;  %20553 = vmatprep.subr.bf16.mxu0 %v23562_v33  ;;  %v23619_v16 = vld [vmem:[#allocation2 + $0x6f0] sm:$0xff]   ;;  %v23618_v33 = vld [vmem:[#allocation2 + $0x618] sm:$0xff]  }
 0x1d4   :  { %20581 = vmatprep.subr.bf16.mxu1 %v23564_v37  ;;  %v23620_v37 = vld [vmem:[#allocation2 + $0x6b0] sm:$0xff]  }
 0x1d6   :  { %20554 = vmatpush3.bf16.msra.mxu0 %v23563_v39  ;;  %v23621_v39 = vld [vmem:[#allocation2 + $0x6f8] sm:$0xff]  }
 0x1d7   :  { %20582 = vmatpush3.bf16.msra.mxu1 %v23565_v40  ;;  %20555 = vmatprep.subr.bf16.mxu0 %v23566_v41  ;;  %v23623_v40 = vld [vmem:[#allocation2 + $0x660] sm:$0xff]   ;;  %v23622_v41 = vld [vmem:[#allocation2 + $0x6b8] sm:$0xff]  }
 0x1d8   :  { %20583 = vmatprep.subr.bf16.mxu1 %v23568_v42  ;;  %v23625_v42 = vld [vmem:[#allocation2 + $0x700] sm:$0xff]  }
 0x1da   :  { %20556 = vmatpush3.bf16.msra.mxu0 %v23567_v43  ;;  %v23624_v43 = vld [vmem:[#allocation2 + $0x620] sm:$0xff]  }
 0x1db   :  { %20584 = vmatpush3.bf16.msra.mxu1 %v23569_v44  ;;  %20557 = vmatprep.subr.bf16.mxu0 %v23570_v45  ;;  %v23626_v44 = vld [vmem:[#allocation2 + $0x6c0] sm:$0xff]   ;;  %v23627_v45 = vld [vmem:[#allocation2 + $0x668] sm:$0xff]  }
 0x1dc   :  { %20585 = vmatprep.subr.bf16.mxu1 %v23572_v46  ;;  %v23629_v46 = vld [vmem:[#allocation2 + $0x708] sm:$0xff]  }
 0x1de   :  { %20558 = vmatpush3.bf16.msra.mxu0 %v23571_v47  ;;  %v23628_v47 = vld [vmem:[#allocation2 + $0x628] sm:$0xff]  }
 0x1df   :  { %20586 = vmatpush3.bf16.msra.mxu1 %v23573_v48  ;;  %20559 = vmatprep.subr.bf16.mxu0 %v23574_v49  ;;  %v26023_v48 = vld [vmem:[%s28292_s20 + $0x18] ss:$0 sps:$4 sm:$0xff]   ;;  %v23630_v49 = vld [vmem:[#allocation2 + $0x6c8] sm:$0xff]  }
 0x1e0   :  { %20587 = vmatprep.subr.bf16.mxu1 %v23576_v50  ;;  %v23631_v50 = vld [vmem:[#allocation2 + $0x670] sm:$0xff]  }
 0x1e2   :  { %20560 = vmatpush3.bf16.msra.mxu0 %v23575_v51  ;;  %v23633_v51 = vld [vmem:[#allocation2 + $0x710] sm:$0xff]  }
 0x1e3   :  { %20588 = vmatpush3.bf16.msra.mxu1 %v23577_v52  ;;  %20561 = vmatprep.subr.bf16.mxu0 %v23578_v53  ;;  %v23632_v52 = vld [vmem:[#allocation2 + $0x630] sm:$0xff]  }
 0x1e4   :  { %20617 = vmatprep.subr.bf16.mxu1 %v23580_v54  ;;  %v23634_v53 = vld [vmem:[#allocation2 + $0x6d0] sm:$0xff]   ;;  %v23635_v54 = vld [vmem:[#allocation2 + $0x678] sm:$0xff]  }
 0x1e6   :  { %2390 = vmatmul.mubr.bf16.vlgmr.msra.gmra.mrb[20].mxu1 %v25959_v35  ;;  %20562 = vmatpush3.bf16.msra.mxu0 %v23579_v55  ;;  %v23637_v55 = vld [vmem:[#allocation2 + $0x718] sm:$0xff]  }
 0x1e7   :  { %20618 = vmatpush3.bf16.msra.mxu1 %v23581_v56  ;;  %20563 = vmatprep.subr.bf16.mxu0 %v23582_v57  ;;  %v23636_v56 = vld [vmem:[#allocation2 + $0x638] sm:$0xff]  }
 0x1e8   :  { %20619 = vmatprep.subr.bf16.mxu1 %v23584_v58  ;;  %2469 = vmatprep.mubr.bf16.mxu1 %v25973_v7  ;;  %v23638_v57 = vld [vmem:[#allocation2 + $0x6d8] sm:$0xff]   ;;  %v23639_v58 = vld [vmem:[#allocation2 + $0x680] sm:$0xff]  }
 0x1ea   :  { %20564 = vmatpush3.bf16.msra.mxu0 %v23583_v59  ;;  %v23640_v59 = vld [vmem:[#allocation2 + $0x640] sm:$0xff]  }
 0x1eb   :  { %20620 = vmatpush3.bf16.msra.mxu1 %v23585_v60  ;;  %20595 = vmatprep.subr.bf16.mxu0 %v23586_v61  ;;  %v23643_v60 = vld [vmem:[#allocation2 + $0x7a0] sm:$0xff]   ;;  %v23641_v61 = vld [vmem:[#allocation2 + $0x688] sm:$0xff]  }
 0x1ec   :  { %20621 = vmatprep.subr.bf16.mxu1 %v23588_v62  ;;  %v23646_v62 = vld [vmem:[#allocation2 + $0x7e8] sm:$0xff]  }
 0x1ed   :  { %1916 = vmatmul.mubr.bf16.vlgmr.msra.gmra.mrb[24].mxu0 %v25975_v8 }
 0x1ee   :  { %20596 = vmatpush3.bf16.msra.mxu0 %v23587_v63  ;;  %2429 = vmatprep.mubr.bf16.mxu0 %v25961_v36  ;;  %v23642_v63 = vld [vmem:[#allocation2 + $0x648] sm:$0xff]  }
 0x1ef   :  { %20622 = vmatpush3.bf16.msra.mxu1 %v23589_v0  ;;  %20597 = vmatprep.subr.bf16.mxu0 %v23590_v1  ;;  %v23644_v0 = vld [vmem:[#allocation2 + $0x690] sm:$0xff]  }
 0x1f0   :  { %20623 = vmatprep.subr.bf16.mxu1 %v23592_v2  ;;  %v23645_v1 = vld [vmem:[#allocation2 + $0x650] sm:$0xff]   ;;  %v23647_v2 = vld [vmem:[#allocation2 + $0x7a8] sm:$0xff]  }
 0x1f2   :  { %20598 = vmatpush3.bf16.msra.mxu0 %v23591_v3  ;;  %v23648_v3 = vld [vmem:[#allocation2 + $0x698] sm:$0xff]  }
 0x1f3   :  { %20624 = vmatpush3.bf16.msra.mxu1 %v23593_v4  ;;  %20599 = vmatprep.subr.bf16.mxu0 %v23594_v5  ;;  %v23650_v4 = vld [vmem:[#allocation2 + $0x7f0] sm:$0xff]   ;;  %v23649_v5 = vld [vmem:[#allocation2 + $0x658] sm:$0xff]  }
 0x1f4   :  { %20625 = vmatprep.subr.bf16.mxu1 %v23596_v6  ;;  %v23651_v6 = vld [vmem:[#allocation2 + $0x7b0] sm:$0xff]  }
 0x1f6   :  { %20600 = vmatpush3.bf16.msra.mxu0 %v23595_v9  ;;  %v26034_v9 = vld [vmem:[#allocation4] ss:$0 sm:$0xff] }
 0x1f7   :  { %20626 = vmatpush3.bf16.msra.mxu1 %v23597_v10  ;;  %20601 = vmatprep.subr.bf16.mxu0 %v23598_v12  ;;  %v23652_v10 = vld [vmem:[#allocation2 + $0x760] sm:$0xff]  }
 0x1f8   :  { %20627 = vmatprep.subr.bf16.mxu1 %v23600_v13  ;;  %v23654_v13 = vld [vmem:[#allocation2 + $0x7f8] sm:$0xff]  }
 0x1fa   :  { %20602 = vmatpush3.bf16.msra.mxu0 %v23599_v14 }
 0x1fb   :  { %20628 = vmatpush3.bf16.msra.mxu1 %v23601_v15  ;;  %20603 = vmatprep.subr.bf16.mxu0 %v23602_v17  ;;  %v23653_v17 = vld [vmem:[#allocation2 + $0x720] sm:$0xff]  }
 0x1fc   :  { %20629 = vmatprep.subr.bf16.mxu1 %v23604_v18 }
 0x1fe   :  { %20604 = vmatpush3.bf16.msra.mxu0 %v23603_v19 }
 0x1ff   :  { %20630 = vmatpush3.bf16.msra.mxu1 %v23605_v20  ;;  %20605 = vmatprep.subr.bf16.mxu0 %v23606_v21  ;;  %v23655_v21 = vld [vmem:[#allocation2 + $0x7b8] sm:$0xff]  }
 0x200   :  { %20631 = vmatprep.subr.bf16.mxu1 %v23608_v22  ;;  %v23656_v22 = vld [vmem:[#allocation2 + $0x768] sm:$0xff]  }
 0x202   :  { %20606 = vmatpush3.bf16.msra.mxu0 %v23607_v23 }
 0x203   :  { %20632 = vmatpush3.bf16.msra.mxu1 %v23609_v24  ;;  %20607 = vmatprep.subr.bf16.mxu0 %v23610_v25 }
 0x204   :  { %20663 = vmatprep.subr.bf16.mxu1 %v23612_v26 }
 0x206   :  { %2470 = vmatmul.mubr.bf16.vlgmr.msra.gmra.mrb[24].mxu1 %v25975_v8  ;;  %20608 = vmatpush3.bf16.msra.mxu0 %v23611_v27  ;;  %v23658_v27 = vld [vmem:[#allocation2 + $0x800] sm:$0xff]  }
 0x207   :  { %20664 = vmatpush3.bf16.msra.mxu1 %v23613_v28  ;;  %20609 = vmatprep.subr.bf16.mxu0 %v23614_v29  ;;  %v23657_v29 = vld [vmem:[#allocation2 + $0x728] sm:$0xff]  }
 0x208   :  { %20665 = vmatprep.subr.bf16.mxu1 %v23616_v30  ;;  %2983 = vmatprep.mubr.bf16.mxu1 %v25961_v36 }
 0x20a   :  { %20610 = vmatpush3.bf16.msra.mxu0 %v23615_v31  ;;  %v23659_v31 = vld [vmem:[#allocation2 + $0x7c0] sm:$0xff]  }
 0x20b   :  { %20666 = vmatpush3.bf16.msra.mxu1 %v23617_v32  ;;  %21947 = vmatprep.subr.bf16.mxu0 %v25624_v11  ;;  %v23660_v32 = vld [vmem:[#allocation2 + $0x770] sm:$0xff]  }
 0x20c   :  { %20667 = vmatprep.subr.bf16.mxu1 %v23619_v16  ;;  %v23662_v16 = vld [vmem:[#allocation2 + $0x808] sm:$0xff]  }
 0x20d   :  { %2430 = vmatmul.mubr.bf16.vlgmr.msra.gmra.mrb[28].mxu0 %v25963_v38 }
 0x20e   :  { %21948 = vmatpush3.bf16.msra.mxu0 %v23618_v33  ;;  %21949 = vmatprep.mubr.msk.bf16.mxu0 %vm25625_vm0, %v25624_v11  ;;  %v23661_v33 = vld [vmem:[#allocation2 + $0x730] sm:$0xff]  }
 0x20f   :  { %20668 = vmatpush3.bf16.msra.mxu1 %v23620_v37  ;;  %20641 = vmatprep.subr.bf16.mxu0 %v23623_v40  ;;  %v23663_v37 = vld [vmem:[#allocation2 + $0x7c8] sm:$0xff]   ;;  %v23666_v40 = vld [vmem:[#allocation2 + $0x810] sm:$0xff]  }
 0x210   :  { %20669 = vmatprep.subr.bf16.mxu1 %v23621_v39  ;;  %v23664_v39 = vld [vmem:[#allocation2 + $0x778] sm:$0xff]  }
 0x213   :  { %20670 = vmatpush3.bf16.msra.mxu1 %v23622_v41  ;;  %v23665_v41 = vld [vmem:[#allocation2 + $0x738] sm:$0xff]  }
 0x214   :  { %20671 = vmatprep.subr.bf16.mxu1 %v23625_v42  ;;  %v23667_v42 = vld [vmem:[#allocation2 + $0x7d0] sm:$0xff]  }
 0x215   :  { %21950 = vmatmul.mubr.msk.bf16.vlgmr.msra.gmra.mrb[32].mxu0 %vm691_vm1, %v26023_v48 }
 0x216   :  { %20642 = vmatpush3.bf16.msra.mxu0 %v23624_v43  ;;  %2943 = vmatprep.mubr.bf16.mxu0 %v25957_v34  ;;  %v23668_v43 = vld [vmem:[#allocation2 + $0x780] sm:$0xff]  }
 0x217   :  { %20672 = vmatpush3.bf16.msra.mxu1 %v23626_v44  ;;  %20643 = vmatprep.subr.bf16.mxu0 %v23627_v45  ;;  %v23670_v44 = vld [vmem:[#allocation2 + $0x818] sm:$0xff]   ;;  %v23669_v45 = vld [vmem:[#allocation2 + $0x740] sm:$0xff]  }
 0x218   :  { %20673 = vmatprep.subr.bf16.mxu1 %v23629_v46  ;;  %v23671_v46 = vld [vmem:[#allocation2 + $0x7d8] sm:$0xff]  }
 0x21a   :  { %20644 = vmatpush3.bf16.msra.mxu0 %v23628_v47  ;;  %v23672_v47 = vld [vmem:[#allocation2 + $0x788] sm:$0xff]  }
 0x21b   :  { %20674 = vmatpush3.bf16.msra.mxu1 %v23630_v49  ;;  %20645 = vmatprep.subr.bf16.mxu0 %v23631_v50  ;;  %v23674_v49 = vld [vmem:[#allocation2 + $0x820] sm:$0xff]   ;;  %v23673_v50 = vld [vmem:[#allocation2 + $0x748] sm:$0xff]  }
 0x21c   :  { %20675 = vmatprep.subr.bf16.mxu1 %v23633_v51  ;;  %v23675_v51 = vld [vmem:[#allocation2 + $0x7e0] sm:$0xff]  }
 0x21e   :  { %20646 = vmatpush3.bf16.msra.mxu0 %v23632_v52  ;;  %v23676_v52 = vld [vmem:[#allocation2 + $0x790] sm:$0xff]  }
 0x21f   :  { %20676 = vmatpush3.bf16.msra.mxu1 %v23634_v53  ;;  %20647 = vmatprep.subr.bf16.mxu0 %v23635_v54  ;;  %v23678_v53 = vld [vmem:[#allocation2 + $0x8e8] sm:$0xff]   ;;  %v23677_v54 = vld [vmem:[#allocation2 + $0x750] sm:$0xff]  }
 0x220   :  { %20677 = vmatprep.subr.bf16.mxu1 %v23637_v55  ;;  %v23679_v55 = vld [vmem:[#allocation2 + $0x8a8] sm:$0xff]  }
 0x222   :  { %20648 = vmatpush3.bf16.msra.mxu0 %v23636_v56  ;;  %v23680_v56 = vld [vmem:[#allocation2 + $0x798] sm:$0xff]  }
 0x223   :  { %20678 = vmatpush3.bf16.msra.mxu1 %v23638_v57  ;;  %20649 = vmatprep.subr.bf16.mxu0 %v23639_v58  ;;  %v23682_v57 = vld [vmem:[#allocation2 + $0x8f0] sm:$0xff]   ;;  %v23681_v58 = vld [vmem:[#allocation2 + $0x758] sm:$0xff]  }
 0x224   :  { %21953 = vmatprep.subr.bf16.mxu1 %v25624_v11 }
 0x226   :  { %2984 = vmatmul.mubr.bf16.vlgmr.msra.gmra.mrb[28].mxu1 %v25963_v38  ;;  %20650 = vmatpush3.bf16.msra.mxu0 %v23640_v59  ;;  %v23683_v59 = vld [vmem:[#allocation2 + $0x8b0] sm:$0xff]  }
 0x227   :  { %21954 = vmatpush3.bf16.msra.mxu1 %v23643_v60  ;;  %20651 = vmatprep.subr.bf16.mxu0 %v23641_v61  ;;  %v23684_v60 = vld [vmem:[#allocation2 + $0x868] sm:$0xff]   ;;  %v23686_v61 = vld [vmem:[#allocation2 + $0x8f8] sm:$0xff]  }
 0x228   :  { %21955 = vmatprep.mubr.msk.bf16.mxu1 %vm25625_vm0, %v25624_v11  ;;  %20709 = vmatprep.subr.bf16.mxu1 %v23646_v62 }
 0x22a   :  { %20652 = vmatpush3.bf16.msra.mxu0 %v23642_v63  ;;  %v23685_v63 = vld [vmem:[#allocation2 + $0x828] sm:$0xff]  }
 0x22b   :  { %20653 = vmatprep.subr.bf16.mxu0 %v23644_v0  ;;  %v23687_v0 = vld [vmem:[#allocation2 + $0x8b8] sm:$0xff]  }
 0x22e   :  { %21956 = vmatmul.mubr.msk.bf16.vlgmr.msra.gmra.mrb[32].mxu1 %vm691_vm1, %v26023_v48  ;;  %20654 = vmatpush3.bf16.msra.mxu0 %v23645_v1 }
 0x22f   :  { %20710 = vmatpush3.bf16.msra.mxu1 %v23647_v2  ;;  %20655 = vmatprep.subr.bf16.mxu0 %v23648_v3  ;;  %v23688_v3 = vld [vmem:[#allocation2 + $0x870] sm:$0xff]  }
 0x230   :  { %20711 = vmatprep.subr.bf16.mxu1 %v23650_v4  ;;  %v20385_v12 = vpop.f32.mrb[0].mxu0  ;;  %3497 = vmatprep.mubr.bf16.mxu1 %v25957_v34 }
 0x231   :  { %v20386_v14 = vpop.f32.mrb[1].mxu0  ;;  %v20407_v15 = vpop.f32.mrb[0].mxu1 }
 0x232   :  { %v20387_v18 = vadd.f32 %v20386_v14, %v20385_v12  ;;  %v20388_v19 = vpop.f32.mrb[2].mxu0  ;;  %v20408_v20 = vpop.f32.mrb[1].mxu1  ;;  %20656 = vmatpush3.bf16.msra.mxu0 %v23649_v5 }
 0x233   :  { %20712 = vmatpush3.bf16.msra.mxu1 %v23651_v6  ;;  %v20389_v23 = vpop.f32.mrb[3].mxu0  ;;  %v20409_v24 = vadd.f32 %v20408_v20, %v20407_v15  ;;  %v20410_v25 = vpop.f32.mrb[2].mxu1  ;;  %20685 = vmatprep.subr.bf16.mxu0 %v23652_v10  ;;  %v23690_v10 = vld [vmem:[#allocation2 + $0x900] sm:$0xff]   ;;  %v23689_v15 = vld [vmem:[#allocation2 + $0x830] sm:$0xff]   ;;  %v23692_v20 = vld [vmem:[#allocation2 + $0x878] sm:$0xff]  }
 0x234   :  { %v730_v26 = vadd.f32 %v20387_v18, %v26034_v9  ;;  %20713 = vmatprep.subr.bf16.mxu1 %v23654_v13  ;;  %v20411_v28 = vpop.f32.mrb[3].mxu1  ;;  %v23691_v19 = vld [vmem:[#allocation2 + $0x8c0] sm:$0xff]   ;;  %v23693_v25 = vld [vmem:[#allocation2 + $0x838] sm:$0xff]  }
 0x235   :  { %2944 = vmatmul.mubr.bf16.vlgmr.msra.gmra.mrb[36].mxu0 %v25959_v35 }
 0x236   :  { %v26039_v30 = vadd.f32 %v20409_v24, %v730_v26  ;;  %20686 = vmatpush3.bf16.msra.mxu0 %v23653_v17  ;;  %3023 = vmatprep.mubr.bf16.mxu0 %v25973_v7 }
 0x237   :  { %20714 = vmatpush3.bf16.msra.mxu1 %v23655_v21  ;;  %20687 = vmatprep.subr.bf16.mxu0 %v23656_v22  ;;  %v23694_v21 = vld [vmem:[#allocation2 + $0x908] sm:$0xff]  }
 0x238   :  { %20715 = vmatprep.subr.bf16.mxu1 %v23658_v27  ;;  %v23695_v27 = vld [vmem:[#allocation2 + $0x8c8] sm:$0xff]  }
 0x23a   :  { %20688 = vmatpush3.bf16.msra.mxu0 %v23657_v29  ;;  %v23696_v29 = vld [vmem:[#allocation2 + $0x880] sm:$0xff]  }
 0x23b   :  { %20716 = vmatpush3.bf16.msra.mxu1 %v23659_v31  ;;  %20689 = vmatprep.subr.bf16.mxu0 %v23660_v32  ;;  %v23697_v31 = vld [vmem:[#allocation2 + $0x840] sm:$0xff]   ;;  %v23699_v32 = vld [vmem:[#allocation2 + $0x8d0] sm:$0xff]  }
 0x23c   :  { %20717 = vmatprep.subr.bf16.mxu1 %v23662_v16  ;;  %v23700_v16 = vld [vmem:[#allocation2 + $0x888] sm:$0xff]  }
 0x23e   :  { %20690 = vmatpush3.bf16.msra.mxu0 %v23661_v33  ;;  %v23702_v33 = vld [vmem:[#allocation2 + $0x918] sm:$0xff]  }
 0x23f   :  { %20718 = vmatpush3.bf16.msra.mxu1 %v23663_v37  ;;  %20691 = vmatprep.subr.bf16.mxu0 %v23664_v39  ;;  %v23701_v37 = vld [vmem:[#allocation2 + $0x848] sm:$0xff]   ;;  %v23703_v39 = vld [vmem:[#allocation2 + $0x8d8] sm:$0xff]  }
 0x240   :  { %20719 = vmatprep.subr.bf16.mxu1 %v23666_v40  ;;  %v23704_v40 = vld [vmem:[#allocation2 + $0x890] sm:$0xff]  }
 0x242   :  { %20692 = vmatpush3.bf16.msra.mxu0 %v23665_v41  ;;  %v23706_v41 = vld [vmem:[#allocation2 + $0x920] sm:$0xff]  }
 0x243   :  { %20720 = vmatpush3.bf16.msra.mxu1 %v23667_v42  ;;  %20693 = vmatprep.subr.bf16.mxu0 %v23668_v43  ;;  %v23705_v42 = vld [vmem:[#allocation2 + $0x850] sm:$0xff]   ;;  %v23707_v43 = vld [vmem:[#allocation2 + $0x8e0] sm:$0xff]  }
 0x244   :  { %20721 = vmatprep.subr.bf16.mxu1 %v23670_v44  ;;  %v23708_v44 = vld [vmem:[#allocation2 + $0x898] sm:$0xff]  }
 0x246   :  { %20694 = vmatpush3.bf16.msra.mxu0 %v23669_v45  ;;  %v23710_v45 = vld [vmem:[#allocation2 + $0x9f0] sm:$0xff]  }
 0x247   :  { %20722 = vmatpush3.bf16.msra.mxu1 %v23671_v46  ;;  %20695 = vmatprep.subr.bf16.mxu0 %v23672_v47  ;;  %v23709_v46 = vld [vmem:[#allocation2 + $0x858] sm:$0xff]   ;;  %v23711_v47 = vld [vmem:[#allocation2 + $0x9b0] sm:$0xff]  }
 0x248   :  { %20723 = vmatprep.subr.bf16.mxu1 %v23674_v49  ;;  %v23712_v49 = vld [vmem:[#allocation2 + $0x8a0] sm:$0xff]  }
 0x24a   :  { %20696 = vmatpush3.bf16.msra.mxu0 %v23673_v50  ;;  %v23714_v50 = vld [vmem:[#allocation2 + $0x9f8] sm:$0xff]  }
 0x24b   :  { %20724 = vmatpush3.bf16.msra.mxu1 %v23675_v51  ;;  %20697 = vmatprep.subr.bf16.mxu0 %v23676_v52  ;;  %v23713_v51 = vld [vmem:[#allocation2 + $0x860] sm:$0xff]   ;;  %v23715_v52 = vld [vmem:[#allocation2 + $0x9b8] sm:$0xff]  }
 0x24c   :  { %20753 = vmatprep.subr.bf16.mxu1 %v23678_v53  ;;  %v23717_v53 = vld [vmem:[#allocation2 + $0xa00] sm:$0xff]  }
 0x24e   :  { %3498 = vmatmul.mubr.bf16.vlgmr.msra.gmra.mrb[36].mxu1 %v25959_v35  ;;  %20698 = vmatpush3.bf16.msra.mxu0 %v23677_v54 }
 0x24f   :  { %20754 = vmatpush3.bf16.msra.mxu1 %v23679_v55  ;;  %20699 = vmatprep.subr.bf16.mxu0 %v23680_v56  ;;  %v23716_v55 = vld [vmem:[#allocation2 + $0x928] sm:$0xff]  }
 0x250   :  { %20755 = vmatprep.subr.bf16.mxu1 %v23682_v57  ;;  %v20429_v62 = vpop.f32.mrb[4].mxu0  ;;  %3577 = vmatprep.mubr.bf16.mxu1 %v25973_v7  ;;  %v23718_v57 = vld [vmem:[#allocation2 + $0x9c0] sm:$0xff]  }
 0x251   :  { %v20453_v1 = vpop.f32.mrb[4].mxu1  ;;  %v20430_v2 = vpop.f32.mrb[5].mxu0 }
 0x252   :  { %v20454_v4 = vpop.f32.mrb[5].mxu1  ;;  %20700 = vmatpush3.bf16.msra.mxu0 %v23681_v58  ;;  %v20431_v5 = vadd.f32 %v20430_v2, %v20429_v62  ;;  %v20432_v6 = vpop.f32.mrb[6].mxu0  ;;  %v23721_v62 = vld [vmem:[#allocation2 + $0x970] sm:$0xff]  }
 0x253   :  { %20756 = vmatpush3.bf16.msra.mxu1 %v23683_v59  ;;  %v26044_v12 = vadd.f32 %v20454_v4, %v20453_v1  ;;  %20731 = vmatprep.subr.bf16.mxu0 %v23684_v60  ;;  %v20433_v13 = vpop.f32.mrb[7].mxu0  ;;  %v20456_v14 = vpop.f32.mrb[6].mxu1  ;;  %v23719_v60 = vld [vmem:[#allocation2 + $0xa08] sm:$0xff]   ;;  %v23722_v2 = vld [vmem:[#allocation2 + $0x930] sm:$0xff]  }
 0x254   :  { %20757 = vmatprep.subr.bf16.mxu1 %v23686_v61  ;;  %v810_v17 = vadd.f32 %v20431_v5, %v26039_v30  ;;  %v20457_v18 = vpop.f32.mrb[7].mxu1  ;;  %v23698_v30 = vld [vmem:[#allocation2 + $0x910] sm:$0xff]   ;;  %v23725_v13 = vld [vmem:[#allocation2 + $0x978] sm:$0xff]  }
 0x255   :  { %3024 = vmatmul.mubr.bf16.vlgmr.msra.gmra.mrb[40].mxu0 %v25975_v8  ;;  %v23724_v4 = vld [vmem:[#allocation2 + $0x9d0] sm:$0xff]   ;;  %v1284_v5 = vadd.f32 %v26044_v12, %v26034_v9  ;;  %v23726_v18 = vld [vmem:[#allocation2 + $0x938] sm:$0xff]   ;;  %v23731_v9 = vld [vmem:[#allocation2 + $0xa20] sm:$0xff]  }
 0x256   :  { %20732 = vmatpush3.bf16.msra.mxu0 %v23685_v63  ;;  %3537 = vmatprep.mubr.bf16.mxu0 %v25961_v36  ;;  %v23720_v63 = vld [vmem:[#allocation2 + $0x9c8] sm:$0xff]  }
 0x257   :  { %20758 = vmatpush3.bf16.msra.mxu1 %v23687_v0  ;;  %20733 = vmatprep.subr.bf16.mxu0 %v23688_v3  ;;  %v23723_v0 = vld [vmem:[#allocation2 + $0xa10] sm:$0xff]  }
 0x258   :  { %20759 = vmatprep.subr.bf16.mxu1 %v23690_v10  ;;  %v849_v22 = vpop.f32.mrb[8].mxu0 }
 0x259   :  { %v26049_v23 = vadd.f32 %v849_v22, %v810_v17  ;;  %v21933_v24 = vpop.f32.mrb[9].mxu0 }
 0x25a   :  { %20734 = vmatpush3.bf16.msra.mxu0 %v23689_v15  ;;  %v852_v26 = vpop.f32.mrb[10].mxu0  ;;  %v23727_v15 = vld [vmem:[#allocation2 + $0xa18] sm:$0xff]  }
 0x25b   :  { %20760 = vmatpush3.bf16.msra.mxu1 %v23691_v19  ;;  %20735 = vmatprep.subr.bf16.mxu0 %v23692_v20  ;;  %v21934_v28 = vpop.f32.mrb[11].mxu0  ;;  %v23728_v19 = vld [vmem:[#allocation2 + $0x9d8] sm:$0xff]  }
 0x25c   :  { %20761 = vmatprep.subr.bf16.mxu1 %v23694_v21  ;;  %v23729_v21 = vld [vmem:[#allocation2 + $0x980] sm:$0xff]   ;;  %v23733_v28 = vld [vmem:[#allocation2 + $0x988] sm:$0xff]  }
 0x25e   :  { %20736 = vmatpush3.bf16.msra.mxu0 %v23693_v25  ;;  %v23730_v25 = vld [vmem:[#allocation2 + $0x940] sm:$0xff]  }
 0x25f   :  { %20762 = vmatpush3.bf16.msra.mxu1 %v23695_v27  ;;  %20737 = vmatprep.subr.bf16.mxu0 %v23696_v29  ;;  %v23732_v27 = vld [vmem:[#allocation2 + $0x9e0] sm:$0xff]   ;;  %v23735_v29 = vld [vmem:[#allocation2 + $0xa28] sm:$0xff]  }
 0x260   :  { %20763 = vmatprep.subr.bf16.mxu1 %v23698_v30  ;;  %v23734_v30 = vld [vmem:[#allocation2 + $0x948] sm:$0xff]  }
 0x262   :  { %20738 = vmatpush3.bf16.msra.mxu0 %v23697_v31  ;;  %v23736_v31 = vld [vmem:[#allocation2 + $0x9e8] sm:$0xff]  }
 0x263   :  { %20764 = vmatpush3.bf16.msra.mxu1 %v23699_v32  ;;  %20739 = vmatprep.subr.bf16.mxu0 %v23700_v16  ;;  %v23737_v32 = vld [vmem:[#allocation2 + $0x990] sm:$0xff]  }
 0x264   :  { %20765 = vmatprep.subr.bf16.mxu1 %v23702_v33  ;;  %v23738_v16 = vld [vmem:[#allocation2 + $0x950] sm:$0xff]  }
 0x265   :  { %v23741_v33 = vld [vmem:[#allocation2 + $0xab0] sm:$0xff]  }
 0x266   :  { %20740 = vmatpush3.bf16.msra.mxu0 %v23701_v37  ;;  %v23739_v37 = vld [vmem:[#allocation2 + $0x998] sm:$0xff]  }
 0x267   :  { %20766 = vmatpush3.bf16.msra.mxu1 %v23703_v39  ;;  %20741 = vmatprep.subr.bf16.mxu0 %v23704_v40  ;;  %v23744_v39 = vld [vmem:[#allocation2 + $0xaf8] sm:$0xff]  }
 0x268   :  { %20767 = vmatprep.subr.bf16.mxu1 %v23706_v41  ;;  %v23740_v40 = vld [vmem:[#allocation2 + $0x958] sm:$0xff]   ;;  %v23742_v41 = vld [vmem:[#allocation2 + $0x9a0] sm:$0xff]  }
 0x26a   :  { %20742 = vmatpush3.bf16.msra.mxu0 %v23705_v42  ;;  %v23743_v42 = vld [vmem:[#allocation2 + $0x960] sm:$0xff]  }
 0x26b   :  { %20768 = vmatpush3.bf16.msra.mxu1 %v23707_v43  ;;  %20743 = vmatprep.subr.bf16.mxu0 %v23708_v44  ;;  %v23745_v44 = vld [vmem:[#allocation2 + $0xab8] sm:$0xff]  }
 0x26c   :  { %20799 = vmatprep.subr.bf16.mxu1 %v23710_v45 }
 0x26e   :  { %3578 = vmatmul.mubr.bf16.vlgmr.msra.gmra.mrb[40].mxu1 %v25975_v8  ;;  %20744 = vmatpush3.bf16.msra.mxu0 %v23709_v46  ;;  %v23746_v46 = vld [vmem:[#allocation2 + $0x9a8] sm:$0xff]  }
 0x26f   :  { %20800 = vmatpush3.bf16.msra.mxu1 %v23711_v47  ;;  %20745 = vmatprep.subr.bf16.mxu0 %v23712_v49 }
 0x270   :  { %20801 = vmatprep.subr.bf16.mxu1 %v23714_v50  ;;  %4091 = vmatprep.mubr.bf16.mxu1 %v25961_v36  ;;  %v23748_v50 = vld [vmem:[#allocation2 + $0xb00] sm:$0xff]  }
 0x271   :  { %v20497_v54 = vpop.f32.mrb[8].mxu1 }
 0x272   :  { %v20498_v56 = vpop.f32.mrb[9].mxu1  ;;  %20746 = vmatpush3.bf16.msra.mxu0 %v23713_v51 }
 0x273   :  { %20802 = vmatpush3.bf16.msra.mxu1 %v23715_v52  ;;  %v20499_v58 = vadd.f32 %v20498_v56, %v20497_v54  ;;  %v20500_v59 = vpop.f32.mrb[10].mxu1  ;;  %21959 = vmatprep.subr.bf16.mxu0 %v25624_v11  ;;  %v23747_v52 = vld [vmem:[#allocation2 + $0x968] sm:$0xff]   ;;  %v23749_v54 = vld [vmem:[#allocation2 + $0xac0] sm:$0xff]  }
 0x274   :  { %20803 = vmatprep.subr.bf16.mxu1 %v23717_v53  ;;  %v20501_v61 = vpop.f32.mrb[11].mxu1  ;;  %v26071_v53 = vld [vmem:[%s28292_s20 + $0x18] ss:$0 sps:$4 sm:$0xff]   ;;  %v23752_v56 = vld [vmem:[#allocation2 + $0xb08] sm:$0xff]  }
 0x275   :  { %3538 = vmatmul.mubr.bf16.vlgmr.msra.gmra.mrb[44].mxu0 %v25963_v38  ;;  %v23753_v59 = vld [vmem:[#allocation2 + $0xac8] sm:$0xff]   ;;  %v23754_v61 = vld [vmem:[#allocation2 + $0xa78] sm:$0xff]  }
 0x276   :  { %21960 = vmatpush3.bf16.msra.mxu0 %v23716_v55  ;;  %21961 = vmatprep.mubr.msk.bf16.mxu0 %vm25625_vm0, %v25624_v11  ;;  %v23750_v55 = vld [vmem:[#allocation2 + $0xa70] sm:$0xff]  }
 0x277   :  { %20804 = vmatpush3.bf16.msra.mxu1 %v23718_v57  ;;  %20777 = vmatprep.subr.bf16.mxu0 %v23721_v62  ;;  %v23751_v57 = vld [vmem:[#allocation2 + $0xa30] sm:$0xff]  }
 0x278   :  { %20805 = vmatprep.subr.bf16.mxu1 %v23719_v60  ;;  %v20475_v1 = vpop.f32.mrb[12].mxu0 }
 0x279   :  { %v20476_v3 = vpop.f32.mrb[13].mxu0 }
 0x27a   :  { %v20477_v6 = vadd.f32 %v20476_v3, %v20475_v1  ;;  %v20478_v10 = vpop.f32.mrb[14].mxu0  ;;  %v23755_v1 = vld [vmem:[#allocation2 + $0xa38] sm:$0xff]   ;;  %v23758_v3 = vld [vmem:[#allocation2 + $0xa80] sm:$0xff]  }
 0x27b   :  { %20806 = vmatpush3.bf16.msra.mxu1 %v23720_v63  ;;  %v20479_v14 = vpop.f32.mrb[15].mxu0  ;;  %v23756_v63 = vld [vmem:[#allocation2 + $0xb10] sm:$0xff]  }
 0x27c   :  { %20807 = vmatprep.subr.bf16.mxu1 %v23723_v0  ;;  %v1324_v17 = vadd.f32 %v20477_v6, %v1284_v5  ;;  %v23759_v6 = vld [vmem:[#allocation2 + $0xa40] sm:$0xff]  }
 0x27d   :  { %21962 = vmatmul.mubr.msk.bf16.vlgmr.msra.gmra.mrb[48].mxu0 %vm691_vm1, %v26023_v48 }
 0x27e   :  { %20778 = vmatpush3.bf16.msra.mxu0 %v23722_v2  ;;  %v1364_v20 = vadd.f32 %v20499_v58, %v1324_v17  ;;  %4051 = vmatprep.mubr.bf16.mxu0 %v25957_v34  ;;  %v23757_v2 = vld [vmem:[#allocation2 + $0xad0] sm:$0xff]   ;;  %v23762_v17 = vld [vmem:[#allocation2 + $0xa88] sm:$0xff]  }
 0x27f   :  { %20808 = vmatpush3.bf16.msra.mxu1 %v23724_v4  ;;  %20779 = vmatprep.subr.bf16.mxu0 %v23725_v13  ;;  %v23760_v4 = vld [vmem:[#allocation2 + $0xb18] sm:$0xff]  }
 0x280   :  { %20809 = vmatprep.subr.bf16.mxu1 %v23727_v15  ;;  %v1403_v12 = vpop.f32.mrb[16].mxu0  ;;  %v23761_v13 = vld [vmem:[#allocation2 + $0xad8] sm:$0xff]  }
 0x281   :  { %v26062_v22 = vadd.f32 %v1403_v12, %v1364_v20  ;;  %v21939_v24 = vpop.f32.mrb[17].mxu0  ;;  %v26080_v20 = vld [vmem:[#allocation4] ss:$0 sm:$0xff]  ;;  %v23765_v12 = vld [vmem:[#allocation2 + $0xae0] sm:$0xff]  }
 0x282   :  { %20780 = vmatpush3.bf16.msra.mxu0 %v23726_v18  ;;  %v1406_v26 = vpop.f32.mrb[18].mxu0  ;;  %v23766_v24 = vld [vmem:[#allocation2 + $0xa90] sm:$0xff]  }
 0x283   :  { %20810 = vmatpush3.bf16.msra.mxu1 %v23728_v19  ;;  %20781 = vmatprep.subr.bf16.mxu0 %v23729_v21  ;;  %v21940_v48 = vpop.f32.mrb[19].mxu0  ;;  %v23764_v19 = vld [vmem:[#allocation2 + $0xb20] sm:$0xff]   ;;  %v23768_v26 = vld [vmem:[#allocation2 + $0xb28] sm:$0xff]  }
 0x284   :  { %20811 = vmatprep.subr.bf16.mxu1 %v23731_v9  ;;  %v23763_v9 = vld [vmem:[#allocation2 + $0xa48] sm:$0xff]  }
 0x285   :  { %v23769_v48 = vld [vmem:[#allocation2 + $0xae8] sm:$0xff]  }
 0x286   :  { %20782 = vmatpush3.bf16.msra.mxu0 %v23730_v25 }
 0x287   :  { %20812 = vmatpush3.bf16.msra.mxu1 %v23732_v27  ;;  %20783 = vmatprep.subr.bf16.mxu0 %v23733_v28  ;;  %v23767_v27 = vld [vmem:[#allocation2 + $0xa50] sm:$0xff]   ;;  %v23770_v28 = vld [vmem:[#allocation2 + $0xa98] sm:$0xff]  }
 0x288   :  { %20813 = vmatprep.subr.bf16.mxu1 %v23735_v29  ;;  %v23772_v29 = vld [vmem:[#allocation2 + $0xb30] sm:$0xff]  }
 0x28a   :  { %20784 = vmatpush3.bf16.msra.mxu0 %v23734_v30  ;;  %v23771_v30 = vld [vmem:[#allocation2 + $0xa58] sm:$0xff]  }
 0x28b   :  { %20814 = vmatpush3.bf16.msra.mxu1 %v23736_v31  ;;  %20785 = vmatprep.subr.bf16.mxu0 %v23737_v32  ;;  %v23773_v31 = vld [vmem:[#allocation2 + $0xaf0] sm:$0xff]   ;;  %v23774_v32 = vld [vmem:[#allocation2 + $0xaa0] sm:$0xff]  }
 0x28c   :  { %21965 = vmatprep.subr.bf16.mxu1 %v25624_v11 }
 0x28e   :  { %4092 = vmatmul.mubr.bf16.vlgmr.msra.gmra.mrb[44].mxu1 %v25963_v38  ;;  %20786 = vmatpush3.bf16.msra.mxu0 %v23738_v16  ;;  %v23776_v16 = vld [vmem:[#allocation2 + $0xbf8] sm:$0xff]  }
 0x28f   :  { %21966 = vmatpush3.bf16.msra.mxu1 %v23741_v33  ;;  %20787 = vmatprep.subr.bf16.mxu0 %v23739_v37  ;;  %v23775_v33 = vld [vmem:[#allocation2 + $0xa60] sm:$0xff]   ;;  %v23777_v37 = vld [vmem:[#allocation2 + $0xbb8] sm:$0xff]  }
 0x290   :  { %21967 = vmatprep.mubr.msk.bf16.mxu1 %vm25625_vm0, %v25624_v11  ;;  %20845 = vmatprep.subr.bf16.mxu1 %v23744_v39  ;;  %v23778_v39 = vld [vmem:[#allocation2 + $0xaa8] sm:$0xff]  }
 0x291   :  { %v20543_v43 = vpop.f32.mrb[12].mxu1 }
 0x292   :  { %v20544_v45 = vpop.f32.mrb[13].mxu1  ;;  %20788 = vmatpush3.bf16.msra.mxu0 %v23740_v40  ;;  %v23780_v40 = vld [vmem:[#allocation2 + $0xc00] sm:$0xff]  }
 0x293   :  { %v20545_v47 = vadd.f32 %v20544_v45, %v20543_v43  ;;  %v20546_v49 = vpop.f32.mrb[14].mxu1  ;;  %20789 = vmatprep.subr.bf16.mxu0 %v23742_v41  ;;  %v23779_v41 = vld [vmem:[#allocation2 + $0xa68] sm:$0xff]   ;;  %v23782_v43 = vld [vmem:[#allocation2 + $0xb78] sm:$0xff]  }
 0x294   :  { %v20547_v51 = vpop.f32.mrb[15].mxu1  ;;  %v23783_v45 = vld [vmem:[#allocation2 + $0xb38] sm:$0xff]  }
 0x296   :  { %21968 = vmatmul.mubr.msk.bf16.vlgmr.msra.gmra.mrb[48].mxu1 %vm691_vm1, %v26071_v53  ;;  %20790 = vmatpush3.bf16.msra.mxu0 %v23743_v42  ;;  %v23781_v42 = vld [vmem:[#allocation2 + $0xbc0] sm:$0xff]  }
 0x297   :  { %20846 = vmatpush3.bf16.msra.mxu1 %v23745_v44  ;;  %20791 = vmatprep.subr.bf16.mxu0 %v23746_v46  ;;  %v23784_v44 = vld [vmem:[#allocation2 + $0xc08] sm:$0xff]  }
 0x298   :  { %20847 = vmatprep.subr.bf16.mxu1 %v23748_v50  ;;  %4605 = vmatprep.mubr.bf16.mxu1 %v25957_v34  ;;  %v23786_v50 = vld [vmem:[#allocation2 + $0xb80] sm:$0xff]  }
 0x299   :  { %v26075_v58 = vpop.f32.mrb[16].mxu1 }
 0x29a   :  { %v21945_v60 = vpop.f32.mrb[17].mxu1  ;;  %20792 = vmatpush3.bf16.msra.mxu0 %v23747_v52 }
 0x29b   :  { %20848 = vmatpush3.bf16.msra.mxu1 %v23749_v54  ;;  %v1960_v62 = vpop.f32.mrb[18].mxu1  ;;  %20821 = vmatprep.subr.bf16.mxu0 %v23750_v55  ;;  %v23788_v54 = vld [vmem:[#allocation2 + $0xc10] sm:$0xff]   ;;  %v23792_v60 = vld [vmem:[#allocation2 + $0xc18] sm:$0xff]  }
 0x29c   :  { %20849 = vmatprep.subr.bf16.mxu1 %v23752_v56  ;;  %v21946_v0 = vpop.f32.mrb[19].mxu1  ;;  %v23787_v56 = vld [vmem:[#allocation2 + $0xb40] sm:$0xff]   ;;  %v23791_v62 = vld [vmem:[#allocation2 + $0xb48] sm:$0xff]  }
 0x29d   :  { %4052 = vmatmul.mubr.bf16.vlgmr.msra.gmra.mrb[52].mxu0 %v25959_v35  ;;  %v23793_v0 = vld [vmem:[#allocation2 + $0xbd8] sm:$0xff]  }
 0x29e   :  { %20822 = vmatpush3.bf16.msra.mxu0 %v23751_v57  ;;  %4131 = vmatprep.mubr.bf16.mxu0 %v25973_v7  ;;  %v23789_v57 = vld [vmem:[#allocation2 + $0xbd0] sm:$0xff]  }
 0x29f   :  { %20850 = vmatpush3.bf16.msra.mxu1 %v23753_v59  ;;  %20823 = vmatprep.subr.bf16.mxu0 %v23754_v61  ;;  %v23790_v59 = vld [vmem:[#allocation2 + $0xb88] sm:$0xff]  }
 0x2a0   :  { %20851 = vmatprep.subr.bf16.mxu1 %v23756_v63  ;;  %v20521_v5 = vpop.f32.mrb[20].mxu0 }
 0x2a1   :  { %v20522_v10 = vpop.f32.mrb[21].mxu0 }
 0x2a2   :  { %20824 = vmatpush3.bf16.msra.mxu0 %v23755_v1  ;;  %v20523_v14 = vadd.f32 %v20522_v10, %v20521_v5  ;;  %v20524_v15 = vpop.f32.mrb[22].mxu0  ;;  %v23796_v5 = vld [vmem:[#allocation2 + $0xc20] sm:$0xff]   ;;  %v23795_v10 = vld [vmem:[#allocation2 + $0xb50] sm:$0xff]  }
 0x2a3   :  { %20852 = vmatpush3.bf16.msra.mxu1 %v23757_v2  ;;  %v20525_v18 = vpop.f32.mrb[23].mxu0  ;;  %20825 = vmatprep.subr.bf16.mxu0 %v23758_v3  ;;  %v23794_v3 = vld [vmem:[#allocation2 + $0xb90] sm:$0xff]   ;;  %v23798_v15 = vld [vmem:[#allocation2 + $0xb98] sm:$0xff]  }
 0x2a4   :  { %20853 = vmatprep.subr.bf16.mxu1 %v23760_v4  ;;  %v1838_v21 = vadd.f32 %v26080_v20, %v20523_v14  ;;  %v23799_v18 = vld [vmem:[#allocation2 + $0xb58] sm:$0xff]  }
 0x2a6   :  { %20826 = vmatpush3.bf16.msra.mxu0 %v23759_v6  ;;  %v26083_v25 = vadd.f32 %v20545_v47, %v1838_v21  ;;  %v23785_v47 = vld [vmem:[#allocation2 + $0xbc8] sm:$0xff]   ;;  %v23802_v21 = vld [vmem:[#allocation2 + $0xba0] sm:$0xff]  }
 0x2a7   :  { %20854 = vmatpush3.bf16.msra.mxu1 %v23761_v13  ;;  %20827 = vmatprep.subr.bf16.mxu0 %v23762_v17  ;;  %v23797_v13 = vld [vmem:[#allocation2 + $0xbe0] sm:$0xff]   ;;  %v23800_v17 = vld [vmem:[#allocation2 + $0xc28] sm:$0xff]  }
 0x2a8   :  { %20855 = vmatprep.subr.bf16.mxu1 %v23764_v19  ;;  %v23801_v19 = vld [vmem:[#allocation2 + $0xbe8] sm:$0xff]  }
 0x2aa   :  { %20828 = vmatpush3.bf16.msra.mxu0 %v23763_v9  ;;  %v23804_v9 = vld [vmem:[#allocation2 + $0xc30] sm:$0xff]  }
 0x2ab   :  { %20856 = vmatpush3.bf16.msra.mxu1 %v23765_v12  ;;  %20829 = vmatprep.subr.bf16.mxu0 %v23766_v24  ;;  %v23803_v12 = vld [vmem:[#allocation2 + $0xb60] sm:$0xff]   ;;  %v23805_v24 = vld [vmem:[#allocation2 + $0xbf0] sm:$0xff]  }
 0x2ac   :  { %20857 = vmatprep.subr.bf16.mxu1 %v23768_v26  ;;  %v23807_v26 = vld [vmem:[#allocation2 + $0xb68] sm:$0xff]  }
 0x2ae   :  { %20830 = vmatpush3.bf16.msra.mxu0 %v23767_v27  ;;  %v23809_v27 = vld [vmem:[#allocation2 + $0xcc0] sm:$0xff]  }
 0x2af   :  { %20858 = vmatpush3.bf16.msra.mxu1 %v23769_v48  ;;  %20831 = vmatprep.subr.bf16.mxu0 %v23770_v28  ;;  %v23810_v48 = vld [vmem:[#allocation2 + $0xbb0] sm:$0xff]   ;;  %v23812_v28 = vld [vmem:[#allocation2 + $0xd08] sm:$0xff]  }
 0x2b0   :  { %20859 = vmatprep.subr.bf16.mxu1 %v23772_v29  ;;  %v23811_v29 = vld [vmem:[#allocation2 + $0xb70] sm:$0xff]  }
 0x2b2   :  { %20832 = vmatpush3.bf16.msra.mxu0 %v23771_v30  ;;  %v23813_v30 = vld [vmem:[#allocation2 + $0xcc8] sm:$0xff]  }
 0x2b3   :  { %20860 = vmatpush3.bf16.msra.mxu1 %v23773_v31  ;;  %20833 = vmatprep.subr.bf16.mxu0 %v23774_v32  ;;  %v23815_v31 = vld [vmem:[#allocation2 + $0xd10] sm:$0xff]  }
 0x2b4   :  { %20889 = vmatprep.subr.bf16.mxu1 %v23776_v16  ;;  %v23814_v16 = vld [vmem:[#allocation2 + $0xc38] sm:$0xff]  }
 0x2b6   :  { %4606 = vmatmul.mubr.bf16.vlgmr.msra.gmra.mrb[52].mxu1 %v25959_v35  ;;  %20834 = vmatpush3.bf16.msra.mxu0 %v23775_v33 }
 0x2b7   :  { %20890 = vmatpush3.bf16.msra.mxu1 %v23777_v37  ;;  %20835 = vmatprep.subr.bf16.mxu0 %v23778_v39  ;;  %v23816_v37 = vld [vmem:[#allocation2 + $0xcd0] sm:$0xff]  }
 0x2b8   :  { %20891 = vmatprep.subr.bf16.mxu1 %v23780_v40  ;;  %4685 = vmatprep.mubr.bf16.mxu1 %v25973_v7 }
 0x2b9   :  { %v20589_v46 = vpop.f32.mrb[20].mxu1 }
 0x2ba   :  { %v20590_v49 = vpop.f32.mrb[21].mxu1  ;;  %20836 = vmatpush3.bf16.msra.mxu0 %v23779_v41  ;;  %v23817_v41 = vld [vmem:[#allocation2 + $0xd18] sm:$0xff]  }
 0x2bb   :  { %20892 = vmatpush3.bf16.msra.mxu1 %v23781_v42  ;;  %v26087_v51 = vadd.f32 %v20590_v49, %v20589_v46  ;;  %v20592_v52 = vpop.f32.mrb[22].mxu1  ;;  %20867 = vmatprep.subr.bf16.mxu0 %v23782_v43  ;;  %v23819_v43 = vld [vmem:[#allocation2 + $0xc80] sm:$0xff]  }
 0x2bc   :  { %20893 = vmatprep.subr.bf16.mxu1 %v23784_v44  ;;  %v20593_v55 = vpop.f32.mrb[23].mxu1  ;;  %v23818_v44 = vld [vmem:[#allocation2 + $0xcd8] sm:$0xff]  }
 0x2bd   :  { %4132 = vmatmul.mubr.bf16.vlgmr.msra.gmra.mrb[56].mxu0 %v25975_v8  ;;  %v2392_v52 = vadd.f32 %v26080_v20, %v26087_v51  ;;  %v23829_v51 = vld [vmem:[#allocation2 + $0xd30] sm:$0xff]  }
 0x2be   :  { %20868 = vmatpush3.bf16.msra.mxu0 %v23783_v45  ;;  %4645 = vmatprep.mubr.bf16.mxu0 %v25961_v36  ;;  %v23821_v45 = vld [vmem:[#allocation2 + $0xd20] sm:$0xff]  }
 0x2bf   :  { %20894 = vmatpush3.bf16.msra.mxu1 %v23785_v47  ;;  %20869 = vmatprep.subr.bf16.mxu0 %v23786_v50  ;;  %v23820_v47 = vld [vmem:[#allocation2 + $0xc40] sm:$0xff]  }
 0x2c0   :  { %20895 = vmatprep.subr.bf16.mxu1 %v23788_v54  ;;  %v20565_v61 = vpop.f32.mrb[24].mxu0  ;;  %v23822_v50 = vld [vmem:[#allocation2 + $0xce0] sm:$0xff]  }
 0x2c1   :  { %v20566_v63 = vpop.f32.mrb[25].mxu0 }
 0x2c2   :  { %20870 = vmatpush3.bf16.msra.mxu0 %v23787_v56  ;;  %v20567_v1 = vadd.f32 %v20566_v63, %v20565_v61  ;;  %v20568_v2 = vpop.f32.mrb[26].mxu0  ;;  %v23823_v56 = vld [vmem:[#allocation2 + $0xc88] sm:$0xff]  }
 0x2c3   :  { %20896 = vmatpush3.bf16.msra.mxu1 %v23789_v57  ;;  %v20569_v4 = vpop.f32.mrb[27].mxu0  ;;  %20871 = vmatprep.subr.bf16.mxu0 %v23790_v59  ;;  %v23825_v59 = vld [vmem:[#allocation2 + $0xd28] sm:$0xff]  }
 0x2c4   :  { %20897 = vmatprep.subr.bf16.mxu1 %v23792_v60  ;;  %v1918_v6 = vadd.f32 %v20567_v1, %v26083_v25  ;;  %v23808_v25 = vld [vmem:[#allocation2 + $0xd00] sm:$0xff]   ;;  %v23824_v61 = vld [vmem:[#allocation2 + $0xc48] sm:$0xff]   ;;  %v23828_v4 = vld [vmem:[#allocation2 + $0xc50] sm:$0xff]  }
 0x2c6   :  { %v26093_v14 = vadd.f32 %v26075_v58, %v1918_v6  ;;  %20872 = vmatpush3.bf16.msra.mxu0 %v23791_v62  ;;  %v23806_v58 = vld [vmem:[#allocation2 + $0xba8] sm:$0xff]   ;;  %v23830_v6 = vld [vmem:[#allocation2 + $0xcf0] sm:$0xff]  }
 0x2c7   :  { %20898 = vmatpush3.bf16.msra.mxu1 %v23793_v0  ;;  %20873 = vmatprep.subr.bf16.mxu0 %v23794_v3  ;;  %v23826_v62 = vld [vmem:[#allocation2 + $0xce8] sm:$0xff]   ;;  %v23827_v0 = vld [vmem:[#allocation2 + $0xc90] sm:$0xff]  }
 0x2c8   :  { %20899 = vmatprep.subr.bf16.mxu1 %v23796_v5 }
 0x2ca   :  { %20874 = vmatpush3.bf16.msra.mxu0 %v23795_v10 }
 0x2cb   :  { %20900 = vmatpush3.bf16.msra.mxu1 %v23797_v13  ;;  %20875 = vmatprep.subr.bf16.mxu0 %v23798_v15  ;;  %v23831_v13 = vld [vmem:[#allocation2 + $0xc98] sm:$0xff]  }
 0x2cc   :  { %20901 = vmatprep.subr.bf16.mxu1 %v23800_v17  ;;  %v23833_v15 = vld [vmem:[#allocation2 + $0xd38] sm:$0xff]  }
 0x2cd   :  { %v23832_v17 = vld [vmem:[#allocation2 + $0xc58] sm:$0xff]  }
 0x2ce   :  { %20876 = vmatpush3.bf16.msra.mxu0 %v23799_v18  ;;  %v23834_v18 = vld [vmem:[#allocation2 + $0xcf8] sm:$0xff]  }
 0x2cf   :  { %20902 = vmatpush3.bf16.msra.mxu1 %v23801_v19  ;;  %20877 = vmatprep.subr.bf16.mxu0 %v23802_v21  ;;  %v23835_v19 = vld [vmem:[#allocation2 + $0xca0] sm:$0xff]  }
 0x2d0   :  { %20903 = vmatprep.subr.bf16.mxu1 %v23804_v9  ;;  %v23836_v21 = vld [vmem:[#allocation2 + $0xc60] sm:$0xff]  }
 0x2d1   :  { %v23839_v9 = vld [vmem:[#allocation2 + $0xdc0] sm:$0xff]  }
 0x2d2   :  { %20878 = vmatpush3.bf16.msra.mxu0 %v23803_v12  ;;  %v23837_v12 = vld [vmem:[#allocation2 + $0xca8] sm:$0xff]  }
 0x2d3   :  { %20904 = vmatpush3.bf16.msra.mxu1 %v23805_v24  ;;  %20879 = vmatprep.subr.bf16.mxu0 %v23806_v58  ;;  %v23842_v24 = vld [vmem:[#allocation2 + $0xe08] sm:$0xff]  }
 0x2d4   :  { %20935 = vmatprep.subr.bf16.mxu1 %v23808_v25  ;;  %v23838_v58 = vld [vmem:[#allocation2 + $0xc68] sm:$0xff]   ;;  %v23840_v25 = vld [vmem:[#allocation2 + $0xcb0] sm:$0xff]  }
 0x2d6   :  { %4686 = vmatmul.mubr.bf16.vlgmr.msra.gmra.mrb[56].mxu1 %v25975_v8  ;;  %20880 = vmatpush3.bf16.msra.mxu0 %v23807_v26  ;;  %v23841_v26 = vld [vmem:[#allocation2 + $0xc70] sm:$0xff]  }
 0x2d7   :  { %20936 = vmatpush3.bf16.msra.mxu1 %v23809_v27  ;;  %20881 = vmatprep.subr.bf16.mxu0 %v23810_v48  ;;  %v23843_v48 = vld [vmem:[#allocation2 + $0xdc8] sm:$0xff]  }
 0x2d8   :  { %20937 = vmatprep.subr.bf16.mxu1 %v23812_v28  ;;  %5199 = vmatprep.mubr.bf16.mxu1 %v25961_v36 }
 0x2d9   :  { %v20633_v32 = vpop.f32.mrb[24].mxu1 }
 0x2da   :  { %v20634_v33 = vpop.f32.mrb[25].mxu1  ;;  %20882 = vmatpush3.bf16.msra.mxu0 %v23811_v29  ;;  %v23844_v29 = vld [vmem:[#allocation2 + $0xcb8] sm:$0xff]  }
 0x2db   :  { %20938 = vmatpush3.bf16.msra.mxu1 %v23813_v30  ;;  %v20635_v39 = vadd.f32 %v20634_v33, %v20633_v32  ;;  %v20636_v40 = vpop.f32.mrb[26].mxu1  ;;  %21971 = vmatprep.subr.bf16.mxu0 %v25624_v11  ;;  %v23846_v32 = vld [vmem:[#allocation2 + $0xe10] sm:$0xff]   ;;  %v23845_v33 = vld [vmem:[#allocation2 + $0xc78] sm:$0xff]  }
 0x2dc   :  { %20939 = vmatprep.subr.bf16.mxu1 %v23815_v31  ;;  %v20637_v42 = vpop.f32.mrb[27].mxu1  ;;  %v23850_v40 = vld [vmem:[#allocation2 + $0xe18] sm:$0xff]  }
 0x2dd   :  { %4646 = vmatmul.mubr.bf16.vlgmr.msra.gmra.mrb[60].mxu0 %v25963_v38 }
 0x2de   :  { %21972 = vmatpush3.bf16.msra.mxu0 %v23814_v16  ;;  %21973 = vmatprep.mubr.msk.bf16.mxu0 %vm25625_vm0, %v25624_v11 }
 0x2df   :  { %20940 = vmatpush3.bf16.msra.mxu1 %v23816_v37  ;;  %20913 = vmatprep.subr.bf16.mxu0 %v23819_v43  ;;  %v23847_v37 = vld [vmem:[#allocation2 + $0xdd0] sm:$0xff]   ;;  %v23851_v43 = vld [vmem:[#allocation2 + $0xdd8] sm:$0xff]  }
 0x2e0   :  { %20941 = vmatprep.subr.bf16.mxu1 %v23817_v41  ;;  %v20611_v46 = vpop.f32.mrb[28].mxu0  ;;  %v23849_v41 = vld [vmem:[#allocation2 + $0xd40] sm:$0xff]  }
 0x2e1   :  { %v20612_v49 = vpop.f32.mrb[29].mxu0 }
 0x2e2   :  { %v20613_v54 = vadd.f32 %v20612_v49, %v20611_v46  ;;  %v20614_v55 = vpop.f32.mrb[30].mxu0  ;;  %v23853_v49 = vld [vmem:[#allocation2 + $0xd48] sm:$0xff]  }
 0x2e3   :  { %20942 = vmatpush3.bf16.msra.mxu1 %v23818_v44  ;;  %v20615_v57 = vpop.f32.mrb[31].mxu0 }
 0x2e4   :  { %20943 = vmatprep.subr.bf16.mxu1 %v23821_v45  ;;  %v2432_v60 = vadd.f32 %v20613_v54, %v2392_v52  ;;  %v23852_v45 = vld [vmem:[#allocation2 + $0xd88] sm:$0xff]   ;;  %v23856_v52 = vld [vmem:[#allocation2 + $0xd90] sm:$0xff]  }
 0x2e5   :  { %21974 = vmatmul.mubr.msk.bf16.vlgmr.msra.gmra.mrb[64].mxu0 %vm691_vm1, %v26071_v53  ;;  %v23858_v54 = vld [vmem:[#allocation2 + $0xe28] sm:$0xff]  }
 0x2e6   :  { %20914 = vmatpush3.bf16.msra.mxu0 %v23820_v47  ;;  %v2472_v63 = vadd.f32 %v20635_v39, %v2432_v60  ;;  %5159 = vmatprep.mubr.bf16.mxu0 %v25957_v34  ;;  %v23848_v39 = vld [vmem:[#allocation2 + $0xd80] sm:$0xff]  }
 0x2e7   :  { %20944 = vmatpush3.bf16.msra.mxu1 %v23822_v50  ;;  %20915 = vmatprep.subr.bf16.mxu0 %v23823_v56  ;;  %v23855_v50 = vld [vmem:[#allocation2 + $0xde0] sm:$0xff]   ;;  %v23857_v56 = vld [vmem:[#allocation2 + $0xd50] sm:$0xff]  }
 0x2e8   :  { %20945 = vmatprep.subr.bf16.mxu1 %v23825_v59  ;;  %v2511_v1 = vpop.f32.mrb[32].mxu0  ;;  %v23859_v59 = vld [vmem:[#allocation2 + $0xde8] sm:$0xff]  }
 0x2e9   :  { %v26106_v2 = vadd.f32 %v2511_v1, %v2472_v63  ;;  %v21951_v3 = vpop.f32.mrb[33].mxu0  ;;  %v23861_v1 = vld [vmem:[#allocation2 + $0xd58] sm:$0xff]  }
 0x2ea   :  { %20916 = vmatpush3.bf16.msra.mxu0 %v23824_v61  ;;  %v2514_v5 = vpop.f32.mrb[34].mxu0  ;;  %v23863_v3 = vld [vmem:[#allocation2 + $0xdf0] sm:$0xff]  }
 0x2eb   :  { %20946 = vmatpush3.bf16.msra.mxu1 %v23826_v62  ;;  %20917 = vmatprep.subr.bf16.mxu0 %v23827_v0  ;;  %v21952_v10 = vpop.f32.mrb[35].mxu0  ;;  %v23860_v62 = vld [vmem:[#allocation2 + $0xd98] sm:$0xff]   ;;  %v23862_v0 = vld [vmem:[#allocation2 + $0xe30] sm:$0xff]  }
 0x2ec   :  { %20947 = vmatprep.subr.bf16.mxu1 %v23829_v51  ;;  %v23865_v10 = vld [vmem:[#allocation2 + $0xd60] sm:$0xff]  }
 0x2ee   :  { %20918 = vmatpush3.bf16.msra.mxu0 %v23828_v4  ;;  %v23864_v4 = vld [vmem:[#allocation2 + $0xda0] sm:$0xff]  }
 0x2ef   :  { %20948 = vmatpush3.bf16.msra.mxu1 %v23830_v6  ;;  %20919 = vmatprep.subr.bf16.mxu0 %v23831_v13  ;;  %v23866_v6 = vld [vmem:[#allocation2 + $0xe38] sm:$0xff]  }
 0x2f0   :  { %20949 = vmatprep.subr.bf16.mxu1 %v23833_v15  ;;  %v23867_v13 = vld [vmem:[#allocation2 + $0xdf8] sm:$0xff]   ;;  %v23868_v15 = vld [vmem:[#allocation2 + $0xda8] sm:$0xff]  }
 0x2f2   :  { %20920 = vmatpush3.bf16.msra.mxu0 %v23832_v17  ;;  %v23870_v17 = vld [vmem:[#allocation2 + $0xe40] sm:$0xff]  }
 0x2f3   :  { %20950 = vmatpush3.bf16.msra.mxu1 %v23834_v18  ;;  %20921 = vmatprep.subr.bf16.mxu0 %v23835_v19  ;;  %v23869_v18 = vld [vmem:[#allocation2 + $0xd68] sm:$0xff]   ;;  %v23872_v19 = vld [vmem:[#allocation2 + $0xdb0] sm:$0xff]  }
 0x2f4   :  { %21977 = vmatprep.subr.bf16.mxu1 %v25624_v11 }
 0x2f6   :  { %5200 = vmatmul.mubr.bf16.vlgmr.msra.gmra.mrb[60].mxu1 %v25963_v38  ;;  %20922 = vmatpush3.bf16.msra.mxu0 %v23836_v21  ;;  %v23874_v21 = vld [vmem:[#allocation2 + $0xf08] sm:$0xff]  }
 0x2f7   :  { %21978 = vmatpush3.bf16.msra.mxu1 %v23839_v9  ;;  %20923 = vmatprep.subr.bf16.mxu0 %v23837_v12  ;;  %v23873_v9 = vld [vmem:[#allocation2 + $0xd70] sm:$0xff]   ;;  %v23875_v12 = vld [vmem:[#allocation2 + $0xec8] sm:$0xff]  }
 0x2f8   :  { %21979 = vmatprep.mubr.msk.bf16.mxu1 %vm25625_vm0, %v25624_v11  ;;  %20981 = vmatprep.subr.bf16.mxu1 %v23842_v24  ;;  %v23876_v24 = vld [vmem:[#allocation2 + $0xdb8] sm:$0xff]  }
 0x2f9   :  { %v20679_v27 = vpop.f32.mrb[28].mxu1 }
 0x2fa   :  { %v20680_v28 = vpop.f32.mrb[29].mxu1  ;;  %20924 = vmatpush3.bf16.msra.mxu0 %v23838_v58  ;;  %v23878_v58 = vld [vmem:[#allocation2 + $0xf10] sm:$0xff]  }
 0x2fb   :  { %v20681_v30 = vadd.f32 %v20680_v28, %v20679_v27  ;;  %v20682_v31 = vpop.f32.mrb[30].mxu1  ;;  %20925 = vmatprep.subr.bf16.mxu0 %v23840_v25  ;;  %v23877_v25 = vld [vmem:[#allocation2 + $0xd78] sm:$0xff]   ;;  %v23880_v27 = vld [vmem:[#allocation2 + $0xe88] sm:$0xff]  }
 0x2fc   :  { %v20683_v16 = vpop.f32.mrb[31].mxu1  ;;  %v23881_v28 = vld [vmem:[#allocation2 + $0xe48] sm:$0xff]  }
 0x2fe   :  { %21980 = vmatmul.mubr.msk.bf16.vlgmr.msra.gmra.mrb[64].mxu1 %vm691_vm1, %v26071_v53  ;;  %20926 = vmatpush3.bf16.msra.mxu0 %v23841_v26  ;;  %v23854_v53 = vld [vmem:[#allocation2 + $0xe20] sm:$0xff]   ;;  %v23879_v26 = vld [vmem:[#allocation2 + $0xed0] sm:$0xff]  }
 0x2ff   :  { %20982 = vmatpush3.bf16.msra.mxu1 %v23843_v48  ;;  %20927 = vmatprep.subr.bf16.mxu0 %v23844_v29  ;;  %v23882_v48 = vld [vmem:[#allocation2 + $0xf18] sm:$0xff]  }
 0x300   :  { %20983 = vmatprep.subr.bf16.mxu1 %v23846_v32  ;;  %5713 = vmatprep.mubr.bf16.mxu1 %v25957_v34  ;;  %v23884_v32 = vld [vmem:[#allocation2 + $0xe90] sm:$0xff]  }
 0x301   :  { %v26114_v42 = vpop.f32.mrb[32].mxu1 }
 0x302   :  { %v21957_v44 = vpop.f32.mrb[33].mxu1  ;;  %20928 = vmatpush3.bf16.msra.mxu0 %v23845_v33 }
 0x303   :  { %20984 = vmatpush3.bf16.msra.mxu1 %v23847_v37  ;;  %v3068_v46 = vpop.f32.mrb[34].mxu1  ;;  %20957 = vmatprep.subr.bf16.mxu0 %v23848_v39  ;;  %v23886_v37 = vld [vmem:[#allocation2 + $0xf20] sm:$0xff]   ;;  %v23890_v44 = vld [vmem:[#allocation2 + $0xf28] sm:$0xff]  }
 0x304   :  { %20985 = vmatprep.subr.bf16.mxu1 %v23850_v40  ;;  %v21958_v47 = vpop.f32.mrb[35].mxu1  ;;  %v23885_v40 = vld [vmem:[#allocation2 + $0xe50] sm:$0xff]   ;;  %v23889_v46 = vld [vmem:[#allocation2 + $0xe58] sm:$0xff]  }
 0x305   :  { %5160 = vmatmul.mubr.bf16.vlgmr.msra.gmra.mrb[68].mxu0 %v25959_v35  ;;  %v23891_v47 = vld [vmem:[#allocation2 + $0xee8] sm:$0xff]  }
 0x306   :  { %20958 = vmatpush3.bf16.msra.mxu0 %v23849_v41  ;;  %5239 = vmatprep.mubr.bf16.mxu0 %v25973_v7  ;;  %v23887_v41 = vld [vmem:[#allocation2 + $0xee0] sm:$0xff]  }
 0x307   :  { %20986 = vmatpush3.bf16.msra.mxu1 %v23851_v43  ;;  %20959 = vmatprep.subr.bf16.mxu0 %v23852_v45  ;;  %v23888_v43 = vld [vmem:[#allocation2 + $0xe98] sm:$0xff]  }
 0x308   :  { %20987 = vmatprep.subr.bf16.mxu1 %v23854_v53  ;;  %v20657_v55 = vpop.f32.mrb[36].mxu0 }
 0x309   :  { %v20658_v57 = vpop.f32.mrb[37].mxu0 }
 0x30a   :  { %20960 = vmatpush3.bf16.msra.mxu0 %v23853_v49  ;;  %v20659_v60 = vadd.f32 %v20658_v57, %v20657_v55  ;;  %v20660_v61 = vpop.f32.mrb[38].mxu0  ;;  %v23894_v55 = vld [vmem:[#allocation2 + $0xf30] sm:$0xff]   ;;  %v23893_v57 = vld [vmem:[#allocation2 + $0xe60] sm:$0xff]  }
 0x30b   :  { %20988 = vmatpush3.bf16.msra.mxu1 %v23855_v50  ;;  %v20661_v63 = vpop.f32.mrb[39].mxu0  ;;  %20961 = vmatprep.subr.bf16.mxu0 %v23856_v52  ;;  %v23892_v52 = vld [vmem:[#allocation2 + $0xea0] sm:$0xff]   ;;  %v23896_v61 = vld [vmem:[#allocation2 + $0xea8] sm:$0xff]  }
 0x30c   :  { %20989 = vmatprep.subr.bf16.mxu1 %v23858_v54  ;;  %v2946_v51 = vadd.f32 %v26080_v20, %v20659_v60  ;;  %v23871_v20 = vld [vmem:[#allocation2 + $0xe00] sm:$0xff]   ;;  %v23897_v63 = vld [vmem:[#allocation2 + $0xe68] sm:$0xff]  }
 0x30e   :  { %20962 = vmatpush3.bf16.msra.mxu0 %v23857_v56  ;;  %v26120_v5 = vadd.f32 %v20681_v30, %v2946_v51  ;;  %v23883_v30 = vld [vmem:[#allocation2 + $0xed8] sm:$0xff]   ;;  %v23900_v51 = vld [vmem:[#allocation2 + $0xeb0] sm:$0xff]  }
 0x30f   :  { %20990 = vmatpush3.bf16.msra.mxu1 %v23859_v59  ;;  %20963 = vmatprep.subr.bf16.mxu0 %v23860_v62  ;;  %v23895_v59 = vld [vmem:[#allocation2 + $0xef0] sm:$0xff]   ;;  %v23898_v62 = vld [vmem:[#allocation2 + $0xf38] sm:$0xff]  }
 0x310   :  { %20991 = vmatprep.subr.bf16.mxu1 %v23862_v0  ;;  %v23899_v0 = vld [vmem:[#allocation2 + $0xef8] sm:$0xff]  }
 0x312   :  { %20964 = vmatpush3.bf16.msra.mxu0 %v23861_v1  ;;  %v23902_v1 = vld [vmem:[#allocation2 + $0xf40] sm:$0xff]  }
 0x313   :  { %20992 = vmatpush3.bf16.msra.mxu1 %v23863_v3  ;;  %20965 = vmatprep.subr.bf16.mxu0 %v23864_v4  ;;  %v23901_v3 = vld [vmem:[#allocation2 + $0xe70] sm:$0xff]   ;;  %v23903_v4 = vld [vmem:[#allocation2 + $0xf00] sm:$0xff]  }
 0x314   :  { %20993 = vmatprep.subr.bf16.mxu1 %v23866_v6  ;;  %v23905_v6 = vld [vmem:[#allocation2 + $0xe78] sm:$0xff]  }
 0x316   :  { %20966 = vmatpush3.bf16.msra.mxu0 %v23865_v10  ;;  %v23907_v10 = vld [vmem:[#allocation2 + $0xfd0] sm:$0xff]  }
 0x317   :  { %20994 = vmatpush3.bf16.msra.mxu1 %v23867_v13  ;;  %20967 = vmatprep.subr.bf16.mxu0 %v23868_v15  ;;  %v23908_v13 = vld [vmem:[#allocation2 + $0xec0] sm:$0xff]   ;;  %v23910_v15 = vld [vmem:[#allocation2 + $0x1018] sm:$0xff]  }
 0x318   :  { %20995 = vmatprep.subr.bf16.mxu1 %v23870_v17  ;;  %v23909_v17 = vld [vmem:[#allocation2 + $0xe80] sm:$0xff]  }
 0x31a   :  { %20968 = vmatpush3.bf16.msra.mxu0 %v23869_v18  ;;  %v23911_v18 = vld [vmem:[#allocation2 + $0xfd8] sm:$0xff]  }
 0x31b   :  { %20996 = vmatpush3.bf16.msra.mxu1 %v23871_v20  ;;  %20969 = vmatprep.subr.bf16.mxu0 %v23872_v19  ;;  %v23913_v20 = vld [vmem:[#allocation2 + $0x1020] sm:$0xff]  }
 0x31c   :  { %21025 = vmatprep.subr.bf16.mxu1 %v23874_v21  ;;  %v23912_v21 = vld [vmem:[#allocation2 + $0xf48] sm:$0xff]  }
 0x31e   :  { %5714 = vmatmul.mubr.bf16.vlgmr.msra.gmra.mrb[68].mxu1 %v25959_v35  ;;  %20970 = vmatpush3.bf16.msra.mxu0 %v23873_v9 }
 0x31f   :  { %21026 = vmatpush3.bf16.msra.mxu1 %v23875_v12  ;;  %20971 = vmatprep.subr.bf16.mxu0 %v23876_v24  ;;  %v23914_v12 = vld [vmem:[#allocation2 + $0xfe0] sm:$0xff]  }
 0x320   :  { %21027 = vmatprep.subr.bf16.mxu1 %v23878_v58  ;;  %5793 = vmatprep.mubr.bf16.mxu1 %v25973_v7 }
 0x321   :  { %v20725_v29 = vpop.f32.mrb[36].mxu1 }
 0x322   :  { %v20726_v31 = vpop.f32.mrb[37].mxu1  ;;  %20972 = vmatpush3.bf16.msra.mxu0 %v23877_v25  ;;  %v23915_v25 = vld [vmem:[#allocation2 + $0x1028] sm:$0xff]  }
 0x323   :  { %21028 = vmatpush3.bf16.msra.mxu1 %v23879_v26  ;;  %v26124_v16 = vadd.f32 %v20726_v31, %v20725_v29  ;;  %v20728_v33 = vpop.f32.mrb[38].mxu1  ;;  %21003 = vmatprep.subr.bf16.mxu0 %v23880_v27  ;;  %v23917_v27 = vld [vmem:[#allocation2 + $0xf90] sm:$0xff]  }
 0x324   :  { %21029 = vmatprep.subr.bf16.mxu1 %v23882_v48  ;;  %v20729_v39 = vpop.f32.mrb[39].mxu1  ;;  %v23916_v48 = vld [vmem:[#allocation2 + $0xfe8] sm:$0xff]   ;;  %v26138_v33 = vld [vmem:[#allocation4] ss:$0 sm:$0xff] }
 0x325   :  { %5240 = vmatmul.mubr.bf16.vlgmr.msra.gmra.mrb[72].mxu0 %v25975_v8 }
 0x326   :  { %21004 = vmatpush3.bf16.msra.mxu0 %v23881_v28  ;;  %5753 = vmatprep.mubr.bf16.mxu0 %v25961_v36  ;;  %v23919_v28 = vld [vmem:[#allocation2 + $0x1030] sm:$0xff]  }
 0x327   :  { %21030 = vmatpush3.bf16.msra.mxu1 %v23883_v30  ;;  %21005 = vmatprep.subr.bf16.mxu0 %v23884_v32  ;;  %v23918_v30 = vld [vmem:[#allocation2 + $0xf50] sm:$0xff]  }
 0x328   :  { %21031 = vmatprep.subr.bf16.mxu1 %v23886_v37  ;;  %v20701_v45 = vpop.f32.mrb[40].mxu0  ;;  %v23920_v32 = vld [vmem:[#allocation2 + $0xff0] sm:$0xff]   ;;  %v3500_v37 = vadd.f32 %v26138_v33, %v26124_v16 }
 0x329   :  { %v20702_v53 = vpop.f32.mrb[41].mxu0 }
 0x32a   :  { %21006 = vmatpush3.bf16.msra.mxu0 %v23885_v40  ;;  %v20703_v49 = vadd.f32 %v20702_v53, %v20701_v45  ;;  %v20704_v50 = vpop.f32.mrb[42].mxu0  ;;  %v26145_v53 = vld [vmem:[%s28292_s20 + $0x18] ss:$0 sps:$4 sm:$0xff]  }
 0x32b   :  { %21032 = vmatpush3.bf16.msra.mxu1 %v23887_v41  ;;  %v20705_v54 = vpop.f32.mrb[43].mxu0  ;;  %21007 = vmatprep.subr.bf16.mxu0 %v23888_v43  ;;  %v23921_v41 = vld [vmem:[#allocation2 + $0xf98] sm:$0xff]   ;;  %v23927_v50 = vld [vmem:[#allocation2 + $0x1040] sm:$0xff]  }
 0x32c   :  { %21033 = vmatprep.subr.bf16.mxu1 %v23890_v44  ;;  %v3026_v56 = vadd.f32 %v20703_v49, %v26120_v5  ;;  %v23906_v5 = vld [vmem:[#allocation2 + $0x1010] sm:$0xff]   ;;  %v23923_v44 = vld [vmem:[#allocation2 + $0x1038] sm:$0xff]   ;;  %v23925_v49 = vld [vmem:[#allocation2 + $0xfa0] sm:$0xff]  }
 0x32e   :  { %v26130_v60 = vadd.f32 %v26114_v42, %v3026_v56  ;;  %21008 = vmatpush3.bf16.msra.mxu0 %v23889_v46  ;;  %v23904_v42 = vld [vmem:[#allocation2 + $0xeb8] sm:$0xff]   ;;  %v23926_v56 = vld [vmem:[#allocation2 + $0xf60] sm:$0xff]  }
 0x32f   :  { %21034 = vmatpush3.bf16.msra.mxu1 %v23891_v47  ;;  %21009 = vmatprep.subr.bf16.mxu0 %v23892_v52  ;;  %v23922_v46 = vld [vmem:[#allocation2 + $0xf58] sm:$0xff]  }
 0x330   :  { %21035 = vmatprep.subr.bf16.mxu1 %v23894_v55  ;;  %v23924_v47 = vld [vmem:[#allocation2 + $0xff8] sm:$0xff]  }
 0x332   :  { %21010 = vmatpush3.bf16.msra.mxu0 %v23893_v57 }
 0x333   :  { %21036 = vmatpush3.bf16.msra.mxu1 %v23895_v59  ;;  %21011 = vmatprep.subr.bf16.mxu0 %v23896_v61  ;;  %v23928_v59 = vld [vmem:[#allocation2 + $0x1000] sm:$0xff]  }
 0x334   :  { %21037 = vmatprep.subr.bf16.mxu1 %v23898_v62  ;;  %v23929_v62 = vld [vmem:[#allocation2 + $0xfa8] sm:$0xff]  }
 0x336   :  { %21012 = vmatpush3.bf16.msra.mxu0 %v23897_v63  ;;  %v23931_v63 = vld [vmem:[#allocation2 + $0x1048] sm:$0xff]  }
 0x337   :  { %21038 = vmatpush3.bf16.msra.mxu1 %v23899_v0  ;;  %21013 = vmatprep.subr.bf16.mxu0 %v23900_v51  ;;  %v23930_v0 = vld [vmem:[#allocation2 + $0xf68] sm:$0xff]  }
 0x338   :  { %21039 = vmatprep.subr.bf16.mxu1 %v23902_v1  ;;  %v23932_v51 = vld [vmem:[#allocation2 + $0x1008] sm:$0xff]   ;;  %v23933_v1 = vld [vmem:[#allocation2 + $0xfb0] sm:$0xff]  }
 0x33a   :  { %21014 = vmatpush3.bf16.msra.mxu0 %v23901_v3  ;;  %v23934_v3 = vld [vmem:[#allocation2 + $0xf70] sm:$0xff]  }
 0x33b   :  { %21040 = vmatpush3.bf16.msra.mxu1 %v23903_v4  ;;  %21015 = vmatprep.subr.bf16.mxu0 %v23904_v42  ;;  %v23937_v4 = vld [vmem:[#allocation2 + $0x10d0] sm:$0xff]   ;;  %v23935_v42 = vld [vmem:[#allocation2 + $0xfb8] sm:$0xff]  }
 0x33c   :  { %21071 = vmatprep.subr.bf16.mxu1 %v23906_v5  ;;  %v23940_v5 = vld [vmem:[#allocation2 + $0x1118] sm:$0xff]  }
 0x33e   :  { %5794 = vmatmul.mubr.bf16.vlgmr.msra.gmra.mrb[72].mxu1 %v25975_v8  ;;  %21016 = vmatpush3.bf16.msra.mxu0 %v23905_v6  ;;  %v23936_v6 = vld [vmem:[#allocation2 + $0xf78] sm:$0xff]  }
 0x33f   :  { %21072 = vmatpush3.bf16.msra.mxu1 %v23907_v10  ;;  %21017 = vmatprep.subr.bf16.mxu0 %v23908_v13  ;;  %v23938_v10 = vld [vmem:[#allocation2 + $0xfc0] sm:$0xff]  }
 0x340   :  { %21073 = vmatprep.subr.bf16.mxu1 %v23910_v15  ;;  %6307 = vmatprep.mubr.bf16.mxu1 %v25961_v36  ;;  %v23939_v13 = vld [vmem:[#allocation2 + $0xf80] sm:$0xff]  }
 0x341   :  { %v20769_v19 = vpop.f32.mrb[40].mxu1 }
 0x342   :  { %v20770_v9 = vpop.f32.mrb[41].mxu1  ;;  %21018 = vmatpush3.bf16.msra.mxu0 %v23909_v17  ;;  %v23941_v17 = vld [vmem:[#allocation2 + $0x10d8] sm:$0xff]  }
 0x343   :  { %21074 = vmatpush3.bf16.msra.mxu1 %v23911_v18  ;;  %v20771_v24 = vadd.f32 %v20770_v9, %v20769_v19  ;;  %v20772_v58 = vpop.f32.mrb[42].mxu1  ;;  %21983 = vmatprep.subr.bf16.mxu0 %v25624_v11  ;;  %v23944_v9 = vld [vmem:[#allocation2 + $0x1120] sm:$0xff]  }
 0x344   :  { %21075 = vmatprep.subr.bf16.mxu1 %v23913_v20  ;;  %v20773_v26 = vpop.f32.mrb[43].mxu1  ;;  %v23942_v20 = vld [vmem:[#allocation2 + $0xfc8] sm:$0xff]   ;;  %v23945_v58 = vld [vmem:[#allocation2 + $0x10e0] sm:$0xff]  }
 0x345   :  { %5754 = vmatmul.mubr.bf16.vlgmr.msra.gmra.mrb[76].mxu0 %v25963_v38  ;;  %v23948_v26 = vld [vmem:[#allocation2 + $0x1128] sm:$0xff]  }
 0x346   :  { %21984 = vmatpush3.bf16.msra.mxu0 %v23912_v21  ;;  %21985 = vmatprep.mubr.msk.bf16.mxu0 %vm25625_vm0, %v25624_v11 }
 0x347   :  { %21076 = vmatpush3.bf16.msra.mxu1 %v23914_v12  ;;  %21049 = vmatprep.subr.bf16.mxu0 %v23917_v27  ;;  %v23947_v27 = vld [vmem:[#allocation2 + $0x1050] sm:$0xff]  }
 0x348   :  { %21077 = vmatprep.subr.bf16.mxu1 %v23915_v25  ;;  %v20747_v29 = vpop.f32.mrb[44].mxu0  ;;  %v23946_v25 = vld [vmem:[#allocation2 + $0x1090] sm:$0xff]  }
 0x349   :  { %v20748_v31 = vpop.f32.mrb[45].mxu0 }
 0x34a   :  { %v20749_v39 = vadd.f32 %v20748_v31, %v20747_v29  ;;  %v20750_v40 = vpop.f32.mrb[46].mxu0 }
 0x34b   :  { %21078 = vmatpush3.bf16.msra.mxu1 %v23916_v48  ;;  %v20751_v43 = vpop.f32.mrb[47].mxu0  ;;  %v23953_v40 = vld [vmem:[#allocation2 + $0x10f0] sm:$0xff]  }
 0x34c   :  { %21079 = vmatprep.subr.bf16.mxu1 %v23919_v28  ;;  %v3540_v45 = vadd.f32 %v20749_v39, %v3500_v37  ;;  %v23949_v28 = vld [vmem:[#allocation2 + $0x10e8] sm:$0xff]   ;;  %v23951_v39 = vld [vmem:[#allocation2 + $0x1058] sm:$0xff]  }
 0x34d   :  { %21986 = vmatmul.mubr.msk.bf16.vlgmr.msra.gmra.mrb[80].mxu0 %vm691_vm1, %v26145_v53  ;;  %v23956_v43 = vld [vmem:[#allocation2 + $0x1138] sm:$0xff]  }
 0x34e   :  { %21050 = vmatpush3.bf16.msra.mxu0 %v23918_v30  ;;  %v3580_v16 = vadd.f32 %v20771_v24, %v3540_v45  ;;  %6267 = vmatprep.mubr.bf16.mxu0 %v25957_v34  ;;  %v23943_v24 = vld [vmem:[#allocation2 + $0xf88] sm:$0xff]   ;;  %v23950_v30 = vld [vmem:[#allocation2 + $0x1098] sm:$0xff]   ;;  %v23955_v45 = vld [vmem:[#allocation2 + $0x1060] sm:$0xff]  }
 0x34f   :  { %21080 = vmatpush3.bf16.msra.mxu1 %v23920_v32  ;;  %21051 = vmatprep.subr.bf16.mxu0 %v23921_v41  ;;  %v23952_v32 = vld [vmem:[#allocation2 + $0x1130] sm:$0xff]   ;;  %v23954_v41 = vld [vmem:[#allocation2 + $0x10a0] sm:$0xff]  }
 0x350   :  { %21081 = vmatprep.subr.bf16.mxu1 %v23923_v44  ;;  %v3619_v52 = vpop.f32.mrb[48].mxu0 }
 0x351   :  { %v26150_v54 = vadd.f32 %v3619_v52, %v3580_v16  ;;  %v21963_v55 = vpop.f32.mrb[49].mxu0 }
 0x352   :  { %21052 = vmatpush3.bf16.msra.mxu0 %v23922_v46  ;;  %v3622_v57 = vpop.f32.mrb[50].mxu0  ;;  %v23960_v55 = vld [vmem:[#allocation2 + $0x1140] sm:$0xff]  }
 0x353   :  { %21082 = vmatpush3.bf16.msra.mxu1 %v23924_v47  ;;  %21053 = vmatprep.subr.bf16.mxu0 %v23925_v49  ;;  %v21964_v61 = vpop.f32.mrb[51].mxu0  ;;  %v23957_v47 = vld [vmem:[#allocation2 + $0x10f8] sm:$0xff]   ;;  %v23959_v57 = vld [vmem:[#allocation2 + $0x1068] sm:$0xff]  }
 0x354   :  { %21083 = vmatprep.subr.bf16.mxu1 %v23927_v50  ;;  %v23958_v50 = vld [vmem:[#allocation2 + $0x10a8] sm:$0xff]   ;;  %v23962_v61 = vld [vmem:[#allocation2 + $0x10b0] sm:$0xff]  }
 0x356   :  { %21054 = vmatpush3.bf16.msra.mxu0 %v23926_v56 }
 0x357   :  { %21084 = vmatpush3.bf16.msra.mxu1 %v23928_v59  ;;  %21055 = vmatprep.subr.bf16.mxu0 %v23929_v62  ;;  %v23961_v59 = vld [vmem:[#allocation2 + $0x1100] sm:$0xff]  }
 0x358   :  { %21085 = vmatprep.subr.bf16.mxu1 %v23931_v63  ;;  %v23964_v63 = vld [vmem:[#allocation2 + $0x1148] sm:$0xff]  }
 0x35a   :  { %21056 = vmatpush3.bf16.msra.mxu0 %v23930_v0  ;;  %v23963_v0 = vld [vmem:[#allocation2 + $0x1070] sm:$0xff]  }
 0x35b   :  { %21086 = vmatpush3.bf16.msra.mxu1 %v23932_v51  ;;  %21057 = vmatprep.subr.bf16.mxu0 %v23933_v1  ;;  %v23965_v51 = vld [vmem:[#allocation2 + $0x1108] sm:$0xff]   ;;  %v23966_v1 = vld [vmem:[#allocation2 + $0x10b8] sm:$0xff]  }
 0x35c   :  { %21989 = vmatprep.subr.bf16.mxu1 %v25624_v11 }
 0x35e   :  { %6308 = vmatmul.mubr.bf16.vlgmr.msra.gmra.mrb[76].mxu1 %v25963_v38  ;;  %21058 = vmatpush3.bf16.msra.mxu0 %v23934_v3  ;;  %v23968_v3 = vld [vmem:[#allocation2 + $0x1150] sm:$0xff]  }
 0x35f   :  { %21990 = vmatpush3.bf16.msra.mxu1 %v23937_v4  ;;  %21059 = vmatprep.subr.bf16.mxu0 %v23935_v42  ;;  %v23967_v4 = vld [vmem:[#allocation2 + $0x1078] sm:$0xff]   ;;  %v23969_v42 = vld [vmem:[#allocation2 + $0x1110] sm:$0xff]  }
 0x360   :  { %21991 = vmatprep.mubr.msk.bf16.mxu1 %vm25625_vm0, %v25624_v11  ;;  %21117 = vmatprep.subr.bf16.mxu1 %v23940_v5  ;;  %v23970_v5 = vld [vmem:[#allocation2 + $0x10c0] sm:$0xff]  }
 0x361   :  { %v20815_v15 = vpop.f32.mrb[44].mxu1 }
 0x362   :  { %v20816_v18 = vpop.f32.mrb[45].mxu1  ;;  %21060 = vmatpush3.bf16.msra.mxu0 %v23936_v6  ;;  %v23972_v6 = vld [vmem:[#allocation2 + $0x1218] sm:$0xff]  }
 0x363   :  { %v20817_v19 = vadd.f32 %v20816_v18, %v20815_v15  ;;  %v20818_v21 = vpop.f32.mrb[46].mxu1  ;;  %21061 = vmatprep.subr.bf16.mxu0 %v23938_v10  ;;  %v23971_v10 = vld [vmem:[#allocation2 + $0x1080] sm:$0xff]   ;;  %v23974_v15 = vld [vmem:[#allocation2 + $0x10c8] sm:$0xff]  }
 0x364   :  { %v20819_v12 = vpop.f32.mrb[47].mxu1  ;;  %v23975_v18 = vld [vmem:[#allocation2 + $0x1088] sm:$0xff]  }
 0x365   :  { %v23980_v21 = vld [vmem:[#allocation2 + $0x1228] sm:$0xff]  }
 0x366   :  { %21992 = vmatmul.mubr.msk.bf16.vlgmr.msra.gmra.mrb[80].mxu1 %vm691_vm1, %v26145_v53  ;;  %21062 = vmatpush3.bf16.msra.mxu0 %v23939_v13  ;;  %v23973_v13 = vld [vmem:[#allocation2 + $0x11d8] sm:$0xff]  }
 0x367   :  { %21118 = vmatpush3.bf16.msra.mxu1 %v23941_v17  ;;  %21063 = vmatprep.subr.bf16.mxu0 %v23942_v20  ;;  %v23976_v17 = vld [vmem:[#allocation2 + $0x1220] sm:$0xff]  }
 0x368   :  { %21119 = vmatprep.subr.bf16.mxu1 %v23944_v9  ;;  %6821 = vmatprep.mubr.bf16.mxu1 %v25957_v34  ;;  %v23977_v20 = vld [vmem:[#allocation2 + $0x11e0] sm:$0xff]   ;;  %v23979_v9 = vld [vmem:[#allocation2 + $0x1158] sm:$0xff]  }
 0x369   :  { %v26158_v48 = vpop.f32.mrb[48].mxu1 }
 0x36a   :  { %v21969_v29 = vpop.f32.mrb[49].mxu1  ;;  %21064 = vmatpush3.bf16.msra.mxu0 %v23943_v24  ;;  %v23981_v24 = vld [vmem:[#allocation2 + $0x11e8] sm:$0xff]  }
 0x36b   :  { %21120 = vmatpush3.bf16.msra.mxu1 %v23945_v58  ;;  %v4176_v31 = vpop.f32.mrb[50].mxu1  ;;  %21093 = vmatprep.subr.bf16.mxu0 %v23946_v25  ;;  %v23982_v25 = vld [vmem:[#allocation2 + $0x11a0] sm:$0xff]  }
 0x36c   :  { %21121 = vmatprep.subr.bf16.mxu1 %v23948_v26  ;;  %v21970_v37 = vpop.f32.mrb[51].mxu1  ;;  %v23985_v31 = vld [vmem:[#allocation2 + $0x11f0] sm:$0xff]  }
 0x36d   :  { %6268 = vmatmul.mubr.bf16.vlgmr.msra.gmra.mrb[84].mxu0 %v25959_v35  ;;  %v23988_v37 = vld [vmem:[#allocation2 + $0x1238] sm:$0xff]  }
 0x36e   :  { %21094 = vmatpush3.bf16.msra.mxu0 %v23947_v27  ;;  %6347 = vmatprep.mubr.bf16.mxu0 %v25973_v7 }
 0x36f   :  { %21122 = vmatpush3.bf16.msra.mxu1 %v23949_v28  ;;  %21095 = vmatprep.subr.bf16.mxu0 %v23950_v30  ;;  %v23984_v28 = vld [vmem:[#allocation2 + $0x1230] sm:$0xff]   ;;  %v23983_v30 = vld [vmem:[#allocation2 + $0x1160] sm:$0xff]  }
 0x370   :  { %21123 = vmatprep.subr.bf16.mxu1 %v23952_v32  ;;  %v20793_v44 = vpop.f32.mrb[52].mxu0  ;;  %v23986_v32 = vld [vmem:[#allocation2 + $0x11a8] sm:$0xff]  }
 0x371   :  { %v20794_v46 = vpop.f32.mrb[53].mxu0 }
 0x372   :  { %21096 = vmatpush3.bf16.msra.mxu0 %v23951_v39  ;;  %v20795_v16 = vadd.f32 %v20794_v46, %v20793_v44  ;;  %v20796_v49 = vpop.f32.mrb[54].mxu0  ;;  %v23990_v46 = vld [vmem:[#allocation2 + $0x11b0] sm:$0xff]  }
 0x373   :  { %21124 = vmatpush3.bf16.msra.mxu1 %v23953_v40  ;;  %v20797_v52 = vpop.f32.mrb[55].mxu0  ;;  %21097 = vmatprep.subr.bf16.mxu0 %v23954_v41  ;;  %v23987_v40 = vld [vmem:[#allocation2 + $0x1168] sm:$0xff]  }
 0x374   :  { %21125 = vmatprep.subr.bf16.mxu1 %v23956_v43  ;;  %v4054_v56 = vadd.f32 %v26138_v33, %v20795_v16  ;;  %v23989_v43 = vld [vmem:[#allocation2 + $0x11f8] sm:$0xff]   ;;  %v23992_v16 = vld [vmem:[#allocation2 + $0x1240] sm:$0xff]  }
 0x375   :  { %v23993_v52 = vld [vmem:[#allocation2 + $0x1200] sm:$0xff]  }
 0x376   :  { %21098 = vmatpush3.bf16.msra.mxu0 %v23955_v45  ;;  %v26164_v62 = vadd.f32 %v20817_v19, %v4054_v56  ;;  %v23978_v19 = vld [vmem:[#allocation2 + $0x1198] sm:$0xff]  }
 0x377   :  { %21126 = vmatpush3.bf16.msra.mxu1 %v23957_v47  ;;  %21099 = vmatprep.subr.bf16.mxu0 %v23958_v50  ;;  %v23991_v50 = vld [vmem:[#allocation2 + $0x1170] sm:$0xff]   ;;  %v23994_v56 = vld [vmem:[#allocation2 + $0x11b8] sm:$0xff]  }
 0x378   :  { %21127 = vmatprep.subr.bf16.mxu1 %v23960_v55 }
 0x37a   :  { %21100 = vmatpush3.bf16.msra.mxu0 %v23959_v57  ;;  %v23996_v57 = vld [vmem:[#allocation2 + $0x1248] sm:$0xff]  }
 0x37b   :  { %21128 = vmatpush3.bf16.msra.mxu1 %v23961_v59  ;;  %21101 = vmatprep.subr.bf16.mxu0 %v23962_v61  ;;  %v23995_v59 = vld [vmem:[#allocation2 + $0x1178] sm:$0xff]   ;;  %v23997_v61 = vld [vmem:[#allocation2 + $0x1208] sm:$0xff]  }
 0x37c   :  { %21129 = vmatprep.subr.bf16.mxu1 %v23964_v63  ;;  %v23998_v63 = vld [vmem:[#allocation2 + $0x11c0] sm:$0xff]  }
 0x37e   :  { %21102 = vmatpush3.bf16.msra.mxu0 %v23963_v0  ;;  %v24000_v0 = vld [vmem:[#allocation2 + $0x1250] sm:$0xff]  }
 0x37f   :  { %21130 = vmatpush3.bf16.msra.mxu1 %v23965_v51  ;;  %21103 = vmatprep.subr.bf16.mxu0 %v23966_v1  ;;  %v24001_v51 = vld [vmem:[#allocation2 + $0x1210] sm:$0xff]   ;;  %v24004_v1 = vld [vmem:[#allocation2 + $0x1320] sm:$0xff]  }
 0x380   :  { %21131 = vmatprep.subr.bf16.mxu1 %v23968_v3  ;;  %v24003_v3 = vld [vmem:[#allocation2 + $0x1188] sm:$0xff]  }
 0x382   :  { %21104 = vmatpush3.bf16.msra.mxu0 %v23967_v4  ;;  %v24005_v4 = vld [vmem:[#allocation2 + $0x12e0] sm:$0xff]  }
 0x383   :  { %21132 = vmatpush3.bf16.msra.mxu1 %v23969_v42  ;;  %21105 = vmatprep.subr.bf16.mxu0 %v23970_v5  ;;  %v24006_v42 = vld [vmem:[#allocation2 + $0x11d0] sm:$0xff]   ;;  %v24008_v5 = vld [vmem:[#allocation2 + $0x1328] sm:$0xff]  }
 0x384   :  { %21161 = vmatprep.subr.bf16.mxu1 %v23972_v6  ;;  %v24007_v6 = vld [vmem:[#allocation2 + $0x1190] sm:$0xff]  }
 0x386   :  { %6822 = vmatmul.mubr.bf16.vlgmr.msra.gmra.mrb[84].mxu1 %v25959_v35  ;;  %21106 = vmatpush3.bf16.msra.mxu0 %v23971_v10  ;;  %v24009_v10 = vld [vmem:[#allocation2 + $0x12e8] sm:$0xff]  }
 0x387   :  { %21162 = vmatpush3.bf16.msra.mxu1 %v23973_v13  ;;  %21107 = vmatprep.subr.bf16.mxu0 %v23974_v15  ;;  %v24011_v13 = vld [vmem:[#allocation2 + $0x1330] sm:$0xff]  }
 0x388   :  { %21163 = vmatprep.subr.bf16.mxu1 %v23976_v17  ;;  %6901 = vmatprep.mubr.bf16.mxu1 %v25973_v7  ;;  %v24010_v17 = vld [vmem:[#allocation2 + $0x1258] sm:$0xff]  }
 0x389   :  { %v20861_v12 = vpop.f32.mrb[52].mxu1 }
 0x38a   :  { %v20862_v58 = vpop.f32.mrb[53].mxu1  ;;  %21108 = vmatpush3.bf16.msra.mxu0 %v23975_v18 }
 0x38b   :  { %21164 = vmatpush3.bf16.msra.mxu1 %v23977_v20  ;;  %v26168_v26 = vadd.f32 %v20862_v58, %v20861_v12  ;;  %v20864_v27 = vpop.f32.mrb[54].mxu1  ;;  %21139 = vmatprep.subr.bf16.mxu0 %v23978_v19  ;;  %v24012_v20 = vld [vmem:[#allocation2 + $0x12f0] sm:$0xff]   ;;  %v24014_v58 = vld [vmem:[#allocation2 + $0x12f8] sm:$0xff]  }
 0x38c   :  { %21165 = vmatprep.subr.bf16.mxu1 %v23980_v21  ;;  %v20865_v29 = vpop.f32.mrb[55].mxu1 }
 0x38d   :  { %6348 = vmatmul.mubr.bf16.vlgmr.msra.gmra.mrb[88].mxu0 %v25975_v8 }
 0x38e   :  { %21140 = vmatpush3.bf16.msra.mxu0 %v23979_v9  ;;  %6861 = vmatprep.mubr.bf16.mxu0 %v25961_v36  ;;  %v24013_v9 = vld [vmem:[#allocation2 + $0x1338] sm:$0xff]  }
 0x38f   :  { %21166 = vmatpush3.bf16.msra.mxu1 %v23981_v24  ;;  %21141 = vmatprep.subr.bf16.mxu0 %v23982_v25  ;;  %v24015_v24 = vld [vmem:[#allocation2 + $0x12a0] sm:$0xff]  }
 0x390   :  { %21167 = vmatprep.subr.bf16.mxu1 %v23984_v28  ;;  %v20837_v39 = vpop.f32.mrb[56].mxu0  ;;  %v24017_v25 = vld [vmem:[#allocation2 + $0x1340] sm:$0xff]  }
 0x391   :  { %v20838_v41 = vpop.f32.mrb[57].mxu0  ;;  %v24016_v28 = vld [vmem:[#allocation2 + $0x1260] sm:$0xff]  }
 0x392   :  { %21142 = vmatpush3.bf16.msra.mxu0 %v23983_v30  ;;  %v20839_v44 = vadd.f32 %v20838_v41, %v20837_v39  ;;  %v20840_v45 = vpop.f32.mrb[58].mxu0  ;;  %v24018_v30 = vld [vmem:[#allocation2 + $0x1300] sm:$0xff]   ;;  %v24019_v39 = vld [vmem:[#allocation2 + $0x12a8] sm:$0xff]  }
 0x393   :  { %21168 = vmatpush3.bf16.msra.mxu1 %v23985_v31  ;;  %v20841_v47 = vpop.f32.mrb[59].mxu0  ;;  %21143 = vmatprep.subr.bf16.mxu0 %v23986_v32  ;;  %v4608_v31 = vadd.f32 %v26138_v33, %v26168_v26  ;;  %v24021_v41 = vld [vmem:[#allocation2 + $0x1348] sm:$0xff]   ;;  %v24025_v33 = vld [vmem:[#allocation2 + $0x1350] sm:$0xff]  }
 0x394   :  { %21169 = vmatprep.subr.bf16.mxu1 %v23988_v37  ;;  %v4134_v49 = vadd.f32 %v20839_v44, %v26164_v62  ;;  %v23999_v62 = vld [vmem:[#allocation2 + $0x1180] sm:$0xff]   ;;  %v24020_v44 = vld [vmem:[#allocation2 + $0x1268] sm:$0xff]   ;;  %v24023_v47 = vld [vmem:[#allocation2 + $0x12b0] sm:$0xff]  }
 0x395   :  { %v24022_v45 = vld [vmem:[#allocation2 + $0x1308] sm:$0xff]  }
 0x396   :  { %v26174_v55 = vadd.f32 %v26158_v48, %v4134_v49  ;;  %21144 = vmatpush3.bf16.msra.mxu0 %v23987_v40  ;;  %v24002_v48 = vld [vmem:[#allocation2 + $0x11c8] sm:$0xff]  }
 0x397   :  { %21170 = vmatpush3.bf16.msra.mxu1 %v23989_v43  ;;  %21145 = vmatprep.subr.bf16.mxu0 %v23990_v46 }
 0x398   :  { %21171 = vmatprep.subr.bf16.mxu1 %v23992_v16 }
 0x39a   :  { %21146 = vmatpush3.bf16.msra.mxu0 %v23991_v50  ;;  %v24024_v50 = vld [vmem:[#allocation2 + $0x1270] sm:$0xff]  }
 0x39b   :  { %21172 = vmatpush3.bf16.msra.mxu1 %v23993_v52  ;;  %21147 = vmatprep.subr.bf16.mxu0 %v23994_v56  ;;  %v24026_v56 = vld [vmem:[#allocation2 + $0x1310] sm:$0xff]  }
 0x39c   :  { %21173 = vmatprep.subr.bf16.mxu1 %v23996_v57  ;;  %v24027_v57 = vld [vmem:[#allocation2 + $0x12b8] sm:$0xff]  }
 0x39e   :  { %21148 = vmatpush3.bf16.msra.mxu0 %v23995_v59  ;;  %v24029_v59 = vld [vmem:[#allocation2 + $0x1358] sm:$0xff]  }
 0x39f   :  { %21174 = vmatpush3.bf16.msra.mxu1 %v23997_v61  ;;  %21149 = vmatprep.subr.bf16.mxu0 %v23998_v63  ;;  %v24028_v61 = vld [vmem:[#allocation2 + $0x1278] sm:$0xff]  }
 0x3a0   :  { %21175 = vmatprep.subr.bf16.mxu1 %v24000_v0  ;;  %v24030_v63 = vld [vmem:[#allocation2 + $0x1318] sm:$0xff]   ;;  %v24031_v0 = vld [vmem:[#allocation2 + $0x12c0] sm:$0xff]  }
 0x3a2   :  { %21150 = vmatpush3.bf16.msra.mxu0 %v23999_v62  ;;  %v24032_v62 = vld [vmem:[#allocation2 + $0x1280] sm:$0xff]  }
 0x3a3   :  { %21176 = vmatpush3.bf16.msra.mxu1 %v24001_v51  ;;  %21151 = vmatprep.subr.bf16.mxu0 %v24002_v48  ;;  %v24035_v51 = vld [vmem:[#allocation2 + $0x13e0] sm:$0xff]   ;;  %v24033_v48 = vld [vmem:[#allocation2 + $0x12c8] sm:$0xff]  }
 0x3a4   :  { %21207 = vmatprep.subr.bf16.mxu1 %v24004_v1  ;;  %v24038_v1 = vld [vmem:[#allocation2 + $0x1428] sm:$0xff]  }
 0x3a6   :  { %6902 = vmatmul.mubr.bf16.vlgmr.msra.gmra.mrb[88].mxu1 %v25975_v8  ;;  %21152 = vmatpush3.bf16.msra.mxu0 %v24003_v3  ;;  %v24034_v3 = vld [vmem:[#allocation2 + $0x1288] sm:$0xff]  }
 0x3a7   :  { %21208 = vmatpush3.bf16.msra.mxu1 %v24005_v4  ;;  %21153 = vmatprep.subr.bf16.mxu0 %v24006_v42  ;;  %v24036_v4 = vld [vmem:[#allocation2 + $0x12d0] sm:$0xff]  }
 0x3a8   :  { %21209 = vmatprep.subr.bf16.mxu1 %v24008_v5  ;;  %7415 = vmatprep.mubr.bf16.mxu1 %v25961_v36  ;;  %v24037_v42 = vld [vmem:[#allocation2 + $0x1290] sm:$0xff]  }
 0x3a9   :  { %v20905_v15 = vpop.f32.mrb[56].mxu1 }
 0x3aa   :  { %v20906_v18 = vpop.f32.mrb[57].mxu1  ;;  %21154 = vmatpush3.bf16.msra.mxu0 %v24007_v6  ;;  %v24039_v6 = vld [vmem:[#allocation2 + $0x13e8] sm:$0xff]  }
 0x3ab   :  { %21210 = vmatpush3.bf16.msra.mxu1 %v24009_v10  ;;  %v20907_v19 = vadd.f32 %v20906_v18, %v20905_v15  ;;  %v20908_v21 = vpop.f32.mrb[58].mxu1  ;;  %21995 = vmatprep.subr.bf16.mxu0 %v25624_v11  ;;  %v24042_v18 = vld [vmem:[#allocation2 + $0x1430] sm:$0xff]  }
 0x3ac   :  { %21211 = vmatprep.subr.bf16.mxu1 %v24011_v13  ;;  %v20909_v12 = vpop.f32.mrb[59].mxu1  ;;  %v24040_v13 = vld [vmem:[#allocation2 + $0x12d8] sm:$0xff]  }
 0x3ad   :  { %6862 = vmatmul.mubr.bf16.vlgmr.msra.gmra.mrb[92].mxu0 %v25963_v38  ;;  %v26196_v21 = vld [vmem:[%s28292_s20 + $0x18] ss:$0 sps:$4 sm:$0xff]   ;;  %v24044_v12 = vld [vmem:[#allocation2 + $0x13a0] sm:$0xff]  }
 0x3ae   :  { %21996 = vmatpush3.bf16.msra.mxu0 %v24010_v17  ;;  %21997 = vmatprep.mubr.msk.bf16.mxu0 %vm25625_vm0, %v25624_v11 }
 0x3af   :  { %21212 = vmatpush3.bf16.msra.mxu1 %v24012_v20  ;;  %21185 = vmatprep.subr.bf16.mxu0 %v24015_v24  ;;  %v24046_v24 = vld [vmem:[#allocation2 + $0x1438] sm:$0xff]  }
 0x3b0   :  { %21213 = vmatprep.subr.bf16.mxu1 %v24013_v9  ;;  %v20883_v27 = vpop.f32.mrb[60].mxu0  ;;  %v24043_v9 = vld [vmem:[#allocation2 + $0x13f0] sm:$0xff]  }
 0x3b1   :  { %v20884_v29 = vpop.f32.mrb[61].mxu0 }
 0x3b2   :  { %v20885_v32 = vadd.f32 %v20884_v29, %v20883_v27  ;;  %v20886_v37 = vpop.f32.mrb[62].mxu0  ;;  %v24047_v27 = vld [vmem:[#allocation2 + $0x13f8] sm:$0xff]   ;;  %v24048_v29 = vld [vmem:[#allocation2 + $0x13a8] sm:$0xff]  }
 0x3b3   :  { %21214 = vmatpush3.bf16.msra.mxu1 %v24014_v58  ;;  %v20887_v40 = vpop.f32.mrb[63].mxu0  ;;  %v24045_v58 = vld [vmem:[#allocation2 + $0x1360] sm:$0xff]   ;;  %v24049_v37 = vld [vmem:[#allocation2 + $0x1368] sm:$0xff]  }
 0x3b4   :  { %21215 = vmatprep.subr.bf16.mxu1 %v24017_v25  ;;  %v4648_v43 = vadd.f32 %v20885_v32, %v4608_v31  ;;  %v24050_v31 = vld [vmem:[#allocation2 + $0x1440] sm:$0xff]   ;;  %v24052_v40 = vld [vmem:[#allocation2 + $0x13b0] sm:$0xff]  }
 0x3b5   :  { %21998 = vmatmul.mubr.msk.bf16.vlgmr.msra.gmra.mrb[96].mxu0 %vm691_vm1, %v26145_v53 }
 0x3b6   :  { %21186 = vmatpush3.bf16.msra.mxu0 %v24016_v28  ;;  %v4688_v46 = vadd.f32 %v20907_v19, %v4648_v43  ;;  %7375 = vmatprep.mubr.bf16.mxu0 %v25957_v34  ;;  %v24041_v19 = vld [vmem:[#allocation2 + $0x1298] sm:$0xff]   ;;  %v24053_v43 = vld [vmem:[#allocation2 + $0x1370] sm:$0xff]  }
 0x3b7   :  { %21216 = vmatpush3.bf16.msra.mxu1 %v24018_v30  ;;  %21187 = vmatprep.subr.bf16.mxu0 %v24019_v39  ;;  %v24051_v39 = vld [vmem:[#allocation2 + $0x1400] sm:$0xff]  }
 0x3b8   :  { %21217 = vmatprep.subr.bf16.mxu1 %v24021_v41  ;;  %v4727_v26 = vpop.f32.mrb[64].mxu0 }
 0x3b9   :  { %v26187_v16 = vadd.f32 %v4727_v26, %v4688_v46  ;;  %v21975_v49 = vpop.f32.mrb[65].mxu0 }
 0x3ba   :  { %21188 = vmatpush3.bf16.msra.mxu0 %v24020_v44  ;;  %v4730_v52 = vpop.f32.mrb[66].mxu0  ;;  %v24058_v49 = vld [vmem:[#allocation2 + $0x1450] sm:$0xff]  }
 0x3bb   :  { %21218 = vmatpush3.bf16.msra.mxu1 %v24022_v45  ;;  %21189 = vmatprep.subr.bf16.mxu0 %v24023_v47  ;;  %v21976_v53 = vpop.f32.mrb[67].mxu0  ;;  %v24055_v45 = vld [vmem:[#allocation2 + $0x1408] sm:$0xff]  }
 0x3bc   :  { %21219 = vmatprep.subr.bf16.mxu1 %v24025_v33  ;;  %v24056_v33 = vld [vmem:[#allocation2 + $0x13b8] sm:$0xff]   ;;  %v24059_v53 = vld [vmem:[#allocation2 + $0x1410] sm:$0xff]  }
 0x3be   :  { %21190 = vmatpush3.bf16.msra.mxu0 %v24024_v50  ;;  %v26205_v50 = vld [vmem:[#allocation4] ss:$0 sm:$0xff] }
 0x3bf   :  { %21220 = vmatpush3.bf16.msra.mxu1 %v24026_v56  ;;  %21191 = vmatprep.subr.bf16.mxu0 %v24027_v57  ;;  %v24057_v56 = vld [vmem:[#allocation2 + $0x1378] sm:$0xff]   ;;  %v24060_v57 = vld [vmem:[#allocation2 + $0x13c0] sm:$0xff]  }
 0x3c0   :  { %21221 = vmatprep.subr.bf16.mxu1 %v24029_v59 }
 0x3c2   :  { %21192 = vmatpush3.bf16.msra.mxu0 %v24028_v61  ;;  %v24062_v61 = vld [vmem:[#allocation2 + $0x1458] sm:$0xff]  }
 0x3c3   :  { %21222 = vmatpush3.bf16.msra.mxu1 %v24030_v63  ;;  %21193 = vmatprep.subr.bf16.mxu0 %v24031_v0  ;;  %v24061_v63 = vld [vmem:[#allocation2 + $0x1380] sm:$0xff]   ;;  %v24063_v0 = vld [vmem:[#allocation2 + $0x1418] sm:$0xff]  }
 0x3c4   :  { %22001 = vmatprep.subr.bf16.mxu1 %v25624_v11 }
 0x3c6   :  { %7416 = vmatmul.mubr.bf16.vlgmr.msra.gmra.mrb[92].mxu1 %v25963_v38  ;;  %21194 = vmatpush3.bf16.msra.mxu0 %v24032_v62  ;;  %v24064_v62 = vld [vmem:[#allocation2 + $0x13c8] sm:$0xff]  }
 0x3c7   :  { %22002 = vmatpush3.bf16.msra.mxu1 %v24035_v51  ;;  %21195 = vmatprep.subr.bf16.mxu0 %v24033_v48  ;;  %v24066_v51 = vld [vmem:[#allocation2 + $0x1460] sm:$0xff]   ;;  %v24065_v48 = vld [vmem:[#allocation2 + $0x1388] sm:$0xff]  }
 0x3c8   :  { %22003 = vmatprep.mubr.msk.bf16.mxu1 %vm25625_vm0, %v25624_v11  ;;  %21253 = vmatprep.subr.bf16.mxu1 %v24038_v1  ;;  %v24067_v1 = vld [vmem:[#allocation2 + $0x1420] sm:$0xff]  }
 0x3c9   :  { %v20951_v5 = vpop.f32.mrb[60].mxu1 }
 0x3ca   :  { %v20952_v10 = vpop.f32.mrb[61].mxu1  ;;  %21196 = vmatpush3.bf16.msra.mxu0 %v24034_v3  ;;  %v24068_v3 = vld [vmem:[#allocation2 + $0x13d0] sm:$0xff]  }
 0x3cb   :  { %v20953_v15 = vadd.f32 %v20952_v10, %v20951_v5  ;;  %v20954_v17 = vpop.f32.mrb[62].mxu1  ;;  %21197 = vmatprep.subr.bf16.mxu0 %v24036_v4  ;;  %v24070_v4 = vld [vmem:[#allocation2 + $0x1528] sm:$0xff]   ;;  %v24074_v10 = vld [vmem:[#allocation2 + $0x1530] sm:$0xff]  }
 0x3cc   :  { %v20955_v20 = vpop.f32.mrb[63].mxu1  ;;  %v24071_v5 = vld [vmem:[#allocation2 + $0x14e8] sm:$0xff]  }
 0x3cd   :  { %v24076_v17 = vld [vmem:[#allocation2 + $0x14a8] sm:$0xff]  }
 0x3ce   :  { %22004 = vmatmul.mubr.msk.bf16.vlgmr.msra.gmra.mrb[96].mxu1 %vm691_vm1, %v26196_v21  ;;  %21198 = vmatpush3.bf16.msra.mxu0 %v24037_v42  ;;  %v24069_v42 = vld [vmem:[#allocation2 + $0x1390] sm:$0xff]   ;;  %v24077_v20 = vld [vmem:[#allocation2 + $0x1468] sm:$0xff]  }
 0x3cf   :  { %21254 = vmatpush3.bf16.msra.mxu1 %v24039_v6  ;;  %21199 = vmatprep.subr.bf16.mxu0 %v24040_v13  ;;  %v24072_v6 = vld [vmem:[#allocation2 + $0x13d8] sm:$0xff]  }
 0x3d0   :  { %21255 = vmatprep.subr.bf16.mxu1 %v24042_v18  ;;  %7929 = vmatprep.mubr.bf16.mxu1 %v25957_v34  ;;  %v24054_v34 = vld [vmem:[#allocation2 + $0x1448] sm:$0xff]   ;;  %v24073_v13 = vld [vmem:[#allocation2 + $0x1398] sm:$0xff]  }
 0x3d1   :  { %v26200_v25 = vpop.f32.mrb[64].mxu1  ;;  %v24078_v18 = vld [vmem:[#allocation2 + $0x1538] sm:$0xff]  }
 0x3d2   :  { %v21981_v28 = vpop.f32.mrb[65].mxu1  ;;  %21200 = vmatpush3.bf16.msra.mxu0 %v24041_v19 }
 0x3d3   :  { %21256 = vmatpush3.bf16.msra.mxu1 %v24043_v9  ;;  %v5284_v30 = vpop.f32.mrb[66].mxu1  ;;  %21229 = vmatprep.subr.bf16.mxu0 %v24044_v12  ;;  %v24079_v9 = vld [vmem:[#allocation2 + $0x14f8] sm:$0xff]  }
 0x3d4   :  { %21257 = vmatprep.subr.bf16.mxu1 %v24046_v24  ;;  %v21982_v32 = vpop.f32.mrb[67].mxu1  ;;  %v24080_v24 = vld [vmem:[#allocation2 + $0x14b0] sm:$0xff]   ;;  %v24083_v30 = vld [vmem:[#allocation2 + $0x1500] sm:$0xff]  }
 0x3d5   :  { %7376 = vmatmul.mubr.bf16.vlgmr.msra.gmra.mrb[100].mxu0 %v25959_v35 }
 0x3d6   :  { %21230 = vmatpush3.bf16.msra.mxu0 %v24045_v58  ;;  %7455 = vmatprep.mubr.bf16.mxu0 %v25973_v7 }
 0x3d7   :  { %21258 = vmatpush3.bf16.msra.mxu1 %v24047_v27  ;;  %21231 = vmatprep.subr.bf16.mxu0 %v24048_v29  ;;  %v24081_v29 = vld [vmem:[#allocation2 + $0x1470] sm:$0xff]  }
 0x3d8   :  { %21259 = vmatprep.subr.bf16.mxu1 %v24050_v31  ;;  %v20929_v41 = vpop.f32.mrb[68].mxu0  ;;  %v24084_v31 = vld [vmem:[#allocation2 + $0x14b8] sm:$0xff]  }
 0x3d9   :  { %v20930_v44 = vpop.f32.mrb[69].mxu0 }
 0x3da   :  { %21232 = vmatpush3.bf16.msra.mxu0 %v24049_v37  ;;  %v20931_v46 = vadd.f32 %v20930_v44, %v20929_v41  ;;  %v20932_v47 = vpop.f32.mrb[70].mxu0  ;;  %v24085_v37 = vld [vmem:[#allocation2 + $0x1478] sm:$0xff]  }
 0x3db   :  { %21260 = vmatpush3.bf16.msra.mxu1 %v24051_v39  ;;  %v20933_v26 = vpop.f32.mrb[71].mxu0  ;;  %21233 = vmatprep.subr.bf16.mxu0 %v24052_v40  ;;  %v24087_v40 = vld [vmem:[#allocation2 + $0x1508] sm:$0xff]   ;;  %v24089_v47 = vld [vmem:[#allocation2 + $0x1480] sm:$0xff]  }
 0x3dc   :  { %21261 = vmatprep.subr.bf16.mxu1 %v24054_v34  ;;  %v5162_v52 = vadd.f32 %v26205_v50, %v20931_v46  ;;  %v24092_v26 = vld [vmem:[#allocation2 + $0x14c8] sm:$0xff]  }
 0x3de   :  { %21234 = vmatpush3.bf16.msra.mxu0 %v24053_v43  ;;  %v26208_v59 = vadd.f32 %v20953_v15, %v5162_v52  ;;  %v24075_v15 = vld [vmem:[#allocation2 + $0x14f0] sm:$0xff]   ;;  %v24088_v43 = vld [vmem:[#allocation2 + $0x14c0] sm:$0xff]   ;;  %v24094_v52 = vld [vmem:[#allocation2 + $0x1558] sm:$0xff]  }
 0x3df   :  { %21262 = vmatpush3.bf16.msra.mxu1 %v24055_v45  ;;  %21235 = vmatprep.subr.bf16.mxu0 %v24056_v33  ;;  %v24090_v45 = vld [vmem:[#allocation2 + $0x1550] sm:$0xff]  }
 0x3e0   :  { %21263 = vmatprep.subr.bf16.mxu1 %v24058_v49  ;;  %v24091_v33 = vld [vmem:[#allocation2 + $0x1510] sm:$0xff]   ;;  %v855_v49 = vmax.f32 %v26049_v23, 0.0 }
 0x3e1   :  { %v26295_v23 = vld [vmem:[#allocation6 + $0x98] sm:$0xff]  }
 0x3e2   :  { %21236 = vmatpush3.bf16.msra.mxu0 %v24057_v56  ;;  %v1409_v56 = vmax.f32 %v26062_v22, 0.0 }
 0x3e3   :  { %21264 = vmatpush3.bf16.msra.mxu1 %v24059_v53  ;;  %21237 = vmatprep.subr.bf16.mxu0 %v24060_v57  ;;  %v24093_v53 = vld [vmem:[#allocation2 + $0x1488] sm:$0xff]   ;;  %v24095_v57 = vld [vmem:[#allocation2 + $0x1518] sm:$0xff]  }
 0x3e4   :  { %21265 = vmatprep.subr.bf16.mxu1 %v24062_v61  ;;  %v24096_v61 = vld [vmem:[#allocation2 + $0x14d0] sm:$0xff]  }
 0x3e6   :  { %21238 = vmatpush3.bf16.msra.mxu0 %v24061_v63  ;;  %v24098_v63 = vld [vmem:[#allocation2 + $0x1560] sm:$0xff]  }
 0x3e7   :  { %21266 = vmatpush3.bf16.msra.mxu1 %v24063_v0  ;;  %21239 = vmatprep.subr.bf16.mxu0 %v24064_v62  ;;  %v24099_v0 = vld [vmem:[#allocation2 + $0x1520] sm:$0xff]   ;;  %v24100_v62 = vld [vmem:[#allocation2 + $0x14d8] sm:$0xff]  }
 0x3e8   :  { %21267 = vmatprep.subr.bf16.mxu1 %v24066_v51  ;;  %v26222_v51 = vld [vmem:[#allocation6 + $0x38] sm:$0xff]  }
 0x3ea   :  { %21240 = vmatpush3.bf16.msra.mxu0 %v24065_v48  ;;  %v24103_v48 = vld [vmem:[#allocation2 + $0x14e0] sm:$0xff]  }
 0x3eb   :  { %21268 = vmatpush3.bf16.msra.mxu1 %v24067_v1  ;;  %21241 = vmatprep.subr.bf16.mxu0 %v24068_v3  ;;  %v24104_v1 = vld [vmem:[#allocation2 + $0x14a0] sm:$0xff]   ;;  %v26225_v3 = vld [vmem:[#allocation6 + $0x40] sm:$0xff]  }
 0x3ec   :  { %21297 = vmatprep.subr.bf16.mxu1 %v24070_v4  ;;  %v24106_v4 = vld [vmem:[#allocation2 + $0x1568] sm:$0xff]  }
 0x3ee   :  { %7930 = vmatmul.mubr.bf16.vlgmr.msra.gmra.mrb[100].mxu1 %v25959_v35  ;;  %21242 = vmatpush3.bf16.msra.mxu0 %v24069_v42  ;;  %v24082_v35 = vld [vmem:[#allocation2 + $0x1540] sm:$0xff]  }
 0x3ef   :  { %21298 = vmatpush3.bf16.msra.mxu1 %v24071_v5  ;;  %21243 = vmatprep.subr.bf16.mxu0 %v24072_v6  ;;  %v26230_v42 = vld [vmem:[#allocation6 + $0x48] sm:$0xff]  }
 0x3f0   :  { %21299 = vmatprep.subr.bf16.mxu1 %v24074_v10  ;;  %8009 = vmatprep.mubr.bf16.mxu1 %v25973_v7  ;;  %v24086_v7 = vld [vmem:[#allocation2 + $0x1548] sm:$0xff]  }
 0x3f1   :  { %v20997_v19 = vpop.f32.mrb[68].mxu1 }
 0x3f2   :  { %v20998_v12 = vpop.f32.mrb[69].mxu1  ;;  %21244 = vmatpush3.bf16.msra.mxu0 %v24073_v13 }
 0x3f3   :  { %21300 = vmatpush3.bf16.msra.mxu1 %v24075_v15  ;;  %v26212_v58 = vadd.f32 %v20998_v12, %v20997_v19  ;;  %v21000_v27 = vpop.f32.mrb[70].mxu1  ;;  %21275 = vmatprep.subr.bf16.mxu0 %v24076_v17  ;;  %v26237_v15 = vld [vmem:[#allocation6 + $0x50] sm:$0xff]  }
 0x3f4   :  { %21301 = vmatprep.subr.bf16.mxu1 %v24078_v18  ;;  %v21001_v28 = vpop.f32.mrb[71].mxu1  ;;  %v26245_v18 = vld [vmem:[#allocation6 + $0x70] sm:$0xff]  }
 0x3f5   :  { %7456 = vmatmul.mubr.bf16.vlgmr.msra.gmra.mrb[104].mxu0 %v25975_v8  ;;  %v26255_v28 = vld [vmem:[#allocation6 + $0x60] sm:$0xff]  }
 0x3f6   :  { %21276 = vmatpush3.bf16.msra.mxu0 %v24077_v20  ;;  %7969 = vmatprep.mubr.bf16.mxu0 %v25961_v36  ;;  %v26247_v20 = vld [vmem:[#allocation6 + $0x58] sm:$0xff]  }
 0x3f7   :  { %21302 = vmatpush3.bf16.msra.mxu1 %v24079_v9  ;;  %21277 = vmatprep.subr.bf16.mxu0 %v24080_v24  ;;  %v5716_v9 = vadd.f32 %v26205_v50, %v26212_v58 }
 0x3f8   :  { %21303 = vmatprep.subr.bf16.mxu1 %v24082_v35  ;;  %v20973_v32 = vpop.f32.mrb[72].mxu0  ;;  %v26253_v35 = vld [vmem:[#allocation6 + $0x78] sm:$0xff]  }
 0x3f9   :  { %v20974_v39 = vpop.f32.mrb[73].mxu0 }
 0x3fa   :  { %21278 = vmatpush3.bf16.msra.mxu0 %v24081_v29  ;;  %v20975_v34 = vadd.f32 %v20974_v39, %v20973_v32  ;;  %v20976_v41 = vpop.f32.mrb[74].mxu0  ;;  %v26275_v39 = vld [vmem:[#allocation6 + $0x88] sm:$0xff]  }
 0x3fb   :  { %21304 = vmatpush3.bf16.msra.mxu1 %v24083_v30  ;;  %v20977_v44 = vpop.f32.mrb[75].mxu0  ;;  %21279 = vmatprep.subr.bf16.mxu0 %v24084_v31  ;;  %v26263_v30 = vld [vmem:[#allocation6 + $0x80] sm:$0xff]   ;;  %v26265_v31 = vld [vmem:[#allocation6 + $0x68] sm:$0xff]   ;;  %v26286_v41 = vld [vmem:[#allocation6 + $0x90] sm:$0xff]  }
 0x3fc   :  { %21305 = vmatprep.subr.bf16.mxu1 %v24086_v7  ;;  %v5242_v46 = vadd.f32 %v20975_v34, %v26208_v59  ;;  %v24097_v59 = vld [vmem:[#allocation2 + $0x1490] sm:$0xff]   ;;  %v8074_v34 = vpack.c.bf16 %v855_v49, %v855_v49  ;;  %v26297_v44 = vld [vmem:[#allocation6 + $0x10] sm:$0xff]  }
 0x3fe   :  { %v26219_v36 = vadd.f32 %v26200_v25, %v5242_v46  ;;  %21280 = vmatpush3.bf16.msra.mxu0 %v24085_v37  ;;  %v24101_v25 = vld [vmem:[#allocation2 + $0x1498] sm:$0xff]   ;;  %v26307_v46 = vld [vmem:[#allocation6 + $0x18] sm:$0xff]  }
 0x3ff   :  { %21306 = vmatpush3.bf16.msra.mxu1 %v24087_v40  ;;  %21281 = vmatprep.subr.bf16.mxu0 %v24088_v43  ;;  %v26277_v40 = vld [vmem:[#allocation6] sm:$0xff]   ;;  %v26288_v43 = vld [vmem:[#allocation6 + $0x8] sm:$0xff]  }
 0x400   :  { %21307 = vmatprep.subr.bf16.mxu1 %v24090_v45  ;;  %v26305_v45 = vld [vmem:[#allocation6 + $0xa0] sm:$0xff]  }
 0x402   :  { %21282 = vmatpush3.bf16.msra.mxu0 %v24089_v47 }
 0x403   :  { %21308 = vmatpush3.bf16.msra.mxu1 %v24091_v33  ;;  %21283 = vmatprep.subr.bf16.mxu0 %v24092_v26 }
 0x404   :  { %21309 = vmatprep.subr.bf16.mxu1 %v24094_v52 }
 0x406   :  { %21284 = vmatpush3.bf16.msra.mxu0 %v24093_v53  ;;  %v26313_v53 = vld [vmem:[#allocation6 + $0x20] sm:$0xff]  }
 0x407   :  { %21310 = vmatpush3.bf16.msra.mxu1 %v24095_v57  ;;  %21285 = vmatprep.subr.bf16.mxu0 %v24096_v61  ;;  %v8090_v57 = vpack.c.bf16 %v1409_v56, %v1409_v56  ;;  %v26322_v61 = vld [vmem:[#allocation6 + $0x28] sm:$0xff]   ;;  %v26331_v56 = vld [vmem:[#allocation6 + $0x30] sm:$0xff]  }
 0x408   :  { %21311 = vmatprep.subr.bf16.mxu1 %v24098_v63 }
 0x40a   :  { %21286 = vmatpush3.bf16.msra.mxu0 %v24097_v59 }
 0x40b   :  { %21312 = vmatpush3.bf16.msra.mxu1 %v24099_v0  ;;  %21287 = vmatprep.subr.bf16.mxu0 %v24100_v62 }
 0x40c   :  { %22031 = vmatprep.subr.bf16.mxu1 %v25624_v11 }
 0x40e   :  { %8010 = vmatmul.mubr.bf16.vlgmr.msra.gmra.mrb[104].mxu1 %v25975_v8  ;;  %21288 = vmatpush3.bf16.msra.mxu0 %v24101_v25 }
 0x40f   :  { %22032 = vmatpush3.bf16.msra.mxu1 %v26222_v51  ;;  %21289 = vmatprep.subr.bf16.mxu0 %v24103_v48 }
 0x410   :  { %22033 = vmatprep.subr.bf16.mxu1 %v25624_v11  ;;  %22045 = vmatprep.mubr.msk.bf16.mxu1 %vm25625_vm0, %v25624_v11 }
 0x411   :  { %v21041_v5 = vpop.f32.mrb[72].mxu1 }
 0x412   :  { %v21042_v6 = vpop.f32.mrb[73].mxu1  ;;  %21290 = vmatpush3.bf16.msra.mxu0 %v24104_v1 }
 0x413   :  { %22034 = vmatpush3.bf16.msra.mxu1 %v26225_v3  ;;  %v21043_v10 = vadd.f32 %v21042_v6, %v21041_v5  ;;  %v21044_v13 = vpop.f32.mrb[74].mxu1  ;;  %22007 = vmatprep.subr.bf16.mxu0 %v25624_v11 }
 0x414   :  { %22035 = vmatprep.subr.bf16.mxu1 %v25624_v11  ;;  %v21045_v8 = vpop.f32.mrb[75].mxu1 }
 0x415   :  { %7970 = vmatmul.mubr.bf16.vlgmr.msra.gmra.mrb[108].mxu0 %v25963_v38 }
 0x416   :  { %22008 = vmatpush3.bf16.msra.mxu0 %v24106_v4  ;;  %22009 = vmatprep.mubr.msk.bf16.mxu0 %vm25625_vm0, %v25624_v11 }
 0x417   :  { %22036 = vmatpush3.bf16.msra.mxu1 %v26230_v42  ;;  %22013 = vmatprep.subr.bf16.mxu0 %v25624_v11 }
 0x418   :  { %22037 = vmatprep.subr.bf16.mxu1 %v25624_v11  ;;  %v21019_v17 = vpop.f32.mrb[76].mxu0 }
 0x419   :  { %v21020_v19 = vpop.f32.mrb[77].mxu0 }
 0x41a   :  { %v21021_v38 = vadd.f32 %v21020_v19, %v21019_v17  ;;  %v21022_v12 = vpop.f32.mrb[78].mxu0 }
 0x41b   :  { %22038 = vmatpush3.bf16.msra.mxu1 %v26237_v15  ;;  %v21023_v24 = vpop.f32.mrb[79].mxu0 }
 0x41c   :  { %22039 = vmatprep.subr.bf16.mxu1 %v25624_v11  ;;  %v5756_v27 = vadd.f32 %v21021_v38, %v5716_v9 }
 0x41d   :  { %22010 = vmatmul.mubr.msk.bf16.vlgmr.msra.gmra.mrb[112].mxu0 %vm691_vm1, %v26196_v21 }
 0x41e   :  { %22014 = vmatpush3.bf16.msra.mxu0 %v26245_v18  ;;  %v5796_v58 = vadd.f32 %v21043_v10, %v5756_v27  ;;  %22027 = vmatprep.mubr.msk.bf16.mxu0 %vm25625_vm0, %v25624_v11 }
 0x41f   :  { %22040 = vmatpush3.bf16.msra.mxu1 %v26247_v20  ;;  %22015 = vmatprep.subr.bf16.mxu0 %v25624_v11 }
 0x420   :  { %22041 = vmatprep.subr.bf16.mxu1 %v25624_v11  ;;  %v5835_v29 = vpop.f32.mrb[80].mxu0 }
 0x421   :  { %v26269_v7 = vadd.f32 %v5835_v29, %v5796_v58  ;;  %v21987_v21 = vpop.f32.mrb[81].mxu0 }
 0x422   :  { %22016 = vmatpush3.bf16.msra.mxu0 %v26253_v35  ;;  %v5838_v32 = vpop.f32.mrb[82].mxu0  ;;  %v26428_v21 = vld [vmem:[#allocation4] ss:$0 sm:$0xff] }
 0x423   :  { %22042 = vmatpush3.bf16.msra.mxu1 %v26255_v28  ;;  %22017 = vmatprep.subr.bf16.mxu0 %v25624_v11  ;;  %v21988_v37 = vpop.f32.mrb[83].mxu0 }
 0x424   :  { %22043 = vmatprep.subr.bf16.mxu1 %v25624_v11 }
 0x426   :  { %22018 = vmatpush3.bf16.msra.mxu0 %v26263_v30 }
 0x427   :  { %22044 = vmatpush3.bf16.msra.mxu1 %v26265_v31  ;;  %22019 = vmatprep.subr.bf16.mxu0 %v25624_v11 }
 0x428   :  { %22067 = vmatprep.subr.bf16.mxu1 %v25624_v11 }
 0x42a   :  { %22046 = vmatmul.mubr.msk.bf16.vlgmr.msra.gmra.mrb[108].mxu1 %vm8133_vm2, %v8074_v34  ;;  %22020 = vmatpush3.bf16.msra.mxu0 %v26275_v39 }
 0x42b   :  { %22068 = vmatpush3.bf16.msra.mxu1 %v26277_v40  ;;  %22021 = vmatprep.subr.bf16.mxu0 %v25624_v11 }
 0x42c   :  { %22069 = vmatprep.subr.bf16.mxu1 %v25624_v11  ;;  %22081 = vmatprep.mubr.msk.bf16.mxu1 %vm25625_vm0, %v25624_v11 }
 0x42e   :  { %22022 = vmatpush3.bf16.msra.mxu0 %v26286_v41 }
 0x42f   :  { %22070 = vmatpush3.bf16.msra.mxu1 %v26288_v43  ;;  %22023 = vmatprep.subr.bf16.mxu0 %v25624_v11 }
 0x430   :  { %22071 = vmatprep.subr.bf16.mxu1 %v25624_v11 }
 0x431   :  { %v21087_v47 = vpop.f32.mrb[76].mxu1 }
 0x432   :  { %v21088_v33 = vpop.f32.mrb[77].mxu1  ;;  %22024 = vmatpush3.bf16.msra.mxu0 %v26295_v23 }
 0x433   :  { %22072 = vmatpush3.bf16.msra.mxu1 %v26297_v44  ;;  %v21089_v26 = vadd.f32 %v21088_v33, %v21087_v47  ;;  %v21090_v49 = vpop.f32.mrb[78].mxu1  ;;  %22025 = vmatprep.subr.bf16.mxu0 %v25624_v11 }
 0x434   :  { %22073 = vmatprep.subr.bf16.mxu1 %v25624_v11  ;;  %v21091_v52 = vpop.f32.mrb[79].mxu1 }
 0x436   :  { %22026 = vmatpush3.bf16.msra.mxu0 %v26305_v45 }
 0x437   :  { %22074 = vmatpush3.bf16.msra.mxu1 %v26307_v46  ;;  %22049 = vmatprep.subr.bf16.mxu0 %v25624_v11 }
 0x438   :  { %22075 = vmatprep.subr.bf16.mxu1 %v25624_v11 }
 0x439   :  { %v26324_v63 = vpop.f32.mrb[80].mxu1  ;;  %22028 = vmatmul.mubr.msk.bf16.vlgmr.msra.gmra.mrb[116].mxu0 %vm8133_vm2, %v8090_v57 }
 0x43a   :  { %v21993_v59 = vpop.f32.mrb[81].mxu1  ;;  %22050 = vmatpush3.bf16.msra.mxu0 %v26222_v51  ;;  %22063 = vmatprep.mubr.msk.bf16.mxu0 %vm25625_vm0, %v25624_v11 }
 0x43b   :  { %22076 = vmatpush3.bf16.msra.mxu1 %v26313_v53  ;;  %v6392_v0 = vpop.f32.mrb[82].mxu1  ;;  %22051 = vmatprep.subr.bf16.mxu0 %v25624_v11  ;;  %v26476_v59 = vld [vmem:[#allocation6 + $0x58] sm:$0xff]  }
 0x43c   :  { %22077 = vmatprep.subr.bf16.mxu1 %v25624_v11  ;;  %v21994_v22 = vpop.f32.mrb[83].mxu1 }
 0x43e   :  { %22052 = vmatpush3.bf16.msra.mxu0 %v26225_v3 }
 0x43f   :  { %22078 = vmatpush3.bf16.msra.mxu1 %v26322_v61  ;;  %22053 = vmatprep.subr.bf16.mxu0 %v25624_v11 }
 0x440   :  { %22079 = vmatprep.subr.bf16.mxu1 %v25624_v11  ;;  %v21065_v62 = vpop.f32.mrb[84].mxu0 }
 0x441   :  { %v21066_v25 = vpop.f32.mrb[85].mxu0 }
 0x442   :  { %22054 = vmatpush3.bf16.msra.mxu0 %v26230_v42  ;;  %v21067_v48 = vadd.f32 %v21066_v25, %v21065_v62  ;;  %v21068_v1 = vpop.f32.mrb[86].mxu0  ;;  %v4179_v25 = vmax.f32 %v26174_v55, 0.0 }
 0x443   :  { %22080 = vmatpush3.bf16.msra.mxu1 %v26331_v56  ;;  %v21069_v4 = vpop.f32.mrb[87].mxu0  ;;  %22055 = vmatprep.subr.bf16.mxu0 %v25624_v11  ;;  %v26491_v1 = vld [vmem:[#allocation6 + $0x68] sm:$0xff]  }
 0x444   :  { %22103 = vmatprep.subr.bf16.mxu1 %v25624_v11  ;;  %v6270_v5 = vadd.f32 %v26205_v50, %v21067_v48  ;;  %v1963_v50 = vmax.f32 %v26093_v14, 0.0  ;;  %v8588_v4 = vpack.c.bf16 %v4179_v25, %v4179_v25 }
 0x446   :  { %22082 = vmatmul.mubr.msk.bf16.vlgmr.msra.gmra.mrb[112].mxu1 %vm8133_vm2, %v8090_v57  ;;  %22056 = vmatpush3.bf16.msra.mxu0 %v26237_v15  ;;  %v6310_v6 = vadd.f32 %v21089_v26, %v6270_v5  ;;  %v26461_v26 = vld [vmem:[#allocation6 + $0x48] sm:$0xff]  }
 0x447   :  { %22104 = vmatpush3.bf16.msra.mxu1 %v26222_v51  ;;  %22057 = vmatprep.subr.bf16.mxu0 %v25624_v11  ;;  %v8284_v51 = vpack.c.bf16 %v1963_v50, %v1963_v50  ;;  %v26498_v50 = vld [vmem:[#allocation6 + $0x70] sm:$0xff]  }
 0x448   :  { %22105 = vmatprep.subr.bf16.mxu1 %v25624_v11  ;;  %22117 = vmatprep.mubr.msk.bf16.mxu1 %vm25625_vm0, %v25624_v11 }
 0x44a   :  { %22058 = vmatpush3.bf16.msra.mxu0 %v26247_v20 }
 0x44b   :  { %22106 = vmatpush3.bf16.msra.mxu1 %v26225_v3  ;;  %22059 = vmatprep.subr.bf16.mxu0 %v25624_v11  ;;  %v3071_v3 = vmax.f32 %v26130_v60, 0.0 }
 0x44c   :  { %22107 = vmatprep.subr.bf16.mxu1 %v25624_v11 }
 0x44e   :  { %22060 = vmatpush3.bf16.msra.mxu0 %v26255_v28 }
 0x44f   :  { %22108 = vmatpush3.bf16.msra.mxu1 %v26230_v42  ;;  %22061 = vmatprep.subr.bf16.mxu0 %v25624_v11 }
 0x450   :  { %22109 = vmatprep.subr.bf16.mxu1 %v25624_v11 }
 0x452   :  { %22062 = vmatpush3.bf16.msra.mxu0 %v26265_v31 }
 0x453   :  { %22110 = vmatpush3.bf16.msra.mxu1 %v26237_v15  ;;  %22085 = vmatprep.subr.bf16.mxu0 %v25624_v11  ;;  %v8457_v15 = vpack.c.bf16 %v3071_v3, %v3071_v3 }
 0x454   :  { %22111 = vmatprep.subr.bf16.mxu1 %v25624_v11 }
 0x455   :  { %22064 = vmatmul.mubr.msk.bf16.vlgmr.msra.gmra.mrb[120].mxu0 %vm8133_vm2, %v8284_v51 }
 0x456   :  { %22086 = vmatpush3.bf16.msra.mxu0 %v26245_v18  ;;  %22099 = vmatprep.mubr.msk.bf16.mxu0 %vm25625_vm0, %v25624_v11 }
 0x457   :  { %22112 = vmatpush3.bf16.msra.mxu1 %v26247_v20  ;;  %22087 = vmatprep.subr.bf16.mxu0 %v25624_v11 }
 0x458   :  { %22113 = vmatprep.subr.bf16.mxu1 %v25624_v11 }
 0x459   :  { %v21133_v14 = vpop.f32.mrb[84].mxu1 }
 0x45a   :  { %v21134_v42 = vpop.f32.mrb[85].mxu1  ;;  %22088 = vmatpush3.bf16.msra.mxu0 %v26253_v35 }
 0x45b   :  { %22114 = vmatpush3.bf16.msra.mxu1 %v26255_v28  ;;  %v26374_v10 = vadd.f32 %v21134_v42, %v21133_v14  ;;  %v21136_v13 = vpop.f32.mrb[86].mxu1  ;;  %22089 = vmatprep.subr.bf16.mxu0 %v25624_v11  ;;  %v26507_v42 = vld [vmem:[#allocation6 + $0x78] sm:$0xff]  }
 0x45c   :  { %22115 = vmatprep.subr.bf16.mxu1 %v25624_v11  ;;  %v21137_v8 = vpop.f32.mrb[87].mxu1  ;;  %v5287_v13 = vmax.f32 %v26219_v36, 0.0  ;;  %v26529_v36 = vld [vmem:[#allocation6 + $0x90] sm:$0xff]  }
 0x45d   :  { %v6824_v32 = vadd.f32 %v26428_v21, %v26374_v10  ;;  %v26514_v8 = vld [vmem:[#allocation6 + $0x80] sm:$0xff]  }
 0x45e   :  { %22090 = vmatpush3.bf16.msra.mxu0 %v26263_v30 }
 0x45f   :  { %22116 = vmatpush3.bf16.msra.mxu1 %v26265_v31  ;;  %22091 = vmatprep.subr.bf16.mxu0 %v25624_v11 }
 0x460   :  { %22139 = vmatprep.subr.bf16.mxu1 %v25624_v11  ;;  %v21109_v60 = vpop.f32.mrb[88].mxu0 }
 0x461   :  { %v21110_v17 = vpop.f32.mrb[89].mxu0 }
 0x462   :  { %22118 = vmatmul.mubr.msk.bf16.vlgmr.msra.gmra.mrb[116].mxu1 %vm8133_vm2, %v8457_v15  ;;  %22092 = vmatpush3.bf16.msra.mxu0 %v26275_v39  ;;  %v21111_v20 = vadd.f32 %v21110_v17, %v21109_v60  ;;  %v21112_v19 = vpop.f32.mrb[90].mxu0  ;;  %v8719_v15 = vpack.c.bf16 %v5287_v13, %v5287_v13  ;;  %v26521_v60 = vld [vmem:[#allocation6 + $0x88] sm:$0xff]   ;;  %v26535_v17 = vld [vmem:[#allocation6 + $0x98] sm:$0xff]  }
 0x463   :  { %22140 = vmatpush3.bf16.msra.mxu1 %v26245_v18  ;;  %v21113_v9 = vpop.f32.mrb[91].mxu0  ;;  %22093 = vmatprep.subr.bf16.mxu0 %v25624_v11  ;;  %v2517_v18 = vmax.f32 %v26106_v2, 0.0  ;;  %v3625_v2 = vmax.f32 %v26150_v54, 0.0 }
 0x464   :  { %22141 = vmatprep.subr.bf16.mxu1 %v25624_v11  ;;  %v6350_v38 = vadd.f32 %v21111_v20, %v6310_v6  ;;  %22153 = vmatprep.mubr.msk.bf16.mxu1 %vm25625_vm0, %v25624_v11  ;;  %v4733_v20 = vmax.f32 %v26187_v16, 0.0 }
 0x465   :  { %v8410_v24 = vpack.c.bf16 %v2517_v18, %v2517_v18  ;;  %v8541_v29 = vpack.c.bf16 %v3625_v2, %v3625_v2 }
 0x466   :  { %v26390_v12 = vadd.f32 %v26324_v63, %v6350_v38  ;;  %22094 = vmatpush3.bf16.msra.mxu0 %v26286_v41  ;;  %v26542_v38 = vld [vmem:[#allocation6 + $0xa0] sm:$0xff]   ;;  %v8672_v2 = vpack.c.bf16 %v4733_v20, %v4733_v20 }
 0x467   :  { %22142 = vmatpush3.bf16.msra.mxu1 %v26253_v35  ;;  %22095 = vmatprep.subr.bf16.mxu0 %v25624_v11 }
 0x468   :  { %22143 = vmatprep.subr.bf16.mxu1 %v25624_v11 }
 0x46a   :  { %22096 = vmatpush3.bf16.msra.mxu0 %v26295_v23 }
 0x46b   :  { %22144 = vmatpush3.bf16.msra.mxu1 %v26263_v30  ;;  %22097 = vmatprep.subr.bf16.mxu0 %v25624_v11 }
 0x46c   :  { %22145 = vmatprep.subr.bf16.mxu1 %v25624_v11 }
 0x46e   :  { %22098 = vmatpush3.bf16.msra.mxu0 %v26305_v45 }
 0x46f   :  { %22146 = vmatpush3.bf16.msra.mxu1 %v26275_v39  ;;  %22121 = vmatprep.subr.bf16.mxu0 %v25624_v11 }
 0x470   :  { %22147 = vmatprep.subr.bf16.mxu1 %v25624_v11 }
 0x471   :  { %22100 = vmatmul.mubr.msk.bf16.vlgmr.msra.gmra.mrb[124].mxu0 %vm8133_vm2, %v8410_v24 }
 0x472   :  { %22122 = vmatpush3.bf16.msra.mxu0 %v26277_v40  ;;  %22135 = vmatprep.mubr.msk.bf16.mxu0 %vm25625_vm0, %v25624_v11 }
 0x473   :  { %22148 = vmatpush3.bf16.msra.mxu1 %v26286_v41  ;;  %22123 = vmatprep.subr.bf16.mxu0 %v25624_v11 }
 0x474   :  { %22149 = vmatprep.subr.bf16.mxu1 %v25624_v11 }
 0x476   :  { %22124 = vmatpush3.bf16.msra.mxu0 %v26288_v43 }
 0x477   :  { %22150 = vmatpush3.bf16.msra.mxu1 %v26295_v23  ;;  %22125 = vmatprep.subr.bf16.mxu0 %v25624_v11 }
 0x478   :  { %22151 = vmatprep.subr.bf16.mxu1 %v25624_v11 }
 0x479   :  { %v21177_v27 = vpop.f32.mrb[88].mxu1 }
 0x47a   :  { %v21178_v35 = vpop.f32.mrb[89].mxu1  ;;  %22126 = vmatpush3.bf16.msra.mxu0 %v26297_v44 }
 0x47b   :  { %22152 = vmatpush3.bf16.msra.mxu1 %v26305_v45  ;;  %v21179_v28 = vadd.f32 %v21178_v35, %v21177_v27  ;;  %v21180_v58 = vpop.f32.mrb[90].mxu1  ;;  %22127 = vmatprep.subr.bf16.mxu0 %v25624_v11  ;;  %v26551_v27 = vld [vmem:[#allocation6] sm:$0xff]  }
 0x47c   :  { %22175 = vmatprep.subr.bf16.mxu1 %v25624_v11  ;;  %v21181_v30 = vpop.f32.mrb[91].mxu1 }
 0x47e   :  { %22154 = vmatmul.mubr.msk.bf16.vlgmr.msra.gmra.mrb[120].mxu1 %vm8133_vm2, %v8541_v29  ;;  %22128 = vmatpush3.bf16.msra.mxu0 %v26307_v46 }
 0x47f   :  { %22176 = vmatpush3.bf16.msra.mxu1 %v26277_v40  ;;  %22129 = vmatprep.subr.bf16.mxu0 %v25624_v11 }
 0x480   :  { %22177 = vmatprep.subr.bf16.mxu1 %v25624_v11  ;;  %v21155_v54 = vpop.f32.mrb[92].mxu0  ;;  %22189 = vmatprep.mubr.msk.bf16.mxu1 %vm25625_vm0, %v25624_v11 }
 0x481   :  { %v21156_v31 = vpop.f32.mrb[93].mxu0 }
 0x482   :  { %22130 = vmatpush3.bf16.msra.mxu0 %v26313_v53  ;;  %v21157_v37 = vadd.f32 %v21156_v31, %v21155_v54  ;;  %v21158_v39 = vpop.f32.mrb[94].mxu0  ;;  %v5841_v54 = vmax.f32 %v26269_v7, 0.0  ;;  %v26576_v7 = vld [vmem:[#allocation6 + $0x18] sm:$0xff]  }
 0x483   :  { %22178 = vmatpush3.bf16.msra.mxu1 %v26288_v43  ;;  %v21159_v40 = vpop.f32.mrb[95].mxu0  ;;  %22131 = vmatprep.subr.bf16.mxu0 %v25624_v11  ;;  %v26569_v39 = vld [vmem:[#allocation6 + $0x10] sm:$0xff]  }
 0x484   :  { %22179 = vmatprep.subr.bf16.mxu1 %v25624_v11  ;;  %v6864_v34 = vadd.f32 %v21157_v37, %v6824_v32  ;;  %v8803_v40 = vpack.c.bf16 %v5841_v54, %v5841_v54  ;;  %v26756_v54 = vld [vmem:[%s28266_s5 + $0x28] sm:$0xff]  }
 0x486   :  { %22132 = vmatpush3.bf16.msra.mxu0 %v26322_v61  ;;  %v6904_v41 = vadd.f32 %v21179_v28, %v6864_v34  ;;  %v26584_v34 = vld [vmem:[#allocation6 + $0x20] sm:$0xff]  }
 0x487   :  { %22180 = vmatpush3.bf16.msra.mxu1 %v26297_v44  ;;  %22133 = vmatprep.subr.bf16.mxu0 %v25624_v11  ;;  %v26447_v44 = vld [vmem:[#allocation6 + $0x38] sm:$0xff]  }
 0x488   :  { %22181 = vmatprep.subr.bf16.mxu1 %v25624_v11  ;;  %v6943_v23 = vpop.f32.mrb[96].mxu0 }
 0x489   :  { %v26440_v45 = vadd.f32 %v6943_v23, %v6904_v41  ;;  %v21999_v47 = vpop.f32.mrb[97].mxu0  ;;  %v26590_v41 = vld [vmem:[#allocation6 + $0x28] sm:$0xff]   ;;  %v26596_v23 = vld [vmem:[#allocation6 + $0x30] sm:$0xff]  }
 0x48a   :  { %22134 = vmatpush3.bf16.msra.mxu0 %v26331_v56  ;;  %v6946_v43 = vpop.f32.mrb[98].mxu0 }
 0x48b   :  { %22182 = vmatpush3.bf16.msra.mxu1 %v26307_v46  ;;  %v22000_v33 = vpop.f32.mrb[99].mxu0  ;;  %22157 = vmatprep.subr.bf16.mxu0 %v25624_v11  ;;  %v26455_v46 = vld [vmem:[#allocation6 + $0x40] sm:$0xff]  }
 0x48c   :  { %22183 = vmatprep.subr.bf16.mxu1 %v25624_v11 }
 0x48d   :  { %22136 = vmatmul.mubr.msk.bf16.vlgmr.msra.gmra.mrb[128].mxu0 %vm8133_vm2, %v8410_v24 }
 0x48e   :  { %22158 = vmatpush3.bf16.msra.mxu0 %v26447_v44  ;;  %22171 = vmatprep.mubr.msk.bf16.mxu0 %vm25625_vm0, %v25624_v11 }
 0x48f   :  { %22184 = vmatpush3.bf16.msra.mxu1 %v26313_v53  ;;  %22159 = vmatprep.subr.bf16.mxu0 %v25624_v11  ;;  %v26468_v53 = vld [vmem:[#allocation6 + $0x50] sm:$0xff]  }
 0x490   :  { %22185 = vmatprep.subr.bf16.mxu1 %v25624_v11 }
 0x492   :  { %22160 = vmatpush3.bf16.msra.mxu0 %v26455_v46 }
 0x493   :  { %22186 = vmatpush3.bf16.msra.mxu1 %v26322_v61  ;;  %22161 = vmatprep.subr.bf16.mxu0 %v25624_v11 }
 0x494   :  { %22187 = vmatprep.subr.bf16.mxu1 %v25624_v11 }
 0x496   :  { %22162 = vmatpush3.bf16.msra.mxu0 %v26461_v26 }
 0x497   :  { %22188 = vmatpush3.bf16.msra.mxu1 %v26331_v56  ;;  %22163 = vmatprep.subr.bf16.mxu0 %v25624_v11  ;;  %v26484_v56 = vld [vmem:[#allocation6 + $0x60] sm:$0xff]  }
 0x498   :  { %22211 = vmatprep.subr.bf16.mxu1 %v25624_v11 }
 0x499   :  { %v21223_v49 = vpop.f32.mrb[92].mxu1 }
 0x49a   :  { %22190 = vmatmul.mubr.msk.bf16.vlgmr.msra.gmra.mrb[124].mxu1 %vm8133_vm2, %v8541_v29  ;;  %v21224_v52 = vpop.f32.mrb[93].mxu1  ;;  %22164 = vmatpush3.bf16.msra.mxu0 %v26468_v53  ;;  %v26559_v29 = vld [vmem:[#allocation6 + $0x8] sm:$0xff]  }
 0x49b   :  { %22212 = vmatpush3.bf16.msra.mxu1 %v26447_v44  ;;  %v21225_v57 = vadd.f32 %v21224_v52, %v21223_v49  ;;  %v21226_v61 = vpop.f32.mrb[94].mxu1  ;;  %22165 = vmatprep.subr.bf16.mxu0 %v25624_v11 }
 0x49c   :  { %22213 = vmatprep.subr.bf16.mxu1 %v25624_v11  ;;  %v21227_v63 = vpop.f32.mrb[95].mxu1  ;;  %22225 = vmatprep.mubr.msk.bf16.mxu1 %vm25625_vm0, %v25624_v11 }
 0x49e   :  { %22166 = vmatpush3.bf16.msra.mxu0 %v26476_v59 }
 0x49f   :  { %22214 = vmatpush3.bf16.msra.mxu1 %v26455_v46  ;;  %22167 = vmatprep.subr.bf16.mxu0 %v25624_v11 }
 0x4a0   :  { %22215 = vmatprep.subr.bf16.mxu1 %v25624_v11 }
 0x4a1   :  { %v26482_v0 = vpop.f32.mrb[96].mxu1 }
 0x4a2   :  { %v22005_v22 = vpop.f32.mrb[97].mxu1  ;;  %22168 = vmatpush3.bf16.msra.mxu0 %v26484_v56 }
 0x4a3   :  { %22216 = vmatpush3.bf16.msra.mxu1 %v26461_v26  ;;  %v7500_v62 = vpop.f32.mrb[98].mxu1  ;;  %22169 = vmatprep.subr.bf16.mxu0 %v25624_v11 }
 0x4a4   :  { %22217 = vmatprep.subr.bf16.mxu1 %v25624_v11  ;;  %v22006_v48 = vpop.f32.mrb[99].mxu1 }
 0x4a6   :  { %22170 = vmatpush3.bf16.msra.mxu0 %v26491_v1 }
 0x4a7   :  { %22218 = vmatpush3.bf16.msra.mxu1 %v26468_v53  ;;  %22193 = vmatprep.subr.bf16.mxu0 %v25624_v11 }
 0x4a8   :  { %22219 = vmatprep.subr.bf16.mxu1 %v25624_v11  ;;  %v21201_v5 = vpop.f32.mrb[100].mxu0 }
 0x4a9   :  { %22172 = vmatmul.mubr.msk.bf16.vlgmr.msra.gmra.mrb[132].mxu0 %vm8133_vm2, %v8588_v4  ;;  %v21202_v55 = vpop.f32.mrb[101].mxu0 }
 0x4aa   :  { %v21203_v6 = vadd.f32 %v21202_v55, %v21201_v5  ;;  %22194 = vmatpush3.bf16.msra.mxu0 %v26498_v50  ;;  %v21204_v51 = vpop.f32.mrb[102].mxu0  ;;  %22207 = vmatprep.mubr.msk.bf16.mxu0 %vm25625_vm0, %v25624_v11 }
 0x4ab   :  { %22220 = vmatpush3.bf16.msra.mxu1 %v26476_v59  ;;  %v21205_v14 = vpop.f32.mrb[103].mxu0  ;;  %22195 = vmatprep.subr.bf16.mxu0 %v25624_v11 }
 0x4ac   :  { %22221 = vmatprep.subr.bf16.mxu1 %v25624_v11  ;;  %v7378_v3 = vadd.f32 %v26428_v21, %v21203_v6 }
 0x4ae   :  { %22196 = vmatpush3.bf16.msra.mxu0 %v26507_v42  ;;  %v7418_v10 = vadd.f32 %v21225_v57, %v7378_v3 }
 0x4af   :  { %22222 = vmatpush3.bf16.msra.mxu1 %v26484_v56  ;;  %22197 = vmatprep.subr.bf16.mxu0 %v25624_v11 }
 0x4b0   :  { %22223 = vmatprep.subr.bf16.mxu1 %v25624_v11 }
 0x4b2   :  { %22198 = vmatpush3.bf16.msra.mxu0 %v26514_v8 }
 0x4b3   :  { %22224 = vmatpush3.bf16.msra.mxu1 %v26491_v1  ;;  %22199 = vmatprep.subr.bf16.mxu0 %v25624_v11 }
 0x4b4   :  { %22247 = vmatprep.subr.bf16.mxu1 %v25624_v11 }
 0x4b6   :  { %22226 = vmatmul.mubr.msk.bf16.vlgmr.msra.gmra.mrb[128].mxu1 %vm8133_vm2, %v8719_v15  ;;  %22200 = vmatpush3.bf16.msra.mxu0 %v26521_v60 }
 0x4b7   :  { %22248 = vmatpush3.bf16.msra.mxu1 %v26498_v50  ;;  %22201 = vmatprep.subr.bf16.mxu0 %v25624_v11 }
 0x4b8   :  { %22249 = vmatprep.subr.bf16.mxu1 %v25624_v11  ;;  %22261 = vmatprep.mubr.msk.bf16.mxu1 %vm25625_vm0, %v25624_v11 }
 0x4ba   :  { %22202 = vmatpush3.bf16.msra.mxu0 %v26529_v36 }
 0x4bb   :  { %22250 = vmatpush3.bf16.msra.mxu1 %v26507_v42  ;;  %22203 = vmatprep.subr.bf16.mxu0 %v25624_v11 }
 0x4bc   :  { %22251 = vmatprep.subr.bf16.mxu1 %v25624_v11 }
 0x4be   :  { %22204 = vmatpush3.bf16.msra.mxu0 %v26535_v17 }
 0x4bf   :  { %22252 = vmatpush3.bf16.msra.mxu1 %v26514_v8  ;;  %22205 = vmatprep.subr.bf16.mxu0 %v25624_v11 }
 0x4c0   :  { %22253 = vmatprep.subr.bf16.mxu1 %v25624_v11 }
 0x4c1   :  { %v21269_v19 = vpop.f32.mrb[100].mxu1 }
 0x4c2   :  { %v21270_v9 = vpop.f32.mrb[101].mxu1  ;;  %22206 = vmatpush3.bf16.msra.mxu0 %v26542_v38 }
 0x4c3   :  { %22254 = vmatpush3.bf16.msra.mxu1 %v26521_v60  ;;  %v26546_v18 = vadd.f32 %v21270_v9, %v21269_v19  ;;  %v21272_v24 = vpop.f32.mrb[102].mxu1  ;;  %22229 = vmatprep.subr.bf16.mxu0 %v25624_v11 }
 0x4c4   :  { %22255 = vmatprep.subr.bf16.mxu1 %v25624_v11  ;;  %v21273_v16 = vpop.f32.mrb[103].mxu1 }
 0x4c5   :  { %22208 = vmatmul.mubr.msk.bf16.vlgmr.msra.gmra.mrb[136].mxu0 %vm8133_vm2, %v8672_v2  ;;  %v7932_v63 = vadd.f32 %v26428_v21, %v26546_v18 }
 0x4c6   :  { %22230 = vmatpush3.bf16.msra.mxu0 %v26551_v27  ;;  %22243 = vmatprep.mubr.msk.bf16.mxu0 %vm25625_vm0, %v25624_v11 }
 0x4c7   :  { %22256 = vmatpush3.bf16.msra.mxu1 %v26529_v36  ;;  %22231 = vmatprep.subr.bf16.mxu0 %v25624_v11 }
 0x4c8   :  { %22257 = vmatprep.subr.bf16.mxu1 %v25624_v11  ;;  %v21245_v35 = vpop.f32.mrb[104].mxu0 }
 0x4c9   :  { %v21246_v28 = vpop.f32.mrb[105].mxu0 }
 0x4ca   :  { %v21247_v58 = vadd.f32 %v21246_v28, %v21245_v35  ;;  %22232 = vmatpush3.bf16.msra.mxu0 %v26559_v29  ;;  %v21248_v30 = vpop.f32.mrb[106].mxu0  ;;  %v26733_v35 = vld [vmem:[%s28266_s5 + $0x38] sm:$0xff]   ;;  %v26738_v28 = vld [vmem:[%s28266_s5 + $0x20] sm:$0xff]  }
 0x4cb   :  { %22258 = vmatpush3.bf16.msra.mxu1 %v26535_v17  ;;  %v21249_v31 = vpop.f32.mrb[107].mxu0  ;;  %22233 = vmatprep.subr.bf16.mxu0 %v25624_v11  ;;  %v26751_v30 = vld [vmem:[%s28266_s5 + $0x40] sm:$0xff]  }
 0x4cc   :  { %22259 = vmatprep.subr.bf16.mxu1 %v25624_v11  ;;  %v7458_v32 = vadd.f32 %v21247_v58, %v7418_v10  ;;  %v26740_v58 = vld [vmem:[#allocation7] ss:$0 sm:$0xff] }
 0x4ce   :  { %v26567_v37 = vadd.f32 %v26482_v0, %v7458_v32  ;;  %22234 = vmatpush3.bf16.msra.mxu0 %v26569_v39 }
 0x4cf   :  { %22260 = vmatpush3.bf16.msra.mxu1 %v26542_v38  ;;  %22235 = vmatprep.subr.bf16.mxu0 %v25624_v11 }
 0x4d0   :  { %22283 = vmatprep.subr.bf16.mxu1 %v25624_v11 }
 0x4d2   :  { %22262 = vmatmul.mubr.msk.bf16.vlgmr.msra.gmra.mrb[132].mxu1 %vm8133_vm2, %v8803_v40  ;;  %22236 = vmatpush3.bf16.msra.mxu0 %v26576_v7 }
 0x4d3   :  { %22284 = vmatpush3.bf16.msra.mxu1 %v26551_v27  ;;  %22237 = vmatprep.subr.bf16.mxu0 %v25624_v11 }
 0x4d4   :  { %22285 = vmatprep.subr.bf16.mxu1 %v25624_v11  ;;  %22297 = vmatprep.mubr.msk.bf16.mxu1 %vm25625_vm0, %v25624_v11 }
 0x4d6   :  { %22238 = vmatpush3.bf16.msra.mxu0 %v26584_v34 }
 0x4d7   :  { %22286 = vmatpush3.bf16.msra.mxu1 %v26559_v29  ;;  %22239 = vmatprep.subr.bf16.mxu0 %v25624_v11 }
 0x4d8   :  { %22287 = vmatprep.subr.bf16.mxu1 %v25624_v11 }
 0x4da   :  { %22240 = vmatpush3.bf16.msra.mxu0 %v26590_v41 }
 0x4db   :  { %22288 = vmatpush3.bf16.msra.mxu1 %v26569_v39  ;;  %22241 = vmatprep.subr.bf16.mxu0 %v25624_v11 }
 0x4dc   :  { %22289 = vmatprep.subr.bf16.mxu1 %v25624_v11 }
 0x4de   :  { %22242 = vmatpush3.bf16.msra.mxu0 %v26596_v23 }
 0x4df   :  { %22290 = vmatpush3.bf16.msra.mxu1 %v26576_v7  ;;  %22265 = vmatprep.subr.bf16.mxu0 %v25624_v11 }
 0x4e0   :  { %22291 = vmatprep.subr.bf16.mxu1 %v25624_v11 }
 0x4e1   :  { %v21313_v47 = vpop.f32.mrb[104].mxu1  ;;  %22244 = vmatmul.mubr.msk.bf16.vlgmr.msra.gmra.mrb[140].mxu0 %vm8133_vm2, %v8672_v2 }
 0x4e2   :  { %v21314_v43 = vpop.f32.mrb[105].mxu1  ;;  %22266 = vmatpush3.bf16.msra.mxu0 %v26447_v44  ;;  %22279 = vmatprep.mubr.msk.bf16.mxu0 %vm25625_vm0, %v25624_v11 }
 0x4e3   :  { %22292 = vmatpush3.bf16.msra.mxu1 %v26584_v34  ;;  %v21315_v33 = vadd.f32 %v21314_v43, %v21313_v47  ;;  %v21316_v49 = vpop.f32.mrb[106].mxu1  ;;  %22267 = vmatprep.subr.bf16.mxu0 %v25624_v11  ;;  %v26793_v47 = vld [vmem:[%s28266_s5 + $0x58] sm:$0xff]  }
 0x4e4   :  { %22293 = vmatprep.subr.bf16.mxu1 %v25624_v11  ;;  %v21317_v52 = vpop.f32.mrb[107].mxu1 }
 0x4e6   :  { %22268 = vmatpush3.bf16.msra.mxu0 %v26455_v46 }
 0x4e7   :  { %22294 = vmatpush3.bf16.msra.mxu1 %v26590_v41  ;;  %22269 = vmatprep.subr.bf16.mxu0 %v25624_v11 }
 0x4e8   :  { %22295 = vmatprep.subr.bf16.mxu1 %v25624_v11  ;;  %v21291_v57 = vpop.f32.mrb[108].mxu0 }
 0x4e9   :  { %v21292_v61 = vpop.f32.mrb[109].mxu0 }
 0x4ea   :  { %v21293_v0 = vadd.f32 %v21292_v61, %v21291_v57  ;;  %22270 = vmatpush3.bf16.msra.mxu0 %v26461_v26  ;;  %v21294_v22 = vpop.f32.mrb[110].mxu0 }
 0x4eb   :  { %22296 = vmatpush3.bf16.msra.mxu1 %v26596_v23  ;;  %v21295_v62 = vpop.f32.mrb[111].mxu0  ;;  %22271 = vmatprep.subr.bf16.mxu0 %v25624_v11 }
 0x4ec   :  { %22319 = vmatprep.subr.bf16.mxu1 %v25624_v11  ;;  %v7972_v25 = vadd.f32 %v21293_v0, %v7932_v63  ;;  %v26816_v0 = vld [vmem:[%s28266_s5 + $0x68] sm:$0xff]   ;;  %v26825_v62 = vld [vmem:[%s28266_s5 + $0x70] sm:$0xff]  }
 0x4ee   :  { %22298 = vmatmul.mubr.msk.bf16.vlgmr.msra.gmra.mrb[136].mxu1 %vm8133_vm2, %v8803_v40  ;;  %22272 = vmatpush3.bf16.msra.mxu0 %v26468_v53  ;;  %v8012_v48 = vadd.f32 %v21315_v33, %v7972_v25  ;;  %v26768_v40 = vld [vmem:[%s28266_s5 + $0x48] sm:$0xff]   ;;  %v26803_v33 = vld [vmem:[%s28266_s5 + $0x60] sm:$0xff]  }
 0x4ef   :  { %22320 = vmatpush3.bf16.msra.mxu1 %v26447_v44  ;;  %22273 = vmatprep.subr.bf16.mxu0 %v25624_v11  ;;  %v6395_v44 = vmax.f32 %v26390_v12, 0.0 }
 0x4f0   :  { %22321 = vmatprep.subr.bf16.mxu1 %v25624_v11  ;;  %v8051_v21 = vpop.f32.mrb[112].mxu0  ;;  %22333 = vmatprep.mubr.msk.bf16.mxu1 %vm25625_vm0, %v25624_v11 }
 0x4f1   :  { %v26626_v4 = vadd.f32 %v8051_v21, %v8012_v48  ;;  %v22011_v5 = vpop.f32.mrb[113].mxu0 }
 0x4f2   :  { %22274 = vmatpush3.bf16.msra.mxu0 %v26476_v59  ;;  %v8054_v55 = vpop.f32.mrb[114].mxu0  ;;  %v26835_v5 = vld [vmem:[%s28266_s5 + $0x78] sm:$0xff]  }
 0x4f3   :  { %22322 = vmatpush3.bf16.msra.mxu1 %v26455_v46  ;;  %v22012_v6 = vpop.f32.mrb[115].mxu0  ;;  %22275 = vmatprep.subr.bf16.mxu0 %v25624_v11  ;;  %v8850_v46 = vpack.c.bf16 %v6395_v44, %v6395_v44  ;;  %v26855_v44 = vld [vmem:[%s28266_s5 + $0x88] sm:$0xff]  }
 0x4f4   :  { %22323 = vmatprep.subr.bf16.mxu1 %v25624_v11  ;;  %v26846_v6 = vld [vmem:[%s28266_s5 + $0x80] sm:$0xff]  }
 0x4f6   :  { %22276 = vmatpush3.bf16.msra.mxu0 %v26484_v56 }
 0x4f7   :  { %22324 = vmatpush3.bf16.msra.mxu1 %v26461_v26  ;;  %22277 = vmatprep.subr.bf16.mxu0 %v25624_v11 }
 0x4f8   :  { %22325 = vmatprep.subr.bf16.mxu1 %v25624_v11 }
 0x4fa   :  { %22278 = vmatpush3.bf16.msra.mxu0 %v26491_v1 }
 0x4fb   :  { %22326 = vmatpush3.bf16.msra.mxu1 %v26468_v53  ;;  %22301 = vmatprep.subr.bf16.mxu0 %v25624_v11  ;;  %v7503_v53 = vmax.f32 %v26567_v37, 0.0 }
 0x4fc   :  { %22327 = vmatprep.subr.bf16.mxu1 %v25624_v11 }
 0x4fd   :  { %v8256_v51 = vpop.f32.mrb[108].mxu1  ;;  %22280 = vmatmul.mubr.msk.bf16.vlgmr.msra.gmra.mrb[144].mxu0 %vm8133_vm2, %v8850_v46  ;;  %v26864_v46 = vld [vmem:[%s28266_s5 + $0x90] sm:$0xff]  }
 0x4fe   :  { %v22047_v14 = vpop.f32.mrb[109].mxu1  ;;  %22302 = vmatpush3.bf16.msra.mxu0 %v26498_v50  ;;  %22315 = vmatprep.mubr.msk.bf16.mxu0 %vm25625_vm0, %v25624_v11 }
 0x4ff   :  { %v8259_v12 = vpop.f32.mrb[110].mxu1  ;;  %22328 = vmatpush3.bf16.msra.mxu1 %v26476_v59  ;;  %22303 = vmatprep.subr.bf16.mxu0 %v25624_v11  ;;  %v8981_v59 = vpack.c.bf16 %v7503_v53, %v7503_v53  ;;  %v26872_v53 = vld [vmem:[%s28266_s5 + $0x98] sm:$0xff]  }
 0x500   :  { %v22048_v26 = vpop.f32.mrb[111].mxu1  ;;  %22329 = vmatprep.subr.bf16.mxu1 %v25624_v11 }
 0x502   :  { %22304 = vmatpush3.bf16.msra.mxu0 %v26507_v42 }
 0x503   :  { %22330 = vmatpush3.bf16.msra.mxu1 %v26484_v56  ;;  %22305 = vmatprep.subr.bf16.mxu0 %v25624_v11 }
 0x504   :  { %22331 = vmatprep.subr.bf16.mxu1 %v25624_v11 }
 0x506   :  { %22306 = vmatpush3.bf16.msra.mxu0 %v26514_v8 }
 0x507   :  { %22332 = vmatpush3.bf16.msra.mxu1 %v26491_v1  ;;  %22307 = vmatprep.subr.bf16.mxu0 %v25624_v11 }
 0x508   :  { %22355 = vmatprep.subr.bf16.mxu1 %v25624_v11 }
 0x50a   :  { %22334 = vmatmul.mubr.msk.bf16.vlgmr.msra.gmra.mrb[140].mxu1 %vm8133_vm2, %v8981_v59  ;;  %22308 = vmatpush3.bf16.msra.mxu0 %v26521_v60 }
 0x50b   :  { %22356 = vmatpush3.bf16.msra.mxu1 %v26498_v50  ;;  %22309 = vmatprep.subr.bf16.mxu0 %v25624_v11  ;;  %v6949_v50 = vmax.f32 %v26440_v45, 0.0 }
 0x50c   :  { %22357 = vmatprep.subr.bf16.mxu1 %v25624_v11  ;;  %v8171_v56 = vpop.f32.mrb[116].mxu0  ;;  %22369 = vmatprep.mubr.msk.bf16.mxu1 %vm25625_vm0, %v25624_v11 }
 0x50d   :  { %v26664_v1 = vadd.f32 %v8256_v51, %v8171_v56  ;;  %v22029_v3 = vpop.f32.mrb[117].mxu0 }
 0x50e   :  { %v8174_v10 = vpop.f32.mrb[118].mxu0  ;;  %22310 = vmatpush3.bf16.msra.mxu0 %v26529_v36  ;;  %v26880_v3 = vld [vmem:[%s28266_s5 + $0xa0] sm:$0xff]  }
 0x50f   :  { %22358 = vmatpush3.bf16.msra.mxu1 %v26507_v42  ;;  %v22030_v13 = vpop.f32.mrb[119].mxu0  ;;  %22311 = vmatprep.subr.bf16.mxu0 %v25624_v11  ;;  %v8934_v42 = vpack.c.bf16 %v6949_v50, %v6949_v50  ;;  %v8268_v37 = vadd.f32 %v26740_v58, %v26664_v1 }
 0x510   :  { %22359 = vmatprep.subr.bf16.mxu1 %v25624_v11 }
 0x512   :  { %22312 = vmatpush3.bf16.msra.mxu0 %v26535_v17 }
 0x513   :  { %22360 = vmatpush3.bf16.msra.mxu1 %v26514_v8  ;;  %22313 = vmatprep.subr.bf16.mxu0 %v25624_v11 }
 0x514   :  { %22361 = vmatprep.subr.bf16.mxu1 %v25624_v11 }
 0x516   :  { %22314 = vmatpush3.bf16.msra.mxu0 %v26542_v38 }
 0x517   :  { %22362 = vmatpush3.bf16.msra.mxu1 %v26521_v60  ;;  %22337 = vmatprep.subr.bf16.mxu0 %v25624_v11  ;;  %v8057_v60 = vmax.f32 %v26626_v4, 0.0 }
 0x518   :  { %22363 = vmatprep.subr.bf16.mxu1 %v25624_v11 }
 0x519   :  { %v8404_v15 = vpop.f32.mrb[112].mxu1  ;;  %22316 = vmatmul.mubr.msk.bf16.vlgmr.msra.gmra.mrb[148].mxu0 %vm8133_vm2, %v8934_v42  ;;  %v9065_v19 = vpack.c.bf16 %v8057_v60, %v8057_v60 }
 0x51a   :  { %v22083_v20 = vpop.f32.mrb[113].mxu1  ;;  %22338 = vmatpush3.bf16.msra.mxu0 %v26551_v27  ;;  %22351 = vmatprep.mubr.msk.bf16.mxu0 %vm25625_vm0, %v25624_v11  ;;  %v26724_v27 = vld [vmem:[%s28266_s5 + $0x18] sm:$0xff]  }
 0x51b   :  { %v8407_v45 = vpop.f32.mrb[114].mxu1  ;;  %22364 = vmatpush3.bf16.msra.mxu1 %v26529_v36  ;;  %22339 = vmatprep.subr.bf16.mxu0 %v25624_v11  ;;  %v26694_v36 = vld [vmem:[%s28266_s5] sm:$0xff]  }
 0x51c   :  { %v22084_v8 = vpop.f32.mrb[115].mxu1  ;;  %22365 = vmatprep.subr.bf16.mxu1 %v25624_v11 }
 0x51e   :  { %22340 = vmatpush3.bf16.msra.mxu0 %v26559_v29 }
 0x51f   :  { %22366 = vmatpush3.bf16.msra.mxu1 %v26535_v17  ;;  %22341 = vmatprep.subr.bf16.mxu0 %v25624_v11  ;;  %v26703_v17 = vld [vmem:[%s28266_s5 + $0x8] sm:$0xff]  }
 0x520   :  { %22367 = vmatprep.subr.bf16.mxu1 %v25624_v11 }
 0x522   :  { %22342 = vmatpush3.bf16.msra.mxu0 %v26569_v39 }
 0x523   :  { %22368 = vmatpush3.bf16.msra.mxu1 %v26542_v38  ;;  %22343 = vmatprep.subr.bf16.mxu0 %v25624_v11  ;;  %v26713_v38 = vld [vmem:[%s28266_s5 + $0x10] sm:$0xff]  }
 0x524   :  { %22391 = vmatprep.subr.bf16.mxu1 %v25624_v11 }
 0x526   :  { %22370 = vmatmul.mubr.msk.bf16.vlgmr.msra.gmra.mrb[144].mxu1 %vm8133_vm2, %v9065_v19  ;;  %22344 = vmatpush3.bf16.msra.mxu0 %v26576_v7  ;;  %v26773_v7 = vld [vmem:[%s28266_s5 + $0x30] sm:$0xff]  }
 0x527   :  { %22392 = vmatpush3.bf16.msra.mxu1 %v26694_v36  ;;  %22345 = vmatprep.subr.bf16.mxu0 %v25624_v11 }
 0x528   :  { %22393 = vmatprep.subr.bf16.mxu1 %v25624_v11  ;;  %v8322_v9 = vpop.f32.mrb[120].mxu0  ;;  %22405 = vmatprep.mubr.msk.bf16.mxu1 %vm25625_vm0, %v25624_v11 }
 0x529   :  { %v8405_v18 = vadd.f32 %v8404_v15, %v8322_v9  ;;  %v22065_v24 = vpop.f32.mrb[121].mxu0 }
 0x52a   :  { %v8325_v2 = vpop.f32.mrb[122].mxu0  ;;  %22346 = vmatpush3.bf16.msra.mxu0 %v26584_v34  ;;  %v8269_v34 = vmax.f32 %v8268_v37, 0.0 }
 0x52b   :  { %22394 = vmatpush3.bf16.msra.mxu1 %v26703_v17  ;;  %v22066_v16 = vpop.f32.mrb[123].mxu0  ;;  %22347 = vmatprep.subr.bf16.mxu0 %v25624_v11 }
 0x52c   :  { %22395 = vmatprep.subr.bf16.mxu1 %v25624_v11 }
 0x52e   :  { %22348 = vmatpush3.bf16.msra.mxu0 %v26590_v41  ;;  %v26784_v41 = vld [vmem:[%s28266_s5 + $0x50] sm:$0xff]  }
 0x52f   :  { %22396 = vmatpush3.bf16.msra.mxu1 %v26713_v38  ;;  %22349 = vmatprep.subr.bf16.mxu0 %v25624_v11 }
 0x530   :  { %22397 = vmatprep.subr.bf16.mxu1 %v25624_v11 }
 0x532   :  { %22350 = vmatpush3.bf16.msra.mxu0 %v26596_v23  ;;  %v9127_v23 = vpack.c.bf16 %v8269_v34, %v8269_v34 }
 0x533   :  { %22398 = vmatpush3.bf16.msra.mxu1 %v26724_v27  ;;  %22373 = vmatprep.subr.bf16.mxu0 %v25624_v11 }
 0x534   :  { %22399 = vmatprep.subr.bf16.mxu1 %v25624_v11 }
 0x535   :  { %v26746_v29 = vpop.f32.mrb[116].mxu1  ;;  %22352 = vmatmul.mubr.msk.bf16.vlgmr.msra.gmra.mrb[152].mxu0 %vm8133_vm2, %v8934_v42 }
 0x536   :  { %v22119_v31 = vpop.f32.mrb[117].mxu1  ;;  %22374 = vmatpush3.bf16.msra.mxu0 %v26733_v35  ;;  %22387 = vmatprep.mubr.msk.bf16.mxu0 %vm25625_vm0, %v25624_v11 }
 0x537   :  { %v8498_v32 = vpop.f32.mrb[118].mxu1  ;;  %22400 = vmatpush3.bf16.msra.mxu1 %v26738_v28  ;;  %22375 = vmatprep.subr.bf16.mxu0 %v25624_v11 }
 0x538   :  { %v22120_v39 = vpop.f32.mrb[119].mxu1  ;;  %22401 = vmatprep.subr.bf16.mxu1 %v25624_v11 }
 0x53a   :  { %22376 = vmatpush3.bf16.msra.mxu0 %v26751_v30 }
 0x53b   :  { %22402 = vmatpush3.bf16.msra.mxu1 %v26756_v54  ;;  %22377 = vmatprep.subr.bf16.mxu0 %v25624_v11 }
 0x53c   :  { %22403 = vmatprep.subr.bf16.mxu1 %v25624_v11 }
 0x53e   :  { %22378 = vmatpush3.bf16.msra.mxu0 %v26768_v40 }
 0x53f   :  { %22404 = vmatpush3.bf16.msra.mxu1 %v26773_v7  ;;  %22379 = vmatprep.subr.bf16.mxu0 %v25624_v11 }
 0x540   :  { %22427 = vmatprep.subr.bf16.mxu1 %v25624_v11 }
 0x542   :  { %22406 = vmatmul.mubr.msk.bf16.vlgmr.msra.gmra.mrb[148].mxu1 %vm8133_vm2, %v9127_v23  ;;  %22380 = vmatpush3.bf16.msra.mxu0 %v26784_v41 }
 0x543   :  { %22428 = vmatpush3.bf16.msra.mxu1 %v26733_v35  ;;  %22381 = vmatprep.subr.bf16.mxu0 %v25624_v11 }
 0x544   :  { %22429 = vmatprep.subr.bf16.mxu1 %v25624_v11  ;;  %v8448_v43 = vpop.f32.mrb[124].mxu0  ;;  %22441 = vmatprep.mubr.msk.bf16.mxu1 %vm25625_vm0, %v25624_v11 }
 0x545   :  { %v8454_v49 = vadd.f32 %v8448_v43, %v8405_v18  ;;  %v22101_v52 = vpop.f32.mrb[125].mxu0 }
 0x546   :  { %v8451_v57 = vpop.f32.mrb[126].mxu0  ;;  %22382 = vmatpush3.bf16.msra.mxu0 %v26793_v47 }
 0x547   :  { %22430 = vmatpush3.bf16.msra.mxu1 %v26751_v30  ;;  %v8455_v61 = vadd.f32 %v26740_v58, %v8454_v49  ;;  %v22102_v63 = vpop.f32.mrb[127].mxu0  ;;  %22383 = vmatprep.subr.bf16.mxu0 %v25624_v11 }
 0x548   :  { %22431 = vmatprep.subr.bf16.mxu1 %v25624_v11 }
 0x549   :  { %v8456_v22 = vmax.f32 %v8455_v61, 0.0 }
 0x54a   :  { %22384 = vmatpush3.bf16.msra.mxu0 %v26803_v33 }
 0x54b   :  { %22432 = vmatpush3.bf16.msra.mxu1 %v26768_v40  ;;  %22385 = vmatprep.subr.bf16.mxu0 %v25624_v11  ;;  %v9143_v25 = vpack.c.bf16 %v8456_v22, %v8456_v22 }
 0x54c   :  { %22433 = vmatprep.subr.bf16.mxu1 %v25624_v11 }
 0x54e   :  { %22386 = vmatpush3.bf16.msra.mxu0 %v26816_v0 }
 0x54f   :  { %22434 = vmatpush3.bf16.msra.mxu1 %v26784_v41  ;;  %22409 = vmatprep.subr.bf16.mxu0 %v25624_v11 }
 0x550   :  { %22435 = vmatprep.subr.bf16.mxu1 %v25624_v11 }
 0x551   :  { %v8579_v48 = vpop.f32.mrb[120].mxu1  ;;  %22388 = vmatmul.mubr.msk.bf16.vlgmr.msra.gmra.mrb[156].mxu0 %vm8133_vm2, %v9143_v25 }
 0x552   :  { %v22155_v21 = vpop.f32.mrb[121].mxu1  ;;  %22410 = vmatpush3.bf16.msra.mxu0 %v26825_v62  ;;  %22423 = vmatprep.mubr.msk.bf16.mxu0 %vm25625_vm0, %v25624_v11 }
 0x553   :  { %v8582_v4 = vpop.f32.mrb[122].mxu1  ;;  %22411 = vmatprep.subr.bf16.mxu0 %v25624_v11  ;;  %22436 = vmatpush3.bf16.msra.mxu1 %v26793_v47 }
 0x554   :  { %v22156_v55 = vpop.f32.mrb[123].mxu1  ;;  %22437 = vmatprep.subr.bf16.mxu1 %v25624_v11 }
 0x556   :  { %22412 = vmatpush3.bf16.msra.mxu0 %v26835_v5 }
 0x557   :  { %22413 = vmatprep.subr.bf16.mxu0 %v25624_v11  ;;  %22438 = vmatpush3.bf16.msra.mxu1 %v26803_v33 }
 0x558   :  { %22439 = vmatprep.subr.bf16.mxu1 %v25624_v11 }
 0x55a   :  { %22414 = vmatpush3.bf16.msra.mxu0 %v26846_v6 }
 0x55b   :  { %22415 = vmatprep.subr.bf16.mxu0 %v25624_v11  ;;  %22440 = vmatpush3.bf16.msra.mxu1 %v26816_v0 }
 0x55c   :  { %22463 = vmatprep.subr.bf16.mxu1 %v25624_v11 }
 0x55e   :  { %22416 = vmatpush3.bf16.msra.mxu0 %v26855_v44 }
 0x55f   :  { %22417 = vmatprep.subr.bf16.mxu0 %v25624_v11 }
 0x560   :  { %v8535_v51 = vpop.f32.mrb[128].mxu0 }
 0x561   :  { %v8536_v14 = vadd.f32 %v8535_v51, %v26746_v29  ;;  %v22137_v12 = vpop.f32.mrb[129].mxu0 }
 0x562   :  { %v8538_v26 = vpop.f32.mrb[130].mxu0  ;;  %22418 = vmatpush3.bf16.msra.mxu0 %v26864_v46 }
 0x563   :  { %v8585_v59 = vadd.f32 %v8579_v48, %v8536_v14  ;;  %v22138_v56 = vpop.f32.mrb[131].mxu0  ;;  %22419 = vmatprep.subr.bf16.mxu0 %v25624_v11 }
 0x565   :  { %v8586_v1 = vadd.f32 %v26740_v58, %v8585_v59 }
 0x566   :  { %22420 = vmatpush3.bf16.msra.mxu0 %v26872_v53 }
 0x567   :  { %v8587_v10 = vmax.f32 %v8586_v1, 0.0  ;;  %22421 = vmatprep.subr.bf16.mxu0 %v25624_v11 }
 0x569   :  { %v9329_v13 = vpack.c.bf16 %v8587_v10, %v8587_v10 }
 0x56a   :  { %22422 = vmatpush3.bf16.msra.mxu0 %v26880_v3 }
 0x56b   :  { %22445 = vmatprep.subr.bf16.mxu0 %v25624_v11 }
 0x56d   :  { %v8666_v50 = vpop.f32.mrb[124].mxu1  ;;  %22424 = vmatmul.mubr.msk.bf16.vlgmr.msra.gmra.mrb[160].mxu0 %vm8133_vm2, %v9329_v13 }
 0x56e   :  { %v22191_v42 = vpop.f32.mrb[125].mxu1  ;;  %22446 = vmatpush3.bf16.msra.mxu0 %v26694_v36  ;;  %22459 = vmatprep.mubr.msk.bf16.mxu0 %vm25625_vm0, %v25624_v11 }
 0x56f   :  { %v8669_v15 = vpop.f32.mrb[126].mxu1  ;;  %22447 = vmatprep.subr.bf16.mxu0 %v25624_v11 }
 0x570   :  { %v22192_v20 = vpop.f32.mrb[127].mxu1 }
 0x571   :  { %v24148_v20 = vld [vmem:[%s28268_s7 + $0x38] sm:$0xff]  }
 0x572   :  { %22448 = vmatpush3.bf16.msra.mxu0 %v26703_v17 }
 0x573   :  { %22449 = vmatprep.subr.bf16.mxu0 %v25624_v11 }
 0x576   :  { %22450 = vmatpush3.bf16.msra.mxu0 %v26713_v38 }
 0x577   :  { %22451 = vmatprep.subr.bf16.mxu0 %v25624_v11 }
 0x57a   :  { %22452 = vmatpush3.bf16.msra.mxu0 %v26724_v27 }
 0x57b   :  { %22453 = vmatprep.subr.bf16.mxu0 %v25624_v11 }
 0x57c   :  { %v8626_v45 = vpop.f32.mrb[132].mxu0 }
 0x57d   :  { %v8667_v8 = vadd.f32 %v8666_v50, %v8626_v45  ;;  %v22173_v60 = vpop.f32.mrb[133].mxu0  ;;  %v24147_v50 = vld [vmem:[%s28268_s7 + $0x30] sm:$0xff]  }
 0x57e   :  { %v8629_v19 = vpop.f32.mrb[134].mxu0  ;;  %22454 = vmatpush3.bf16.msra.mxu0 %v26738_v28 }
 0x57f   :  { %v22174_v9 = vpop.f32.mrb[135].mxu0  ;;  %22455 = vmatprep.subr.bf16.mxu0 %v25624_v11 }
 0x582   :  { %22456 = vmatpush3.bf16.msra.mxu0 %v26756_v54 }
 0x583   :  { %22457 = vmatprep.subr.bf16.mxu0 %v25624_v11 }
 0x586   :  { %22458 = vmatpush3.bf16.msra.mxu0 %v26773_v7 }
 0x587   :  { %22481 = vmatprep.subr.bf16.mxu0 %v25624_v11 }
 0x589   :  { %v8757_v18 = vpop.f32.mrb[128].mxu1  ;;  %22460 = vmatmul.mubr.msk.bf16.vlgmr.msra.gmra.mrb[164].mxu0 %vm8133_vm2, %v9329_v13 }
 0x58a   :  { %v22227_v24 = vpop.f32.mrb[129].mxu1  ;;  %22482 = vmatpush3.bf16.msra.mxu0 %v26733_v35  ;;  %22495 = vmatprep.mubr.msk.bf16.mxu0 %vm25625_vm0, %v25624_v11 }
 0x58b   :  { %v8760_v2 = vpop.f32.mrb[130].mxu1  ;;  %22483 = vmatprep.subr.bf16.mxu0 %v25624_v11 }
 0x58c   :  { %v22228_v16 = vpop.f32.mrb[131].mxu1 }
 0x58d   :  { %v24151_v16 = vld [vmem:[%s28268_s7 + $0x50] sm:$0xff]  }
 0x58e   :  { %22484 = vmatpush3.bf16.msra.mxu0 %v26751_v30 }
 0x58f   :  { %22485 = vmatprep.subr.bf16.mxu0 %v25624_v11 }
 0x592   :  { %22486 = vmatpush3.bf16.msra.mxu0 %v26768_v40 }
 0x593   :  { %22487 = vmatprep.subr.bf16.mxu0 %v25624_v11 }
 0x596   :  { %22488 = vmatpush3.bf16.msra.mxu0 %v26784_v41 }
 0x597   :  { %22489 = vmatprep.subr.bf16.mxu0 %v25624_v11 }
 0x598   :  { %v8710_v29 = vpop.f32.mrb[136].mxu0 }
 0x599   :  { %v8716_v35 = vadd.f32 %v8710_v29, %v8667_v8  ;;  %v22209_v31 = vpop.f32.mrb[137].mxu0  ;;  %v24149_v8 = vld [vmem:[%s28268_s7 + $0x40] sm:$0xff]  }
 0x59a   :  { %v8713_v32 = vpop.f32.mrb[138].mxu0  ;;  %22490 = vmatpush3.bf16.msra.mxu0 %v26793_v47 }
 0x59b   :  { %v8717_v37 = vadd.f32 %v26740_v58, %v8716_v35  ;;  %v22210_v39 = vpop.f32.mrb[139].mxu0  ;;  %22491 = vmatprep.subr.bf16.mxu0 %v25624_v11 }
 0x59d   :  { %v8718_v30 = vmax.f32 %v8717_v37, 0.0 }
 0x59e   :  { %22492 = vmatpush3.bf16.msra.mxu0 %v26803_v33 }
 0x59f   :  { %v9424_v40 = vpack.c.bf16 %v8718_v30, %v8718_v30  ;;  %22493 = vmatprep.subr.bf16.mxu0 %v25624_v11 }
 0x5a1   :  { %22442 = vmatmul.mubr.msk.bf16.vlgmr.msra.gmra.mrb[152].mxu1 %vm8133_vm2, %v9424_v40 }
 0x5a2   :  { %22464 = vmatpush3.bf16.msra.mxu1 %v26825_v62  ;;  %22477 = vmatprep.mubr.msk.bf16.mxu1 %vm25625_vm0, %v25624_v11 }
 0x5a3   :  { %22465 = vmatprep.subr.bf16.mxu1 %v25624_v11  ;;  %22494 = vmatpush3.bf16.msra.mxu0 %v26816_v0 }
 0x5a4   :  { %22517 = vmatprep.subr.bf16.mxu0 %v25624_v11 }
 0x5a5   :  { %v8841_v34 = vpop.f32.mrb[132].mxu1 }
 0x5a6   :  { %v22263_v41 = vpop.f32.mrb[133].mxu1  ;;  %22466 = vmatpush3.bf16.msra.mxu1 %v26835_v5 }
 0x5a7   :  { %v8844_v23 = vpop.f32.mrb[134].mxu1  ;;  %22467 = vmatprep.subr.bf16.mxu1 %v25624_v11 }
 0x5a8   :  { %v22264_v47 = vpop.f32.mrb[135].mxu1 }
 0x5aa   :  { %22468 = vmatpush3.bf16.msra.mxu1 %v26846_v6 }
 0x5ab   :  { %22469 = vmatprep.subr.bf16.mxu1 %v25624_v11 }
 0x5ae   :  { %22470 = vmatpush3.bf16.msra.mxu1 %v26855_v44 }
 0x5af   :  { %22471 = vmatprep.subr.bf16.mxu1 %v25624_v11 }
 0x5b2   :  { %22472 = vmatpush3.bf16.msra.mxu1 %v26864_v46 }
 0x5b3   :  { %22473 = vmatprep.subr.bf16.mxu1 %v25624_v11 }
 0x5b4   :  { %v8797_v43 = vpop.f32.mrb[140].mxu0 }
 0x5b5   :  { %v8798_v33 = vadd.f32 %v8797_v43, %v8757_v18  ;;  %v22245_v49 = vpop.f32.mrb[141].mxu0  ;;  %v24159_v43 = vld [vmem:[%s28268_s7 + $0x60] sm:$0xff]  }
 0x5b6   :  { %v8800_v52 = vpop.f32.mrb[142].mxu0  ;;  %22474 = vmatpush3.bf16.msra.mxu1 %v26872_v53  ;;  %v24161_v49 = vld [vmem:[%s28268_s7 + $0x70] sm:$0xff]  }
 0x5b7   :  { %v8847_v57 = vadd.f32 %v8841_v34, %v8798_v33  ;;  %v22246_v61 = vpop.f32.mrb[143].mxu0  ;;  %22475 = vmatprep.subr.bf16.mxu1 %v25624_v11  ;;  %v24160_v33 = vld [vmem:[%s28268_s7 + $0x68] sm:$0xff]   ;;  %v24162_v52 = vld [vmem:[%s28268_s7 + $0x78] sm:$0xff]  }
 0x5b9   :  { %v8848_v63 = vadd.f32 %v26740_v58, %v8847_v57 }
 0x5ba   :  { %22476 = vmatpush3.bf16.msra.mxu1 %v26880_v3 }
 0x5bb   :  { %v8849_v0 = vmax.f32 %v8848_v63, 0.0  ;;  %22499 = vmatprep.subr.bf16.mxu1 %v25624_v11 }
 0x5bd   :  { %v9508_v22 = vpack.c.bf16 %v8849_v0, %v8849_v0 }
 0x5bf   :  { %22478 = vmatmul.mubr.msk.bf16.vlgmr.msra.gmra.mrb[156].mxu1 %vm8133_vm2, %v9508_v22 }
 0x5c0   :  { %22500 = vmatpush3.bf16.msra.mxu1 %v26694_v36  ;;  %22513 = vmatprep.mubr.msk.bf16.mxu1 %vm25625_vm0, %v25624_v11 }
 0x5c1   :  { %v8928_v25 = vpop.f32.mrb[136].mxu1  ;;  %22501 = vmatprep.subr.bf16.mxu1 %v25624_v11 }
 0x5c2   :  { %v22299_v48 = vpop.f32.mrb[137].mxu1 }
 0x5c3   :  { %v8931_v21 = vpop.f32.mrb[138].mxu1 }
 0x5c4   :  { %v22300_v4 = vpop.f32.mrb[139].mxu1  ;;  %22502 = vmatpush3.bf16.msra.mxu1 %v26703_v17 }
 0x5c5   :  { %22503 = vmatprep.subr.bf16.mxu1 %v25624_v11 }
 0x5c8   :  { %22504 = vmatpush3.bf16.msra.mxu1 %v26713_v38 }
 0x5c9   :  { %22505 = vmatprep.subr.bf16.mxu1 %v25624_v11 }
 0x5cc   :  { %22506 = vmatpush3.bf16.msra.mxu1 %v26724_v27 }
 0x5cd   :  { %22507 = vmatprep.subr.bf16.mxu1 %v25624_v11 }
 0x5d0   :  { %22508 = vmatpush3.bf16.msra.mxu1 %v26738_v28  ;;  %v8888_v36 = vpop.f32.mrb[144].mxu0 }
 0x5d1   :  { %v8929_v55 = vadd.f32 %v8928_v25, %v8888_v36  ;;  %v22281_v51 = vpop.f32.mrb[145].mxu0  ;;  %22509 = vmatprep.subr.bf16.mxu1 %v25624_v11  ;;  %v24164_v25 = vld [vmem:[%s28268_s7 + $0x88] sm:$0xff]  }
 0x5d2   :  { %v8891_v14 = vpop.f32.mrb[146].mxu0 }
 0x5d3   :  { %v22282_v12 = vpop.f32.mrb[147].mxu0 }
 0x5d4   :  { %22510 = vmatpush3.bf16.msra.mxu1 %v26756_v54 }
 0x5d5   :  { %22511 = vmatprep.subr.bf16.mxu1 %v25624_v11 }
 0x5d8   :  { %22512 = vmatpush3.bf16.msra.mxu1 %v26773_v7 }
 0x5d9   :  { %22535 = vmatprep.subr.bf16.mxu1 %v25624_v11 }
 0x5db   :  { %22514 = vmatmul.mubr.msk.bf16.vlgmr.msra.gmra.mrb[160].mxu1 %vm8133_vm2, %v9508_v22  ;;  %v24163_v22 = vld [vmem:[%s28268_s7 + $0x80] sm:$0xff]  }
 0x5dc   :  { %22547 = vmatprep.mubr.msk.bf16.mxu1 %vm25625_vm0, %v25624_v11  ;;  %22536 = vmatpush3.bf16.msra.mxu1 %v24147_v50  ;;  %v24158_v50 = vld [vmem:[%s28268_s7 + $0x28] sm:$0xff]  }
 0x5dd   :  { %v9019_v17 = vpop.f32.mrb[140].mxu1  ;;  %22537 = vmatprep.subr.bf16.mxu1 %v25624_v11 }
 0x5de   :  { %v22335_v38 = vpop.f32.mrb[141].mxu1 }
 0x5df   :  { %v9022_v27 = vpop.f32.mrb[142].mxu1 }
 0x5e0   :  { %v22336_v28 = vpop.f32.mrb[143].mxu1  ;;  %22538 = vmatpush3.bf16.msra.mxu1 %v24148_v20 }
 0x5e1   :  { %22539 = vmatprep.subr.bf16.mxu1 %v25624_v11 }
 0x5e4   :  { %22540 = vmatpush3.bf16.msra.mxu1 %v24149_v8 }
 0x5e5   :  { %22541 = vmatprep.subr.bf16.mxu1 %v25624_v11 }
 0x5ec   :  { %v8972_v26 = vpop.f32.mrb[148].mxu0 }
 0x5ed   :  { %v8978_v59 = vadd.f32 %v8972_v26, %v8929_v55  ;;  %v22317_v56 = vpop.f32.mrb[149].mxu0 }
 0x5ee   :  { %v8975_v1 = vpop.f32.mrb[150].mxu0 }
 0x5ef   :  { %v8979_v54 = vadd.f32 %v26740_v58, %v8978_v59  ;;  %v22318_v10 = vpop.f32.mrb[151].mxu0  ;;  %v24153_v59 = vld [vmem:[%s28268_s7] sm:$0xff]   ;;  %v24154_v1 = vld [vmem:[%s28268_s7 + $0x8] sm:$0xff]  }
 0x5f0   :  { %v24156_v10 = vld [vmem:[%s28268_s7 + $0x18] sm:$0xff]  }
 0x5f1   :  { %v8980_v13 = vmax.f32 %v8979_v54, 0.0  ;;  %v24155_v54 = vld [vmem:[%s28268_s7 + $0x10] sm:$0xff]  }
 0x5f3   :  { %v9555_v7 = vpack.c.bf16 %v8980_v13, %v8980_v13  ;;  %v24157_v13 = vld [vmem:[%s28268_s7 + $0x20] sm:$0xff]  }
 0x5f5   :  { %22496 = vmatmul.mubr.msk.bf16.vlgmr.msra.gmra.mrb[168].mxu0 %vm8133_vm2, %v9555_v7 }
 0x5f6   :  { %22518 = vmatpush3.bf16.msra.mxu0 %v26825_v62  ;;  %22531 = vmatprep.mubr.msk.bf16.mxu0 %vm25625_vm0, %v25624_v11 }
 0x5f7   :  { %22519 = vmatprep.subr.bf16.mxu0 %v25624_v11 }
 0x5f9   :  { %v9103_v42 = vpop.f32.mrb[144].mxu1 }
 0x5fa   :  { %v22371_v15 = vpop.f32.mrb[145].mxu1  ;;  %22520 = vmatpush3.bf16.msra.mxu0 %v26835_v5  ;;  %v24150_v5 = vld [vmem:[%s28268_s7 + $0x48] sm:$0xff]  }
 0x5fb   :  { %v9106_v45 = vpop.f32.mrb[146].mxu1  ;;  %22521 = vmatprep.subr.bf16.mxu0 %v25624_v11  ;;  %22542 = vmatpush3.bf16.msra.mxu1 %v24150_v5 }
 0x5fc   :  { %v22372_v62 = vpop.f32.mrb[147].mxu1  ;;  %22543 = vmatprep.subr.bf16.mxu1 %v25624_v11 }
 0x5fe   :  { %22522 = vmatpush3.bf16.msra.mxu0 %v26846_v6 }
 0x5ff   :  { %22523 = vmatprep.subr.bf16.mxu0 %v25624_v11  ;;  %22544 = vmatpush3.bf16.msra.mxu1 %v24151_v16 }
 0x600   :  { %22545 = vmatprep.subr.bf16.mxu1 %v25624_v11 }
 0x602   :  { %22524 = vmatpush3.bf16.msra.mxu0 %v26855_v44 }
 0x603   :  { %22525 = vmatprep.subr.bf16.mxu0 %v25624_v11 }
 0x606   :  { %22526 = vmatpush3.bf16.msra.mxu0 %v26864_v46 }
 0x607   :  { %22527 = vmatprep.subr.bf16.mxu0 %v25624_v11 }
 0x608   :  { %v9059_v6 = vpop.f32.mrb[152].mxu0 }
 0x609   :  { %v9060_v60 = vadd.f32 %v9059_v6, %v9019_v17  ;;  %v22353_v19 = vpop.f32.mrb[153].mxu0  ;;  %v19480_v17 = vld [vmem:[#allocation9] ss:$0 sm:$0xff] }
 0x60a   :  { %v9062_v9 = vpop.f32.mrb[154].mxu0  ;;  %22528 = vmatpush3.bf16.msra.mxu0 %v26872_v53 }
 0x60b   :  { %v9109_v18 = vadd.f32 %v9103_v42, %v9060_v60  ;;  %v22354_v24 = vpop.f32.mrb[155].mxu0  ;;  %22529 = vmatprep.subr.bf16.mxu0 %v25624_v11 }
 0x60d   :  { %v9110_v44 = vadd.f32 %v26740_v58, %v9109_v18 }
 0x60e   :  { %22530 = vmatpush3.bf16.msra.mxu0 %v26880_v3  ;;  %v24152_v3 = vld [vmem:[%s28268_s7 + $0x58] sm:$0xff]  }
 0x60f   :  { %v9111_v2 = vmax.f32 %v9110_v44, 0.0  ;;  %22567 = vmatprep.subr.bf16.mxu0 %v25624_v11  ;;  %22546 = vmatpush3.bf16.msra.mxu1 %v24152_v3  ;;  %v24166_v3 = vld [vmem:[#allocation12 + $0x8] sm:$0xff]  }
 0x610   :  { %22551 = vmatprep.subr.bf16.mxu1 %v25624_v11 }
 0x611   :  { %v9639_v46 = vpack.c.bf16 %v9111_v2, %v9111_v2 }
 0x613   :  { %22532 = vmatmul.mubr.msk.bf16.vlgmr.msra.gmra.mrb[172].mxu0 %vm8133_vm2, %v9639_v46 }
 0x614   :  { %22579 = vmatprep.mubr.msk.bf16.mxu0 %vm25625_vm0, %v25624_v11  ;;  %22568 = vmatpush3.bf16.msra.mxu0 %v24159_v43 }
 0x615   :  { %v9308_v29 = vpop.f32.mrb[148].mxu1  ;;  %22569 = vmatprep.subr.bf16.mxu0 %v25624_v11 }
 0x616   :  { %v22407_v53 = vpop.f32.mrb[149].mxu1 }
 0x617   :  { %v9311_v58 = vpop.f32.mrb[150].mxu1 }
 0x618   :  { %v22408_v35 = vpop.f32.mrb[151].mxu1  ;;  %22570 = vmatpush3.bf16.msra.mxu0 %v24160_v33  ;;  %v24165_v58 = vld [vmem:[#allocation12] sm:$0xff]  }
 0x619   :  { %22571 = vmatprep.subr.bf16.mxu0 %v25624_v11  ;;  %v24167_v35 = vld [vmem:[#allocation12 + $0x10] sm:$0xff]  }
 0x61c   :  { %22572 = vmatpush3.bf16.msra.mxu0 %v24161_v49 }
 0x61d   :  { %22573 = vmatprep.subr.bf16.mxu0 %v25624_v11 }
 0x620   :  { %22574 = vmatpush3.bf16.msra.mxu0 %v24162_v52 }
 0x621   :  { %22575 = vmatprep.subr.bf16.mxu0 %v25624_v11 }
 0x624   :  { %v9223_v31 = vpop.f32.mrb[156].mxu0  ;;  %22576 = vmatpush3.bf16.msra.mxu0 %v24163_v22 }
 0x625   :  { %v9309_v32 = vadd.f32 %v9308_v29, %v9223_v31  ;;  %v22389_v37 = vpop.f32.mrb[157].mxu0  ;;  %22577 = vmatprep.subr.bf16.mxu0 %v25624_v11  ;;  %v24168_v31 = vld [vmem:[#allocation12 + $0x18] sm:$0xff]  }
 0x626   :  { %v9226_v39 = vpop.f32.mrb[158].mxu0  ;;  %v24171_v37 = vld [vmem:[#allocation15 + $0x8] sm:$0xff]  }
 0x627   :  { %v22390_v30 = vpop.f32.mrb[159].mxu0  ;;  %v24173_v39 = vld [vmem:[#allocation15 + $0x10] sm:$0xff]  }
 0x628   :  { %22578 = vmatpush3.bf16.msra.mxu0 %v24164_v25 }
 0x629   :  { %22595 = vmatprep.subr.bf16.mxu0 %v25624_v11 }
 0x640   :  { %v9409_v40 = vpop.f32.mrb[160].mxu0 }
 0x641   :  { %v9415_v34 = vadd.f32 %v9409_v40, %v9309_v32  ;;  %v22425_v41 = vpop.f32.mrb[161].mxu0  ;;  %v24169_v32 = vld [vmem:[#allocation15] sm:$0xff]  }
 0x642   :  { %v9412_v23 = vpop.f32.mrb[162].mxu0 }
 0x643   :  { %v22426_v47 = vpop.f32.mrb[163].mxu0  ;;  %v9422_v7 = vadd.f32 %v19480_v17, %v9415_v34 }
 0x645   :  { %v9423_v42 = vmax.f32 %v9422_v7, 0.0  ;;  %v24179_v7 = vld [vmem:[#allocation15 + $0x50] sm:$0xff]  }
 0x647   :  { %v9698_v62 = vpack.c.bf16 %v9423_v42, %v9423_v42  ;;  %v24180_v42 = vld [vmem:[#allocation15 + $0x58] sm:$0xff]  }
 0x65c   :  { %v9502_v57 = vpop.f32.mrb[164].mxu0 }
 0x65d   :  { %v22461_v61 = vpop.f32.mrb[165].mxu0 }
 0x65e   :  { %v9505_v63 = vpop.f32.mrb[166].mxu0 }
 0x65f   :  { %v22462_v0 = vpop.f32.mrb[167].mxu0 }
 0x674   :  { %v9462_v48 = vpop.f32.mrb[152].mxu1 }
 0x675   :  { %v9503_v21 = vadd.f32 %v9502_v57, %v9462_v48  ;;  %v22443_v4 = vpop.f32.mrb[153].mxu1  ;;  %v19532_v57 = vld [vmem:[#allocation10] ss:$0 sm:$0xff] }
 0x676   :  { %v9465_v36 = vpop.f32.mrb[154].mxu1 }
 0x677   :  { %v22444_v55 = vpop.f32.mrb[155].mxu1  ;;  %v24172_v36 = vld [vmem:[#allocation15 + $0x28] sm:$0xff]  }
 0x678   :  { %v24174_v55 = vld [vmem:[#allocation15 + $0x30] sm:$0xff]  }
 0x692   :  { %v9546_v51 = vpop.f32.mrb[156].mxu1 }
 0x693   :  { %v9552_v14 = vadd.f32 %v9546_v51, %v9503_v21  ;;  %v22479_v12 = vpop.f32.mrb[157].mxu1  ;;  %v24170_v21 = vld [vmem:[#allocation15 + $0x20] sm:$0xff]   ;;  %v24175_v51 = vld [vmem:[#allocation15 + $0x18] sm:$0xff]  }
 0x694   :  { %v9549_v38 = vpop.f32.mrb[158].mxu1  ;;  %v19533_v12 = vld [vmem:[#allocation13] ss:$0 sm:$0xff] }
 0x695   :  { %v9553_v27 = vadd.f32 %v19480_v17, %v9552_v14  ;;  %v22480_v28 = vpop.f32.mrb[159].mxu1  ;;  %v24176_v14 = vld [vmem:[#allocation15 + $0x38] sm:$0xff]  }
 0x697   :  { %v9554_v26 = vmax.f32 %v9553_v27, 0.0 }
 0x699   :  { %v9712_v56 = vpack.c.bf16 %v9554_v26, %v9554_v26 }
 0x69b   :  { %22548 = vmatmul.mubr.msk.bf16.vlgmr.msra.gmra.mrb[164].mxu1 %vm9749_vm3, %v9712_v56  ;;  %v24177_v56 = vld [vmem:[#allocation15 + $0x40] sm:$0xff]  }
 0x69c   :  { %22552 = vmatpush3.bf16.msra.mxu1 %v24153_v59  ;;  %22563 = vmatprep.mubr.msk.bf16.mxu1 %vm25625_vm0, %v25624_v11 }
 0x69d   :  { %22553 = vmatprep.subr.bf16.mxu1 %v25624_v11 }
 0x6a0   :  { %22554 = vmatpush3.bf16.msra.mxu1 %v24154_v1 }
 0x6a1   :  { %22555 = vmatprep.subr.bf16.mxu1 %v25624_v11 }
 0x6a4   :  { %22556 = vmatpush3.bf16.msra.mxu1 %v24155_v54  ;;  %v27076_v54 = vld [vmem:[#allocation18] sm:$0xff]  }
 0x6a5   :  { %22557 = vmatprep.subr.bf16.mxu1 %v25624_v11 }
 0x6a8   :  { %22558 = vmatpush3.bf16.msra.mxu1 %v24156_v10  ;;  %v24178_v10 = vld [vmem:[#allocation15 + $0x48] sm:$0xff]  }
 0x6a9   :  { %22559 = vmatprep.subr.bf16.mxu1 %v25624_v11 }
 0x6ac   :  { %22560 = vmatpush3.bf16.msra.mxu1 %v24157_v13  ;;  %v27084_v13 = vld [vmem:[#allocation18 + $0x8] sm:$0xff]  }
 0x6ad   :  { %22561 = vmatprep.subr.bf16.mxu1 %v25624_v11 }
 0x6ae   :  { %v9633_v15 = vpop.f32.mrb[160].mxu1 }
 0x6af   :  { %v22515_v20 = vpop.f32.mrb[161].mxu1 }
 0x6b0   :  { %v9636_v45 = vpop.f32.mrb[162].mxu1  ;;  %22562 = vmatpush3.bf16.msra.mxu1 %v24158_v50  ;;  %v27091_v50 = vld [vmem:[#allocation18 + $0x10] sm:$0xff]  }
 0x6b1   :  { %v22516_v8 = vpop.f32.mrb[163].mxu1  ;;  %22583 = vmatprep.subr.bf16.mxu1 %v25624_v11  ;;  %v27099_v20 = vld [vmem:[#allocation18 + $0x30] sm:$0xff]   ;;  %v27103_v45 = vld [vmem:[#allocation18 + $0x20] sm:$0xff]  }
 0x6b2   :  { %v27116_v8 = vld [vmem:[#allocation18 + $0x40] sm:$0xff]  }
 0x6b3   :  { %22564 = vmatmul.mubr.msk.bf16.vlgmr.msra.gmra.mrb[168].mxu1 %vm9749_vm3, %v9698_v62  ;;  %v27108_v62 = vld [vmem:[#allocation18 + $0x38] sm:$0xff]  }
 0x6b4   :  { %22591 = vmatprep.mubr.msk.bf16.mxu1 %vm25625_vm0, %v25624_v11  ;;  %22584 = vmatpush3.bf16.msra.mxu1 %v24165_v58 }
 0x6b5   :  { %22585 = vmatprep.subr.bf16.mxu1 %v25624_v11 }
 0x6b8   :  { %22586 = vmatpush3.bf16.msra.mxu1 %v24166_v3 }
 0x6b9   :  { %22587 = vmatprep.subr.bf16.mxu1 %v25624_v11 }
 0x6bc   :  { %22588 = vmatpush3.bf16.msra.mxu1 %v24167_v35  ;;  %v27137_v35 = vld [vmem:[#allocation18 + $0x60] sm:$0xff]  }
 0x6bd   :  { %22589 = vmatprep.subr.bf16.mxu1 %v25624_v11 }
 0x6c0   :  { %22590 = vmatpush3.bf16.msra.mxu1 %v24168_v31 }
 0x6c1   :  { %22607 = vmatprep.subr.bf16.mxu1 %v25624_v11 }
 0x6c8   :  { %v9593_v5 = vpop.f32.mrb[168].mxu0 }
 0x6c9   :  { %v9634_v6 = vadd.f32 %v9633_v15, %v9593_v5  ;;  %v22497_v60 = vpop.f32.mrb[169].mxu0  ;;  %v27096_v15 = vld [vmem:[#allocation18 + $0x18] sm:$0xff]   ;;  %v27120_v5 = vld [vmem:[#allocation18 + $0x48] sm:$0xff]  }
 0x6ca   :  { %v9596_v19 = vpop.f32.mrb[170].mxu0  ;;  %v27129_v60 = vld [vmem:[#allocation18 + $0x28] sm:$0xff]  }
 0x6cb   :  { %v22498_v9 = vpop.f32.mrb[171].mxu0  ;;  %v27131_v19 = vld [vmem:[#allocation18 + $0x58] sm:$0xff]  }
 0x6cc   :  { %v19539_v9 = vld [vmem:[#allocation16] ss:$0 sm:$0xff] }
 0x6e6   :  { %v9677_v18 = vpop.f32.mrb[172].mxu0 }
 0x6e7   :  { %v9683_v24 = vadd.f32 %v9677_v18, %v9634_v6  ;;  %v22533_v44 = vpop.f32.mrb[173].mxu0  ;;  %v27124_v6 = vld [vmem:[#allocation18 + $0x50] sm:$0xff]  }
 0x6e8   :  { %v9680_v2 = vpop.f32.mrb[174].mxu0 }
 0x6e9   :  { %v9684_v46 = vadd.f32 %v19480_v17, %v9683_v24  ;;  %v22534_v16 = vpop.f32.mrb[175].mxu0 }
 0x6eb   :  { %v9685_v29 = vmax.f32 %v9684_v46, 0.0 }
 0x6ed   :  { %v9885_v53 = vpack.c.bf16 %v9685_v29, %v9685_v29 }
 0x6ef   :  { %22580 = vmatmul.mubr.msk.bf16.vlgmr.msra.gmra.mrb[176].mxu0 %vm9749_vm3, %v9885_v53 }
 0x6f0   :  { %22603 = vmatprep.mubr.msk.bf16.mxu0 %vm25625_vm0, %v25624_v11  ;;  %22596 = vmatpush3.bf16.msra.mxu0 %v24169_v32  ;;  %v27143_v32 = vld [vmem:[#allocation18 + $0x68] sm:$0xff]  }
 0x6f1   :  { %22597 = vmatprep.subr.bf16.mxu0 %v25624_v11 }
 0x6f4   :  { %22598 = vmatpush3.bf16.msra.mxu0 %v24171_v37  ;;  %v27153_v37 = vld [vmem:[#allocation18 + $0x70] sm:$0xff]  }
 0x6f5   :  { %22599 = vmatprep.subr.bf16.mxu0 %v25624_v11 }
 0x6f8   :  { %22600 = vmatpush3.bf16.msra.mxu0 %v24173_v39 }
 0x6f9   :  { %22601 = vmatprep.subr.bf16.mxu0 %v25624_v11 }
 0x6fc   :  { %22602 = vmatpush3.bf16.msra.mxu0 %v24175_v51  ;;  %v27285_v51 = vld [vmem:[#allocation21 + $0x68] sm:$0xff]  }
 0x6fd   :  { %22619 = vmatprep.subr.bf16.mxu0 %v25624_v11 }
 0x76e   :  { %v9787_v30 = vpop.f32.mrb[164].mxu1 }
 0x76f   :  { %v22549_v40 = vpop.f32.mrb[165].mxu1 }
 0x770   :  { %v9790_v34 = vpop.f32.mrb[166].mxu1 }
 0x771   :  { %v22550_v41 = vpop.f32.mrb[167].mxu1  ;;  %v19545_v34 = vld [vmem:[#allocation16 + $0x1] ss:$0 sm:$0xff] }
 0x786   :  { %v9866_v23 = vpop.f32.mrb[168].mxu1 }
 0x787   :  { %v9867_v47 = vadd.f32 %v9866_v23, %v9787_v30  ;;  %v22565_v43 = vpop.f32.mrb[169].mxu1  ;;  %v27161_v30 = vld [vmem:[#allocation18 + $0x78] sm:$0xff]  }
 0x788   :  { %v9869_v33 = vpop.f32.mrb[170].mxu1 }
 0x789   :  { %v22566_v49 = vpop.f32.mrb[171].mxu1  ;;  %v27173_v33 = vld [vmem:[#allocation18 + $0x88] sm:$0xff]  }
 0x7c2   :  { %v9959_v52 = vpop.f32.mrb[176].mxu0 }
 0x7c3   :  { %v9965_v61 = vadd.f32 %v9959_v52, %v9867_v47  ;;  %v22581_v63 = vpop.f32.mrb[177].mxu0  ;;  %v27167_v47 = vld [vmem:[#allocation18 + $0x80] sm:$0xff]  }
 0x7c4   :  { %v9962_v0 = vpop.f32.mrb[178].mxu0 }
 0x7c5   :  { %v9973_v22 = vadd.f32 %v19532_v57, %v9965_v61  ;;  %v22582_v25 = vpop.f32.mrb[179].mxu0  ;;  %v19551_v57 = vld [vmem:[#allocation16 + $0x2] ss:$0 sm:$0xff] }
 0x7c6   :  { %v27251_v25 = vld [vmem:[#allocation21 + $0x40] sm:$0xff]  }
 0x7c7   :  { %v9974_v48 = vmax.f32 %v9973_v22, 0.0  ;;  %v27242_v22 = vld [vmem:[#allocation21 + $0x38] sm:$0xff]  }
 0x7c9   :  { %v9983_v4 = vpack.c.bf16 %v9974_v48, %v9974_v48  ;;  %v27259_v48 = vld [vmem:[#allocation21 + $0x48] sm:$0xff]  }
 0x7cb   :  { %22592 = vmatmul.mubr.msk.bf16.vlgmr.msra.gmra.mrb[172].mxu1 %vm10015_vm4, %v9983_v4  ;;  %v27271_v4 = vld [vmem:[#allocation21 + $0x58] sm:$0xff]  }
 0x7cc   :  { %22608 = vmatpush3.bf16.msra.mxu1 %v24170_v21  ;;  %22615 = vmatprep.mubr.msk.bf16.mxu1 %vm25625_vm0, %v25624_v11  ;;  %v27265_v21 = vld [vmem:[#allocation21 + $0x50] sm:$0xff]  }
 0x7cd   :  { %22609 = vmatprep.subr.bf16.mxu1 %v25624_v11 }
 0x7d0   :  { %22610 = vmatpush3.bf16.msra.mxu1 %v24172_v36  ;;  %v27277_v36 = vld [vmem:[#allocation21 + $0x60] sm:$0xff]  }
 0x7d1   :  { %22611 = vmatprep.subr.bf16.mxu1 %v25624_v11 }
 0x7d4   :  { %22612 = vmatpush3.bf16.msra.mxu1 %v24174_v55  ;;  %v27281_v55 = vld [vmem:[#allocation21 + $0x70] sm:$0xff]  }
 0x7d5   :  { %22613 = vmatprep.subr.bf16.mxu1 %v25624_v11 }
 0x7d8   :  { %22614 = vmatpush3.bf16.msra.mxu1 %v24176_v14  ;;  %v27290_v14 = vld [vmem:[#allocation21 + $0x78] sm:$0xff]  }
 0x7d9   :  { %22631 = vmatprep.subr.bf16.mxu1 %v25624_v11 }
 0x89e   :  { %v10053_v17 = vpop.f32.mrb[172].mxu1 }
 0x89f   :  { %v10054_v38 = vadd.f32 %v19533_v12, %v10053_v17  ;;  %v22593_v27 = vpop.f32.mrb[173].mxu1  ;;  %v27298_v12 = vld [vmem:[#allocation21 + $0x80] sm:$0xff]   ;;  %v27302_v17 = vld [vmem:[#allocation21 + $0x88] sm:$0xff]  }
 0x8a0   :  { %v10056_v28 = vpop.f32.mrb[174].mxu1  ;;  %v27310_v27 = vld [vmem:[#allocation21 + $0x98] sm:$0xff]  }
 0x8a1   :  { %v10059_v26 = vmax.f32 %v10054_v38, 0.0  ;;  %v22594_v59 = vpop.f32.mrb[175].mxu1  ;;  %v27306_v38 = vld [vmem:[#allocation21 + $0x90] sm:$0xff]   ;;  %v27314_v28 = vld [vmem:[#allocation21 + $0xa0] sm:$0xff]  }
 0x8a3   :  { %v10068_v1 = vpack.c.bf16 %v10059_v26, %v10059_v26  ;;  %v27319_v26 = vld [vmem:[#allocation19] ss:$0 sm:$0xff] }
 0x8a5   :  { %22604 = vmatmul.mubr.msk.bf16.vlgmr.msra.gmra.mrb[180].mxu0 %vm10015_vm4, %v10068_v1  ;;  %22616 = vmatmul.mubr.msk.bf16.vlgmr.msra.gmra.mrb[176].mxu1 %vm10015_vm4, %v10068_v1 }
 0x8a6   :  { %22620 = vmatpush3.bf16.msra.mxu0 %v24177_v56  ;;  %22627 = vmatprep.mubr.msk.bf16.mxu0 %vm25625_vm0, %v25624_v11 }
 0x8a7   :  { %22621 = vmatprep.subr.bf16.mxu0 %v25624_v11  ;;  %22632 = vmatpush3.bf16.msra.mxu1 %v27076_v54 }
 0x8a8   :  { %22633 = vmatprep.subr.bf16.mxu1 %v25624_v11  ;;  %22643 = vmatprep.mubr.msk.bf16.mxu1 %vm25625_vm0, %v25624_v11 }
 0x8aa   :  { %22622 = vmatpush3.bf16.msra.mxu0 %v24178_v10 }
 0x8ab   :  { %22623 = vmatprep.subr.bf16.mxu0 %v25624_v11  ;;  %22634 = vmatpush3.bf16.msra.mxu1 %v27084_v13 }
 0x8ac   :  { %22635 = vmatprep.subr.bf16.mxu1 %v25624_v11 }
 0x8ae   :  { %22624 = vmatpush3.bf16.msra.mxu0 %v24179_v7 }
 0x8af   :  { %22625 = vmatprep.subr.bf16.mxu0 %v25624_v11  ;;  %22636 = vmatpush3.bf16.msra.mxu1 %v27091_v50 }
 0x8b0   :  { %22637 = vmatprep.subr.bf16.mxu1 %v25624_v11 }
 0x8b2   :  { %22626 = vmatpush3.bf16.msra.mxu0 %v24180_v42 }
 0x8b3   :  { %22647 = vmatprep.subr.bf16.mxu0 %v25624_v11  ;;  %22638 = vmatpush3.bf16.msra.mxu1 %v27096_v15 }
 0x8b4   :  { %22639 = vmatprep.subr.bf16.mxu1 %v25624_v11 }
 0x8b5   :  { %22628 = vmatmul.mubr.msk.bf16.vlgmr.msra.gmra.mrb[184].mxu0 %vm10015_vm4, %v10068_v1 }
 0x8b6   :  { %22648 = vmatpush3.bf16.msra.mxu0 %v27099_v20  ;;  %22659 = vmatprep.mubr.msk.bf16.mxu0 %vm25625_vm0, %v25624_v11 }
 0x8b7   :  { %22649 = vmatprep.subr.bf16.mxu0 %v25624_v11  ;;  %22640 = vmatpush3.bf16.msra.mxu1 %v27103_v45 }
 0x8b8   :  { %22641 = vmatprep.subr.bf16.mxu1 %v25624_v11 }
 0x8ba   :  { %22650 = vmatpush3.bf16.msra.mxu0 %v27108_v62 }
 0x8bb   :  { %22651 = vmatprep.subr.bf16.mxu0 %v25624_v11  ;;  %22642 = vmatpush3.bf16.msra.mxu1 %v27129_v60 }
 0x8bc   :  { %22663 = vmatprep.subr.bf16.mxu1 %v25624_v11 }
 0x8be   :  { %22652 = vmatpush3.bf16.msra.mxu0 %v27116_v8 }
 0x8bf   :  { %22653 = vmatprep.subr.bf16.mxu0 %v25624_v11 }
 0x8c2   :  { %22654 = vmatpush3.bf16.msra.mxu0 %v27120_v5 }
 0x8c3   :  { %22655 = vmatprep.subr.bf16.mxu0 %v25624_v11 }
 0x8c6   :  { %22656 = vmatpush3.bf16.msra.mxu0 %v27124_v6 }
 0x8c7   :  { %22657 = vmatprep.subr.bf16.mxu0 %v25624_v11 }
 0x8ca   :  { %22658 = vmatpush3.bf16.msra.mxu0 %v27131_v19 }
 0x8cb   :  { %22679 = vmatprep.subr.bf16.mxu0 %v25624_v11 }
 0x978   :  { %v10137_v18 = vpop.f32.mrb[180].mxu0  ;;  %v10219_v24 = vpop.f32.mrb[176].mxu1 }
 0x979   :  { %v10138_v44 = vadd.f32 %v19539_v9, %v10137_v18  ;;  %v22605_v2 = vpop.f32.mrb[181].mxu0  ;;  %v22617_v46 = vpop.f32.mrb[177].mxu1  ;;  %v10220_v43 = vadd.f32 %v19545_v34, %v10219_v24  ;;  %v27356_v9 = vld [vmem:[#allocation21 + $0x28] sm:$0xff]  }
 0x97a   :  { %v10140_v16 = vpop.f32.mrb[182].mxu0  ;;  %v10222_v29 = vpop.f32.mrb[178].mxu1 }
 0x97b   :  { %v10143_v53 = vmax.f32 %v10138_v44, 0.0  ;;  %v22606_v58 = vpop.f32.mrb[183].mxu0  ;;  %v22618_v3 = vpop.f32.mrb[179].mxu1  ;;  %v10225_v49 = vmax.f32 %v10220_v43, 0.0 }
 0x97c   :  { %v27363_v58 = vld [vmem:[#allocation21 + $0x30] sm:$0xff]  }
 0x97d   :  { %v10321_v31 = vpack.c.bf16 %v10143_v53, %v10143_v53  ;;  %v10498_v52 = vpack.c.bf16 %v10225_v49, %v10225_v49 }
 0x97f   :  { %22644 = vmatmul.mubr.msk.bf16.vlgmr.msra.gmra.mrb[180].mxu1 %vm9749_vm3, %v10321_v31  ;;  %22660 = vmatmul.mubr.msk.bf16.vlgmr.msra.gmra.mrb[188].mxu0 %vm9749_vm3, %v10321_v31 }
 0x980   :  { %22664 = vmatpush3.bf16.msra.mxu1 %v27137_v35  ;;  %22680 = vmatpush3.bf16.msra.mxu0 %v27076_v54 }
 0x981   :  { %22665 = vmatprep.subr.bf16.mxu1 %v25624_v11  ;;  %22681 = vmatprep.subr.bf16.mxu0 %v25624_v11 }
 0x982   :  { %22675 = vmatprep.mubr.msk.bf16.mxu1 %vm25625_vm0, %v25624_v11  ;;  %22691 = vmatprep.mubr.msk.bf16.mxu0 %vm25625_vm0, %v25624_v11 }
 0x984   :  { %22666 = vmatpush3.bf16.msra.mxu1 %v27143_v32  ;;  %22682 = vmatpush3.bf16.msra.mxu0 %v27084_v13 }
 0x985   :  { %22667 = vmatprep.subr.bf16.mxu1 %v25624_v11  ;;  %22683 = vmatprep.subr.bf16.mxu0 %v25624_v11 }
 0x988   :  { %v27157_v39 = vpop.f32.mrb[184].mxu0  ;;  %22668 = vmatpush3.bf16.msra.mxu1 %v27153_v37  ;;  %22684 = vmatpush3.bf16.msra.mxu0 %v27091_v50 }
 0x989   :  { %v22629_v40 = vpop.f32.mrb[185].mxu0  ;;  %22669 = vmatprep.subr.bf16.mxu1 %v25624_v11  ;;  %22685 = vmatprep.subr.bf16.mxu0 %v25624_v11  ;;  %v10302_v61 = vadd.f32 %v19551_v57, %v27157_v39 }
 0x98a   :  { %v10304_v41 = vpop.f32.mrb[186].mxu0 }
 0x98b   :  { %v22630_v23 = vpop.f32.mrb[187].mxu0  ;;  %v10307_v63 = vmax.f32 %v10302_v61, 0.0 }
 0x98c   :  { %22670 = vmatpush3.bf16.msra.mxu1 %v27161_v30  ;;  %22686 = vmatpush3.bf16.msra.mxu0 %v27096_v15 }
 0x98d   :  { %22671 = vmatprep.subr.bf16.mxu1 %v25624_v11  ;;  %22687 = vmatprep.subr.bf16.mxu0 %v25624_v11  ;;  %v10674_v0 = vpack.c.bf16 %v10307_v63, %v10307_v63 }
 0x990   :  { %22672 = vmatpush3.bf16.msra.mxu1 %v27167_v47  ;;  %22688 = vmatpush3.bf16.msra.mxu0 %v27103_v45 }
 0x991   :  { %22673 = vmatprep.subr.bf16.mxu1 %v25624_v11  ;;  %22689 = vmatprep.subr.bf16.mxu0 %v25624_v11 }
 0x994   :  { %22674 = vmatpush3.bf16.msra.mxu1 %v27173_v33  ;;  %22690 = vmatpush3.bf16.msra.mxu0 %v27129_v60 }
 0x995   :  { %22695 = vmatprep.subr.bf16.mxu1 %v25624_v11  ;;  %22711 = vmatprep.subr.bf16.mxu0 %v25624_v11 }
 0x997   :  { %22676 = vmatmul.mubr.msk.bf16.vlgmr.msra.gmra.mrb[184].mxu1 %vm9749_vm3, %v10321_v31  ;;  %22692 = vmatmul.mubr.msk.bf16.vlgmr.msra.gmra.mrb[192].mxu0 %vm9749_vm3, %v10498_v52 }
 0x998   :  { %22696 = vmatpush3.bf16.msra.mxu1 %v27099_v20  ;;  %22712 = vmatpush3.bf16.msra.mxu0 %v27137_v35 }
 0x999   :  { %22697 = vmatprep.subr.bf16.mxu1 %v25624_v11  ;;  %22713 = vmatprep.subr.bf16.mxu0 %v25624_v11 }
 0x99a   :  { %22707 = vmatprep.mubr.msk.bf16.mxu1 %vm25625_vm0, %v25624_v11  ;;  %22723 = vmatprep.mubr.msk.bf16.mxu0 %vm25625_vm0, %v25624_v11 }
 0x99c   :  { %22698 = vmatpush3.bf16.msra.mxu1 %v27108_v62  ;;  %22714 = vmatpush3.bf16.msra.mxu0 %v27143_v32 }
 0x99d   :  { %22699 = vmatprep.subr.bf16.mxu1 %v25624_v11  ;;  %22715 = vmatprep.subr.bf16.mxu0 %v25624_v11 }
 0x9a0   :  { %22700 = vmatpush3.bf16.msra.mxu1 %v27116_v8  ;;  %22716 = vmatpush3.bf16.msra.mxu0 %v27153_v37 }
 0x9a1   :  { %22701 = vmatprep.subr.bf16.mxu1 %v25624_v11  ;;  %22717 = vmatprep.subr.bf16.mxu0 %v25624_v11 }
 0x9a4   :  { %22702 = vmatpush3.bf16.msra.mxu1 %v27120_v5  ;;  %22718 = vmatpush3.bf16.msra.mxu0 %v27161_v30 }
 0x9a5   :  { %22703 = vmatprep.subr.bf16.mxu1 %v25624_v11  ;;  %22719 = vmatprep.subr.bf16.mxu0 %v25624_v11 }
 0x9a8   :  { %22704 = vmatpush3.bf16.msra.mxu1 %v27124_v6  ;;  %22720 = vmatpush3.bf16.msra.mxu0 %v27167_v47 }
 0x9a9   :  { %22705 = vmatprep.subr.bf16.mxu1 %v25624_v11  ;;  %22721 = vmatprep.subr.bf16.mxu0 %v25624_v11 }
 0x9ac   :  { %22706 = vmatpush3.bf16.msra.mxu1 %v27131_v19  ;;  %22722 = vmatpush3.bf16.msra.mxu0 %v27173_v33 }
 0x9ad   :  { %22727 = vmatprep.subr.bf16.mxu1 %v25624_v11  ;;  %22743 = vmatprep.subr.bf16.mxu0 %v25624_v11 }
 0x9af   :  { %22708 = vmatmul.mubr.msk.bf16.vlgmr.msra.gmra.mrb[188].mxu1 %vm9749_vm3, %v10498_v52  ;;  %22724 = vmatmul.mubr.msk.bf16.vlgmr.msra.gmra.mrb[196].mxu0 %vm9749_vm3, %v10498_v52 }
 0x9b0   :  { %22728 = vmatpush3.bf16.msra.mxu1 %v27076_v54  ;;  %22744 = vmatpush3.bf16.msra.mxu0 %v27099_v20  ;;  %v27322_v20 = vld [vmem:[#allocation21] sm:$0xff]  }
 0x9b1   :  { %22729 = vmatprep.subr.bf16.mxu1 %v25624_v11  ;;  %22745 = vmatprep.subr.bf16.mxu0 %v25624_v11 }
 0x9b2   :  { %22739 = vmatprep.mubr.msk.bf16.mxu1 %vm25625_vm0, %v25624_v11  ;;  %22755 = vmatprep.mubr.msk.bf16.mxu0 %vm25625_vm0, %v25624_v11 }
 0x9b4   :  { %22730 = vmatpush3.bf16.msra.mxu1 %v27084_v13  ;;  %22746 = vmatpush3.bf16.msra.mxu0 %v27108_v62  ;;  %v27328_v62 = vld [vmem:[#allocation21 + $0x8] sm:$0xff]  }
 0x9b5   :  { %22731 = vmatprep.subr.bf16.mxu1 %v25624_v11  ;;  %22747 = vmatprep.subr.bf16.mxu0 %v25624_v11 }
 0x9b8   :  { %22732 = vmatpush3.bf16.msra.mxu1 %v27091_v50  ;;  %22748 = vmatpush3.bf16.msra.mxu0 %v27116_v8  ;;  %v27338_v8 = vld [vmem:[#allocation21 + $0x10] sm:$0xff]  }
 0x9b9   :  { %22733 = vmatprep.subr.bf16.mxu1 %v25624_v11  ;;  %22749 = vmatprep.subr.bf16.mxu0 %v25624_v11 }
 0x9bc   :  { %22734 = vmatpush3.bf16.msra.mxu1 %v27096_v15  ;;  %22750 = vmatpush3.bf16.msra.mxu0 %v27120_v5  ;;  %v27344_v5 = vld [vmem:[#allocation21 + $0x18] sm:$0xff]  }
 0x9bd   :  { %22735 = vmatprep.subr.bf16.mxu1 %v25624_v11  ;;  %22751 = vmatprep.subr.bf16.mxu0 %v25624_v11 }
 0x9c0   :  { %22736 = vmatpush3.bf16.msra.mxu1 %v27103_v45  ;;  %22752 = vmatpush3.bf16.msra.mxu0 %v27124_v6  ;;  %v27350_v6 = vld [vmem:[#allocation21 + $0x20] sm:$0xff]  }
 0x9c1   :  { %22737 = vmatprep.subr.bf16.mxu1 %v25624_v11  ;;  %22753 = vmatprep.subr.bf16.mxu0 %v25624_v11 }
 0x9c4   :  { %22738 = vmatpush3.bf16.msra.mxu1 %v27129_v60  ;;  %22754 = vmatpush3.bf16.msra.mxu0 %v27131_v19 }
 0x9c5   :  { %22759 = vmatprep.subr.bf16.mxu1 %v25624_v11  ;;  %22775 = vmatprep.subr.bf16.mxu0 %v25624_v11 }
 0x9c7   :  { %22740 = vmatmul.mubr.msk.bf16.vlgmr.msra.gmra.mrb[192].mxu1 %vm9749_vm3, %v10674_v0  ;;  %22756 = vmatmul.mubr.msk.bf16.vlgmr.msra.gmra.mrb[200].mxu0 %vm9749_vm3, %v10674_v0 }
 0x9c8   :  { %22760 = vmatpush3.bf16.msra.mxu1 %v27137_v35  ;;  %22771 = vmatprep.mubr.msk.bf16.mxu1 %vm25625_vm0, %v25624_v11 }
 0x9c9   :  { %22761 = vmatprep.subr.bf16.mxu1 %v25624_v11  ;;  %22776 = vmatpush3.bf16.msra.mxu0 %v27242_v22 }
 0x9ca   :  { %22777 = vmatprep.subr.bf16.mxu0 %v25624_v11  ;;  %22789 = vmatprep.mubr.msk.bf16.mxu0 %vm25625_vm0, %v25624_v11 }
 0x9cc   :  { %22762 = vmatpush3.bf16.msra.mxu1 %v27143_v32 }
 0x9cd   :  { %22763 = vmatprep.subr.bf16.mxu1 %v25624_v11  ;;  %22778 = vmatpush3.bf16.msra.mxu0 %v27251_v25 }
 0x9ce   :  { %22779 = vmatprep.subr.bf16.mxu0 %v25624_v11 }
 0x9d0   :  { %22764 = vmatpush3.bf16.msra.mxu1 %v27153_v37 }
 0x9d1   :  { %22765 = vmatprep.subr.bf16.mxu1 %v25624_v11  ;;  %22780 = vmatpush3.bf16.msra.mxu0 %v27259_v48 }
 0x9d2   :  { %22781 = vmatprep.subr.bf16.mxu0 %v25624_v11 }
 0x9d4   :  { %22766 = vmatpush3.bf16.msra.mxu1 %v27161_v30 }
 0x9d5   :  { %22767 = vmatprep.subr.bf16.mxu1 %v25624_v11  ;;  %22782 = vmatpush3.bf16.msra.mxu0 %v27265_v21 }
 0x9d6   :  { %22783 = vmatprep.subr.bf16.mxu0 %v25624_v11 }
 0x9d8   :  { %22768 = vmatpush3.bf16.msra.mxu1 %v27167_v47 }
 0x9d9   :  { %22769 = vmatprep.subr.bf16.mxu1 %v25624_v11  ;;  %22784 = vmatpush3.bf16.msra.mxu0 %v27271_v4 }
 0x9da   :  { %22785 = vmatprep.subr.bf16.mxu0 %v25624_v11 }
 0x9dc   :  { %22770 = vmatpush3.bf16.msra.mxu1 %v27173_v33 }
 0x9dd   :  { %22793 = vmatprep.subr.bf16.mxu1 %v25624_v11  ;;  %22786 = vmatpush3.bf16.msra.mxu0 %v27277_v36 }
 0x9de   :  { %22787 = vmatprep.subr.bf16.mxu0 %v25624_v11 }
 0x9df   :  { %22772 = vmatmul.mubr.msk.bf16.vlgmr.msra.gmra.mrb[196].mxu1 %vm9749_vm3, %v10674_v0 }
 0x9e0   :  { %22794 = vmatpush3.bf16.msra.mxu1 %v27281_v55  ;;  %22807 = vmatprep.mubr.msk.bf16.mxu1 %vm25625_vm0, %v25624_v11 }
 0x9e1   :  { %22795 = vmatprep.subr.bf16.mxu1 %v25624_v11  ;;  %22788 = vmatpush3.bf16.msra.mxu0 %v27285_v51 }
 0x9e2   :  { %22811 = vmatprep.subr.bf16.mxu0 %v25624_v11 }
 0x9e4   :  { %22796 = vmatpush3.bf16.msra.mxu1 %v27290_v14 }
 0x9e5   :  { %22797 = vmatprep.subr.bf16.mxu1 %v25624_v11 }
 0x9e8   :  { %22798 = vmatpush3.bf16.msra.mxu1 %v27298_v12 }
 0x9e9   :  { %22799 = vmatprep.subr.bf16.mxu1 %v25624_v11 }
 0x9ec   :  { %22800 = vmatpush3.bf16.msra.mxu1 %v27302_v17 }
 0x9ed   :  { %22801 = vmatprep.subr.bf16.mxu1 %v25624_v11 }
 0x9f0   :  { %22802 = vmatpush3.bf16.msra.mxu1 %v27306_v38 }
 0x9f1   :  { %22803 = vmatprep.subr.bf16.mxu1 %v25624_v11 }
 0x9f4   :  { %22804 = vmatpush3.bf16.msra.mxu1 %v27310_v27 }
 0x9f5   :  { %22805 = vmatprep.subr.bf16.mxu1 %v25624_v11 }
 0x9f8   :  { %22806 = vmatpush3.bf16.msra.mxu1 %v27314_v28 }
 0x9f9   :  { %22829 = vmatprep.subr.bf16.mxu1 %v25624_v11 }
 0xa52   :  { %v10401_v59 = vpop.f32.mrb[180].mxu1  ;;  %v10491_v56 = vpop.f32.mrb[188].mxu0 }
 0xa53   :  { %v10402_v1 = vadd.f32 %v27319_v26, %v10401_v59  ;;  %v22645_v54 = vpop.f32.mrb[181].mxu1  ;;  %v22661_v10 = vpop.f32.mrb[189].mxu0  ;;  %v10492_v18 = vadd.f32 %v27319_v26, %v10491_v56 }
 0xa54   :  { %v10404_v13 = vpop.f32.mrb[182].mxu1  ;;  %v10494_v7 = vpop.f32.mrb[190].mxu0 }
 0xa55   :  { %v10407_v50 = vmax.f32 %v10402_v1, 0.0  ;;  %v22646_v42 = vpop.f32.mrb[183].mxu1  ;;  %v22662_v15 = vpop.f32.mrb[191].mxu0  ;;  %v10497_v3 = vmax.f32 %v10492_v18, 0.0 }
 0xa57   :  { %v10858_v45 = vpack.c.bf16 %v10407_v50, %v10407_v50  ;;  %v10965_v35 = vpack.c.bf16 %v10497_v3, %v10497_v3  ;;  %v24228_v3 = vld [vmem:[#allocation24 + $0x1c4] ss:$28 sps:$4 sm:$0xff]  }
 0xa59   :  { %22790 = vmatmul.mubr.msk.bf16.vlgmr.msra.gmra.mrb[204].mxu0 %vm8133_vm2, %v10858_v45  ;;  %22808 = vmatmul.mubr.msk.bf16.vlgmr.msra.gmra.mrb[200].mxu1 %vm8133_vm2, %v10858_v45 }
 0xa5a   :  { %22812 = vmatpush3.bf16.msra.mxu0 %v27322_v20  ;;  %22830 = vmatpush3.bf16.msra.mxu1 %v27242_v22 }
 0xa5b   :  { %22813 = vmatprep.subr.bf16.mxu0 %v25624_v11  ;;  %22831 = vmatprep.subr.bf16.mxu1 %v25624_v11 }
 0xa5c   :  { %22825 = vmatprep.mubr.msk.bf16.mxu0 %vm25625_vm0, %v25624_v11  ;;  %22843 = vmatprep.mubr.msk.bf16.mxu1 %vm25625_vm0, %v25624_v11 }
 0xa5e   :  { %22814 = vmatpush3.bf16.msra.mxu0 %v27328_v62  ;;  %22832 = vmatpush3.bf16.msra.mxu1 %v27251_v25 }
 0xa5f   :  { %22815 = vmatprep.subr.bf16.mxu0 %v25624_v11  ;;  %22833 = vmatprep.subr.bf16.mxu1 %v25624_v11 }
 0xa62   :  { %22816 = vmatpush3.bf16.msra.mxu0 %v27338_v8  ;;  %22834 = vmatpush3.bf16.msra.mxu1 %v27259_v48 }
 0xa63   :  { %22817 = vmatprep.subr.bf16.mxu0 %v25624_v11  ;;  %22835 = vmatprep.subr.bf16.mxu1 %v25624_v11 }
 0xa66   :  { %22818 = vmatpush3.bf16.msra.mxu0 %v27344_v5  ;;  %22836 = vmatpush3.bf16.msra.mxu1 %v27265_v21 }
 0xa67   :  { %22819 = vmatprep.subr.bf16.mxu0 %v25624_v11  ;;  %22837 = vmatprep.subr.bf16.mxu1 %v25624_v11 }
 0xa6a   :  { %v10582_v60 = vpop.f32.mrb[184].mxu1  ;;  %v10625_v19 = vpop.f32.mrb[192].mxu0  ;;  %22820 = vmatpush3.bf16.msra.mxu0 %v27350_v6  ;;  %22838 = vmatpush3.bf16.msra.mxu1 %v27271_v4 }
 0xa6b   :  { %v10626_v24 = vadd.f32 %v10625_v19, %v10582_v60  ;;  %v22677_v44 = vpop.f32.mrb[185].mxu1  ;;  %v22693_v2 = vpop.f32.mrb[193].mxu0  ;;  %22821 = vmatprep.subr.bf16.mxu0 %v25624_v11  ;;  %22839 = vmatprep.subr.bf16.mxu1 %v25624_v11 }
 0xa6c   :  { %v10585_v46 = vpop.f32.mrb[186].mxu1  ;;  %v10628_v16 = vpop.f32.mrb[194].mxu0 }
 0xa6d   :  { %v22678_v29 = vpop.f32.mrb[187].mxu1  ;;  %v22694_v53 = vpop.f32.mrb[195].mxu0  ;;  %v10631_v23 = vadd.f32 %v27319_v26, %v10626_v24 }
 0xa6e   :  { %22822 = vmatpush3.bf16.msra.mxu0 %v27356_v9  ;;  %22840 = vmatpush3.bf16.msra.mxu1 %v27277_v36 }
 0xa6f   :  { %22823 = vmatprep.subr.bf16.mxu0 %v25624_v11  ;;  %22841 = vmatprep.subr.bf16.mxu1 %v25624_v11  ;;  %v10632_v47 = vmax.f32 %v10631_v23, 0.0  ;;  %v24249_v23 = vld [vmem:[#allocation24 + $0x274] ss:$28 sps:$4 sm:$0xff]  }
 0xa71   :  { %v11191_v43 = vpack.c.bf16 %v10632_v47, %v10632_v47  ;;  %v24244_v47 = vld [vmem:[#allocation24 + $0x268] ss:$28 sps:$4 sm:$0xff]  }
 0xa72   :  { %22824 = vmatpush3.bf16.msra.mxu0 %v27363_v58  ;;  %22842 = vmatpush3.bf16.msra.mxu1 %v27285_v51 }
 0xa73   :  { %22847 = vmatprep.subr.bf16.mxu0 %v25624_v11  ;;  %22865 = vmatprep.subr.bf16.mxu1 %v25624_v11 }
 0xa75   :  { %22826 = vmatmul.mubr.msk.bf16.vlgmr.msra.gmra.mrb[208].mxu0 %vm8133_vm2, %v10965_v35  ;;  %22844 = vmatmul.mubr.msk.bf16.vlgmr.msra.gmra.mrb[204].mxu1 %vm8133_vm2, %v10965_v35 }
 0xa76   :  { %22848 = vmatpush3.bf16.msra.mxu0 %v27281_v55  ;;  %22866 = vmatpush3.bf16.msra.mxu1 %v27322_v20 }
 0xa77   :  { %22849 = vmatprep.subr.bf16.mxu0 %v25624_v11  ;;  %22867 = vmatprep.subr.bf16.mxu1 %v25624_v11 }
 0xa78   :  { %22861 = vmatprep.mubr.msk.bf16.mxu0 %vm25625_vm0, %v25624_v11  ;;  %22879 = vmatprep.mubr.msk.bf16.mxu1 %vm25625_vm0, %v25624_v11 }
 0xa7a   :  { %22850 = vmatpush3.bf16.msra.mxu0 %v27290_v14  ;;  %22868 = vmatpush3.bf16.msra.mxu1 %v27328_v62 }
 0xa7b   :  { %22851 = vmatprep.subr.bf16.mxu0 %v25624_v11  ;;  %22869 = vmatprep.subr.bf16.mxu1 %v25624_v11 }
 0xa7e   :  { %22852 = vmatpush3.bf16.msra.mxu0 %v27298_v12  ;;  %22870 = vmatpush3.bf16.msra.mxu1 %v27338_v8 }
 0xa7f   :  { %22853 = vmatprep.subr.bf16.mxu0 %v25624_v11  ;;  %22871 = vmatprep.subr.bf16.mxu1 %v25624_v11 }
 0xa82   :  { %v27389_v31 = vpop.f32.mrb[188].mxu1  ;;  %v10709_v32 = vpop.f32.mrb[196].mxu0  ;;  %22854 = vmatpush3.bf16.msra.mxu0 %v27302_v17  ;;  %22872 = vmatpush3.bf16.msra.mxu1 %v27344_v5 }
 0xa83   :  { %v22709_v37 = vpop.f32.mrb[189].mxu1  ;;  %v22725_v39 = vpop.f32.mrb[197].mxu0  ;;  %22855 = vmatprep.subr.bf16.mxu0 %v25624_v11  ;;  %22873 = vmatprep.subr.bf16.mxu1 %v25624_v11  ;;  %v10668_v7 = vadd.f32 %v27319_v26, %v27389_v31  ;;  %v24234_v31 = vld [vmem:[#allocation24 + $0x1fc] ss:$28 sps:$4 sm:$0xff]  }
 0xa84   :  { %v10670_v30 = vpop.f32.mrb[190].mxu1  ;;  %v10712_v40 = vpop.f32.mrb[198].mxu0  ;;  %v24235_v37 = vld [vmem:[#allocation24 + $0x200] ss:$28 sps:$4 sm:$0xff]   ;;  %v24240_v39 = vld [vmem:[#allocation24 + $0x234] ss:$28 sps:$4 sm:$0xff]  }
 0xa85   :  { %v22710_v34 = vpop.f32.mrb[191].mxu1  ;;  %v22726_v41 = vpop.f32.mrb[199].mxu0  ;;  %v10673_v50 = vmax.f32 %v10668_v7, 0.0  ;;  %v24243_v30 = vld [vmem:[#allocation24 + $0x23c] ss:$28 sps:$4 sm:$0xff]  }
 0xa86   :  { %22856 = vmatpush3.bf16.msra.mxu0 %v27306_v38  ;;  %22874 = vmatpush3.bf16.msra.mxu1 %v27350_v6  ;;  %v24238_v40 = vld [vmem:[#allocation24 + $0x230] ss:$28 sps:$4 sm:$0xff]   ;;  %v24241_v34 = vld [vmem:[#allocation24 + $0x238] ss:$28 sps:$4 sm:$0xff]  }
 0xa87   :  { %22857 = vmatprep.subr.bf16.mxu0 %v25624_v11  ;;  %22875 = vmatprep.subr.bf16.mxu1 %v25624_v11  ;;  %v11318_v42 = vpack.c.bf16 %v10673_v50, %v10673_v50  ;;  %v24246_v41 = vld [vmem:[#allocation24 + $0x26c] ss:$28 sps:$4 sm:$0xff]  }
 0xa8a   :  { %22858 = vmatpush3.bf16.msra.mxu0 %v27310_v27  ;;  %22876 = vmatpush3.bf16.msra.mxu1 %v27356_v9 }
 0xa8b   :  { %22859 = vmatprep.subr.bf16.mxu0 %v25624_v11  ;;  %22877 = vmatprep.subr.bf16.mxu1 %v25624_v11 }
 0xa8e   :  { %22860 = vmatpush3.bf16.msra.mxu0 %v27314_v28  ;;  %22878 = vmatpush3.bf16.msra.mxu1 %v27363_v58 }
 0xa8f   :  { %22883 = vmatprep.subr.bf16.mxu0 %v25624_v11  ;;  %22901 = vmatprep.subr.bf16.mxu1 %v25624_v11 }
 0xa91   :  { %22862 = vmatmul.mubr.msk.bf16.vlgmr.msra.gmra.mrb[212].mxu0 %vm8133_vm2, %v10965_v35  ;;  %22880 = vmatmul.mubr.msk.bf16.vlgmr.msra.gmra.mrb[208].mxu1 %vm8133_vm2, %v11191_v43  ;;  %v24231_v35 = vld [vmem:[#allocation24 + $0x1cc] ss:$28 sps:$4 sm:$0xff]  }
 0xa92   :  { %22884 = vmatpush3.bf16.msra.mxu0 %v27242_v22  ;;  %22902 = vmatpush3.bf16.msra.mxu1 %v27281_v55 }
 0xa93   :  { %22885 = vmatprep.subr.bf16.mxu0 %v25624_v11  ;;  %22903 = vmatprep.subr.bf16.mxu1 %v25624_v11 }
 0xa94   :  { %22897 = vmatprep.mubr.msk.bf16.mxu0 %vm25625_vm0, %v25624_v11  ;;  %22915 = vmatprep.mubr.msk.bf16.mxu1 %vm25625_vm0, %v25624_v11 }
 0xa96   :  { %22886 = vmatpush3.bf16.msra.mxu0 %v27251_v25  ;;  %22904 = vmatpush3.bf16.msra.mxu1 %v27290_v14 }
 0xa97   :  { %22887 = vmatprep.subr.bf16.mxu0 %v25624_v11  ;;  %22905 = vmatprep.subr.bf16.mxu1 %v25624_v11 }
 0xa9a   :  { %v10752_v33 = vpop.f32.mrb[192].mxu1  ;;  %v27422_v49 = vpop.f32.mrb[200].mxu0  ;;  %22888 = vmatpush3.bf16.msra.mxu0 %v27259_v48  ;;  %22906 = vmatpush3.bf16.msra.mxu1 %v27298_v12 }
 0xa9b   :  { %v27426_v52 = vadd.f32 %v10752_v33, %v10709_v32  ;;  %v22741_v57 = vpop.f32.mrb[193].mxu1  ;;  %v22757_v61 = vpop.f32.mrb[201].mxu0  ;;  %22889 = vmatprep.subr.bf16.mxu0 %v25624_v11  ;;  %22907 = vmatprep.subr.bf16.mxu1 %v25624_v11  ;;  %v10795_v19 = vadd.f32 %v27319_v26, %v27422_v49  ;;  %v25626_v32 = vmov 0   ;;  %v24252_v33 = vld [vmem:[#allocation24 + $0x2a4] ss:$28 sps:$4 sm:$0xff]  }
 0xa9c   :  { %v10755_v63 = vpop.f32.mrb[194].mxu1  ;;  %v10797_v0 = vpop.f32.mrb[202].mxu0  ;;  %v24255_v49 = vld [vmem:[#allocation24 + $0x2ac] ss:$28 sps:$4 sm:$0xff]   ;;  %v27668_v61 = vld [vmem:[#allocation22] ss:$0 sm:$0xff] }
 0xa9d   :  { %v22742_v59 = vpop.f32.mrb[195].mxu1  ;;  %v22758_v56 = vpop.f32.mrb[203].mxu0  ;;  %v10758_v15 = vadd.f32 %v27319_v26, %v27426_v52  ;;  %v10800_v18 = vmax.f32 %v10795_v19, 0.0 }
 0xa9e   :  { %22890 = vmatpush3.bf16.msra.mxu0 %v27265_v21  ;;  %22908 = vmatpush3.bf16.msra.mxu1 %v27302_v17 }
 0xa9f   :  { %22891 = vmatprep.subr.bf16.mxu0 %v25624_v11  ;;  %22909 = vmatprep.subr.bf16.mxu1 %v25624_v11  ;;  %v10759_v45 = vmax.f32 %v10758_v15, 0.0  ;;  %v11572_v24 = vpack.c.bf16 %v10800_v18, %v10800_v18  ;;  %v24261_v15 = vld [vmem:[#allocation24 + $0x2e4] ss:$28 sps:$4 sm:$0xff]   ;;  %v24264_v18 = vld [vmem:[#allocation24 + $0x19c] ss:$28 sps:$4 sm:$0xff]  }
 0xaa1   :  { %v11445_v60 = vpack.c.bf16 %v10759_v45, %v10759_v45  ;;  %v24256_v45 = vld [vmem:[#allocation24 + $0x2d8] ss:$28 sps:$4 sm:$0xff]  }
 0xaa2   :  { %22892 = vmatpush3.bf16.msra.mxu0 %v27271_v4  ;;  %22910 = vmatpush3.bf16.msra.mxu1 %v27306_v38 }
 0xaa3   :  { %22893 = vmatprep.subr.bf16.mxu0 %v25624_v11  ;;  %22911 = vmatprep.subr.bf16.mxu1 %v25624_v11 }
 0xaa6   :  { %22894 = vmatpush3.bf16.msra.mxu0 %v27277_v36  ;;  %22912 = vmatpush3.bf16.msra.mxu1 %v27310_v27 }
 0xaa7   :  { %22895 = vmatprep.subr.bf16.mxu0 %v25624_v11  ;;  %22913 = vmatprep.subr.bf16.mxu1 %v25624_v11 }
 0xaaa   :  { %22896 = vmatpush3.bf16.msra.mxu0 %v27285_v51  ;;  %22914 = vmatpush3.bf16.msra.mxu1 %v27314_v28 }
 0xaab   :  { %22919 = vmatprep.subr.bf16.mxu0 %v25624_v11  ;;  %22937 = vmatprep.subr.bf16.mxu1 %v25624_v11 }
 0xaad   :  { %22898 = vmatmul.mubr.msk.bf16.vlgmr.msra.gmra.mrb[216].mxu0 %vm8133_vm2, %v11191_v43  ;;  %22916 = vmatmul.mubr.msk.bf16.vlgmr.msra.gmra.mrb[212].mxu1 %vm8133_vm2, %v11191_v43  ;;  %v24247_v43 = vld [vmem:[#allocation24 + $0x270] ss:$28 sps:$4 sm:$0xff]  }
 0xaae   :  { %22920 = vmatpush3.bf16.msra.mxu0 %v27322_v20  ;;  %22938 = vmatpush3.bf16.msra.mxu1 %v27242_v22 }
 0xaaf   :  { %22921 = vmatprep.subr.bf16.mxu0 %v25624_v11  ;;  %22939 = vmatprep.subr.bf16.mxu1 %v25624_v11 }
 0xab0   :  { %22933 = vmatprep.mubr.msk.bf16.mxu0 %vm25625_vm0, %v25624_v11  ;;  %22951 = vmatprep.mubr.msk.bf16.mxu1 %vm25625_vm0, %v25624_v11 }
 0xab2   :  { %v27456_v1 = vpop.f32.mrb[196].mxu1  ;;  %22922 = vmatpush3.bf16.msra.mxu0 %v27328_v62  ;;  %22940 = vmatpush3.bf16.msra.mxu1 %v27251_v25 }
 0xab3   :  { %v22773_v54 = vpop.f32.mrb[197].mxu1  ;;  %22923 = vmatprep.subr.bf16.mxu0 %v25624_v11  ;;  %22941 = vmatprep.subr.bf16.mxu1 %v25624_v11  ;;  %v10836_v16 = vadd.f32 %v27319_v26, %v27456_v1 }
 0xab4   :  { %v10838_v10 = vpop.f32.mrb[198].mxu1  ;;  %v24250_v54 = vld [vmem:[#allocation24 + $0x2a0] ss:$28 sps:$4 sm:$0xff]  }
 0xab5   :  { %v22774_v13 = vpop.f32.mrb[199].mxu1  ;;  %v10841_v53 = vmax.f32 %v10836_v16, 0.0  ;;  %v24253_v10 = vld [vmem:[#allocation24 + $0x2a8] ss:$28 sps:$4 sm:$0xff]  }
 0xab6   :  { %22924 = vmatpush3.bf16.msra.mxu0 %v27338_v8  ;;  %22942 = vmatpush3.bf16.msra.mxu1 %v27259_v48  ;;  %v24272_v16 = vld [vmem:[#allocation24 + $0x20c] ss:$28 sps:$4 sm:$0xff]  }
 0xab7   :  { %22925 = vmatprep.subr.bf16.mxu0 %v25624_v11  ;;  %22943 = vmatprep.subr.bf16.mxu1 %v25624_v11  ;;  %v11699_v26 = vpack.c.bf16 %v10841_v53, %v10841_v53  ;;  %v24276_v53 = vld [vmem:[#allocation24 + $0x244] ss:$28 sps:$4 sm:$0xff]  }
 0xaba   :  { %22926 = vmatpush3.bf16.msra.mxu0 %v27344_v5  ;;  %22944 = vmatpush3.bf16.msra.mxu1 %v27265_v21 }
 0xabb   :  { %22927 = vmatprep.subr.bf16.mxu0 %v25624_v11  ;;  %22945 = vmatprep.subr.bf16.mxu1 %v25624_v11 }
 0xabe   :  { %22928 = vmatpush3.bf16.msra.mxu0 %v27350_v6  ;;  %22946 = vmatpush3.bf16.msra.mxu1 %v27271_v4 }
 0xabf   :  { %22929 = vmatprep.subr.bf16.mxu0 %v25624_v11  ;;  %22947 = vmatprep.subr.bf16.mxu1 %v25624_v11 }
 0xac2   :  { %22930 = vmatpush3.bf16.msra.mxu0 %v27356_v9  ;;  %22948 = vmatpush3.bf16.msra.mxu1 %v27277_v36 }
 0xac3   :  { %22931 = vmatprep.subr.bf16.mxu0 %v25624_v11  ;;  %22949 = vmatprep.subr.bf16.mxu1 %v25624_v11 }
 0xac6   :  { %22932 = vmatpush3.bf16.msra.mxu0 %v27363_v58  ;;  %22950 = vmatpush3.bf16.msra.mxu1 %v27285_v51 }
 0xac7   :  { %22955 = vmatprep.subr.bf16.mxu0 %v25624_v11  ;;  %22973 = vmatprep.subr.bf16.mxu1 %v25624_v11 }
 0xac9   :  { %22934 = vmatmul.mubr.msk.bf16.vlgmr.msra.gmra.mrb[220].mxu0 %vm8133_vm2, %v11318_v42  ;;  %22952 = vmatmul.mubr.msk.bf16.vlgmr.msra.gmra.mrb[216].mxu1 %vm8133_vm2, %v11318_v42 }
 0xaca   :  { %22956 = vmatpush3.bf16.msra.mxu0 %v27281_v55  ;;  %22974 = vmatpush3.bf16.msra.mxu1 %v27322_v20 }
 0xacb   :  { %22957 = vmatprep.subr.bf16.mxu0 %v25624_v11  ;;  %22975 = vmatprep.subr.bf16.mxu1 %v25624_v11 }
 0xacc   :  { %22969 = vmatprep.mubr.msk.bf16.mxu0 %vm25625_vm0, %v25624_v11  ;;  %22987 = vmatprep.mubr.msk.bf16.mxu1 %vm25625_vm0, %v25624_v11 }
 0xace   :  { %22958 = vmatpush3.bf16.msra.mxu0 %v27290_v14  ;;  %22976 = vmatpush3.bf16.msra.mxu1 %v27328_v62 }
 0xacf   :  { %22959 = vmatprep.subr.bf16.mxu0 %v25624_v11  ;;  %22977 = vmatprep.subr.bf16.mxu1 %v25624_v11 }
 0xad2   :  { %22960 = vmatpush3.bf16.msra.mxu0 %v27298_v12  ;;  %22978 = vmatpush3.bf16.msra.mxu1 %v27338_v8 }
 0xad3   :  { %22961 = vmatprep.subr.bf16.mxu0 %v25624_v11  ;;  %22979 = vmatprep.subr.bf16.mxu1 %v25624_v11 }
 0xad6   :  { %22962 = vmatpush3.bf16.msra.mxu0 %v27302_v17  ;;  %22980 = vmatpush3.bf16.msra.mxu1 %v27344_v5 }
 0xad7   :  { %22963 = vmatprep.subr.bf16.mxu0 %v25624_v11  ;;  %22981 = vmatprep.subr.bf16.mxu1 %v25624_v11 }
 0xada   :  { %22964 = vmatpush3.bf16.msra.mxu0 %v27306_v38  ;;  %22982 = vmatpush3.bf16.msra.mxu1 %v27350_v6 }
 0xadb   :  { %22965 = vmatprep.subr.bf16.mxu0 %v25624_v11  ;;  %22983 = vmatprep.subr.bf16.mxu1 %v25624_v11 }
 0xade   :  { %22966 = vmatpush3.bf16.msra.mxu0 %v27310_v27  ;;  %22984 = vmatpush3.bf16.msra.mxu1 %v27356_v9 }
 0xadf   :  { %22967 = vmatprep.subr.bf16.mxu0 %v25624_v11  ;;  %22985 = vmatprep.subr.bf16.mxu1 %v25624_v11 }
 0xae2   :  { %22968 = vmatpush3.bf16.msra.mxu0 %v27314_v28  ;;  %22986 = vmatpush3.bf16.msra.mxu1 %v27363_v58 }
 0xae3   :  { %22991 = vmatprep.subr.bf16.mxu0 %v25624_v11  ;;  %23009 = vmatprep.subr.bf16.mxu1 %v25624_v11 }
 0xae5   :  { %22970 = vmatmul.mubr.msk.bf16.vlgmr.msra.gmra.mrb[224].mxu0 %vm8133_vm2, %v11318_v42  ;;  %22988 = vmatmul.mubr.msk.bf16.vlgmr.msra.gmra.mrb[220].mxu1 %vm8133_vm2, %v11445_v60  ;;  %v24258_v42 = vld [vmem:[#allocation24 + $0x2dc] ss:$28 sps:$4 sm:$0xff]  }
 0xae6   :  { %22992 = vmatpush3.bf16.msra.mxu0 %v27242_v22  ;;  %23010 = vmatpush3.bf16.msra.mxu1 %v27281_v55 }
 0xae7   :  { %22993 = vmatprep.subr.bf16.mxu0 %v25624_v11  ;;  %23011 = vmatprep.subr.bf16.mxu1 %v25624_v11 }
 0xae8   :  { %23005 = vmatprep.mubr.msk.bf16.mxu0 %vm25625_vm0, %v25624_v11  ;;  %23023 = vmatprep.mubr.msk.bf16.mxu1 %vm25625_vm0, %v25624_v11 }
 0xaea   :  { %22994 = vmatpush3.bf16.msra.mxu0 %v27251_v25  ;;  %23012 = vmatpush3.bf16.msra.mxu1 %v27290_v14 }
 0xaeb   :  { %22995 = vmatprep.subr.bf16.mxu0 %v25624_v11  ;;  %23013 = vmatprep.subr.bf16.mxu1 %v25624_v11 }
 0xaee   :  { %22996 = vmatpush3.bf16.msra.mxu0 %v27259_v48  ;;  %23014 = vmatpush3.bf16.msra.mxu1 %v27298_v12 }
 0xaef   :  { %22997 = vmatprep.subr.bf16.mxu0 %v25624_v11  ;;  %23015 = vmatprep.subr.bf16.mxu1 %v25624_v11 }
 0xaf2   :  { %22998 = vmatpush3.bf16.msra.mxu0 %v27265_v21  ;;  %23016 = vmatpush3.bf16.msra.mxu1 %v27302_v17 }
 0xaf3   :  { %22999 = vmatprep.subr.bf16.mxu0 %v25624_v11  ;;  %23017 = vmatprep.subr.bf16.mxu1 %v25624_v11 }
 0xaf6   :  { %23000 = vmatpush3.bf16.msra.mxu0 %v27271_v4  ;;  %23018 = vmatpush3.bf16.msra.mxu1 %v27306_v38 }
 0xaf7   :  { %23001 = vmatprep.subr.bf16.mxu0 %v25624_v11  ;;  %23019 = vmatprep.subr.bf16.mxu1 %v25624_v11 }
 0xafa   :  { %23002 = vmatpush3.bf16.msra.mxu0 %v27277_v36  ;;  %23020 = vmatpush3.bf16.msra.mxu1 %v27310_v27 }
 0xafb   :  { %23003 = vmatprep.subr.bf16.mxu0 %v25624_v11  ;;  %23021 = vmatprep.subr.bf16.mxu1 %v25624_v11 }
 0xafe   :  { %23004 = vmatpush3.bf16.msra.mxu0 %v27285_v51  ;;  %23022 = vmatpush3.bf16.msra.mxu1 %v27314_v28 }
 0xaff   :  { %23027 = vmatprep.subr.bf16.mxu0 %v25624_v11  ;;  %23045 = vmatprep.subr.bf16.mxu1 %v25624_v11 }
 0xb01   :  { %23006 = vmatmul.mubr.msk.bf16.vlgmr.msra.gmra.mrb[228].mxu0 %vm8133_vm2, %v11445_v60  ;;  %23024 = vmatmul.mubr.msk.bf16.vlgmr.msra.gmra.mrb[224].mxu1 %vm8133_vm2, %v11445_v60  ;;  %v24259_v60 = vld [vmem:[#allocation24 + $0x2e0] ss:$28 sps:$4 sm:$0xff]  }
 0xb02   :  { %23028 = vmatpush3.bf16.msra.mxu0 %v27322_v20  ;;  %23046 = vmatpush3.bf16.msra.mxu1 %v27242_v22 }
 0xb03   :  { %23029 = vmatprep.subr.bf16.mxu0 %v25624_v11  ;;  %23047 = vmatprep.subr.bf16.mxu1 %v25624_v11 }
 0xb04   :  { %23041 = vmatprep.mubr.msk.bf16.mxu0 %vm25625_vm0, %v25624_v11  ;;  %23059 = vmatprep.mubr.msk.bf16.mxu1 %vm25625_vm0, %v25624_v11 }
 0xb06   :  { %23030 = vmatpush3.bf16.msra.mxu0 %v27328_v62  ;;  %23048 = vmatpush3.bf16.msra.mxu1 %v27251_v25 }
 0xb07   :  { %23031 = vmatprep.subr.bf16.mxu0 %v25624_v11  ;;  %23049 = vmatprep.subr.bf16.mxu1 %v25624_v11 }
 0xb0a   :  { %23032 = vmatpush3.bf16.msra.mxu0 %v27338_v8  ;;  %23050 = vmatpush3.bf16.msra.mxu1 %v27259_v48 }
 0xb0b   :  { %23033 = vmatprep.subr.bf16.mxu0 %v25624_v11  ;;  %23051 = vmatprep.subr.bf16.mxu1 %v25624_v11 }
 0xb0e   :  { %23034 = vmatpush3.bf16.msra.mxu0 %v27344_v5  ;;  %23052 = vmatpush3.bf16.msra.mxu1 %v27265_v21 }
 0xb0f   :  { %23035 = vmatprep.subr.bf16.mxu0 %v25624_v11  ;;  %23053 = vmatprep.subr.bf16.mxu1 %v25624_v11 }
 0xb12   :  { %23036 = vmatpush3.bf16.msra.mxu0 %v27350_v6  ;;  %23054 = vmatpush3.bf16.msra.mxu1 %v27271_v4 }
 0xb13   :  { %23037 = vmatprep.subr.bf16.mxu0 %v25624_v11  ;;  %23055 = vmatprep.subr.bf16.mxu1 %v25624_v11 }
 0xb16   :  { %23038 = vmatpush3.bf16.msra.mxu0 %v27356_v9  ;;  %23056 = vmatpush3.bf16.msra.mxu1 %v27277_v36 }
 0xb17   :  { %23039 = vmatprep.subr.bf16.mxu0 %v25624_v11  ;;  %23057 = vmatprep.subr.bf16.mxu1 %v25624_v11 }
 0xb1a   :  { %23040 = vmatpush3.bf16.msra.mxu0 %v27363_v58  ;;  %23058 = vmatpush3.bf16.msra.mxu1 %v27285_v51 }
 0xb1b   :  { %23063 = vmatprep.subr.bf16.mxu0 %v25624_v11  ;;  %23081 = vmatprep.subr.bf16.mxu1 %v25624_v11 }
 0xb1d   :  { %23042 = vmatmul.mubr.msk.bf16.vlgmr.msra.gmra.mrb[232].mxu0 %vm8133_vm2, %v11572_v24  ;;  %23060 = vmatmul.mubr.msk.bf16.vlgmr.msra.gmra.mrb[228].mxu1 %vm8133_vm2, %v11572_v24 }
 0xb1e   :  { %23064 = vmatpush3.bf16.msra.mxu0 %v27281_v55  ;;  %23082 = vmatpush3.bf16.msra.mxu1 %v27322_v20 }
 0xb1f   :  { %23065 = vmatprep.subr.bf16.mxu0 %v25624_v11  ;;  %23083 = vmatprep.subr.bf16.mxu1 %v25624_v11 }
 0xb20   :  { %23077 = vmatprep.mubr.msk.bf16.mxu0 %vm25625_vm0, %v25624_v11  ;;  %23095 = vmatprep.mubr.msk.bf16.mxu1 %vm25625_vm0, %v25624_v11 }
 0xb22   :  { %23066 = vmatpush3.bf16.msra.mxu0 %v27290_v14  ;;  %23084 = vmatpush3.bf16.msra.mxu1 %v27328_v62 }
 0xb23   :  { %23067 = vmatprep.subr.bf16.mxu0 %v25624_v11  ;;  %23085 = vmatprep.subr.bf16.mxu1 %v25624_v11 }
 0xb26   :  { %23068 = vmatpush3.bf16.msra.mxu0 %v27298_v12  ;;  %23086 = vmatpush3.bf16.msra.mxu1 %v27338_v8 }
 0xb27   :  { %23069 = vmatprep.subr.bf16.mxu0 %v25624_v11  ;;  %23087 = vmatprep.subr.bf16.mxu1 %v25624_v11 }
 0xb2a   :  { %23070 = vmatpush3.bf16.msra.mxu0 %v27302_v17  ;;  %23088 = vmatpush3.bf16.msra.mxu1 %v27344_v5 }
 0xb2b   :  { %23071 = vmatprep.subr.bf16.mxu0 %v25624_v11  ;;  %23089 = vmatprep.subr.bf16.mxu1 %v25624_v11 }
 0xb2c   :  { %v27612_v20 = vpop.f32.mrb[204].mxu0  ;;  %v11057_v62 = vpop.f32.mrb[200].mxu1 }
 0xb2d   :  { %v22791_v44 = vpop.f32.mrb[205].mxu0  ;;  %v22809_v2 = vpop.f32.mrb[201].mxu1 }
 0xb2e   :  { %23072 = vmatpush3.bf16.msra.mxu0 %v27306_v38  ;;  %23090 = vmatpush3.bf16.msra.mxu1 %v27350_v6  ;;  %v10947_v8 = vpop.f32.mrb[206].mxu0  ;;  %v11060_v46 = vpop.f32.mrb[202].mxu1  ;;  %v24268_v2 = vld [vmem:[#allocation24 + $0x1d4] ss:$28 sps:$4 sm:$0xff]  }
 0xb2f   :  { %v22792_v29 = vpop.f32.mrb[207].mxu0  ;;  %v22810_v5 = vpop.f32.mrb[203].mxu1  ;;  %23073 = vmatprep.subr.bf16.mxu0 %v25624_v11  ;;  %23091 = vmatprep.subr.bf16.mxu1 %v25624_v11  ;;  %v24266_v8 = vld [vmem:[#allocation24 + $0x1d0] ss:$28 sps:$4 sm:$0xff]   ;;  %v24269_v46 = vld [vmem:[#allocation24 + $0x1d8] ss:$28 sps:$4 sm:$0xff]  }
 0xb30   :  { %v24270_v29 = vld [vmem:[#allocation24 + $0x208] ss:$28 sps:$4 sm:$0xff]   ;;  %v24273_v5 = vld [vmem:[#allocation24 + $0x210] ss:$28 sps:$4 sm:$0xff]  }
 0xb32   :  { %23074 = vmatpush3.bf16.msra.mxu0 %v27310_v27  ;;  %23092 = vmatpush3.bf16.msra.mxu1 %v27356_v9 }
 0xb33   :  { %23075 = vmatprep.subr.bf16.mxu0 %v25624_v11  ;;  %23093 = vmatprep.subr.bf16.mxu1 %v25624_v11 }
 0xb36   :  { %23076 = vmatpush3.bf16.msra.mxu0 %v27314_v28  ;;  %23094 = vmatpush3.bf16.msra.mxu1 %v27363_v58  ;;  %v24225_v58 = vld [vmem:[#allocation24 + $0x194] ss:$28 sps:$4 sm:$0xff]  }
 0xb37   :  { %23099 = vmatprep.subr.bf16.mxu0 %v25624_v11  ;;  %23117 = vmatprep.subr.bf16.mxu1 %v25624_v11 }
 0xb39   :  { %23078 = vmatmul.mubr.msk.bf16.vlgmr.msra.gmra.mrb[236].mxu0 %vm8133_vm2, %v11572_v24  ;;  %23096 = vmatmul.mubr.msk.bf16.vlgmr.msra.gmra.mrb[232].mxu1 %vm8133_vm2, %v11699_v26  ;;  %v24262_v24 = vld [vmem:[#allocation24 + $0x198] ss:$28 sps:$4 sm:$0xff]  }
 0xb3a   :  { %23100 = vmatpush3.bf16.msra.mxu0 %v27242_v22  ;;  %23118 = vmatpush3.bf16.msra.mxu1 %v27281_v55 }
 0xb3b   :  { %23101 = vmatprep.subr.bf16.mxu0 %v25624_v11  ;;  %23119 = vmatprep.subr.bf16.mxu1 %v25624_v11 }
 0xb3c   :  { %23113 = vmatprep.mubr.msk.bf16.mxu0 %vm25625_vm0, %v25624_v11  ;;  %23131 = vmatprep.mubr.msk.bf16.mxu1 %vm25625_vm0, %v25624_v11 }
 0xb3e   :  { %23102 = vmatpush3.bf16.msra.mxu0 %v27251_v25  ;;  %23120 = vmatpush3.bf16.msra.mxu1 %v27290_v14 }
 0xb3f   :  { %23103 = vmatprep.subr.bf16.mxu0 %v25624_v11  ;;  %23121 = vmatprep.subr.bf16.mxu1 %v25624_v11 }
 0xb42   :  { %23104 = vmatpush3.bf16.msra.mxu0 %v27259_v48  ;;  %23122 = vmatpush3.bf16.msra.mxu1 %v27298_v12 }
 0xb43   :  { %23105 = vmatprep.subr.bf16.mxu0 %v25624_v11  ;;  %23123 = vmatprep.subr.bf16.mxu1 %v25624_v11 }
 0xb46   :  { %23106 = vmatpush3.bf16.msra.mxu0 %v27265_v21  ;;  %23124 = vmatpush3.bf16.msra.mxu1 %v27302_v17  ;;  %v24222_v17 = vld [vmem:[#allocation24 + $0x18c] ss:$28 sps:$4 sm:$0xff]  }
 0xb47   :  { %23107 = vmatprep.subr.bf16.mxu0 %v25624_v11  ;;  %23125 = vmatprep.subr.bf16.mxu1 %v25624_v11 }
 0xb48   :  { %v11142_v22 = vpop.f32.mrb[208].mxu0  ;;  %v27650_v25 = vpop.f32.mrb[204].mxu1 }
 0xb49   :  { %v27652_v55 = vadd.f32 %v11142_v22, %v11057_v62  ;;  %v22827_v48 = vpop.f32.mrb[209].mxu0  ;;  %v22845_v14 = vpop.f32.mrb[205].mxu1  ;;  %v24265_v62 = vld [vmem:[#allocation24 + $0x1a0] ss:$28 sps:$4 sm:$0xff]   ;;  %v24277_v22 = vld [vmem:[#allocation24 + $0x248] ss:$28 sps:$4 sm:$0xff]  }
 0xb4a   :  { %v11145_v12 = vpop.f32.mrb[210].mxu0  ;;  %v11187_v6 = vpop.f32.mrb[206].mxu1  ;;  %23108 = vmatpush3.bf16.msra.mxu0 %v27271_v4  ;;  %23126 = vmatpush3.bf16.msra.mxu1 %v27306_v38  ;;  %v24220_v4 = vld [vmem:[#allocation24 + $0x188] ss:$28 sps:$4 sm:$0xff]   ;;  %v24223_v38 = vld [vmem:[#allocation24 + $0x190] ss:$28 sps:$4 sm:$0xff]  }
 0xb4b   :  { %v22828_v21 = vpop.f32.mrb[211].mxu0  ;;  %v22846_v9 = vpop.f32.mrb[207].mxu1  ;;  %23109 = vmatprep.subr.bf16.mxu0 %v25624_v11  ;;  %23127 = vmatprep.subr.bf16.mxu1 %v25624_v11  ;;  %v11148_v13 = vadd.f32 %v27668_v61, %v27652_v55  ;;  %v24280_v55 = vld [vmem:[#allocation24 + $0x27c] ss:$28 sps:$4 sm:$0xff]   ;;  %v24284_v12 = vld [vmem:[#allocation24 + $0x2b4] ss:$28 sps:$4 sm:$0xff]  }
 0xb4c   :  { %v24278_v48 = vld [vmem:[#allocation24 + $0x278] ss:$28 sps:$4 sm:$0xff]   ;;  %v24281_v14 = vld [vmem:[#allocation24 + $0x280] ss:$28 sps:$4 sm:$0xff]  }
 0xb4d   :  { %v11149_v19 = vmax.f32 %v11148_v13, 0.0  ;;  %v24322_v13 = vld [vmem:[#allocation24 + $0x11c] ss:$28 sps:$4 sm:$0xff]  }
 0xb4e   :  { %23110 = vmatpush3.bf16.msra.mxu0 %v27277_v36  ;;  %23128 = vmatpush3.bf16.msra.mxu1 %v27310_v27  ;;  %v24226_v36 = vld [vmem:[#allocation24 + $0x1c0] ss:$28 sps:$4 sm:$0xff]   ;;  %v24229_v27 = vld [vmem:[#allocation24 + $0x1c8] ss:$28 sps:$4 sm:$0xff]  }
 0xb4f   :  { %23111 = vmatprep.subr.bf16.mxu0 %v25624_v11  ;;  %23129 = vmatprep.subr.bf16.mxu1 %v25624_v11  ;;  %v27674_v44 = vpack.c.bf16 %v11149_v19, %v11149_v19 }
 0xb52   :  { %23112 = vmatpush3.bf16.msra.mxu0 %v27285_v51  ;;  %23130 = vmatpush3.bf16.msra.mxu1 %v27314_v28  ;;  %v24237_v51 = vld [vmem:[#allocation24 + $0x204] ss:$28 sps:$4 sm:$0xff]   ;;  %v24232_v28 = vld [vmem:[#allocation24 + $0x1f8] ss:$28 sps:$4 sm:$0xff]  }
 0xb53   :  { %12237 = vmatprep.subr.bf16.mxu0 %v24222_v17  ;;  %12278 = vmatprep.subr.bf16.mxu1 %v24225_v58 }
 0xb55   :  { %23114 = vmatmul.mubr.msk.bf16.vlgmr.msra.gmra.mrb[240].mxu0 %vm8133_vm2, %v11699_v26  ;;  %23132 = vmatmul.mubr.msk.bf16.vlgmr.msra.gmra.mrb[236].mxu1 %vm8133_vm2, %v11699_v26  ;;  %v24274_v26 = vld [vmem:[#allocation24 + $0x240] ss:$28 sps:$4 sm:$0xff]  }
 0xb56   :  { %12238 = vmatpush1.bf16.msra.mxu0 %v24220_v4  ;;  %12279 = vmatpush1.bf16.msra.mxu1 %v24223_v38  ;;  %v24282_v38 = vld [vmem:[#allocation24 + $0x2b0] ss:$28 sps:$4 sm:$0xff]  }
 0xb57   :  { %12239 = vmatprep.subr.bf16.mxu0 %v24228_v3  ;;  %12280 = vmatprep.subr.bf16.mxu1 %v24231_v35  ;;  %v24285_v3 = vld [vmem:[#allocation24 + $0x2b8] ss:$28 sps:$4 sm:$0xff]  }
 0xb58   :  { %12269 = vmatprep.mubr.bf16.mxu0 %v25626_v32  ;;  %12310 = vmatprep.mubr.bf16.mxu1 %v25626_v32 }
 0xb5a   :  { %12240 = vmatpush1.bf16.msra.mxu0 %v24226_v36  ;;  %12281 = vmatpush1.bf16.msra.mxu1 %v24229_v27  ;;  %v24288_v27 = vld [vmem:[#allocation24 + $0x2ec] ss:$28 sps:$4 sm:$0xff]  }
 0xb5b   :  { %12241 = vmatprep.subr.bf16.mxu0 %v24234_v31  ;;  %12282 = vmatprep.subr.bf16.mxu1 %v24237_v51  ;;  %v24286_v31 = vld [vmem:[#allocation24 + $0x2e8] ss:$28 sps:$4 sm:$0xff]   ;;  %v24289_v51 = vld [vmem:[#allocation24 + $0x2f0] ss:$28 sps:$4 sm:$0xff]  }
 0xb5e   :  { %12242 = vmatpush1.bf16.msra.mxu0 %v24232_v28  ;;  %12283 = vmatpush1.bf16.msra.mxu1 %v24235_v37  ;;  %v24292_v28 = vld [vmem:[#allocation24 + $0x4] ss:$28 sps:$4 sm:$0xff]   ;;  %v24295_v37 = vld [vmem:[#allocation24 + $0xc] ss:$28 sps:$4 sm:$0xff]  }
 0xb5f   :  { %12243 = vmatprep.subr.bf16.mxu0 %v24240_v39  ;;  %12284 = vmatprep.subr.bf16.mxu1 %v24243_v30  ;;  %v24290_v39 = vld [vmem:[#allocation24] ss:$28 sps:$4 sm:$0xff]   ;;  %v24293_v30 = vld [vmem:[#allocation24 + $0x8] ss:$28 sps:$4 sm:$0xff]  }
 0xb62   :  { %12244 = vmatpush1.bf16.msra.mxu0 %v24238_v40  ;;  %12285 = vmatpush1.bf16.msra.mxu1 %v24241_v34  ;;  %v24298_v40 = vld [vmem:[#allocation24 + $0x3c] ss:$28 sps:$4 sm:$0xff]   ;;  %v24301_v34 = vld [vmem:[#allocation24 + $0x44] ss:$28 sps:$4 sm:$0xff]  }
 0xb63   :  { %12245 = vmatprep.subr.bf16.mxu0 %v24246_v41  ;;  %12286 = vmatprep.subr.bf16.mxu1 %v24249_v23  ;;  %v24296_v41 = vld [vmem:[#allocation24 + $0x38] ss:$28 sps:$4 sm:$0xff]   ;;  %v24299_v23 = vld [vmem:[#allocation24 + $0x40] ss:$28 sps:$4 sm:$0xff]  }
 0xb64   :  { %v11226_v52 = vpop.f32.mrb[212].mxu0  ;;  %v11269_v57 = vpop.f32.mrb[208].mxu1 }
 0xb65   :  { %v27670_v63 = vadd.f32 %v11269_v57, %v11226_v52  ;;  %v22863_v0 = vpop.f32.mrb[213].mxu0  ;;  %v22881_v59 = vpop.f32.mrb[209].mxu1  ;;  %v24310_v52 = vld [vmem:[#allocation24 + $0xac] ss:$28 sps:$4 sm:$0xff]   ;;  %v24313_v57 = vld [vmem:[#allocation24 + $0xb4] ss:$28 sps:$4 sm:$0xff]  }
 0xb66   :  { %v11229_v56 = vpop.f32.mrb[214].mxu0  ;;  %v11272_v1 = vpop.f32.mrb[210].mxu1  ;;  %12246 = vmatpush1.bf16.msra.mxu0 %v24244_v47  ;;  %12287 = vmatpush1.bf16.msra.mxu1 %v24247_v43  ;;  %v24304_v47 = vld [vmem:[#allocation24 + $0x74] ss:$28 sps:$4 sm:$0xff]   ;;  %v24307_v43 = vld [vmem:[#allocation24 + $0x7c] ss:$28 sps:$4 sm:$0xff]  }
 0xb67   :  { %v22864_v7 = vpop.f32.mrb[215].mxu0  ;;  %v22882_v50 = vpop.f32.mrb[211].mxu1  ;;  %12247 = vmatprep.subr.bf16.mxu0 %v24252_v33  ;;  %12288 = vmatprep.subr.bf16.mxu1 %v24255_v49  ;;  %v24302_v33 = vld [vmem:[#allocation24 + $0x70] ss:$28 sps:$4 sm:$0xff]   ;;  %v24305_v49 = vld [vmem:[#allocation24 + $0x78] ss:$28 sps:$4 sm:$0xff]  }
 0xb68   :  { %v24308_v0 = vld [vmem:[#allocation24 + $0xa8] ss:$28 sps:$4 sm:$0xff]   ;;  %v24311_v59 = vld [vmem:[#allocation24 + $0xb0] ss:$28 sps:$4 sm:$0xff]  }
 0xb69   :  { %v24316_v56 = vld [vmem:[#allocation24 + $0xe4] ss:$28 sps:$4 sm:$0xff]   ;;  %v24319_v1 = vld [vmem:[#allocation24 + $0xec] ss:$28 sps:$4 sm:$0xff]  }
 0xb6a   :  { %12248 = vmatpush1.bf16.msra.mxu0 %v24250_v54  ;;  %12289 = vmatpush1.bf16.msra.mxu1 %v24253_v10  ;;  %v24314_v54 = vld [vmem:[#allocation24 + $0xe0] ss:$28 sps:$4 sm:$0xff]   ;;  %v24317_v10 = vld [vmem:[#allocation24 + $0xe8] ss:$28 sps:$4 sm:$0xff]  }
 0xb6b   :  { %12249 = vmatprep.subr.bf16.mxu0 %v24258_v42  ;;  %12290 = vmatprep.subr.bf16.mxu1 %v24261_v15  ;;  %v24325_v7 = vld [vmem:[#allocation24 + $0x124] ss:$28 sps:$4 sm:$0xff]  }
 0xb6e   :  { %12250 = vmatpush1.bf16.msra.mxu0 %v24256_v45  ;;  %12291 = vmatpush1.bf16.msra.mxu1 %v24259_v60 }
 0xb6f   :  { %12319 = vmatprep.subr.bf16.mxu0 %v24264_v18  ;;  %23135 = vmatprep.subr.bf16.mxu1 %v25624_v11 }
 0xb71   :  { %19676 = vmatmul.mubr.msk.bf16.vlgmr.msra.gmra.mrb[244].mxu0 %vm8133_vm2, %v27674_v44  ;;  %19677 = vmatmul.mubr.msk.bf16.vlgmr.msra.gmra.mrb[240].mxu1 %vm8133_vm2, %v27674_v44 }
 0xb72   :  { %12320 = vmatpush1.bf16.msra.mxu0 %v24262_v24  ;;  %23136 = vmatpush3.bf16.msra.mxu1 %v24265_v62  ;;  %v24320_v24 = vld [vmem:[#allocation24 + $0x118] ss:$28 sps:$4 sm:$0xff]   ;;  %v24323_v62 = vld [vmem:[#allocation24 + $0x120] ss:$28 sps:$4 sm:$0xff]  }
 0xb73   :  { %12321 = vmatprep.subr.bf16.mxu0 %v24268_v2  ;;  %23137 = vmatprep.subr.bf16.mxu1 %v25624_v11 }
 0xb74   :  { %12351 = vmatprep.mubr.bf16.mxu0 %v25626_v32  ;;  %23149 = vmatprep.mubr.msk.bf16.mxu1 %vm25625_vm0, %v25624_v11 }
 0xb76   :  { %12322 = vmatpush1.bf16.msra.mxu0 %v24266_v8  ;;  %23138 = vmatpush3.bf16.msra.mxu1 %v24269_v46  ;;  %v24328_v46 = vld [vmem:[#allocation24 + $0x154] ss:$28 sps:$4 sm:$0xff]  }
 0xb77   :  { %12323 = vmatprep.subr.bf16.mxu0 %v24272_v16  ;;  %23139 = vmatprep.subr.bf16.mxu1 %v25624_v11  ;;  %v24331_v16 = vld [vmem:[#allocation24 + $0x15c] ss:$28 sps:$4 sm:$0xff]  }
 0xb7a   :  { %12324 = vmatpush1.bf16.msra.mxu0 %v24270_v29  ;;  %23140 = vmatpush3.bf16.msra.mxu1 %v24273_v5  ;;  %v24326_v29 = vld [vmem:[#allocation24 + $0x150] ss:$28 sps:$4 sm:$0xff]   ;;  %v24329_v5 = vld [vmem:[#allocation24 + $0x158] ss:$28 sps:$4 sm:$0xff]  }
 0xb7b   :  { %12325 = vmatprep.subr.bf16.mxu0 %v24276_v53  ;;  %23141 = vmatprep.subr.bf16.mxu1 %v25624_v11 }
 0xb7e   :  { %12326 = vmatpush1.bf16.msra.mxu0 %v24274_v26  ;;  %23142 = vmatpush3.bf16.msra.mxu1 %v24277_v22  ;;  %v24334_v26 = vld [vmem:[#allocation24 + $0x14] ss:$28 sps:$4 sm:$0xff]  }
 0xb7f   :  { %12327 = vmatprep.subr.bf16.mxu0 %v24280_v55  ;;  %23143 = vmatprep.subr.bf16.mxu1 %v25624_v11  ;;  %v24332_v22 = vld [vmem:[#allocation24 + $0x10] ss:$28 sps:$4 sm:$0xff]   ;;  %v24335_v55 = vld [vmem:[#allocation24 + $0x18] ss:$28 sps:$4 sm:$0xff]  }
 0xb80   :  { %v27688_v6 = vpop.f32.mrb[216].mxu0  ;;  %v27690_v21 = vpop.f32.mrb[212].mxu1 }
 0xb81   :  { %v22899_v9 = vpop.f32.mrb[217].mxu0  ;;  %v22917_v17 = vpop.f32.mrb[213].mxu1 }
 0xb82   :  { %v11314_v58 = vpop.f32.mrb[218].mxu0  ;;  %v11356_v4 = vpop.f32.mrb[214].mxu1  ;;  %12328 = vmatpush1.bf16.msra.mxu0 %v24278_v48  ;;  %23144 = vmatpush3.bf16.msra.mxu1 %v24281_v14  ;;  %v24336_v14 = vld [vmem:[#allocation24 + $0x48] ss:$28 sps:$4 sm:$0xff]   ;;  %v24340_v9 = vld [vmem:[#allocation24 + $0x80] ss:$28 sps:$4 sm:$0xff]  }
 0xb83   :  { %v22900_v35 = vpop.f32.mrb[219].mxu0  ;;  %v22918_v36 = vpop.f32.mrb[215].mxu1  ;;  %12329 = vmatprep.subr.bf16.mxu0 %v24284_v12  ;;  %23145 = vmatprep.subr.bf16.mxu1 %v25624_v11  ;;  %v24339_v12 = vld [vmem:[#allocation24 + $0x50] ss:$28 sps:$4 sm:$0xff]   ;;  %v24343_v17 = vld [vmem:[#allocation24 + $0x88] ss:$28 sps:$4 sm:$0xff]  }
 0xb84   :  { %v24346_v58 = vld [vmem:[#allocation24 + $0xbc] ss:$28 sps:$4 sm:$0xff]   ;;  %v24348_v35 = vld [vmem:[#allocation24 + $0xf0] ss:$28 sps:$4 sm:$0xff]  }
 0xb85   :  { %v24344_v4 = vld [vmem:[#allocation24 + $0xb8] ss:$28 sps:$4 sm:$0xff]  }
 0xb86   :  { %12330 = vmatpush1.bf16.msra.mxu0 %v24282_v38  ;;  %23146 = vmatpush3.bf16.msra.mxu1 %v24285_v3  ;;  %v24347_v38 = vld [vmem:[#allocation24 + $0xc0] ss:$28 sps:$4 sm:$0xff]   ;;  %v24350_v3 = vld [vmem:[#allocation24 + $0xf4] ss:$28 sps:$4 sm:$0xff]  }
 0xb87   :  { %12331 = vmatprep.subr.bf16.mxu0 %v24288_v27  ;;  %23147 = vmatprep.subr.bf16.mxu1 %v25624_v11  ;;  %v24351_v36 = vld [vmem:[#allocation24 + $0xf8] ss:$28 sps:$4 sm:$0xff]   ;;  %v24354_v27 = vld [vmem:[#allocation24 + $0x12c] ss:$28 sps:$4 sm:$0xff]  }
 0xb8a   :  { %12332 = vmatpush1.bf16.msra.mxu0 %v24286_v31  ;;  %23148 = vmatpush3.bf16.msra.mxu1 %v24289_v51 }
 0xb8b   :  { %12655 = vmatprep.subr.bf16.mxu0 %v24292_v28  ;;  %12696 = vmatprep.subr.bf16.mxu1 %v24295_v37 }
 0xb8d   :  { %19678 = vmatmul.mubr.msk.bf16.vlgmr.msra.gmra.mrb[248].mxu0 %vm8133_vm2, %v27674_v44  ;;  %23150 = vmatmul.mubr.msk.bf16.vlgmr.msra.gmra.mrb[244].mxu1 %vm8133_vm2, %v27674_v44  ;;  %v10945_v44 = vadd.f32 %v27668_v61, %v27612_v20  ;;  %v24338_v20 = vld [vmem:[#allocation24 + $0x4c] ss:$28 sps:$4 sm:$0xff]  }
 0xb8e   :  { %12656 = vmatpush1.bf16.msra.mxu0 %v24290_v39  ;;  %12697 = vmatpush1.bf16.msra.mxu1 %v24293_v30 }
 0xb8f   :  { %12657 = vmatprep.subr.bf16.mxu0 %v24298_v40  ;;  %12698 = vmatprep.subr.bf16.mxu1 %v24301_v34  ;;  %v10950_v53 = vmax.f32 %v10945_v44, 0.0  ;;  %v24352_v34 = vld [vmem:[#allocation24 + $0x128] ss:$28 sps:$4 sm:$0xff]   ;;  %v24389_v44 = vld [vmem:[#allocation24 + $0x3fc] ss:$28 sps:$4 sm:$0xff]  }
 0xb90   :  { %12687 = vmatprep.mubr.bf16.mxu0 %v25626_v32  ;;  %12728 = vmatprep.mubr.bf16.mxu1 %v25626_v32 }
 0xb91   :  { %v27707_v48 = vpack.c.bf16 %v10950_v53, %v10950_v53 }
 0xb92   :  { %12658 = vmatpush1.bf16.msra.mxu0 %v24296_v41  ;;  %12699 = vmatpush1.bf16.msra.mxu1 %v24299_v23  ;;  %v24355_v41 = vld [vmem:[#allocation24 + $0x130] ss:$28 sps:$4 sm:$0xff]  }
 0xb93   :  { %12659 = vmatprep.subr.bf16.mxu0 %v24304_v47  ;;  %12700 = vmatprep.subr.bf16.mxu1 %v24307_v43  ;;  %v24358_v43 = vld [vmem:[#allocation24 + $0x164] ss:$28 sps:$4 sm:$0xff]  }
 0xb96   :  { %12660 = vmatpush1.bf16.msra.mxu0 %v24302_v33  ;;  %12701 = vmatpush1.bf16.msra.mxu1 %v24305_v49  ;;  %v24356_v33 = vld [vmem:[#allocation24 + $0x160] ss:$28 sps:$4 sm:$0xff]   ;;  %v24359_v49 = vld [vmem:[#allocation24 + $0x168] ss:$28 sps:$4 sm:$0xff]  }
 0xb97   :  { %12661 = vmatprep.subr.bf16.mxu0 %v24310_v52  ;;  %12702 = vmatprep.subr.bf16.mxu1 %v24313_v57  ;;  %v24362_v52 = vld [vmem:[#allocation24 + $0x314] ss:$28 sps:$4 sm:$0xff]   ;;  %v24365_v57 = vld [vmem:[#allocation24 + $0x31c] ss:$28 sps:$4 sm:$0xff]  }
 0xb9a   :  { %12662 = vmatpush1.bf16.msra.mxu0 %v24308_v0  ;;  %12703 = vmatpush1.bf16.msra.mxu1 %v24311_v59  ;;  %v24360_v0 = vld [vmem:[#allocation24 + $0x310] ss:$28 sps:$4 sm:$0xff]   ;;  %v24363_v59 = vld [vmem:[#allocation24 + $0x318] ss:$28 sps:$4 sm:$0xff]  }
 0xb9b   :  { %12663 = vmatprep.subr.bf16.mxu0 %v24316_v56  ;;  %12704 = vmatprep.subr.bf16.mxu1 %v24319_v1  ;;  %v24368_v56 = vld [vmem:[#allocation24 + $0x34c] ss:$28 sps:$4 sm:$0xff]   ;;  %v24371_v1 = vld [vmem:[#allocation24 + $0x354] ss:$28 sps:$4 sm:$0xff]  }
 0xb9c   :  { %v11396_v50 = vpop.f32.mrb[220].mxu0  ;;  %v27700_v42 = vpop.f32.mrb[216].mxu1 }
 0xb9d   :  { %v27703_v15 = vadd.f32 %v11396_v50, %v27690_v21  ;;  %v22935_v45 = vpop.f32.mrb[221].mxu0  ;;  %v22953_v60 = vpop.f32.mrb[217].mxu1  ;;  %v24342_v21 = vld [vmem:[#allocation24 + $0x84] ss:$28 sps:$4 sm:$0xff]  }
 0xb9e   :  { %v11399_v19 = vpop.f32.mrb[222].mxu0  ;;  %v11441_v18 = vpop.f32.mrb[218].mxu1  ;;  %12664 = vmatpush1.bf16.msra.mxu0 %v24314_v54  ;;  %12705 = vmatpush1.bf16.msra.mxu1 %v24317_v10  ;;  %v24366_v54 = vld [vmem:[#allocation24 + $0x348] ss:$28 sps:$4 sm:$0xff]   ;;  %v24369_v10 = vld [vmem:[#allocation24 + $0x350] ss:$28 sps:$4 sm:$0xff]  }
 0xb9f   :  { %v22936_v2 = vpop.f32.mrb[223].mxu0  ;;  %v22954_v8 = vpop.f32.mrb[219].mxu1  ;;  %12665 = vmatprep.subr.bf16.mxu0 %v24322_v13  ;;  %12706 = vmatprep.subr.bf16.mxu1 %v24325_v7  ;;  %v24374_v13 = vld [vmem:[#allocation24 + $0x384] ss:$28 sps:$4 sm:$0xff]   ;;  %v24377_v7 = vld [vmem:[#allocation24 + $0x38c] ss:$28 sps:$4 sm:$0xff]  }
 0xba0   :  { %v24372_v50 = vld [vmem:[#allocation24 + $0x380] ss:$28 sps:$4 sm:$0xff]   ;;  %v24375_v45 = vld [vmem:[#allocation24 + $0x388] ss:$28 sps:$4 sm:$0xff]   ;;  %v24378_v18 = vld [vmem:[#allocation24 + $0x3b8] ss:$28 sps:$4 sm:$0xff]  }
 0xba1   :  { %v24380_v60 = vld [vmem:[#allocation24 + $0x3bc] ss:$28 sps:$4 sm:$0xff]   ;;  %v24383_v19 = vld [vmem:[#allocation24 + $0x3c4] ss:$28 sps:$4 sm:$0xff]   ;;  %v24384_v2 = vld [vmem:[#allocation24 + $0x3f0] ss:$28 sps:$4 sm:$0xff]  }
 0xba2   :  { %12666 = vmatpush1.bf16.msra.mxu0 %v24320_v24  ;;  %12707 = vmatpush1.bf16.msra.mxu1 %v24323_v62  ;;  %v24381_v24 = vld [vmem:[#allocation24 + $0x3c0] ss:$28 sps:$4 sm:$0xff]   ;;  %v24386_v62 = vld [vmem:[#allocation24 + $0x3f4] ss:$28 sps:$4 sm:$0xff]  }
 0xba3   :  { %12667 = vmatprep.subr.bf16.mxu0 %v24328_v46  ;;  %12708 = vmatprep.subr.bf16.mxu1 %v24331_v16  ;;  %v24387_v8 = vld [vmem:[#allocation24 + $0x3f8] ss:$28 sps:$4 sm:$0xff]   ;;  %v24392_v46 = vld [vmem:[#allocation24 + $0x42c] ss:$28 sps:$4 sm:$0xff]  }
 0xba4   :  { %v24395_v16 = vld [vmem:[#allocation24 + $0x434] ss:$28 sps:$4 sm:$0xff]  }
 0xba6   :  { %12668 = vmatpush1.bf16.msra.mxu0 %v24326_v29  ;;  %12709 = vmatpush1.bf16.msra.mxu1 %v24329_v5 }
 0xba7   :  { %12737 = vmatprep.subr.bf16.mxu0 %v24334_v26  ;;  %23153 = vmatprep.subr.bf16.mxu1 %v25624_v11 }
 0xba9   :  { %19729 = vmatmul.mubr.msk.bf16.vlgmr.msra.gmra.mrb[252].mxu0 %vm8133_vm2, %v27707_v48  ;;  %19730 = vmatmul.mubr.msk.bf16.vlgmr.msra.gmra.mrb[248].mxu1 %vm8133_vm2, %v27707_v48 }
 0xbaa   :  { %12738 = vmatpush1.bf16.msra.mxu0 %v24332_v22  ;;  %23154 = vmatpush3.bf16.msra.mxu1 %v24335_v55 }
 0xbab   :  { %12739 = vmatprep.subr.bf16.mxu0 %v24338_v20  ;;  %23155 = vmatprep.subr.bf16.mxu1 %v25624_v11  ;;  %v24393_v20 = vld [vmem:[#allocation24 + $0x430] ss:$28 sps:$4 sm:$0xff]  }
 0xbac   :  { %12769 = vmatprep.mubr.bf16.mxu0 %v25626_v32  ;;  %23167 = vmatprep.mubr.msk.bf16.mxu1 %vm25625_vm0, %v25624_v11 }
 0xbae   :  { %12740 = vmatpush1.bf16.msra.mxu0 %v24336_v14  ;;  %23156 = vmatpush3.bf16.msra.mxu1 %v24339_v12  ;;  %v11185_v14 = vadd.f32 %v27668_v61, %v27650_v25  ;;  %v24408_v25 = vld [vmem:[#allocation24 + $0x35c] ss:$28 sps:$4 sm:$0xff]  }
 0xbaf   :  { %12741 = vmatprep.subr.bf16.mxu0 %v24342_v21  ;;  %23157 = vmatprep.subr.bf16.mxu1 %v25624_v11 }
 0xbb2   :  { %12742 = vmatpush1.bf16.msra.mxu0 %v24340_v9  ;;  %23158 = vmatpush3.bf16.msra.mxu1 %v24343_v17  ;;  %v24398_v9 = vld [vmem:[#allocation24 + $0x464] ss:$28 sps:$4 sm:$0xff]   ;;  %v24401_v17 = vld [vmem:[#allocation24 + $0x46c] ss:$28 sps:$4 sm:$0xff]  }
 0xbb3   :  { %12743 = vmatprep.subr.bf16.mxu0 %v24346_v58  ;;  %23159 = vmatprep.subr.bf16.mxu1 %v25624_v11  ;;  %v24396_v58 = vld [vmem:[#allocation24 + $0x460] ss:$28 sps:$4 sm:$0xff]  }
 0xbb6   :  { %12744 = vmatpush1.bf16.msra.mxu0 %v24344_v4  ;;  %23160 = vmatpush3.bf16.msra.mxu1 %v24347_v38  ;;  %v24399_v4 = vld [vmem:[#allocation24 + $0x468] ss:$28 sps:$4 sm:$0xff]   ;;  %v11190_v38 = vmax.f32 %v11185_v14, 0.0  ;;  %v24456_v14 = vld [vmem:[#allocation24 + $0x57c] ss:$28 sps:$4 sm:$0xff]  }
 0xbb7   :  { %12745 = vmatprep.subr.bf16.mxu0 %v24350_v3  ;;  %23161 = vmatprep.subr.bf16.mxu1 %v25624_v11  ;;  %v24404_v3 = vld [vmem:[#allocation24 + $0x324] ss:$28 sps:$4 sm:$0xff]  }
 0xbb8   :  { %v11480_v31 = vpop.f32.mrb[224].mxu0  ;;  %v11523_v51 = vpop.f32.mrb[220].mxu1 }
 0xbb9   :  { %v27721_v28 = vadd.f32 %v11523_v51, %v11480_v31  ;;  %v22971_v37 = vpop.f32.mrb[225].mxu0  ;;  %v22989_v39 = vpop.f32.mrb[221].mxu1  ;;  %v24406_v31 = vld [vmem:[#allocation24 + $0x358] ss:$28 sps:$4 sm:$0xff]   ;;  %v24409_v51 = vld [vmem:[#allocation24 + $0x360] ss:$28 sps:$4 sm:$0xff]  }
 0xbba   :  { %v11483_v30 = vpop.f32.mrb[226].mxu0  ;;  %v11526_v40 = vpop.f32.mrb[222].mxu1  ;;  %12746 = vmatpush1.bf16.msra.mxu0 %v24348_v35  ;;  %23162 = vmatpush3.bf16.msra.mxu1 %v24351_v36  ;;  %v24402_v35 = vld [vmem:[#allocation24 + $0x320] ss:$28 sps:$4 sm:$0xff]   ;;  %v24405_v36 = vld [vmem:[#allocation24 + $0x328] ss:$28 sps:$4 sm:$0xff]  }
 0xbbb   :  { %v22972_v23 = vpop.f32.mrb[227].mxu0  ;;  %v22990_v47 = vpop.f32.mrb[223].mxu1  ;;  %12747 = vmatprep.subr.bf16.mxu0 %v24354_v27  ;;  %23163 = vmatprep.subr.bf16.mxu1 %v25624_v11  ;;  %v27737_v27 = vpack.c.bf16 %v11190_v38, %v11190_v38  ;;  %v24412_v37 = vld [vmem:[#allocation24 + $0x394] ss:$28 sps:$4 sm:$0xff]   ;;  %v24416_v40 = vld [vmem:[#allocation24 + $0x3cc] ss:$28 sps:$4 sm:$0xff]  }
 0xbbc   :  { %v24410_v39 = vld [vmem:[#allocation24 + $0x390] ss:$28 sps:$4 sm:$0xff]   ;;  %v24413_v30 = vld [vmem:[#allocation24 + $0x398] ss:$28 sps:$4 sm:$0xff]   ;;  %v24420_v23 = vld [vmem:[#allocation24 + $0x404] ss:$28 sps:$4 sm:$0xff]  }
 0xbbd   :  { %v24418_v47 = vld [vmem:[#allocation24 + $0x400] ss:$28 sps:$4 sm:$0xff]  }
 0xbbe   :  { %12748 = vmatpush1.bf16.msra.mxu0 %v24352_v34  ;;  %23164 = vmatpush3.bf16.msra.mxu1 %v24355_v41  ;;  %v24414_v34 = vld [vmem:[#allocation24 + $0x3c8] ss:$28 sps:$4 sm:$0xff]   ;;  %v24417_v41 = vld [vmem:[#allocation24 + $0x3d0] ss:$28 sps:$4 sm:$0xff]  }
 0xbbf   :  { %12749 = vmatprep.subr.bf16.mxu0 %v24358_v43  ;;  %23165 = vmatprep.subr.bf16.mxu1 %v25624_v11  ;;  %v24421_v43 = vld [vmem:[#allocation24 + $0x408] ss:$28 sps:$4 sm:$0xff]  }
 0xbc2   :  { %12750 = vmatpush1.bf16.msra.mxu0 %v24356_v33  ;;  %23166 = vmatpush3.bf16.msra.mxu1 %v24359_v49  ;;  %v24424_v33 = vld [vmem:[#allocation24 + $0x43c] ss:$28 sps:$4 sm:$0xff]  }
 0xbc3   :  { %13131 = vmatprep.subr.bf16.mxu0 %v24362_v52  ;;  %13172 = vmatprep.subr.bf16.mxu1 %v24365_v57 }
 0xbc5   :  { %19731 = vmatmul.mubr.msk.bf16.vlgmr.msra.gmra.mrb[0].mxu0 %vm8133_vm2, %v27707_v48  ;;  %23168 = vmatmul.mubr.msk.bf16.vlgmr.msra.gmra.mrb[252].mxu1 %vm8133_vm2, %v27707_v48  ;;  %v24390_v48 = vld [vmem:[#allocation24 + $0x428] ss:$28 sps:$4 sm:$0xff]  }
 0xbc6   :  { %13132 = vmatpush1.bf16.msra.mxu0 %v24360_v0  ;;  %13173 = vmatpush1.bf16.msra.mxu1 %v24363_v59 }
 0xbc7   :  { %13133 = vmatprep.subr.bf16.mxu0 %v24368_v56  ;;  %13174 = vmatprep.subr.bf16.mxu1 %v24371_v1 }
 0xbc8   :  { %13163 = vmatprep.mubr.bf16.mxu0 %v25626_v32  ;;  %13204 = vmatprep.mubr.bf16.mxu1 %v25626_v32 }
 0xbca   :  { %13134 = vmatpush1.bf16.msra.mxu0 %v24366_v54  ;;  %13175 = vmatpush1.bf16.msra.mxu1 %v24369_v10  ;;  %v24422_v54 = vld [vmem:[#allocation24 + $0x438] ss:$28 sps:$4 sm:$0xff]   ;;  %v24425_v10 = vld [vmem:[#allocation24 + $0x440] ss:$28 sps:$4 sm:$0xff]  }
 0xbcb   :  { %13135 = vmatprep.subr.bf16.mxu0 %v24374_v13  ;;  %13176 = vmatprep.subr.bf16.mxu1 %v24377_v7 }
 0xbce   :  { %13136 = vmatpush1.bf16.msra.mxu0 %v24372_v50  ;;  %13177 = vmatpush1.bf16.msra.mxu1 %v24375_v45  ;;  %v24428_v50 = vld [vmem:[#allocation24 + $0x474] ss:$28 sps:$4 sm:$0xff]  }
 0xbcf   :  { %13137 = vmatprep.subr.bf16.mxu0 %v24380_v60  ;;  %13178 = vmatprep.subr.bf16.mxu1 %v24383_v19  ;;  %v24426_v45 = vld [vmem:[#allocation24 + $0x470] ss:$28 sps:$4 sm:$0xff]   ;;  %v24429_v60 = vld [vmem:[#allocation24 + $0x478] ss:$28 sps:$4 sm:$0xff]  }
 0xbd0   :  { %v24432_v19 = vld [vmem:[#allocation24 + $0x49c] ss:$28 sps:$4 sm:$0xff]  }
 0xbd2   :  { %13138 = vmatpush1.bf16.msra.mxu0 %v24378_v18  ;;  %13179 = vmatpush1.bf16.msra.mxu1 %v24381_v24  ;;  %v24435_v18 = vld [vmem:[#allocation24 + $0x4a4] ss:$28 sps:$4 sm:$0xff]   ;;  %v24430_v24 = vld [vmem:[#allocation24 + $0x498] ss:$28 sps:$4 sm:$0xff]  }
 0xbd3   :  { %13139 = vmatprep.subr.bf16.mxu0 %v24386_v62  ;;  %13180 = vmatprep.subr.bf16.mxu1 %v24389_v44  ;;  %v24433_v62 = vld [vmem:[#allocation24 + $0x4a0] ss:$28 sps:$4 sm:$0xff]   ;;  %v24438_v44 = vld [vmem:[#allocation24 + $0x4d4] ss:$28 sps:$4 sm:$0xff]  }
 0xbd4   :  { %v27731_v29 = vpop.f32.mrb[228].mxu0  ;;  %v27733_v5 = vpop.f32.mrb[224].mxu1 }
 0xbd5   :  { %v23007_v53 = vpop.f32.mrb[229].mxu0  ;;  %v23025_v26 = vpop.f32.mrb[225].mxu1 }
 0xbd6   :  { %v11568_v22 = vpop.f32.mrb[230].mxu0  ;;  %v11610_v55 = vpop.f32.mrb[226].mxu1  ;;  %13140 = vmatpush1.bf16.msra.mxu0 %v24384_v2  ;;  %13181 = vmatpush1.bf16.msra.mxu1 %v24387_v8  ;;  %v24441_v2 = vld [vmem:[#allocation24 + $0x4dc] ss:$28 sps:$4 sm:$0xff]   ;;  %v24436_v8 = vld [vmem:[#allocation24 + $0x4d0] ss:$28 sps:$4 sm:$0xff]  }
 0xbd7   :  { %v23008_v12 = vpop.f32.mrb[231].mxu0  ;;  %v23026_v21 = vpop.f32.mrb[227].mxu1  ;;  %13141 = vmatprep.subr.bf16.mxu0 %v24392_v46  ;;  %13182 = vmatprep.subr.bf16.mxu1 %v24395_v16  ;;  %v24439_v46 = vld [vmem:[#allocation24 + $0x4d8] ss:$28 sps:$4 sm:$0xff]   ;;  %v24444_v16 = vld [vmem:[#allocation24 + $0x50c] ss:$28 sps:$4 sm:$0xff]  }
 0xbd8   :  { %v24442_v53 = vld [vmem:[#allocation24 + $0x508] ss:$28 sps:$4 sm:$0xff]   ;;  %v24445_v26 = vld [vmem:[#allocation24 + $0x510] ss:$28 sps:$4 sm:$0xff]   ;;  %v24454_v21 = vld [vmem:[#allocation24 + $0x578] ss:$28 sps:$4 sm:$0xff]  }
 0xbd9   :  { %v24450_v22 = vld [vmem:[#allocation24 + $0x544] ss:$28 sps:$4 sm:$0xff]   ;;  %v24453_v55 = vld [vmem:[#allocation24 + $0x54c] ss:$28 sps:$4 sm:$0xff]  }
 0xbda   :  { %13142 = vmatpush1.bf16.msra.mxu0 %v24390_v48  ;;  %13183 = vmatpush1.bf16.msra.mxu1 %v24393_v20  ;;  %v24448_v48 = vld [vmem:[#allocation24 + $0x540] ss:$28 sps:$4 sm:$0xff]   ;;  %v24451_v20 = vld [vmem:[#allocation24 + $0x548] ss:$28 sps:$4 sm:$0xff]  }
 0xbdb   :  { %13143 = vmatprep.subr.bf16.mxu0 %v24398_v9  ;;  %13184 = vmatprep.subr.bf16.mxu1 %v24401_v17  ;;  %v24459_v12 = vld [vmem:[#allocation24 + $0x584] ss:$28 sps:$4 sm:$0xff]   ;;  %v24462_v17 = vld [vmem:[#allocation24 + $0x5b4] ss:$28 sps:$4 sm:$0xff]  }
 0xbdc   :  { %v24457_v9 = vld [vmem:[#allocation24 + $0x580] ss:$28 sps:$4 sm:$0xff]  }
 0xbde   :  { %13144 = vmatpush1.bf16.msra.mxu0 %v24396_v58  ;;  %13185 = vmatpush1.bf16.msra.mxu1 %v24399_v4  ;;  %v24465_v58 = vld [vmem:[#allocation24 + $0x5bc] ss:$28 sps:$4 sm:$0xff]  }
 0xbdf   :  { %13213 = vmatprep.subr.bf16.mxu0 %v24404_v3  ;;  %23171 = vmatprep.subr.bf16.mxu1 %v25624_v11 }
 0xbe1   :  { %19782 = vmatmul.mubr.msk.bf16.vlgmr.msra.gmra.mrb[4].mxu0 %vm8133_vm2, %v27737_v27  ;;  %19783 = vmatmul.mubr.msk.bf16.vlgmr.msra.gmra.mrb[0].mxu1 %vm8133_vm2, %v27737_v27 }
 0xbe2   :  { %13214 = vmatpush1.bf16.msra.mxu0 %v24402_v35  ;;  %23172 = vmatpush3.bf16.msra.mxu1 %v24405_v36 }
 0xbe3   :  { %13215 = vmatprep.subr.bf16.mxu0 %v24408_v25  ;;  %23173 = vmatprep.subr.bf16.mxu1 %v25624_v11 }
 0xbe4   :  { %13245 = vmatprep.mubr.bf16.mxu0 %v25626_v32  ;;  %23185 = vmatprep.mubr.msk.bf16.mxu1 %vm25625_vm0, %v25624_v11 }
 0xbe6   :  { %13216 = vmatpush1.bf16.msra.mxu0 %v24406_v31  ;;  %23174 = vmatpush3.bf16.msra.mxu1 %v24409_v51  ;;  %v24460_v31 = vld [vmem:[#allocation24 + $0x5b0] ss:$28 sps:$4 sm:$0xff]   ;;  %v24463_v51 = vld [vmem:[#allocation24 + $0x5b8] ss:$28 sps:$4 sm:$0xff]  }
 0xbe7   :  { %13217 = vmatprep.subr.bf16.mxu0 %v24412_v37  ;;  %23175 = vmatprep.subr.bf16.mxu1 %v25624_v11  ;;  %v11275_v37 = vadd.f32 %v27668_v61, %v27670_v63  ;;  %v24478_v61 = vld [vmem:[#allocation24 + $0x4e4] ss:$28 sps:$4 sm:$0xff]  }
 0xbe8   :  { %v24476_v63 = vld [vmem:[#allocation24 + $0x4e0] ss:$28 sps:$4 sm:$0xff]  }
 0xbea   :  { %13218 = vmatpush1.bf16.msra.mxu0 %v24410_v39  ;;  %23176 = vmatpush3.bf16.msra.mxu1 %v24413_v30 }
 0xbeb   :  { %13219 = vmatprep.subr.bf16.mxu0 %v24416_v40  ;;  %23177 = vmatprep.subr.bf16.mxu1 %v25624_v11  ;;  %v24468_v40 = vld [vmem:[#allocation24 + $0x5ec] ss:$28 sps:$4 sm:$0xff]  }
 0xbee   :  { %13220 = vmatpush1.bf16.msra.mxu0 %v24414_v34  ;;  %23178 = vmatpush3.bf16.msra.mxu1 %v24417_v41  ;;  %v24471_v34 = vld [vmem:[#allocation24 + $0x5f4] ss:$28 sps:$4 sm:$0xff]   ;;  %v24466_v41 = vld [vmem:[#allocation24 + $0x5e8] ss:$28 sps:$4 sm:$0xff]  }
 0xbef   :  { %13221 = vmatprep.subr.bf16.mxu0 %v24420_v23  ;;  %23179 = vmatprep.subr.bf16.mxu1 %v25624_v11  ;;  %v24469_v23 = vld [vmem:[#allocation24 + $0x5f0] ss:$28 sps:$4 sm:$0xff]  }
 0xbf0   :  { %v11650_v49 = vpop.f32.mrb[232].mxu0  ;;  %v27751_v52 = vpop.f32.mrb[228].mxu1 }
 0xbf1   :  { %v27754_v57 = vadd.f32 %v11650_v49, %v27733_v5  ;;  %v23043_v0 = vpop.f32.mrb[233].mxu0  ;;  %v23061_v59 = vpop.f32.mrb[229].mxu1  ;;  %v24447_v5 = vld [vmem:[#allocation24 + $0x514] ss:$28 sps:$4 sm:$0xff]  }
 0xbf2   :  { %v11653_v56 = vpop.f32.mrb[234].mxu0  ;;  %v11695_v1 = vpop.f32.mrb[230].mxu1  ;;  %13222 = vmatpush1.bf16.msra.mxu0 %v24418_v47  ;;  %23180 = vmatpush3.bf16.msra.mxu1 %v24421_v43  ;;  %v11276_v47 = vmax.f32 %v11275_v37, 0.0  ;;  %v24474_v43 = vld [vmem:[#allocation24 + $0x4ac] ss:$28 sps:$4 sm:$0xff]  }
 0xbf3   :  { %v23044_v13 = vpop.f32.mrb[235].mxu0  ;;  %v23062_v7 = vpop.f32.mrb[231].mxu1  ;;  %13223 = vmatprep.subr.bf16.mxu0 %v24424_v33  ;;  %23181 = vmatprep.subr.bf16.mxu1 %v25624_v11  ;;  %v24472_v33 = vld [vmem:[#allocation24 + $0x4a8] ss:$28 sps:$4 sm:$0xff]   ;;  %v24475_v49 = vld [vmem:[#allocation24 + $0x4b0] ss:$28 sps:$4 sm:$0xff]  }
 0xbf4   :  { %v27768_v0 = vpack.c.bf16 %v11276_v47, %v11276_v47  ;;  %v24479_v59 = vld [vmem:[#allocation24 + $0x4e8] ss:$28 sps:$4 sm:$0xff]   ;;  %v24482_v56 = vld [vmem:[#allocation24 + $0x51c] ss:$28 sps:$4 sm:$0xff]   ;;  %v24484_v13 = vld [vmem:[#allocation24 + $0x550] ss:$28 sps:$4 sm:$0xff]  }
 0xbf5   :  { %v24480_v1 = vld [vmem:[#allocation24 + $0x518] ss:$28 sps:$4 sm:$0xff]   ;;  %v24526_v37 = vld [vmem:[#allocation24 + $0x704] ss:$28 sps:$4 sm:$0xff]  }
 0xbf6   :  { %13224 = vmatpush1.bf16.msra.mxu0 %v24422_v54  ;;  %23182 = vmatpush3.bf16.msra.mxu1 %v24425_v10  ;;  %v24483_v54 = vld [vmem:[#allocation24 + $0x520] ss:$28 sps:$4 sm:$0xff]   ;;  %v24486_v10 = vld [vmem:[#allocation24 + $0x554] ss:$28 sps:$4 sm:$0xff]  }
 0xbf7   :  { %13225 = vmatprep.subr.bf16.mxu0 %v24428_v50  ;;  %23183 = vmatprep.subr.bf16.mxu1 %v25624_v11  ;;  %v24487_v7 = vld [vmem:[#allocation24 + $0x558] ss:$28 sps:$4 sm:$0xff]   ;;  %v24490_v50 = vld [vmem:[#allocation24 + $0x58c] ss:$28 sps:$4 sm:$0xff]  }
 0xbfa   :  { %13226 = vmatpush1.bf16.msra.mxu0 %v24426_v45  ;;  %23184 = vmatpush3.bf16.msra.mxu1 %v24429_v60  ;;  %v24488_v45 = vld [vmem:[#allocation24 + $0x588] ss:$28 sps:$4 sm:$0xff]   ;;  %v24491_v60 = vld [vmem:[#allocation24 + $0x590] ss:$28 sps:$4 sm:$0xff]  }
 0xbfb   :  { %13614 = vmatprep.subr.bf16.mxu0 %v24432_v19  ;;  %13655 = vmatprep.subr.bf16.mxu1 %v24435_v18  ;;  %v24494_v19 = vld [vmem:[#allocation24 + $0x5c4] ss:$28 sps:$4 sm:$0xff]  }
 0xbfd   :  { %19784 = vmatmul.mubr.msk.bf16.vlgmr.msra.gmra.mrb[8].mxu0 %vm8133_vm2, %v27737_v27  ;;  %23186 = vmatmul.mubr.msk.bf16.vlgmr.msra.gmra.mrb[4].mxu1 %vm8133_vm2, %v27737_v27 }
 0xbfe   :  { %13615 = vmatpush1.bf16.msra.mxu0 %v24430_v24  ;;  %13656 = vmatpush1.bf16.msra.mxu1 %v24433_v62 }
 0xbff   :  { %13616 = vmatprep.subr.bf16.mxu0 %v24438_v44  ;;  %13657 = vmatprep.subr.bf16.mxu1 %v24441_v2 }
 0xc00   :  { %13646 = vmatprep.mubr.bf16.mxu0 %v25626_v32  ;;  %13687 = vmatprep.mubr.bf16.mxu1 %v25626_v32 }
 0xc02   :  { %13617 = vmatpush1.bf16.msra.mxu0 %v24436_v8  ;;  %13658 = vmatpush1.bf16.msra.mxu1 %v24439_v46  ;;  %v24492_v46 = vld [vmem:[#allocation24 + $0x5c0] ss:$28 sps:$4 sm:$0xff]  }
 0xc03   :  { %13618 = vmatprep.subr.bf16.mxu0 %v24444_v16  ;;  %13659 = vmatprep.subr.bf16.mxu1 %v24447_v5  ;;  %v24495_v16 = vld [vmem:[#allocation24 + $0x5c8] ss:$28 sps:$4 sm:$0xff]  }
 0xc06   :  { %13619 = vmatpush1.bf16.msra.mxu0 %v24442_v53  ;;  %13660 = vmatpush1.bf16.msra.mxu1 %v24445_v26  ;;  %v24498_v26 = vld [vmem:[#allocation24 + $0x5fc] ss:$28 sps:$4 sm:$0xff]  }
 0xc07   :  { %13620 = vmatprep.subr.bf16.mxu0 %v24450_v22  ;;  %13661 = vmatprep.subr.bf16.mxu1 %v24453_v55  ;;  %v24496_v22 = vld [vmem:[#allocation24 + $0x5f8] ss:$28 sps:$4 sm:$0xff]   ;;  %v24499_v55 = vld [vmem:[#allocation24 + $0x600] ss:$28 sps:$4 sm:$0xff]  }
 0xc0a   :  { %13621 = vmatpush1.bf16.msra.mxu0 %v24448_v48  ;;  %13662 = vmatpush1.bf16.msra.mxu1 %v24451_v20  ;;  %v24502_v48 = vld [vmem:[#allocation24 + $0x624] ss:$28 sps:$4 sm:$0xff]   ;;  %v24505_v20 = vld [vmem:[#allocation24 + $0x62c] ss:$28 sps:$4 sm:$0xff]  }
 0xc0b   :  { %13622 = vmatprep.subr.bf16.mxu0 %v24456_v14  ;;  %13663 = vmatprep.subr.bf16.mxu1 %v24459_v12  ;;  %v24500_v14 = vld [vmem:[#allocation24 + $0x620] ss:$28 sps:$4 sm:$0xff]   ;;  %v24503_v12 = vld [vmem:[#allocation24 + $0x628] ss:$28 sps:$4 sm:$0xff]  }
 0xc0c   :  { %v11734_v4 = vpop.f32.mrb[236].mxu0  ;;  %v11777_v38 = vpop.f32.mrb[232].mxu1 }
 0xc0d   :  { %v27764_v3 = vadd.f32 %v11777_v38, %v11734_v4  ;;  %v23079_v35 = vpop.f32.mrb[237].mxu0  ;;  %v23097_v36 = vpop.f32.mrb[233].mxu1  ;;  %v24514_v4 = vld [vmem:[#allocation24 + $0x694] ss:$28 sps:$4 sm:$0xff]   ;;  %v24517_v38 = vld [vmem:[#allocation24 + $0x69c] ss:$28 sps:$4 sm:$0xff]  }
 0xc0e   :  { %v11737_v27 = vpop.f32.mrb[238].mxu0  ;;  %v11780_v25 = vpop.f32.mrb[234].mxu1  ;;  %13623 = vmatpush1.bf16.msra.mxu0 %v24454_v21  ;;  %13664 = vmatpush1.bf16.msra.mxu1 %v24457_v9  ;;  %v24508_v21 = vld [vmem:[#allocation24 + $0x65c] ss:$28 sps:$4 sm:$0xff]   ;;  %v24511_v9 = vld [vmem:[#allocation24 + $0x664] ss:$28 sps:$4 sm:$0xff]  }
 0xc0f   :  { %v23080_v39 = vpop.f32.mrb[239].mxu0  ;;  %v23098_v30 = vpop.f32.mrb[235].mxu1  ;;  %13624 = vmatprep.subr.bf16.mxu0 %v24462_v17  ;;  %13665 = vmatprep.subr.bf16.mxu1 %v24465_v58  ;;  %v24506_v17 = vld [vmem:[#allocation24 + $0x658] ss:$28 sps:$4 sm:$0xff]   ;;  %v24509_v58 = vld [vmem:[#allocation24 + $0x660] ss:$28 sps:$4 sm:$0xff]  }
 0xc10   :  { %v24512_v35 = vld [vmem:[#allocation24 + $0x690] ss:$28 sps:$4 sm:$0xff]   ;;  %v24515_v36 = vld [vmem:[#allocation24 + $0x698] ss:$28 sps:$4 sm:$0xff]   ;;  %v24524_v30 = vld [vmem:[#allocation24 + $0x700] ss:$28 sps:$4 sm:$0xff]  }
 0xc11   :  { %v24520_v27 = vld [vmem:[#allocation24 + $0x6cc] ss:$28 sps:$4 sm:$0xff]   ;;  %v24523_v25 = vld [vmem:[#allocation24 + $0x6d4] ss:$28 sps:$4 sm:$0xff]  }
 0xc12   :  { %13625 = vmatpush1.bf16.msra.mxu0 %v24460_v31  ;;  %13666 = vmatpush1.bf16.msra.mxu1 %v24463_v51  ;;  %v24518_v31 = vld [vmem:[#allocation24 + $0x6c8] ss:$28 sps:$4 sm:$0xff]   ;;  %v24521_v51 = vld [vmem:[#allocation24 + $0x6d0] ss:$28 sps:$4 sm:$0xff]  }
 0xc13   :  { %13626 = vmatprep.subr.bf16.mxu0 %v24468_v40  ;;  %13667 = vmatprep.subr.bf16.mxu1 %v24471_v34  ;;  %v24529_v39 = vld [vmem:[#allocation24 + $0x70c] ss:$28 sps:$4 sm:$0xff]   ;;  %v24532_v34 = vld [vmem:[#allocation24 + $0x73c] ss:$28 sps:$4 sm:$0xff]  }
 0xc14   :  { %v24527_v40 = vld [vmem:[#allocation24 + $0x708] ss:$28 sps:$4 sm:$0xff]  }
 0xc16   :  { %13627 = vmatpush1.bf16.msra.mxu0 %v24466_v41  ;;  %13668 = vmatpush1.bf16.msra.mxu1 %v24469_v23  ;;  %v24535_v41 = vld [vmem:[#allocation24 + $0x744] ss:$28 sps:$4 sm:$0xff]  }
 0xc17   :  { %13696 = vmatprep.subr.bf16.mxu0 %v24474_v43  ;;  %23189 = vmatprep.subr.bf16.mxu1 %v25624_v11 }
 0xc19   :  { %19835 = vmatmul.mubr.msk.bf16.vlgmr.msra.gmra.mrb[12].mxu0 %vm8133_vm2, %v27768_v0  ;;  %19836 = vmatmul.mubr.msk.bf16.vlgmr.msra.gmra.mrb[8].mxu1 %vm8133_vm2, %v27768_v0 }
 0xc1a   :  { %13697 = vmatpush1.bf16.msra.mxu0 %v24472_v33  ;;  %23190 = vmatpush3.bf16.msra.mxu1 %v24475_v49 }
 0xc1b   :  { %13698 = vmatprep.subr.bf16.mxu0 %v24478_v61  ;;  %23191 = vmatprep.subr.bf16.mxu1 %v25624_v11  ;;  %v24530_v61 = vld [vmem:[#allocation24 + $0x738] ss:$28 sps:$4 sm:$0xff]  }
 0xc1c   :  { %13728 = vmatprep.mubr.bf16.mxu0 %v25626_v32  ;;  %23203 = vmatprep.mubr.msk.bf16.mxu1 %vm25625_vm0, %v25624_v11 }
 0xc1e   :  { %13699 = vmatpush1.bf16.msra.mxu0 %v24476_v63  ;;  %23192 = vmatpush3.bf16.msra.mxu1 %v24479_v59  ;;  %v24533_v63 = vld [vmem:[#allocation24 + $0x740] ss:$28 sps:$4 sm:$0xff]  }
 0xc1f   :  { %13700 = vmatprep.subr.bf16.mxu0 %v24482_v56  ;;  %23193 = vmatprep.subr.bf16.mxu1 %v25624_v11  ;;  %v27802_v59 = vld [vmem:[#allocation22] ss:$0 sm:$0xff] }
 0xc20   :  { %v11312_v56 = vadd.f32 %v27802_v59, %v27688_v6  ;;  %v24548_v6 = vld [vmem:[#allocation24 + $0x66c] ss:$28 sps:$4 sm:$0xff]  }
 0xc22   :  { %13701 = vmatpush1.bf16.msra.mxu0 %v24480_v1  ;;  %23194 = vmatpush3.bf16.msra.mxu1 %v24483_v54 }
 0xc23   :  { %13702 = vmatprep.subr.bf16.mxu0 %v24486_v10  ;;  %23195 = vmatprep.subr.bf16.mxu1 %v25624_v11  ;;  %v24538_v10 = vld [vmem:[#allocation24 + $0x774] ss:$28 sps:$4 sm:$0xff]  }
 0xc26   :  { %13703 = vmatpush1.bf16.msra.mxu0 %v24484_v13  ;;  %23196 = vmatpush3.bf16.msra.mxu1 %v24487_v7  ;;  %v24541_v13 = vld [vmem:[#allocation24 + $0x77c] ss:$28 sps:$4 sm:$0xff]   ;;  %v24536_v7 = vld [vmem:[#allocation24 + $0x770] ss:$28 sps:$4 sm:$0xff]  }
 0xc27   :  { %13704 = vmatprep.subr.bf16.mxu0 %v24490_v50  ;;  %23197 = vmatprep.subr.bf16.mxu1 %v25624_v11  ;;  %v24539_v50 = vld [vmem:[#allocation24 + $0x778] ss:$28 sps:$4 sm:$0xff]  }
 0xc28   :  { %v27782_v18 = vpop.f32.mrb[240].mxu0  ;;  %v27784_v24 = vpop.f32.mrb[236].mxu1 }
 0xc29   :  { %v23115_v62 = vpop.f32.mrb[241].mxu0  ;;  %v23133_v44 = vpop.f32.mrb[237].mxu1 }
 0xc2a   :  { %v11822_v2 = vpop.f32.mrb[242].mxu0  ;;  %v11863_v8 = vpop.f32.mrb[238].mxu1  ;;  %13705 = vmatpush1.bf16.msra.mxu0 %v24488_v45  ;;  %23198 = vmatpush3.bf16.msra.mxu1 %v24491_v60  ;;  %v11317_v45 = vmax.f32 %v11312_v56, 0.0  ;;  %v24544_v60 = vld [vmem:[#allocation24 + $0x634] ss:$28 sps:$4 sm:$0xff]  }
 0xc2b   :  { %v23116_v5 = vpop.f32.mrb[243].mxu0  ;;  %v23134_v53 = vpop.f32.mrb[239].mxu1  ;;  %13706 = vmatprep.subr.bf16.mxu0 %v24494_v19  ;;  %23199 = vmatprep.subr.bf16.mxu1 %v25624_v11  ;;  %v24542_v19 = vld [vmem:[#allocation24 + $0x630] ss:$28 sps:$4 sm:$0xff]   ;;  %v24545_v62 = vld [vmem:[#allocation24 + $0x638] ss:$28 sps:$4 sm:$0xff]  }
 0xc2c   :  { %v27806_v44 = vpack.c.bf16 %v11317_v45, %v11317_v45  ;;  %v24546_v2 = vld [vmem:[#allocation24 + $0x668] ss:$28 sps:$4 sm:$0xff]   ;;  %v24549_v8 = vld [vmem:[#allocation24 + $0x670] ss:$28 sps:$4 sm:$0xff]   ;;  %v24556_v53 = vld [vmem:[#allocation24 + $0x6dc] ss:$28 sps:$4 sm:$0xff]  }
 0xc2d   :  { %v24553_v5 = vld [vmem:[#allocation24 + $0x6a8] ss:$28 sps:$4 sm:$0xff]   ;;  %v24582_v56 = vld [vmem:[#allocation24 + $0x818] ss:$28 sps:$4 sm:$0xff]  }
 0xc2e   :  { %13707 = vmatpush1.bf16.msra.mxu0 %v24492_v46  ;;  %23200 = vmatpush3.bf16.msra.mxu1 %v24495_v16  ;;  %v24552_v46 = vld [vmem:[#allocation24 + $0x6a4] ss:$28 sps:$4 sm:$0xff]   ;;  %v24599_v45 = vld [vmem:[#allocation24 + $0x894] ss:$28 sps:$4 sm:$0xff]  }
 0xc2f   :  { %13708 = vmatprep.subr.bf16.mxu0 %v24498_v26  ;;  %23201 = vmatprep.subr.bf16.mxu1 %v25624_v11  ;;  %v24550_v16 = vld [vmem:[#allocation24 + $0x6a0] ss:$28 sps:$4 sm:$0xff]   ;;  %v24554_v26 = vld [vmem:[#allocation24 + $0x6d8] ss:$28 sps:$4 sm:$0xff]  }
 0xc32   :  { %13709 = vmatpush1.bf16.msra.mxu0 %v24496_v22  ;;  %23202 = vmatpush3.bf16.msra.mxu1 %v24499_v55  ;;  %v24557_v22 = vld [vmem:[#allocation24 + $0x6e0] ss:$28 sps:$4 sm:$0xff]   ;;  %v24560_v55 = vld [vmem:[#allocation24 + $0x714] ss:$28 sps:$4 sm:$0xff]  }
 0xc33   :  { %14097 = vmatprep.subr.bf16.mxu0 %v24502_v48  ;;  %14138 = vmatprep.subr.bf16.mxu1 %v24505_v20  ;;  %v24558_v48 = vld [vmem:[#allocation24 + $0x710] ss:$28 sps:$4 sm:$0xff]   ;;  %v24561_v20 = vld [vmem:[#allocation24 + $0x718] ss:$28 sps:$4 sm:$0xff]  }
 0xc35   :  { %19837 = vmatmul.mubr.msk.bf16.vlgmr.msra.gmra.mrb[16].mxu0 %vm8133_vm2, %v27768_v0  ;;  %23204 = vmatmul.mubr.msk.bf16.vlgmr.msra.gmra.mrb[12].mxu1 %vm8133_vm2, %v27768_v0 }
 0xc36   :  { %14098 = vmatpush1.bf16.msra.mxu0 %v24500_v14  ;;  %14139 = vmatpush1.bf16.msra.mxu1 %v24503_v12  ;;  %v24564_v14 = vld [vmem:[#allocation24 + $0x74c] ss:$28 sps:$4 sm:$0xff]  }
 0xc37   :  { %14099 = vmatprep.subr.bf16.mxu0 %v24508_v21  ;;  %14140 = vmatprep.subr.bf16.mxu1 %v24511_v9 }
 0xc38   :  { %14129 = vmatprep.mubr.bf16.mxu0 %v25626_v32  ;;  %14170 = vmatprep.mubr.bf16.mxu1 %v25626_v32 }
 0xc3a   :  { %14100 = vmatpush1.bf16.msra.mxu0 %v24506_v17  ;;  %14141 = vmatpush1.bf16.msra.mxu1 %v24509_v58 }
 0xc3b   :  { %14101 = vmatprep.subr.bf16.mxu0 %v24514_v4  ;;  %14142 = vmatprep.subr.bf16.mxu1 %v24517_v38  ;;  %v24562_v38 = vld [vmem:[#allocation24 + $0x748] ss:$28 sps:$4 sm:$0xff]  }
 0xc3e   :  { %14102 = vmatpush1.bf16.msra.mxu0 %v24512_v35  ;;  %14143 = vmatpush1.bf16.msra.mxu1 %v24515_v36  ;;  %v24565_v35 = vld [vmem:[#allocation24 + $0x750] ss:$28 sps:$4 sm:$0xff]  }
 0xc3f   :  { %14103 = vmatprep.subr.bf16.mxu0 %v24520_v27  ;;  %14144 = vmatprep.subr.bf16.mxu1 %v24523_v25  ;;  %v24568_v25 = vld [vmem:[#allocation24 + $0x784] ss:$28 sps:$4 sm:$0xff]  }
 0xc42   :  { %14104 = vmatpush1.bf16.msra.mxu0 %v24518_v31  ;;  %14145 = vmatpush1.bf16.msra.mxu1 %v24521_v51  ;;  %v24566_v31 = vld [vmem:[#allocation24 + $0x780] ss:$28 sps:$4 sm:$0xff]   ;;  %v24569_v51 = vld [vmem:[#allocation24 + $0x788] ss:$28 sps:$4 sm:$0xff]  }
 0xc43   :  { %14105 = vmatprep.subr.bf16.mxu0 %v24526_v37  ;;  %14146 = vmatprep.subr.bf16.mxu1 %v24529_v39  ;;  %v24572_v37 = vld [vmem:[#allocation24 + $0x7ac] ss:$28 sps:$4 sm:$0xff]   ;;  %v24575_v39 = vld [vmem:[#allocation24 + $0x7b4] ss:$28 sps:$4 sm:$0xff]  }
 0xc44   :  { %v27794_v23 = vpop.f32.mrb[244].mxu0  ;;  %v27796_v47 = vpop.f32.mrb[240].mxu1 }
 0xc45   :  { %v27798_v43 = vpop.f32.mrb[245].mxu0  ;;  %v27800_v33 = vpop.f32.mrb[241].mxu1 }
 0xc46   :  { %v12275_v49 = vpop.f32.mrb[246].mxu0  ;;  %v12316_v0 = vpop.f32.mrb[242].mxu1  ;;  %14106 = vmatpush1.bf16.msra.mxu0 %v24524_v30  ;;  %14147 = vmatpush1.bf16.msra.mxu1 %v24527_v40  ;;  %v24570_v30 = vld [vmem:[#allocation24 + $0x7a8] ss:$28 sps:$4 sm:$0xff]   ;;  %v24573_v40 = vld [vmem:[#allocation24 + $0x7b0] ss:$28 sps:$4 sm:$0xff]  }
 0xc47   :  { %v12276_v1 = vpop.f32.mrb[247].mxu0  ;;  %v12317_v54 = vpop.f32.mrb[243].mxu1  ;;  %14107 = vmatprep.subr.bf16.mxu0 %v24532_v34  ;;  %14148 = vmatprep.subr.bf16.mxu1 %v24535_v41  ;;  %v24578_v34 = vld [vmem:[#allocation24 + $0x7e4] ss:$28 sps:$4 sm:$0xff]   ;;  %v24581_v41 = vld [vmem:[#allocation24 + $0x7ec] ss:$28 sps:$4 sm:$0xff]  }
 0xc48   :  { %v24576_v49 = vld [vmem:[#allocation24 + $0x7e0] ss:$28 sps:$4 sm:$0xff]   ;;  %v24579_v0 = vld [vmem:[#allocation24 + $0x7e8] ss:$28 sps:$4 sm:$0xff]   ;;  %v24590_v54 = vld [vmem:[#allocation24 + $0x854] ss:$28 sps:$4 sm:$0xff]  }
 0xc49   :  { %v24585_v1 = vld [vmem:[#allocation24 + $0x820] ss:$28 sps:$4 sm:$0xff]  }
 0xc4a   :  { %14108 = vmatpush1.bf16.msra.mxu0 %v24530_v61  ;;  %14149 = vmatpush1.bf16.msra.mxu1 %v24533_v63  ;;  %v24584_v61 = vld [vmem:[#allocation24 + $0x81c] ss:$28 sps:$4 sm:$0xff]   ;;  %v24587_v63 = vld [vmem:[#allocation24 + $0x824] ss:$28 sps:$4 sm:$0xff]  }
 0xc4b   :  { %14109 = vmatprep.subr.bf16.mxu0 %v24538_v10  ;;  %14150 = vmatprep.subr.bf16.mxu1 %v24541_v13  ;;  %v24593_v10 = vld [vmem:[#allocation24 + $0x85c] ss:$28 sps:$4 sm:$0xff]   ;;  %v24588_v13 = vld [vmem:[#allocation24 + $0x850] ss:$28 sps:$4 sm:$0xff]  }
 0xc4e   :  { %14110 = vmatpush1.bf16.msra.mxu0 %v24536_v7  ;;  %14151 = vmatpush1.bf16.msra.mxu1 %v24539_v50  ;;  %v24591_v7 = vld [vmem:[#allocation24 + $0x858] ss:$28 sps:$4 sm:$0xff]   ;;  %v24596_v50 = vld [vmem:[#allocation24 + $0x88c] ss:$28 sps:$4 sm:$0xff]  }
 0xc4f   :  { %14179 = vmatprep.subr.bf16.mxu0 %v24544_v60  ;;  %23207 = vmatprep.subr.bf16.mxu1 %v25624_v11  ;;  %v24594_v60 = vld [vmem:[#allocation24 + $0x888] ss:$28 sps:$4 sm:$0xff]  }
 0xc51   :  { %19888 = vmatmul.mubr.msk.bf16.vlgmr.msra.gmra.mrb[20].mxu0 %vm8133_vm2, %v27806_v44  ;;  %19889 = vmatmul.mubr.msk.bf16.vlgmr.msra.gmra.mrb[16].mxu1 %vm8133_vm2, %v27806_v44 }
 0xc52   :  { %14180 = vmatpush1.bf16.msra.mxu0 %v24542_v19  ;;  %23208 = vmatpush3.bf16.msra.mxu1 %v24545_v62  ;;  %v24597_v19 = vld [vmem:[#allocation24 + $0x890] ss:$28 sps:$4 sm:$0xff]   ;;  %v24602_v62 = vld [vmem:[#allocation24 + $0x8c4] ss:$28 sps:$4 sm:$0xff]  }
 0xc53   :  { %14181 = vmatprep.subr.bf16.mxu0 %v24548_v6  ;;  %23209 = vmatprep.subr.bf16.mxu1 %v25624_v11 }
 0xc54   :  { %14211 = vmatprep.mubr.bf16.mxu0 %v25626_v32  ;;  %23221 = vmatprep.mubr.msk.bf16.mxu1 %vm25625_vm0, %v25624_v11 }
 0xc56   :  { %14182 = vmatpush1.bf16.msra.mxu0 %v24546_v2  ;;  %23210 = vmatpush3.bf16.msra.mxu1 %v24549_v8 }
 0xc57   :  { %14183 = vmatprep.subr.bf16.mxu0 %v24552_v46  ;;  %23211 = vmatprep.subr.bf16.mxu1 %v25624_v11 }
 0xc5a   :  { %14184 = vmatpush1.bf16.msra.mxu0 %v24550_v16  ;;  %23212 = vmatpush3.bf16.msra.mxu1 %v24553_v5 }
 0xc5b   :  { %14185 = vmatprep.subr.bf16.mxu0 %v24556_v53  ;;  %23213 = vmatprep.subr.bf16.mxu1 %v25624_v11 }
 0xc5e   :  { %14186 = vmatpush1.bf16.msra.mxu0 %v24554_v26  ;;  %23214 = vmatpush3.bf16.msra.mxu1 %v24557_v22 }
 0xc5f   :  { %14187 = vmatprep.subr.bf16.mxu0 %v24560_v55  ;;  %23215 = vmatprep.subr.bf16.mxu1 %v25624_v11 }
 0xc60   :  { %v27820_v12 = vpop.f32.mrb[248].mxu0  ;;  %v27822_v21 = vpop.f32.mrb[244].mxu1 }
 0xc61   :  { %v27824_v9 = vpop.f32.mrb[249].mxu0  ;;  %v23151_v17 = vpop.f32.mrb[245].mxu1 }
 0xc62   :  { %v12357_v58 = vpop.f32.mrb[250].mxu0  ;;  %v12397_v4 = vpop.f32.mrb[246].mxu1  ;;  %14188 = vmatpush1.bf16.msra.mxu0 %v24558_v48  ;;  %23216 = vmatpush3.bf16.msra.mxu1 %v24561_v20  ;;  %v24600_v48 = vld [vmem:[#allocation24 + $0x8c0] ss:$28 sps:$4 sm:$0xff]   ;;  %v24603_v20 = vld [vmem:[#allocation24 + $0x8c8] ss:$28 sps:$4 sm:$0xff]  }
 0xc63   :  { %v12358_v36 = vpop.f32.mrb[251].mxu0  ;;  %v23152_v27 = vpop.f32.mrb[247].mxu1  ;;  %14189 = vmatprep.subr.bf16.mxu0 %v24564_v14  ;;  %23217 = vmatprep.subr.bf16.mxu1 %v25624_v11  ;;  %v24608_v17 = vld [vmem:[#allocation24 + $0x8fc] ss:$28 sps:$4 sm:$0xff]   ;;  %v24611_v58 = vld [vmem:[#allocation24 + $0x904] ss:$28 sps:$4 sm:$0xff]  }
 0xc64   :  { %v24615_v36 = vld [vmem:[#allocation24 + $0x7c0] ss:$28 sps:$4 sm:$0xff]  }
 0xc66   :  { %14190 = vmatpush1.bf16.msra.mxu0 %v24562_v38  ;;  %23218 = vmatpush3.bf16.msra.mxu1 %v24565_v35  ;;  %v24614_v38 = vld [vmem:[#allocation24 + $0x7bc] ss:$28 sps:$4 sm:$0xff]  }
 0xc67   :  { %14191 = vmatprep.subr.bf16.mxu0 %v24568_v25  ;;  %23219 = vmatprep.subr.bf16.mxu1 %v25624_v11  ;;  %v24612_v35 = vld [vmem:[#allocation24 + $0x7b8] ss:$28 sps:$4 sm:$0xff]   ;;  %v24616_v25 = vld [vmem:[#allocation24 + $0x7f0] ss:$28 sps:$4 sm:$0xff]  }
 0xc6a   :  { %14192 = vmatpush1.bf16.msra.mxu0 %v24566_v31  ;;  %23220 = vmatpush3.bf16.msra.mxu1 %v24569_v51  ;;  %v24619_v31 = vld [vmem:[#allocation24 + $0x7f8] ss:$28 sps:$4 sm:$0xff]   ;;  %v24622_v51 = vld [vmem:[#allocation24 + $0x82c] ss:$28 sps:$4 sm:$0xff]  }
 0xc6b   :  { %14580 = vmatprep.subr.bf16.mxu0 %v24572_v37  ;;  %14621 = vmatprep.subr.bf16.mxu1 %v24575_v39  ;;  %v24620_v37 = vld [vmem:[#allocation24 + $0x828] ss:$28 sps:$4 sm:$0xff]   ;;  %v24623_v39 = vld [vmem:[#allocation24 + $0x830] ss:$28 sps:$4 sm:$0xff]  }
 0xc6d   :  { %19890 = vmatmul.mubr.msk.bf16.vlgmr.msra.gmra.mrb[24].mxu0 %vm8133_vm2, %v27806_v44  ;;  %23222 = vmatmul.mubr.msk.bf16.vlgmr.msra.gmra.mrb[20].mxu1 %vm8133_vm2, %v27806_v44  ;;  %v24605_v44 = vld [vmem:[#allocation24 + $0x8cc] ss:$28 sps:$4 sm:$0xff]  }
 0xc6e   :  { %14581 = vmatpush1.bf16.msra.mxu0 %v24570_v30  ;;  %14622 = vmatpush1.bf16.msra.mxu1 %v24573_v40  ;;  %v24626_v30 = vld [vmem:[#allocation24 + $0x864] ss:$28 sps:$4 sm:$0xff]  }
 0xc6f   :  { %14582 = vmatprep.subr.bf16.mxu0 %v24578_v34  ;;  %14623 = vmatprep.subr.bf16.mxu1 %v24581_v41  ;;  %v24624_v40 = vld [vmem:[#allocation24 + $0x860] ss:$28 sps:$4 sm:$0xff]   ;;  %v24627_v34 = vld [vmem:[#allocation24 + $0x868] ss:$28 sps:$4 sm:$0xff]  }
 0xc70   :  { %14612 = vmatprep.mubr.bf16.mxu0 %v25626_v32  ;;  %14653 = vmatprep.mubr.bf16.mxu1 %v25626_v32  ;;  %v24630_v41 = vld [vmem:[#allocation24 + $0x89c] ss:$28 sps:$4 sm:$0xff]  }
 0xc72   :  { %14583 = vmatpush1.bf16.msra.mxu0 %v24576_v49  ;;  %14624 = vmatpush1.bf16.msra.mxu1 %v24579_v0  ;;  %v24628_v49 = vld [vmem:[#allocation24 + $0x898] ss:$28 sps:$4 sm:$0xff]   ;;  %v24631_v0 = vld [vmem:[#allocation24 + $0x8a0] ss:$28 sps:$4 sm:$0xff]  }
 0xc73   :  { %14584 = vmatprep.subr.bf16.mxu0 %v24584_v61  ;;  %14625 = vmatprep.subr.bf16.mxu1 %v24587_v63  ;;  %v24634_v61 = vld [vmem:[#allocation24 + $0x8d4] ss:$28 sps:$4 sm:$0xff]  }
 0xc76   :  { %14585 = vmatpush1.bf16.msra.mxu0 %v24582_v56  ;;  %14626 = vmatpush1.bf16.msra.mxu1 %v24585_v1 }
 0xc77   :  { %14586 = vmatprep.subr.bf16.mxu0 %v24590_v54  ;;  %14627 = vmatprep.subr.bf16.mxu1 %v24593_v10 }
 0xc7a   :  { %14587 = vmatpush1.bf16.msra.mxu0 %v24588_v13  ;;  %14628 = vmatpush1.bf16.msra.mxu1 %v24591_v7 }
 0xc7b   :  { %14588 = vmatprep.subr.bf16.mxu0 %v24596_v50  ;;  %14629 = vmatprep.subr.bf16.mxu1 %v24599_v45 }
 0xc7c   :  { %v12689_v6 = vpop.f32.mrb[252].mxu0  ;;  %v12730_v2 = vpop.f32.mrb[248].mxu1 }
 0xc7d   :  { %v27835_v8 = vadd.f32 %v12689_v6, %v27794_v23  ;;  %v27838_v46 = vadd.f32 %v12730_v2, %v27796_v47  ;;  %v12691_v16 = vpop.f32.mrb[253].mxu0  ;;  %v12732_v5 = vpop.f32.mrb[249].mxu1  ;;  %v11402_v23 = vadd.f32 %v27802_v59, %v27703_v15  ;;  %v24618_v15 = vld [vmem:[#allocation24 + $0x7f4] ss:$28 sps:$4 sm:$0xff]   ;;  %v24645_v2 = vld [vmem:[#allocation24 + $0x93c] ss:$28 sps:$4 sm:$0xff]  }
 0xc7e   :  { %v27841_v53 = vadd.f32 %v12691_v16, %v27798_v43  ;;  %v27844_v26 = vadd.f32 %v12732_v5, %v27800_v33  ;;  %v12693_v22 = vpop.f32.mrb[254].mxu0  ;;  %v12734_v55 = vpop.f32.mrb[250].mxu1  ;;  %14589 = vmatpush1.bf16.msra.mxu0 %v24594_v60  ;;  %14630 = vmatpush1.bf16.msra.mxu1 %v24597_v19  ;;  %v24606_v43 = vld [vmem:[#allocation24 + $0x8f8] ss:$28 sps:$4 sm:$0xff]   ;;  %v24609_v33 = vld [vmem:[#allocation24 + $0x900] ss:$28 sps:$4 sm:$0xff]  }
 0xc7f   :  { %v12694_v14 = vpop.f32.mrb[255].mxu0  ;;  %v12735_v47 = vpop.f32.mrb[251].mxu1  ;;  %14590 = vmatprep.subr.bf16.mxu0 %v24602_v62  ;;  %14631 = vmatprep.subr.bf16.mxu1 %v24605_v44  ;;  %v11403_v4 = vmax.f32 %v11402_v23, 0.0  ;;  %v24632_v60 = vld [vmem:[#allocation24 + $0x8d0] ss:$28 sps:$4 sm:$0xff]  }
 0xc80   :  { %v24635_v19 = vld [vmem:[#allocation24 + $0x8d8] ss:$28 sps:$4 sm:$0xff]   ;;  %v24639_v6 = vld [vmem:[#allocation24 + $0x910] ss:$28 sps:$4 sm:$0xff]   ;;  %v24654_v23 = vld [vmem:[#allocation24 + $0x9a4] ss:$28 sps:$4 sm:$0xff]  }
 0xc81   :  { %v27848_v27 = vpack.c.bf16 %v11403_v4, %v11403_v4  ;;  %v24640_v16 = vld [vmem:[#allocation24 + $0x930] ss:$28 sps:$4 sm:$0xff]   ;;  %v24643_v5 = vld [vmem:[#allocation24 + $0x938] ss:$28 sps:$4 sm:$0xff]   ;;  %v24652_v47 = vld [vmem:[#allocation24 + $0x9a0] ss:$28 sps:$4 sm:$0xff]  }
 0xc82   :  { %14591 = vmatpush1.bf16.msra.mxu0 %v24600_v48  ;;  %14632 = vmatpush1.bf16.msra.mxu1 %v24603_v20  ;;  %v24648_v22 = vld [vmem:[#allocation24 + $0x96c] ss:$28 sps:$4 sm:$0xff]   ;;  %v24651_v55 = vld [vmem:[#allocation24 + $0x974] ss:$28 sps:$4 sm:$0xff]   ;;  %v24661_v4 = vld [vmem:[#allocation24 + $0x9e0] ss:$28 sps:$4 sm:$0xff]  }
 0xc83   :  { %14592 = vmatprep.subr.bf16.mxu0 %v24608_v17  ;;  %14633 = vmatprep.subr.bf16.mxu1 %v24611_v58  ;;  %v24646_v48 = vld [vmem:[#allocation24 + $0x968] ss:$28 sps:$4 sm:$0xff]   ;;  %v24649_v20 = vld [vmem:[#allocation24 + $0x970] ss:$28 sps:$4 sm:$0xff]   ;;  %v24660_v58 = vld [vmem:[#allocation24 + $0x9dc] ss:$28 sps:$4 sm:$0xff]  }
 0xc84   :  { %v24657_v14 = vld [vmem:[#allocation24 + $0x9ac] ss:$28 sps:$4 sm:$0xff]  }
 0xc85   :  { %v24655_v17 = vld [vmem:[#allocation24 + $0x9a8] ss:$28 sps:$4 sm:$0xff]  }
 0xc86   :  { %14593 = vmatpush1.bf16.msra.mxu0 %v24606_v43  ;;  %14634 = vmatpush1.bf16.msra.mxu1 %v24609_v33  ;;  %v24663_v43 = vld [vmem:[#allocation24 + $0x9e4] ss:$28 sps:$4 sm:$0xff]   ;;  %v24658_v33 = vld [vmem:[#allocation24 + $0x9d8] ss:$28 sps:$4 sm:$0xff]  }
 0xc87   :  { %14662 = vmatprep.subr.bf16.mxu0 %v24614_v38  ;;  %23225 = vmatprep.subr.bf16.mxu1 %v25624_v11  ;;  %v24666_v38 = vld [vmem:[#allocation24 + $0xa14] ss:$28 sps:$4 sm:$0xff]  }
 0xc89   :  { %19941 = vmatmul.mubr.msk.bf16.vlgmr.msra.gmra.mrb[28].mxu0 %vm8133_vm2, %v27848_v27  ;;  %19942 = vmatmul.mubr.msk.bf16.vlgmr.msra.gmra.mrb[24].mxu1 %vm8133_vm2, %v27848_v27 }
 0xc8a   :  { %14663 = vmatpush1.bf16.msra.mxu0 %v24612_v35  ;;  %23226 = vmatpush3.bf16.msra.mxu1 %v24615_v36  ;;  %v24669_v35 = vld [vmem:[#allocation24 + $0xa1c] ss:$28 sps:$4 sm:$0xff]   ;;  %v24664_v36 = vld [vmem:[#allocation24 + $0xa10] ss:$28 sps:$4 sm:$0xff]  }
 0xc8b   :  { %14664 = vmatprep.subr.bf16.mxu0 %v24618_v15  ;;  %23227 = vmatprep.subr.bf16.mxu1 %v25624_v11  ;;  %v24672_v15 = vld [vmem:[#allocation24 + $0xa4c] ss:$28 sps:$4 sm:$0xff]  }
 0xc8c   :  { %14694 = vmatprep.mubr.bf16.mxu0 %v25626_v32  ;;  %23239 = vmatprep.mubr.msk.bf16.mxu1 %vm25625_vm0, %v25624_v11 }
 0xc8e   :  { %14665 = vmatpush1.bf16.msra.mxu0 %v24616_v25  ;;  %23228 = vmatpush3.bf16.msra.mxu1 %v24619_v31  ;;  %v24675_v25 = vld [vmem:[#allocation24 + $0xa54] ss:$28 sps:$4 sm:$0xff]  }
 0xc8f   :  { %14666 = vmatprep.subr.bf16.mxu0 %v24622_v51  ;;  %23229 = vmatprep.subr.bf16.mxu1 %v25624_v11 }
 0xc92   :  { %14667 = vmatpush1.bf16.msra.mxu0 %v24620_v37  ;;  %23230 = vmatpush3.bf16.msra.mxu1 %v24623_v39 }
 0xc93   :  { %14668 = vmatprep.subr.bf16.mxu0 %v24626_v30  ;;  %23231 = vmatprep.subr.bf16.mxu1 %v25624_v11 }
 0xc96   :  { %14669 = vmatpush1.bf16.msra.mxu0 %v24624_v40  ;;  %23232 = vmatpush3.bf16.msra.mxu1 %v24627_v34 }
 0xc97   :  { %14670 = vmatprep.subr.bf16.mxu0 %v24630_v41  ;;  %23233 = vmatprep.subr.bf16.mxu1 %v25624_v11 }
 0xc98   :  { %v12771_v63 = vpop.f32.mrb[0].mxu0  ;;  %v12812_v56 = vpop.f32.mrb[252].mxu1 }
 0xc99   :  { %v27863_v1 = vadd.f32 %v12771_v63, %v27820_v12  ;;  %v27866_v54 = vadd.f32 %v12812_v56, %v27822_v21  ;;  %v12773_v10 = vpop.f32.mrb[1].mxu0  ;;  %v23169_v13 = vpop.f32.mrb[253].mxu1  ;;  %v24638_v12 = vld [vmem:[#allocation24 + $0x90c] ss:$28 sps:$4 sm:$0xff]  }
 0xc9a   :  { %v27869_v7 = vadd.f32 %v12773_v10, %v27824_v9  ;;  %v12775_v50 = vpop.f32.mrb[2].mxu0  ;;  %v12815_v45 = vpop.f32.mrb[254].mxu1  ;;  %14671 = vmatpush1.bf16.msra.mxu0 %v24628_v49  ;;  %23234 = vmatpush3.bf16.msra.mxu1 %v24631_v0  ;;  %v24636_v21 = vld [vmem:[#allocation24 + $0x908] ss:$28 sps:$4 sm:$0xff]   ;;  %v24642_v9 = vld [vmem:[#allocation24 + $0x934] ss:$28 sps:$4 sm:$0xff]  }
 0xc9b   :  { %v12776_v62 = vpop.f32.mrb[3].mxu0  ;;  %v23170_v44 = vpop.f32.mrb[255].mxu1  ;;  %14672 = vmatprep.subr.bf16.mxu0 %v24634_v61  ;;  %23235 = vmatprep.subr.bf16.mxu1 %v25624_v11  ;;  %v24670_v61 = vld [vmem:[#allocation24 + $0xa48] ss:$28 sps:$4 sm:$0xff]   ;;  %v24673_v63 = vld [vmem:[#allocation24 + $0xa50] ss:$28 sps:$4 sm:$0xff]  }
 0xc9c   :  { %v24678_v10 = vld [vmem:[#allocation24 + $0xa84] ss:$28 sps:$4 sm:$0xff]   ;;  %v24681_v13 = vld [vmem:[#allocation24 + $0xa8c] ss:$28 sps:$4 sm:$0xff]   ;;  %v24686_v44 = vld [vmem:[#allocation24 + $0x978] ss:$28 sps:$4 sm:$0xff]  }
 0xc9d   :  { %v24684_v45 = vld [vmem:[#allocation24 + $0x944] ss:$28 sps:$4 sm:$0xff]  }
 0xc9e   :  { %14673 = vmatpush1.bf16.msra.mxu0 %v24632_v60  ;;  %23236 = vmatpush3.bf16.msra.mxu1 %v24635_v19  ;;  %v24682_v60 = vld [vmem:[#allocation24 + $0x940] ss:$28 sps:$4 sm:$0xff]   ;;  %v24685_v19 = vld [vmem:[#allocation24 + $0x948] ss:$28 sps:$4 sm:$0xff]  }
 0xc9f   :  { %14674 = vmatprep.subr.bf16.mxu0 %v24638_v12  ;;  %23237 = vmatprep.subr.bf16.mxu1 %v25624_v11  ;;  %v24689_v12 = vld [vmem:[#allocation24 + $0x980] ss:$28 sps:$4 sm:$0xff]  }
 0xca2   :  { %14675 = vmatpush1.bf16.msra.mxu0 %v24636_v21  ;;  %23238 = vmatpush3.bf16.msra.mxu1 %v24639_v6  ;;  %v24692_v21 = vld [vmem:[#allocation24 + $0x9b4] ss:$28 sps:$4 sm:$0xff]  }
 0xca3   :  { %15063 = vmatprep.subr.bf16.mxu0 %v24642_v9  ;;  %15104 = vmatprep.subr.bf16.mxu1 %v24645_v2  ;;  %v24690_v6 = vld [vmem:[#allocation24 + $0x9b0] ss:$28 sps:$4 sm:$0xff]   ;;  %v24693_v9 = vld [vmem:[#allocation24 + $0x9b8] ss:$28 sps:$4 sm:$0xff]  }
 0xca4   :  { %v24696_v2 = vld [vmem:[#allocation24 + $0x9ec] ss:$28 sps:$4 sm:$0xff]  }
 0xca5   :  { %19943 = vmatmul.mubr.msk.bf16.vlgmr.msra.gmra.mrb[32].mxu0 %vm8133_vm2, %v27848_v27  ;;  %23240 = vmatmul.mubr.msk.bf16.vlgmr.msra.gmra.mrb[28].mxu1 %vm8133_vm2, %v27848_v27  ;;  %v24667_v27 = vld [vmem:[#allocation24 + $0xa18] ss:$28 sps:$4 sm:$0xff]  }
 0xca6   :  { %15064 = vmatpush1.bf16.msra.mxu0 %v24640_v16  ;;  %15105 = vmatpush1.bf16.msra.mxu1 %v24643_v5  ;;  %v24694_v16 = vld [vmem:[#allocation24 + $0x9e8] ss:$28 sps:$4 sm:$0xff]   ;;  %v24697_v5 = vld [vmem:[#allocation24 + $0x9f0] ss:$28 sps:$4 sm:$0xff]  }
 0xca7   :  { %15065 = vmatprep.subr.bf16.mxu0 %v24648_v22  ;;  %15106 = vmatprep.subr.bf16.mxu1 %v24651_v55  ;;  %v24700_v22 = vld [vmem:[#allocation24 + $0xa24] ss:$28 sps:$4 sm:$0xff]  }
 0xca8   :  { %15095 = vmatprep.mubr.bf16.mxu0 %v25626_v32  ;;  %15136 = vmatprep.mubr.bf16.mxu1 %v25626_v32  ;;  %v24698_v55 = vld [vmem:[#allocation24 + $0xa20] ss:$28 sps:$4 sm:$0xff]  }
 0xcaa   :  { %15066 = vmatpush1.bf16.msra.mxu0 %v24646_v48  ;;  %15107 = vmatpush1.bf16.msra.mxu1 %v24649_v20  ;;  %v24701_v48 = vld [vmem:[#allocation24 + $0xa28] ss:$28 sps:$4 sm:$0xff]   ;;  %v24704_v20 = vld [vmem:[#allocation24 + $0xa5c] ss:$28 sps:$4 sm:$0xff]  }
 0xcab   :  { %15067 = vmatprep.subr.bf16.mxu0 %v24654_v23  ;;  %15108 = vmatprep.subr.bf16.mxu1 %v24657_v14 }
 0xcae   :  { %15068 = vmatpush1.bf16.msra.mxu0 %v24652_v47  ;;  %15109 = vmatpush1.bf16.msra.mxu1 %v24655_v17 }
 0xcaf   :  { %15069 = vmatprep.subr.bf16.mxu0 %v24660_v58  ;;  %15110 = vmatprep.subr.bf16.mxu1 %v24663_v43 }
 0xcb2   :  { %15070 = vmatpush1.bf16.msra.mxu0 %v24658_v33  ;;  %15111 = vmatpush1.bf16.msra.mxu1 %v24661_v4 }
 0xcb3   :  { %15071 = vmatprep.subr.bf16.mxu0 %v24666_v38  ;;  %15112 = vmatprep.subr.bf16.mxu1 %v24669_v35  ;;  %v24702_v35 = vld [vmem:[#allocation24 + $0xa58] ss:$28 sps:$4 sm:$0xff]  }
 0xcb4   :  { %v13165_v31 = vpop.f32.mrb[4].mxu0  ;;  %v13206_v51 = vpop.f32.mrb[0].mxu1 }
 0xcb5   :  { %v27880_v37 = vadd.f32 %v13165_v31, %v27835_v8  ;;  %v27883_v39 = vadd.f32 %v13206_v51, %v27838_v46  ;;  %v13167_v30 = vpop.f32.mrb[5].mxu0  ;;  %v13208_v40 = vpop.f32.mrb[1].mxu1  ;;  %v11439_v8 = vadd.f32 %v27802_v59, %v27700_v42  ;;  %v24688_v42 = vld [vmem:[#allocation24 + $0x97c] ss:$28 sps:$4 sm:$0xff]   ;;  %v24715_v31 = vld [vmem:[#allocation24 + $0xac4] ss:$28 sps:$4 sm:$0xff]  }
 0xcb6   :  { %v27886_v34 = vadd.f32 %v13167_v30, %v27841_v53  ;;  %v27889_v41 = vadd.f32 %v13208_v40, %v27844_v26  ;;  %v13169_v49 = vpop.f32.mrb[6].mxu0  ;;  %v13210_v0 = vpop.f32.mrb[2].mxu1  ;;  %15072 = vmatpush1.bf16.msra.mxu0 %v24664_v36  ;;  %15113 = vmatpush1.bf16.msra.mxu1 %v24667_v27  ;;  %v24676_v53 = vld [vmem:[#allocation24 + $0xa80] ss:$28 sps:$4 sm:$0xff]   ;;  %v24679_v26 = vld [vmem:[#allocation24 + $0xa88] ss:$28 sps:$4 sm:$0xff]  }
 0xcb7   :  { %v13170_v56 = vpop.f32.mrb[7].mxu0  ;;  %v13211_v46 = vpop.f32.mrb[3].mxu1  ;;  %15073 = vmatprep.subr.bf16.mxu0 %v24672_v15  ;;  %15114 = vmatprep.subr.bf16.mxu1 %v24675_v25  ;;  %v11444_v50 = vmax.f32 %v11439_v8, 0.0  ;;  %v24705_v36 = vld [vmem:[#allocation24 + $0xa60] ss:$28 sps:$4 sm:$0xff]  }
 0xcb8   :  { %v24709_v25 = vld [vmem:[#allocation24 + $0xa98] ss:$28 sps:$4 sm:$0xff]   ;;  %v24713_v30 = vld [vmem:[#allocation24 + $0xac0] ss:$28 sps:$4 sm:$0xff]   ;;  %v24716_v0 = vld [vmem:[#allocation24 + $0xaf0] ss:$28 sps:$4 sm:$0xff]  }
 0xcb9   :  { %v27893_v62 = vpack.c.bf16 %v11444_v50, %v11444_v50  ;;  %v24710_v51 = vld [vmem:[#allocation24 + $0xab8] ss:$28 sps:$4 sm:$0xff]   ;;  %v24722_v56 = vld [vmem:[#allocation24 + $0xb28] ss:$28 sps:$4 sm:$0xff]   ;;  %v24725_v46 = vld [vmem:[#allocation24 + $0xb30] ss:$28 sps:$4 sm:$0xff]  }
 0xcba   :  { %15074 = vmatpush1.bf16.msra.mxu0 %v24670_v61  ;;  %15115 = vmatpush1.bf16.msra.mxu1 %v24673_v63  ;;  %v24718_v40 = vld [vmem:[#allocation24 + $0xaf4] ss:$28 sps:$4 sm:$0xff]   ;;  %v24721_v49 = vld [vmem:[#allocation24 + $0xafc] ss:$28 sps:$4 sm:$0xff]   ;;  %v24724_v63 = vld [vmem:[#allocation24 + $0xb2c] ss:$28 sps:$4 sm:$0xff]  }
 0xcbb   :  { %15075 = vmatprep.subr.bf16.mxu0 %v24678_v10  ;;  %15116 = vmatprep.subr.bf16.mxu1 %v24681_v13  ;;  %v24719_v61 = vld [vmem:[#allocation24 + $0xaf8] ss:$28 sps:$4 sm:$0xff]   ;;  %v24730_v10 = vld [vmem:[#allocation24 + $0xb64] ss:$28 sps:$4 sm:$0xff]   ;;  %v24733_v13 = vld [vmem:[#allocation24 + $0xb6c] ss:$28 sps:$4 sm:$0xff]  }
 0xcbc   :  { %v24727_v8 = vld [vmem:[#allocation24 + $0xb34] ss:$28 sps:$4 sm:$0xff]   ;;  %v24736_v50 = vld [vmem:[#allocation24 + $0xb9c] ss:$28 sps:$4 sm:$0xff]  }
 0xcbe   :  { %15076 = vmatpush1.bf16.msra.mxu0 %v24676_v53  ;;  %15117 = vmatpush1.bf16.msra.mxu1 %v24679_v26  ;;  %v24728_v53 = vld [vmem:[#allocation24 + $0xb60] ss:$28 sps:$4 sm:$0xff]   ;;  %v24731_v26 = vld [vmem:[#allocation24 + $0xb68] ss:$28 sps:$4 sm:$0xff]  }
 0xcbf   :  { %15145 = vmatprep.subr.bf16.mxu0 %v24684_v45  ;;  %23243 = vmatprep.subr.bf16.mxu1 %v25624_v11  ;;  %v24739_v45 = vld [vmem:[#allocation24 + $0xba4] ss:$28 sps:$4 sm:$0xff]  }
 0xcc1   :  { %19994 = vmatmul.mubr.msk.bf16.vlgmr.msra.gmra.mrb[36].mxu0 %vm8133_vm2, %v27893_v62  ;;  %19995 = vmatmul.mubr.msk.bf16.vlgmr.msra.gmra.mrb[32].mxu1 %vm8133_vm2, %v27893_v62 }
 0xcc2   :  { %15146 = vmatpush1.bf16.msra.mxu0 %v24682_v60  ;;  %23244 = vmatpush3.bf16.msra.mxu1 %v24685_v19  ;;  %v24734_v60 = vld [vmem:[#allocation24 + $0xb98] ss:$28 sps:$4 sm:$0xff]   ;;  %v24737_v19 = vld [vmem:[#allocation24 + $0xba0] ss:$28 sps:$4 sm:$0xff]  }
 0xcc3   :  { %15147 = vmatprep.subr.bf16.mxu0 %v24688_v42  ;;  %23245 = vmatprep.subr.bf16.mxu1 %v25624_v11  ;;  %v24745_v42 = vld [vmem:[#allocation24 + $0xbdc] ss:$28 sps:$4 sm:$0xff]  }
 0xcc4   :  { %15177 = vmatprep.mubr.bf16.mxu0 %v25626_v32  ;;  %23257 = vmatprep.mubr.msk.bf16.mxu1 %vm25625_vm0, %v25624_v11 }
 0xcc6   :  { %15148 = vmatpush1.bf16.msra.mxu0 %v24686_v44  ;;  %23246 = vmatpush3.bf16.msra.mxu1 %v24689_v12 }
 0xcc7   :  { %15149 = vmatprep.subr.bf16.mxu0 %v24692_v21  ;;  %23247 = vmatprep.subr.bf16.mxu1 %v25624_v11 }
 0xcca   :  { %15150 = vmatpush1.bf16.msra.mxu0 %v24690_v6  ;;  %23248 = vmatpush3.bf16.msra.mxu1 %v24693_v9 }
 0xccb   :  { %15151 = vmatprep.subr.bf16.mxu0 %v24696_v2  ;;  %23249 = vmatprep.subr.bf16.mxu1 %v25624_v11 }
 0xcce   :  { %15152 = vmatpush1.bf16.msra.mxu0 %v24694_v16  ;;  %23250 = vmatpush3.bf16.msra.mxu1 %v24697_v5 }
 0xccf   :  { %15153 = vmatprep.subr.bf16.mxu0 %v24700_v22  ;;  %23251 = vmatprep.subr.bf16.mxu1 %v25624_v11 }
 0xcd0   :  { %v13247_v23 = vpop.f32.mrb[8].mxu0  ;;  %v13288_v14 = vpop.f32.mrb[4].mxu1 }
 0xcd1   :  { %v27908_v47 = vadd.f32 %v13247_v23, %v27863_v1  ;;  %v27911_v17 = vadd.f32 %v13288_v14, %v27866_v54  ;;  %v13249_v58 = vpop.f32.mrb[9].mxu0  ;;  %v23187_v43 = vpop.f32.mrb[5].mxu1  ;;  %v24708_v1 = vld [vmem:[#allocation24 + $0xa94] ss:$28 sps:$4 sm:$0xff]   ;;  %v24748_v14 = vld [vmem:[#allocation24 + $0xc0c] ss:$28 sps:$4 sm:$0xff]  }
 0xcd2   :  { %v27914_v33 = vadd.f32 %v13249_v58, %v27869_v7  ;;  %v13251_v4 = vpop.f32.mrb[10].mxu0  ;;  %v13291_v38 = vpop.f32.mrb[6].mxu1  ;;  %15154 = vmatpush1.bf16.msra.mxu0 %v24698_v55  ;;  %23252 = vmatpush3.bf16.msra.mxu1 %v24701_v48  ;;  %v24706_v54 = vld [vmem:[#allocation24 + $0xa90] ss:$28 sps:$4 sm:$0xff]   ;;  %v24712_v7 = vld [vmem:[#allocation24 + $0xabc] ss:$28 sps:$4 sm:$0xff]  }
 0xcd3   :  { %v13252_v27 = vpop.f32.mrb[11].mxu0  ;;  %v23188_v15 = vpop.f32.mrb[7].mxu1  ;;  %15155 = vmatprep.subr.bf16.mxu0 %v24704_v20  ;;  %23253 = vmatprep.subr.bf16.mxu1 %v25624_v11  ;;  %v24740_v48 = vld [vmem:[#allocation24 + $0xbd0] ss:$28 sps:$4 sm:$0xff]   ;;  %v24743_v20 = vld [vmem:[#allocation24 + $0xbd8] ss:$28 sps:$4 sm:$0xff]  }
 0xcd4   :  { %v24751_v58 = vld [vmem:[#allocation24 + $0xc14] ss:$28 sps:$4 sm:$0xff]   ;;  %v24754_v4 = vld [vmem:[#allocation24 + $0xacc] ss:$28 sps:$4 sm:$0xff]   ;;  %v24762_v15 = vld [vmem:[#allocation24 + $0xb3c] ss:$28 sps:$4 sm:$0xff]  }
 0xcd5   :  { %v24752_v38 = vld [vmem:[#allocation24 + $0xac8] ss:$28 sps:$4 sm:$0xff]  }
 0xcd6   :  { %15156 = vmatpush1.bf16.msra.mxu0 %v24702_v35  ;;  %23254 = vmatpush3.bf16.msra.mxu1 %v24705_v36  ;;  %v24755_v35 = vld [vmem:[#allocation24 + $0xad0] ss:$28 sps:$4 sm:$0xff]   ;;  %v24759_v27 = vld [vmem:[#allocation24 + $0xb08] ss:$28 sps:$4 sm:$0xff]  }
 0xcd7   :  { %15157 = vmatprep.subr.bf16.mxu0 %v24708_v1  ;;  %23255 = vmatprep.subr.bf16.mxu1 %v25624_v11  ;;  %v24760_v1 = vld [vmem:[#allocation24 + $0xb38] ss:$28 sps:$4 sm:$0xff]  }
 0xcda   :  { %15158 = vmatpush1.bf16.msra.mxu0 %v24706_v54  ;;  %23256 = vmatpush3.bf16.msra.mxu1 %v24709_v25  ;;  %v24763_v54 = vld [vmem:[#allocation24 + $0xb40] ss:$28 sps:$4 sm:$0xff]   ;;  %v24766_v25 = vld [vmem:[#allocation24 + $0xb74] ss:$28 sps:$4 sm:$0xff]  }
 0xcdb   :  { %15546 = vmatprep.subr.bf16.mxu0 %v24712_v7  ;;  %15587 = vmatprep.subr.bf16.mxu1 %v24715_v31  ;;  %v24764_v7 = vld [vmem:[#allocation24 + $0xb70] ss:$28 sps:$4 sm:$0xff]   ;;  %v24767_v31 = vld [vmem:[#allocation24 + $0xb78] ss:$28 sps:$4 sm:$0xff]  }
 0xcdd   :  { %19996 = vmatmul.mubr.msk.bf16.vlgmr.msra.gmra.mrb[40].mxu0 %vm8133_vm2, %v27893_v62  ;;  %23258 = vmatmul.mubr.msk.bf16.vlgmr.msra.gmra.mrb[36].mxu1 %vm8133_vm2, %v27893_v62  ;;  %v24742_v62 = vld [vmem:[#allocation24 + $0xbd4] ss:$28 sps:$4 sm:$0xff]  }
 0xcde   :  { %15547 = vmatpush1.bf16.msra.mxu0 %v24710_v51  ;;  %15588 = vmatpush1.bf16.msra.mxu1 %v24713_v30  ;;  %v24770_v51 = vld [vmem:[#allocation24 + $0xbac] ss:$28 sps:$4 sm:$0xff]  }
 0xcdf   :  { %15548 = vmatprep.subr.bf16.mxu0 %v24718_v40  ;;  %15589 = vmatprep.subr.bf16.mxu1 %v24721_v49  ;;  %v24768_v30 = vld [vmem:[#allocation24 + $0xba8] ss:$28 sps:$4 sm:$0xff]   ;;  %v24771_v40 = vld [vmem:[#allocation24 + $0xbb0] ss:$28 sps:$4 sm:$0xff]  }
 0xce0   :  { %15578 = vmatprep.mubr.bf16.mxu0 %v25626_v32  ;;  %15619 = vmatprep.mubr.bf16.mxu1 %v25626_v32  ;;  %v24774_v49 = vld [vmem:[#allocation24 + $0xbe4] ss:$28 sps:$4 sm:$0xff]  }
 0xce2   :  { %15549 = vmatpush1.bf16.msra.mxu0 %v24716_v0  ;;  %15590 = vmatpush1.bf16.msra.mxu1 %v24719_v61 }
 0xce3   :  { %15550 = vmatprep.subr.bf16.mxu0 %v24724_v63  ;;  %15591 = vmatprep.subr.bf16.mxu1 %v24727_v8 }
 0xce6   :  { %15551 = vmatpush1.bf16.msra.mxu0 %v24722_v56  ;;  %15592 = vmatpush1.bf16.msra.mxu1 %v24725_v46 }
 0xce7   :  { %15552 = vmatprep.subr.bf16.mxu0 %v24730_v10  ;;  %15593 = vmatprep.subr.bf16.mxu1 %v24733_v13 }
 0xcea   :  { %15553 = vmatpush1.bf16.msra.mxu0 %v24728_v53  ;;  %15594 = vmatpush1.bf16.msra.mxu1 %v24731_v26  ;;  %v24772_v26 = vld [vmem:[#allocation24 + $0xbe0] ss:$28 sps:$4 sm:$0xff]  }
 0xceb   :  { %15554 = vmatprep.subr.bf16.mxu0 %v24736_v50  ;;  %15595 = vmatprep.subr.bf16.mxu1 %v24739_v45  ;;  %v24775_v50 = vld [vmem:[#allocation24 + $0xbe8] ss:$28 sps:$4 sm:$0xff]  }
 0xcec   :  { %v13648_v44 = vpop.f32.mrb[12].mxu0  ;;  %v13689_v12 = vpop.f32.mrb[8].mxu1 }
 0xced   :  { %v27925_v21 = vadd.f32 %v13648_v44, %v27880_v37  ;;  %v27928_v6 = vadd.f32 %v13689_v12, %v27883_v39  ;;  %v13650_v9 = vpop.f32.mrb[13].mxu0  ;;  %v13691_v2 = vpop.f32.mrb[9].mxu1  ;;  %v11529_v37 = vadd.f32 %v27802_v59, %v27721_v28  ;;  %v24758_v28 = vld [vmem:[#allocation24 + $0xb04] ss:$28 sps:$4 sm:$0xff]   ;;  %v24788_v12 = vld [vmem:[#allocation24 + $0xc7c] ss:$28 sps:$4 sm:$0xff]  }
 0xcee   :  { %v27931_v16 = vadd.f32 %v13650_v9, %v27886_v34  ;;  %v27934_v5 = vadd.f32 %v13691_v2, %v27889_v41  ;;  %v13652_v22 = vpop.f32.mrb[14].mxu0  ;;  %v13693_v55 = vpop.f32.mrb[10].mxu1  ;;  %15555 = vmatpush1.bf16.msra.mxu0 %v24734_v60  ;;  %15596 = vmatpush1.bf16.msra.mxu1 %v24737_v19  ;;  %v24746_v34 = vld [vmem:[#allocation24 + $0xc08] ss:$28 sps:$4 sm:$0xff]   ;;  %v24749_v41 = vld [vmem:[#allocation24 + $0xc10] ss:$28 sps:$4 sm:$0xff]  }
 0xcef   :  { %v13653_v23 = vpop.f32.mrb[15].mxu0  ;;  %v13694_v39 = vpop.f32.mrb[11].mxu1  ;;  %15556 = vmatprep.subr.bf16.mxu0 %v24742_v62  ;;  %15597 = vmatprep.subr.bf16.mxu1 %v24745_v42  ;;  %v11530_v43 = vmax.f32 %v11529_v37, 0.0  ;;  %v24756_v59 = vld [vmem:[#allocation24 + $0xb00] ss:$28 sps:$4 sm:$0xff]  }
 0xcf0   :  { %v24779_v19 = vld [vmem:[#allocation24 + $0xc20] ss:$28 sps:$4 sm:$0xff]   ;;  %v24785_v62 = vld [vmem:[#allocation24 + $0xc4c] ss:$28 sps:$4 sm:$0xff]   ;;  %v24786_v2 = vld [vmem:[#allocation24 + $0xc78] ss:$28 sps:$4 sm:$0xff]  }
 0xcf1   :  { %v27938_v36 = vpack.c.bf16 %v11530_v43, %v11530_v43  ;;  %v24780_v42 = vld [vmem:[#allocation24 + $0xc40] ss:$28 sps:$4 sm:$0xff]   ;;  %v24783_v44 = vld [vmem:[#allocation24 + $0xc48] ss:$28 sps:$4 sm:$0xff]   ;;  %v24794_v55 = vld [vmem:[#allocation24 + $0xcb4] ss:$28 sps:$4 sm:$0xff]  }
 0xcf2   :  { %15557 = vmatpush1.bf16.msra.mxu0 %v24740_v48  ;;  %15598 = vmatpush1.bf16.msra.mxu1 %v24743_v20  ;;  %v24791_v9 = vld [vmem:[#allocation24 + $0xc84] ss:$28 sps:$4 sm:$0xff]   ;;  %v24797_v48 = vld [vmem:[#allocation24 + $0xcbc] ss:$28 sps:$4 sm:$0xff]   ;;  %v24792_v20 = vld [vmem:[#allocation24 + $0xcb0] ss:$28 sps:$4 sm:$0xff]  }
 0xcf3   :  { %15558 = vmatprep.subr.bf16.mxu0 %v24748_v14  ;;  %15599 = vmatprep.subr.bf16.mxu1 %v24751_v58  ;;  %v24789_v22 = vld [vmem:[#allocation24 + $0xc80] ss:$28 sps:$4 sm:$0xff]   ;;  %v24795_v37 = vld [vmem:[#allocation24 + $0xcb8] ss:$28 sps:$4 sm:$0xff]   ;;  %v24800_v23 = vld [vmem:[#allocation24 + $0xcec] ss:$28 sps:$4 sm:$0xff]  }
 0xcf4   :  { %v24803_v39 = vld [vmem:[#allocation24 + $0xcf4] ss:$28 sps:$4 sm:$0xff]   ;;  %v24798_v14 = vld [vmem:[#allocation24 + $0xce8] ss:$28 sps:$4 sm:$0xff]   ;;  %v24804_v43 = vld [vmem:[#allocation24 + $0xd20] ss:$28 sps:$4 sm:$0xff]  }
 0xcf5   :  { %v24801_v58 = vld [vmem:[#allocation24 + $0xcf0] ss:$28 sps:$4 sm:$0xff]  }
 0xcf6   :  { %15559 = vmatpush1.bf16.msra.mxu0 %v24746_v34  ;;  %15600 = vmatpush1.bf16.msra.mxu1 %v24749_v41  ;;  %v24806_v34 = vld [vmem:[#allocation24 + $0xd24] ss:$28 sps:$4 sm:$0xff]   ;;  %v24809_v41 = vld [vmem:[#allocation24 + $0xd2c] ss:$28 sps:$4 sm:$0xff]  }
 0xcf7   :  { %15628 = vmatprep.subr.bf16.mxu0 %v24754_v4  ;;  %23261 = vmatprep.subr.bf16.mxu1 %v25624_v11  ;;  %v24807_v4 = vld [vmem:[#allocation24 + $0xd28] ss:$28 sps:$4 sm:$0xff]  }
 0xcf9   :  { %20047 = vmatmul.mubr.msk.bf16.vlgmr.msra.gmra.mrb[44].mxu0 %vm8133_vm2, %v27938_v36  ;;  %20048 = vmatmul.mubr.msk.bf16.vlgmr.msra.gmra.mrb[40].mxu1 %vm8133_vm2, %v27938_v36 }
 0xcfa   :  { %15629 = vmatpush1.bf16.msra.mxu0 %v24752_v38  ;;  %23262 = vmatpush3.bf16.msra.mxu1 %v24755_v35  ;;  %v24812_v38 = vld [vmem:[#allocation24 + $0xd5c] ss:$28 sps:$4 sm:$0xff]   ;;  %v24815_v35 = vld [vmem:[#allocation24 + $0xd64] ss:$28 sps:$4 sm:$0xff]  }
 0xcfb   :  { %15630 = vmatprep.subr.bf16.mxu0 %v24758_v28  ;;  %23263 = vmatprep.subr.bf16.mxu1 %v25624_v11 }
 0xcfc   :  { %15660 = vmatprep.mubr.bf16.mxu0 %v25626_v32  ;;  %23275 = vmatprep.mubr.msk.bf16.mxu1 %vm25625_vm0, %v25624_v11 }
 0xcfe   :  { %15631 = vmatpush1.bf16.msra.mxu0 %v24756_v59  ;;  %23264 = vmatpush3.bf16.msra.mxu1 %v24759_v27 }
 0xcff   :  { %15632 = vmatprep.subr.bf16.mxu0 %v24762_v15  ;;  %23265 = vmatprep.subr.bf16.mxu1 %v25624_v11 }
 0xd02   :  { %15633 = vmatpush1.bf16.msra.mxu0 %v24760_v1  ;;  %23266 = vmatpush3.bf16.msra.mxu1 %v24763_v54 }
 0xd03   :  { %15634 = vmatprep.subr.bf16.mxu0 %v24766_v25  ;;  %23267 = vmatprep.subr.bf16.mxu1 %v25624_v11 }
 0xd06   :  { %15635 = vmatpush1.bf16.msra.mxu0 %v24764_v7  ;;  %23268 = vmatpush3.bf16.msra.mxu1 %v24767_v31 }
 0xd07   :  { %15636 = vmatprep.subr.bf16.mxu0 %v24770_v51  ;;  %23269 = vmatprep.subr.bf16.mxu1 %v25624_v11  ;;  %v24810_v51 = vld [vmem:[#allocation24 + $0xd58] ss:$28 sps:$4 sm:$0xff]  }
 0xd08   :  { %v13730_v0 = vpop.f32.mrb[16].mxu0  ;;  %v13771_v61 = vpop.f32.mrb[12].mxu1 }
 0xd09   :  { %v27953_v63 = vadd.f32 %v13730_v0, %v27908_v47  ;;  %v27956_v8 = vadd.f32 %v13771_v61, %v27911_v17  ;;  %v13732_v56 = vpop.f32.mrb[17].mxu0  ;;  %v23205_v46 = vpop.f32.mrb[13].mxu1  ;;  %v24778_v47 = vld [vmem:[#allocation24 + $0xc1c] ss:$28 sps:$4 sm:$0xff]  }
 0xd0a   :  { %v27959_v10 = vadd.f32 %v13732_v56, %v27914_v33  ;;  %v13734_v13 = vpop.f32.mrb[18].mxu0  ;;  %v13774_v53 = vpop.f32.mrb[14].mxu1  ;;  %15637 = vmatpush1.bf16.msra.mxu0 %v24768_v30  ;;  %23270 = vmatpush3.bf16.msra.mxu1 %v24771_v40  ;;  %v24776_v17 = vld [vmem:[#allocation24 + $0xc18] ss:$28 sps:$4 sm:$0xff]   ;;  %v24782_v33 = vld [vmem:[#allocation24 + $0xc44] ss:$28 sps:$4 sm:$0xff]  }
 0xd0b   :  { %v13735_v45 = vpop.f32.mrb[19].mxu0  ;;  %v23206_v60 = vpop.f32.mrb[15].mxu1  ;;  %15638 = vmatprep.subr.bf16.mxu0 %v24774_v49  ;;  %23271 = vmatprep.subr.bf16.mxu1 %v25624_v11  ;;  %v24813_v30 = vld [vmem:[#allocation24 + $0xd60] ss:$28 sps:$4 sm:$0xff]   ;;  %v24819_v61 = vld [vmem:[#allocation24 + $0xd98] ss:$28 sps:$4 sm:$0xff]  }
 0xd0c   :  { %v27981_v40 = vld [vmem:[#allocation22] ss:$0 sm:$0xff]  ;;  %v24824_v46 = vld [vmem:[#allocation24 + $0xc54] ss:$28 sps:$4 sm:$0xff]   ;;  %v24832_v60 = vld [vmem:[#allocation24 + $0xcc4] ss:$28 sps:$4 sm:$0xff]  }
 0xd0d   :  { %v24821_v0 = vld [vmem:[#allocation24 + $0xd9c] ss:$28 sps:$4 sm:$0xff]   ;;  %v24822_v13 = vld [vmem:[#allocation24 + $0xc50] ss:$28 sps:$4 sm:$0xff]  }
 0xd0e   :  { %15639 = vmatpush1.bf16.msra.mxu0 %v24772_v26  ;;  %23272 = vmatpush3.bf16.msra.mxu1 %v24775_v50  ;;  %v24825_v53 = vld [vmem:[#allocation24 + $0xc58] ss:$28 sps:$4 sm:$0xff]   ;;  %v24826_v50 = vld [vmem:[#allocation24 + $0xc88] ss:$28 sps:$4 sm:$0xff]   ;;  %v24829_v45 = vld [vmem:[#allocation24 + $0xc90] ss:$28 sps:$4 sm:$0xff]  }
 0xd0f   :  { %15640 = vmatprep.subr.bf16.mxu0 %v24778_v47  ;;  %23273 = vmatprep.subr.bf16.mxu1 %v25624_v11  ;;  %v24830_v47 = vld [vmem:[#allocation24 + $0xcc0] ss:$28 sps:$4 sm:$0xff]  }
 0xd12   :  { %15641 = vmatpush1.bf16.msra.mxu0 %v24776_v17  ;;  %23274 = vmatpush3.bf16.msra.mxu1 %v24779_v19  ;;  %v24833_v17 = vld [vmem:[#allocation24 + $0xcc8] ss:$28 sps:$4 sm:$0xff]   ;;  %v24836_v19 = vld [vmem:[#allocation24 + $0xcfc] ss:$28 sps:$4 sm:$0xff]  }
 0xd13   :  { %16029 = vmatprep.subr.bf16.mxu0 %v24782_v33  ;;  %16070 = vmatprep.subr.bf16.mxu1 %v24785_v62  ;;  %v24834_v33 = vld [vmem:[#allocation24 + $0xcf8] ss:$28 sps:$4 sm:$0xff]   ;;  %v24837_v62 = vld [vmem:[#allocation24 + $0xd00] ss:$28 sps:$4 sm:$0xff]  }
 0xd15   :  { %20049 = vmatmul.mubr.msk.bf16.vlgmr.msra.gmra.mrb[48].mxu0 %vm8133_vm2, %v27938_v36  ;;  %23276 = vmatmul.mubr.msk.bf16.vlgmr.msra.gmra.mrb[44].mxu1 %vm8133_vm2, %v27938_v36 }
 0xd16   :  { %16030 = vmatpush1.bf16.msra.mxu0 %v24780_v42  ;;  %16071 = vmatpush1.bf16.msra.mxu1 %v24783_v44  ;;  %v24840_v42 = vld [vmem:[#allocation24 + $0xd34] ss:$28 sps:$4 sm:$0xff]  }
 0xd17   :  { %16031 = vmatprep.subr.bf16.mxu0 %v24788_v12  ;;  %16072 = vmatprep.subr.bf16.mxu1 %v24791_v9  ;;  %v24838_v44 = vld [vmem:[#allocation24 + $0xd30] ss:$28 sps:$4 sm:$0xff]   ;;  %v24841_v12 = vld [vmem:[#allocation24 + $0xd38] ss:$28 sps:$4 sm:$0xff]  }
 0xd18   :  { %16061 = vmatprep.mubr.bf16.mxu0 %v25626_v32  ;;  %16102 = vmatprep.mubr.bf16.mxu1 %v25626_v32  ;;  %v24844_v9 = vld [vmem:[#allocation24 + $0xd6c] ss:$28 sps:$4 sm:$0xff]  }
 0xd1a   :  { %16032 = vmatpush1.bf16.msra.mxu0 %v24786_v2  ;;  %16073 = vmatpush1.bf16.msra.mxu1 %v24789_v22 }
 0xd1b   :  { %16033 = vmatprep.subr.bf16.mxu0 %v24794_v55  ;;  %16074 = vmatprep.subr.bf16.mxu1 %v24797_v48 }
 0xd1e   :  { %16034 = vmatpush1.bf16.msra.mxu0 %v24792_v20  ;;  %16075 = vmatpush1.bf16.msra.mxu1 %v24795_v37 }
 0xd1f   :  { %16035 = vmatprep.subr.bf16.mxu0 %v24800_v23  ;;  %16076 = vmatprep.subr.bf16.mxu1 %v24803_v39 }
 0xd22   :  { %16036 = vmatpush1.bf16.msra.mxu0 %v24798_v14  ;;  %16077 = vmatpush1.bf16.msra.mxu1 %v24801_v58  ;;  %v24842_v58 = vld [vmem:[#allocation24 + $0xd68] ss:$28 sps:$4 sm:$0xff]  }
 0xd23   :  { %16037 = vmatprep.subr.bf16.mxu0 %v24806_v34  ;;  %16078 = vmatprep.subr.bf16.mxu1 %v24809_v41  ;;  %v24845_v34 = vld [vmem:[#allocation24 + $0xd70] ss:$28 sps:$4 sm:$0xff]  }
 0xd24   :  { %v14131_v36 = vpop.f32.mrb[20].mxu0  ;;  %v14172_v28 = vpop.f32.mrb[16].mxu1 }
 0xd25   :  { %v27970_v59 = vadd.f32 %v14131_v36, %v27925_v21  ;;  %v27973_v27 = vadd.f32 %v14172_v28, %v27928_v6  ;;  %v14133_v15 = vpop.f32.mrb[21].mxu0  ;;  %v14174_v1 = vpop.f32.mrb[17].mxu1  ;;  %v11566_v21 = vadd.f32 %v27981_v40, %v27731_v29  ;;  %v24828_v29 = vld [vmem:[#allocation24 + $0xc8c] ss:$28 sps:$4 sm:$0xff]   ;;  %v24858_v28 = vld [vmem:[#allocation24 + $0xe04] ss:$28 sps:$4 sm:$0xff]  }
 0xd26   :  { %v27976_v54 = vadd.f32 %v14133_v15, %v27931_v16  ;;  %v27979_v25 = vadd.f32 %v14174_v1, %v27934_v5  ;;  %v14135_v7 = vpop.f32.mrb[22].mxu0  ;;  %v14176_v31 = vpop.f32.mrb[18].mxu1  ;;  %16038 = vmatpush1.bf16.msra.mxu0 %v24804_v43  ;;  %16079 = vmatpush1.bf16.msra.mxu1 %v24807_v4  ;;  %v24818_v16 = vld [vmem:[#allocation24 + $0xd94] ss:$28 sps:$4 sm:$0xff]   ;;  %v24849_v4 = vld [vmem:[#allocation24 + $0xda8] ss:$28 sps:$4 sm:$0xff]  }
 0xd27   :  { %v14136_v6 = vpop.f32.mrb[23].mxu0  ;;  %v14177_v49 = vpop.f32.mrb[19].mxu1  ;;  %16039 = vmatprep.subr.bf16.mxu0 %v24812_v38  ;;  %16080 = vmatprep.subr.bf16.mxu1 %v24815_v35  ;;  %v24816_v5 = vld [vmem:[#allocation24 + $0xd90] ss:$28 sps:$4 sm:$0xff]   ;;  %v11571_v56 = vmax.f32 %v11566_v21, 0.0 }
 0xd28   :  { %v24855_v38 = vld [vmem:[#allocation24 + $0xdd4] ss:$28 sps:$4 sm:$0xff]   ;;  %v24850_v35 = vld [vmem:[#allocation24 + $0xdc8] ss:$28 sps:$4 sm:$0xff]   ;;  %v24856_v1 = vld [vmem:[#allocation24 + $0xe00] ss:$28 sps:$4 sm:$0xff]  }
 0xd29   :  { %v27985_v26 = vpack.c.bf16 %v11571_v56, %v11571_v56  ;;  %v24853_v36 = vld [vmem:[#allocation24 + $0xdd0] ss:$28 sps:$4 sm:$0xff]   ;;  %v24859_v7 = vld [vmem:[#allocation24 + $0xe08] ss:$28 sps:$4 sm:$0xff]   ;;  %v24864_v31 = vld [vmem:[#allocation24 + $0xe3c] ss:$28 sps:$4 sm:$0xff]  }
 0xd2a   :  { %16040 = vmatpush1.bf16.msra.mxu0 %v24810_v51  ;;  %16081 = vmatpush1.bf16.msra.mxu1 %v24813_v30  ;;  %v24861_v15 = vld [vmem:[#allocation24 + $0xe0c] ss:$28 sps:$4 sm:$0xff]   ;;  %v24867_v51 = vld [vmem:[#allocation24 + $0xe44] ss:$28 sps:$4 sm:$0xff]   ;;  %v24862_v30 = vld [vmem:[#allocation24 + $0xe38] ss:$28 sps:$4 sm:$0xff]  }
 0xd2b   :  { %16041 = vmatprep.subr.bf16.mxu0 %v24818_v16  ;;  %16082 = vmatprep.subr.bf16.mxu1 %v24821_v0  ;;  %v24865_v21 = vld [vmem:[#allocation24 + $0xe40] ss:$28 sps:$4 sm:$0xff]   ;;  %v24870_v6 = vld [vmem:[#allocation24 + $0xe74] ss:$28 sps:$4 sm:$0xff]   ;;  %v24874_v56 = vld [vmem:[#allocation24 + $0xea8] ss:$28 sps:$4 sm:$0xff]  }
 0xd2c   :  { %v24873_v49 = vld [vmem:[#allocation24 + $0xe7c] ss:$28 sps:$4 sm:$0xff]   ;;  %v24868_v16 = vld [vmem:[#allocation24 + $0xe70] ss:$28 sps:$4 sm:$0xff]  }
 0xd2d   :  { %v24871_v0 = vld [vmem:[#allocation24 + $0xe78] ss:$28 sps:$4 sm:$0xff]  }
 0xd2e   :  { %16042 = vmatpush1.bf16.msra.mxu0 %v24816_v5  ;;  %16083 = vmatpush1.bf16.msra.mxu1 %v24819_v61  ;;  %v24876_v5 = vld [vmem:[#allocation24 + $0xeac] ss:$28 sps:$4 sm:$0xff]   ;;  %v24879_v61 = vld [vmem:[#allocation24 + $0xeb4] ss:$28 sps:$4 sm:$0xff]  }
 0xd2f   :  { %16111 = vmatprep.subr.bf16.mxu0 %v24824_v46  ;;  %23279 = vmatprep.subr.bf16.mxu1 %v25624_v11  ;;  %v24877_v46 = vld [vmem:[#allocation24 + $0xeb0] ss:$28 sps:$4 sm:$0xff]  }
 0xd31   :  { %20100 = vmatmul.mubr.msk.bf16.vlgmr.msra.gmra.mrb[52].mxu0 %vm8133_vm2, %v27985_v26  ;;  %20101 = vmatmul.mubr.msk.bf16.vlgmr.msra.gmra.mrb[48].mxu1 %vm8133_vm2, %v27985_v26 }
 0xd32   :  { %16112 = vmatpush1.bf16.msra.mxu0 %v24822_v13  ;;  %23280 = vmatpush3.bf16.msra.mxu1 %v24825_v53  ;;  %v24882_v13 = vld [vmem:[#allocation24 + $0xee4] ss:$28 sps:$4 sm:$0xff]   ;;  %v24885_v53 = vld [vmem:[#allocation24 + $0xeec] ss:$28 sps:$4 sm:$0xff]  }
 0xd33   :  { %16113 = vmatprep.subr.bf16.mxu0 %v24828_v29  ;;  %23281 = vmatprep.subr.bf16.mxu1 %v25624_v11 }
 0xd34   :  { %16143 = vmatprep.mubr.bf16.mxu0 %v25626_v32  ;;  %23293 = vmatprep.mubr.msk.bf16.mxu1 %vm25625_vm0, %v25624_v11 }
 0xd36   :  { %16114 = vmatpush1.bf16.msra.mxu0 %v24826_v50  ;;  %23282 = vmatpush3.bf16.msra.mxu1 %v24829_v45 }
 0xd37   :  { %16115 = vmatprep.subr.bf16.mxu0 %v24832_v60  ;;  %23283 = vmatprep.subr.bf16.mxu1 %v25624_v11 }
 0xd3a   :  { %16116 = vmatpush1.bf16.msra.mxu0 %v24830_v47  ;;  %23284 = vmatpush3.bf16.msra.mxu1 %v24833_v17 }
 0xd3b   :  { %16117 = vmatprep.subr.bf16.mxu0 %v24836_v19  ;;  %23285 = vmatprep.subr.bf16.mxu1 %v25624_v11 }
 0xd3e   :  { %16118 = vmatpush1.bf16.msra.mxu0 %v24834_v33  ;;  %23286 = vmatpush3.bf16.msra.mxu1 %v24837_v62 }
 0xd3f   :  { %16119 = vmatprep.subr.bf16.mxu0 %v24840_v42  ;;  %23287 = vmatprep.subr.bf16.mxu1 %v25624_v11  ;;  %v24880_v42 = vld [vmem:[#allocation24 + $0xee0] ss:$28 sps:$4 sm:$0xff]  }
 0xd40   :  { %v14213_v2 = vpop.f32.mrb[24].mxu0  ;;  %v14254_v22 = vpop.f32.mrb[20].mxu1 }
 0xd41   :  { %v28000_v55 = vadd.f32 %v14213_v2, %v27953_v63  ;;  %v28003_v48 = vadd.f32 %v14254_v22, %v27956_v8  ;;  %v14215_v20 = vpop.f32.mrb[25].mxu0  ;;  %v23223_v37 = vpop.f32.mrb[21].mxu1  ;;  %v24848_v63 = vld [vmem:[#allocation24 + $0xda4] ss:$28 sps:$4 sm:$0xff]  }
 0xd42   :  { %v28006_v23 = vadd.f32 %v14215_v20, %v27959_v10  ;;  %v14217_v39 = vpop.f32.mrb[26].mxu0  ;;  %v14257_v14 = vpop.f32.mrb[22].mxu1  ;;  %16120 = vmatpush1.bf16.msra.mxu0 %v24838_v44  ;;  %23288 = vmatpush3.bf16.msra.mxu1 %v24841_v12  ;;  %v24846_v8 = vld [vmem:[#allocation24 + $0xda0] ss:$28 sps:$4 sm:$0xff]   ;;  %v24852_v10 = vld [vmem:[#allocation24 + $0xdcc] ss:$28 sps:$4 sm:$0xff]  }
 0xd43   :  { %v14218_v41 = vpop.f32.mrb[27].mxu0  ;;  %v23224_v43 = vpop.f32.mrb[23].mxu1  ;;  %16121 = vmatprep.subr.bf16.mxu0 %v24844_v9  ;;  %23289 = vmatprep.subr.bf16.mxu1 %v25624_v11  ;;  %v24883_v44 = vld [vmem:[#allocation24 + $0xee8] ss:$28 sps:$4 sm:$0xff]   ;;  %v24888_v9 = vld [vmem:[#allocation24 + $0xf1c] ss:$28 sps:$4 sm:$0xff]  }
 0xd44   :  { %v24891_v2 = vld [vmem:[#allocation24 + $0xf24] ss:$28 sps:$4 sm:$0xff]   ;;  %v24894_v20 = vld [vmem:[#allocation24 + $0xddc] ss:$28 sps:$4 sm:$0xff]   ;;  %v24902_v41 = vld [vmem:[#allocation24 + $0xe4c] ss:$28 sps:$4 sm:$0xff]  }
 0xd45   :  { %v24892_v37 = vld [vmem:[#allocation24 + $0xdd8] ss:$28 sps:$4 sm:$0xff]   ;;  %v24895_v39 = vld [vmem:[#allocation24 + $0xde0] ss:$28 sps:$4 sm:$0xff]   ;;  %v24900_v43 = vld [vmem:[#allocation24 + $0xe48] ss:$28 sps:$4 sm:$0xff]  }
 0xd46   :  { %16122 = vmatpush1.bf16.msra.mxu0 %v24842_v58  ;;  %23290 = vmatpush3.bf16.msra.mxu1 %v24845_v34  ;;  %v24896_v58 = vld [vmem:[#allocation24 + $0xe10] ss:$28 sps:$4 sm:$0xff]   ;;  %v24899_v34 = vld [vmem:[#allocation24 + $0xe18] ss:$28 sps:$4 sm:$0xff]  }
 0xd47   :  { %16123 = vmatprep.subr.bf16.mxu0 %v24848_v63  ;;  %23291 = vmatprep.subr.bf16.mxu1 %v25624_v11  ;;  %v24903_v63 = vld [vmem:[#allocation24 + $0xe50] ss:$28 sps:$4 sm:$0xff]  }
 0xd4a   :  { %16124 = vmatpush1.bf16.msra.mxu0 %v24846_v8  ;;  %23292 = vmatpush3.bf16.msra.mxu1 %v24849_v4  ;;  %v24906_v8 = vld [vmem:[#allocation24 + $0xe84] ss:$28 sps:$4 sm:$0xff]  }
 0xd4b   :  { %16512 = vmatprep.subr.bf16.mxu0 %v24852_v10  ;;  %16553 = vmatprep.subr.bf16.mxu1 %v24855_v38  ;;  %v24904_v4 = vld [vmem:[#allocation24 + $0xe80] ss:$28 sps:$4 sm:$0xff]   ;;  %v24907_v10 = vld [vmem:[#allocation24 + $0xe88] ss:$28 sps:$4 sm:$0xff]  }
 0xd4c   :  { %v24910_v38 = vld [vmem:[#allocation24 + $0xebc] ss:$28 sps:$4 sm:$0xff]  }
 0xd4d   :  { %20102 = vmatmul.mubr.msk.bf16.vlgmr.msra.gmra.mrb[56].mxu0 %vm8133_vm2, %v27985_v26  ;;  %23294 = vmatmul.mubr.msk.bf16.vlgmr.msra.gmra.mrb[52].mxu1 %vm8133_vm2, %v27985_v26 }
 0xd4e   :  { %16513 = vmatpush1.bf16.msra.mxu0 %v24850_v35  ;;  %16554 = vmatpush1.bf16.msra.mxu1 %v24853_v36  ;;  %v24908_v35 = vld [vmem:[#allocation24 + $0xeb8] ss:$28 sps:$4 sm:$0xff]   ;;  %v24911_v36 = vld [vmem:[#allocation24 + $0xec0] ss:$28 sps:$4 sm:$0xff]  }
 0xd4f   :  { %16514 = vmatprep.subr.bf16.mxu0 %v24858_v28  ;;  %16555 = vmatprep.subr.bf16.mxu1 %v24861_v15  ;;  %v24914_v28 = vld [vmem:[#allocation24 + $0xef4] ss:$28 sps:$4 sm:$0xff]  }
 0xd50   :  { %16544 = vmatprep.mubr.bf16.mxu0 %v25626_v32  ;;  %16585 = vmatprep.mubr.bf16.mxu1 %v25626_v32 }
 0xd52   :  { %16515 = vmatpush1.bf16.msra.mxu0 %v24856_v1  ;;  %16556 = vmatpush1.bf16.msra.mxu1 %v24859_v7 }
 0xd53   :  { %16516 = vmatprep.subr.bf16.mxu0 %v24864_v31  ;;  %16557 = vmatprep.subr.bf16.mxu1 %v24867_v51 }
 0xd56   :  { %16517 = vmatpush1.bf16.msra.mxu0 %v24862_v30  ;;  %16558 = vmatpush1.bf16.msra.mxu1 %v24865_v21 }
 0xd57   :  { %16518 = vmatprep.subr.bf16.mxu0 %v24870_v6  ;;  %16559 = vmatprep.subr.bf16.mxu1 %v24873_v49 }
 0xd5a   :  { %16519 = vmatpush1.bf16.msra.mxu0 %v24868_v16  ;;  %16560 = vmatpush1.bf16.msra.mxu1 %v24871_v0  ;;  %v24912_v16 = vld [vmem:[#allocation24 + $0xef0] ss:$28 sps:$4 sm:$0xff]   ;;  %v24915_v0 = vld [vmem:[#allocation24 + $0xef8] ss:$28 sps:$4 sm:$0xff]  }
 0xd5b   :  { %16520 = vmatprep.subr.bf16.mxu0 %v24876_v5  ;;  %16561 = vmatprep.subr.bf16.mxu1 %v24879_v61 }
 0xd5c   :  { %v14614_v26 = vpop.f32.mrb[28].mxu0  ;;  %v14655_v29 = vpop.f32.mrb[24].mxu1 }
 0xd5d   :  { %v28017_v50 = vadd.f32 %v14614_v26, %v27970_v59  ;;  %v28020_v45 = vadd.f32 %v14655_v29, %v27973_v27  ;;  %v14616_v60 = vpop.f32.mrb[29].mxu0  ;;  %v14657_v47 = vpop.f32.mrb[25].mxu1  ;;  %v11656_v59 = vadd.f32 %v27981_v40, %v27754_v57  ;;  %v24898_v57 = vld [vmem:[#allocation24 + $0xe14] ss:$28 sps:$4 sm:$0xff]   ;;  %v24928_v26 = vld [vmem:[#allocation24 + $0xf8c] ss:$28 sps:$4 sm:$0xff]  }
 0xd5e   :  { %v28023_v17 = vadd.f32 %v14616_v60, %v27976_v54  ;;  %v28026_v19 = vadd.f32 %v14657_v47, %v27979_v25  ;;  %v14618_v33 = vpop.f32.mrb[30].mxu0  ;;  %v14659_v62 = vpop.f32.mrb[26].mxu1  ;;  %16521 = vmatpush1.bf16.msra.mxu0 %v24874_v56  ;;  %16562 = vmatpush1.bf16.msra.mxu1 %v24877_v46  ;;  %v24886_v54 = vld [vmem:[#allocation24 + $0xf18] ss:$28 sps:$4 sm:$0xff]   ;;  %v24889_v25 = vld [vmem:[#allocation24 + $0xf20] ss:$28 sps:$4 sm:$0xff]  }
 0xd5f   :  { %v14619_v12 = vpop.f32.mrb[31].mxu0  ;;  %v14660_v27 = vpop.f32.mrb[27].mxu1  ;;  %16522 = vmatprep.subr.bf16.mxu0 %v24882_v13  ;;  %16563 = vmatprep.subr.bf16.mxu1 %v24885_v53  ;;  %v11657_v22 = vmax.f32 %v11656_v59, 0.0  ;;  %v24919_v56 = vld [vmem:[#allocation24 + $0xf30] ss:$28 sps:$4 sm:$0xff]  }
 0xd60   :  { %v24925_v46 = vld [vmem:[#allocation24 + $0xf5c] ss:$28 sps:$4 sm:$0xff]   ;;  %v24920_v13 = vld [vmem:[#allocation24 + $0xf50] ss:$28 sps:$4 sm:$0xff]   ;;  %v24926_v60 = vld [vmem:[#allocation24 + $0xf88] ss:$28 sps:$4 sm:$0xff]  }
 0xd61   :  { %v28030_v14 = vpack.c.bf16 %v11657_v22, %v11657_v22  ;;  %v24923_v53 = vld [vmem:[#allocation24 + $0xf58] ss:$28 sps:$4 sm:$0xff]   ;;  %v24929_v47 = vld [vmem:[#allocation24 + $0xf90] ss:$28 sps:$4 sm:$0xff]   ;;  %v24934_v33 = vld [vmem:[#allocation24 + $0xfc4] ss:$28 sps:$4 sm:$0xff]  }
 0xd62   :  { %16523 = vmatpush1.bf16.msra.mxu0 %v24880_v42  ;;  %16564 = vmatpush1.bf16.msra.mxu1 %v24883_v44  ;;  %v24931_v29 = vld [vmem:[#allocation24 + $0xf94] ss:$28 sps:$4 sm:$0xff]   ;;  %v24937_v62 = vld [vmem:[#allocation24 + $0xfcc] ss:$28 sps:$4 sm:$0xff]   ;;  %v24932_v42 = vld [vmem:[#allocation24 + $0xfc0] ss:$28 sps:$4 sm:$0xff]  }
 0xd63   :  { %16524 = vmatprep.subr.bf16.mxu0 %v24888_v9  ;;  %16565 = vmatprep.subr.bf16.mxu1 %v24891_v2  ;;  %v24935_v44 = vld [vmem:[#allocation24 + $0xfc8] ss:$28 sps:$4 sm:$0xff]   ;;  %v24940_v59 = vld [vmem:[#allocation24 + $0xffc] ss:$28 sps:$4 sm:$0xff]   ;;  %v24946_v2 = vld [vmem:[#allocation24 + $0x1034] ss:$28 sps:$4 sm:$0xff]  }
 0xd64   :  { %v24943_v12 = vld [vmem:[#allocation24 + $0x1004] ss:$28 sps:$4 sm:$0xff]   ;;  %v24938_v27 = vld [vmem:[#allocation24 + $0xff8] ss:$28 sps:$4 sm:$0xff]  }
 0xd65   :  { %v24941_v9 = vld [vmem:[#allocation24 + $0x1000] ss:$28 sps:$4 sm:$0xff]   ;;  %v24947_v22 = vld [vmem:[#allocation24 + $0x1038] ss:$28 sps:$4 sm:$0xff]  }
 0xd66   :  { %16525 = vmatpush1.bf16.msra.mxu0 %v24886_v54  ;;  %16566 = vmatpush1.bf16.msra.mxu1 %v24889_v25  ;;  %v24949_v54 = vld [vmem:[#allocation24 + $0x103c] ss:$28 sps:$4 sm:$0xff]   ;;  %v24944_v25 = vld [vmem:[#allocation24 + $0x1030] ss:$28 sps:$4 sm:$0xff]  }
 0xd67   :  { %16594 = vmatprep.subr.bf16.mxu0 %v24894_v20  ;;  %23297 = vmatprep.subr.bf16.mxu1 %v25624_v11  ;;  %v24952_v20 = vld [vmem:[#allocation24 + $0x106c] ss:$28 sps:$4 sm:$0xff]  }
 0xd69   :  { %20153 = vmatmul.mubr.msk.bf16.vlgmr.msra.gmra.mrb[60].mxu0 %vm8133_vm2, %v28030_v14  ;;  %20154 = vmatmul.mubr.msk.bf16.vlgmr.msra.gmra.mrb[56].mxu1 %vm8133_vm2, %v28030_v14 }
 0xd6a   :  { %16595 = vmatpush1.bf16.msra.mxu0 %v24892_v37  ;;  %23298 = vmatpush3.bf16.msra.mxu1 %v24895_v39  ;;  %v24955_v37 = vld [vmem:[#allocation24 + $0x1074] ss:$28 sps:$4 sm:$0xff]  }
 0xd6b   :  { %16596 = vmatprep.subr.bf16.mxu0 %v24898_v57  ;;  %23299 = vmatprep.subr.bf16.mxu1 %v25624_v11 }
 0xd6c   :  { %16626 = vmatprep.mubr.bf16.mxu0 %v25626_v32  ;;  %23311 = vmatprep.mubr.msk.bf16.mxu1 %vm25625_vm0, %v25624_v11 }
 0xd6e   :  { %16597 = vmatpush1.bf16.msra.mxu0 %v24896_v58  ;;  %23300 = vmatpush3.bf16.msra.mxu1 %v24899_v34 }
 0xd6f   :  { %16598 = vmatprep.subr.bf16.mxu0 %v24902_v41  ;;  %23301 = vmatprep.subr.bf16.mxu1 %v25624_v11 }
 0xd72   :  { %16599 = vmatpush1.bf16.msra.mxu0 %v24900_v43  ;;  %23302 = vmatpush3.bf16.msra.mxu1 %v24903_v63 }
 0xd73   :  { %16600 = vmatprep.subr.bf16.mxu0 %v24906_v8  ;;  %23303 = vmatprep.subr.bf16.mxu1 %v25624_v11 }
 0xd76   :  { %16601 = vmatpush1.bf16.msra.mxu0 %v24904_v4  ;;  %23304 = vmatpush3.bf16.msra.mxu1 %v24907_v10  ;;  %v24950_v10 = vld [vmem:[#allocation24 + $0x1068] ss:$28 sps:$4 sm:$0xff]  }
 0xd77   :  { %16602 = vmatprep.subr.bf16.mxu0 %v24910_v38  ;;  %23305 = vmatprep.subr.bf16.mxu1 %v25624_v11  ;;  %v24953_v38 = vld [vmem:[#allocation24 + $0x1070] ss:$28 sps:$4 sm:$0xff]  }
 0xd78   :  { %v14696_v15 = vpop.f32.mrb[32].mxu0  ;;  %v14737_v1 = vpop.f32.mrb[28].mxu1 }
 0xd79   :  { %v28045_v7 = vadd.f32 %v14696_v15, %v28000_v55  ;;  %v28048_v31 = vadd.f32 %v14737_v1, %v28003_v48  ;;  %v14698_v51 = vpop.f32.mrb[33].mxu0  ;;  %v23241_v30 = vpop.f32.mrb[29].mxu1  ;;  %v24918_v55 = vld [vmem:[#allocation24 + $0xf2c] ss:$28 sps:$4 sm:$0xff]   ;;  %v24964_v1 = vld [vmem:[#allocation24 + $0xf64] ss:$28 sps:$4 sm:$0xff]  }
 0xd7a   :  { %v28051_v21 = vadd.f32 %v14698_v51, %v28006_v23  ;;  %v14700_v6 = vpop.f32.mrb[34].mxu0  ;;  %v14740_v49 = vpop.f32.mrb[30].mxu1  ;;  %16603 = vmatpush1.bf16.msra.mxu0 %v24908_v35  ;;  %23306 = vmatpush3.bf16.msra.mxu1 %v24911_v36  ;;  %v24916_v48 = vld [vmem:[#allocation24 + $0xf28] ss:$28 sps:$4 sm:$0xff]   ;;  %v24922_v23 = vld [vmem:[#allocation24 + $0xf54] ss:$28 sps:$4 sm:$0xff]  }
 0xd7b   :  { %v14701_v5 = vpop.f32.mrb[35].mxu0  ;;  %v23242_v61 = vpop.f32.mrb[31].mxu1  ;;  %16604 = vmatprep.subr.bf16.mxu0 %v24914_v28  ;;  %23307 = vmatprep.subr.bf16.mxu1 %v25624_v11  ;;  %v24958_v36 = vld [vmem:[#allocation24 + $0x10a4] ss:$28 sps:$4 sm:$0xff]   ;;  %v24961_v28 = vld [vmem:[#allocation24 + $0x10ac] ss:$28 sps:$4 sm:$0xff]  }
 0xd7c   :  { %v24962_v51 = vld [vmem:[#allocation24 + $0xf60] ss:$28 sps:$4 sm:$0xff]   ;;  %v24965_v30 = vld [vmem:[#allocation24 + $0xf68] ss:$28 sps:$4 sm:$0xff]   ;;  %v24966_v49 = vld [vmem:[#allocation24 + $0xf98] ss:$28 sps:$4 sm:$0xff]  }
 0xd7d   :  { %v24970_v5 = vld [vmem:[#allocation24 + $0xfd0] ss:$28 sps:$4 sm:$0xff]   ;;  %v24973_v61 = vld [vmem:[#allocation24 + $0xfd8] ss:$28 sps:$4 sm:$0xff]  }
 0xd7e   :  { %16605 = vmatpush1.bf16.msra.mxu0 %v24912_v16  ;;  %23308 = vmatpush3.bf16.msra.mxu1 %v24915_v0  ;;  %v24969_v16 = vld [vmem:[#allocation24 + $0xfa0] ss:$28 sps:$4 sm:$0xff]   ;;  %v24972_v0 = vld [vmem:[#allocation24 + $0xfd4] ss:$28 sps:$4 sm:$0xff]  }
 0xd7f   :  { %16606 = vmatprep.subr.bf16.mxu0 %v24918_v55  ;;  %23309 = vmatprep.subr.bf16.mxu1 %v25624_v11  ;;  %v24976_v55 = vld [vmem:[#allocation24 + $0x100c] ss:$28 sps:$4 sm:$0xff]  }
 0xd82   :  { %16607 = vmatpush1.bf16.msra.mxu0 %v24916_v48  ;;  %23310 = vmatpush3.bf16.msra.mxu1 %v24919_v56  ;;  %v24974_v48 = vld [vmem:[#allocation24 + $0x1008] ss:$28 sps:$4 sm:$0xff]   ;;  %v24977_v56 = vld [vmem:[#allocation24 + $0x1010] ss:$28 sps:$4 sm:$0xff]  }
 0xd83   :  { %16995 = vmatprep.subr.bf16.mxu0 %v24922_v23  ;;  %17036 = vmatprep.subr.bf16.mxu1 %v24925_v46  ;;  %v24980_v23 = vld [vmem:[#allocation24 + $0x1044] ss:$28 sps:$4 sm:$0xff]  }
 0xd84   :  { %v24978_v46 = vld [vmem:[#allocation24 + $0x1040] ss:$28 sps:$4 sm:$0xff]  }
 0xd85   :  { %20155 = vmatmul.mubr.msk.bf16.vlgmr.msra.gmra.mrb[64].mxu0 %vm8133_vm2, %v28030_v14  ;;  %23312 = vmatmul.mubr.msk.bf16.vlgmr.msra.gmra.mrb[60].mxu1 %vm8133_vm2, %v28030_v14 }
 0xd86   :  { %16996 = vmatpush1.bf16.msra.mxu0 %v24920_v13  ;;  %17037 = vmatpush1.bf16.msra.mxu1 %v24923_v53  ;;  %v24981_v13 = vld [vmem:[#allocation24 + $0x1048] ss:$28 sps:$4 sm:$0xff]   ;;  %v24984_v53 = vld [vmem:[#allocation24 + $0x107c] ss:$28 sps:$4 sm:$0xff]  }
 0xd87   :  { %16997 = vmatprep.subr.bf16.mxu0 %v24928_v26  ;;  %17038 = vmatprep.subr.bf16.mxu1 %v24931_v29 }
 0xd88   :  { %17027 = vmatprep.mubr.bf16.mxu0 %v25626_v32  ;;  %17068 = vmatprep.mubr.bf16.mxu1 %v25626_v32 }
 0xd8a   :  { %16998 = vmatpush1.bf16.msra.mxu0 %v24926_v60  ;;  %17039 = vmatpush1.bf16.msra.mxu1 %v24929_v47 }
 0xd8b   :  { %16999 = vmatprep.subr.bf16.mxu0 %v24934_v33  ;;  %17040 = vmatprep.subr.bf16.mxu1 %v24937_v62 }
 0xd8e   :  { %17000 = vmatpush1.bf16.msra.mxu0 %v24932_v42  ;;  %17041 = vmatpush1.bf16.msra.mxu1 %v24935_v44 }
 0xd8f   :  { %17001 = vmatprep.subr.bf16.mxu0 %v24940_v59  ;;  %17042 = vmatprep.subr.bf16.mxu1 %v24943_v12  ;;  %v24982_v12 = vld [vmem:[#allocation24 + $0x1078] ss:$28 sps:$4 sm:$0xff]  }
 0xd92   :  { %17002 = vmatpush1.bf16.msra.mxu0 %v24938_v27  ;;  %17043 = vmatpush1.bf16.msra.mxu1 %v24941_v9  ;;  %v24985_v27 = vld [vmem:[#allocation24 + $0x1080] ss:$28 sps:$4 sm:$0xff]  }
 0xd93   :  { %17003 = vmatprep.subr.bf16.mxu0 %v24946_v2  ;;  %17044 = vmatprep.subr.bf16.mxu1 %v24949_v54  ;;  %v24989_v54 = vld [vmem:[#allocation24 + $0x10b8] ss:$28 sps:$4 sm:$0xff]  }
 0xd94   :  { %v15097_v39 = vpop.f32.mrb[36].mxu0  ;;  %v15138_v14 = vpop.f32.mrb[32].mxu1 }
 0xd95   :  { %v28062_v57 = vadd.f32 %v15097_v39, %v28017_v50  ;;  %v28065_v58 = vadd.f32 %v15138_v14, %v28020_v45  ;;  %v15099_v34 = vpop.f32.mrb[37].mxu0  ;;  %v15140_v41 = vpop.f32.mrb[33].mxu1  ;;  %v11693_v50 = vadd.f32 %v27981_v40, %v27751_v52  ;;  %v24968_v52 = vld [vmem:[#allocation24 + $0xf9c] ss:$28 sps:$4 sm:$0xff]   ;;  %v24996_v14 = vld [vmem:[#allocation24 + $0x1110] ss:$28 sps:$4 sm:$0xff]  }
 0xd96   :  { %v28068_v43 = vadd.f32 %v15099_v34, %v28023_v17  ;;  %v28071_v63 = vadd.f32 %v15140_v41, %v28026_v19  ;;  %v15101_v8 = vpop.f32.mrb[38].mxu0  ;;  %v15142_v4 = vpop.f32.mrb[34].mxu1  ;;  %17004 = vmatpush1.bf16.msra.mxu0 %v24944_v25  ;;  %17045 = vmatpush1.bf16.msra.mxu1 %v24947_v22  ;;  %v24956_v17 = vld [vmem:[#allocation24 + $0x10a0] ss:$28 sps:$4 sm:$0xff]   ;;  %v24959_v19 = vld [vmem:[#allocation24 + $0x10a8] ss:$28 sps:$4 sm:$0xff]  }
 0xd97   :  { %v15102_v35 = vpop.f32.mrb[39].mxu0  ;;  %v15143_v45 = vpop.f32.mrb[35].mxu1  ;;  %17005 = vmatprep.subr.bf16.mxu0 %v24952_v20  ;;  %17046 = vmatprep.subr.bf16.mxu1 %v24955_v37  ;;  %v11698_v15 = vmax.f32 %v11693_v50, 0.0  ;;  %v24995_v25 = vld [vmem:[#allocation24 + $0x10e4] ss:$28 sps:$4 sm:$0xff]  }
 0xd98   :  { %v24990_v22 = vld [vmem:[#allocation24 + $0x10d8] ss:$28 sps:$4 sm:$0xff]   ;;  %v24993_v20 = vld [vmem:[#allocation24 + $0x10e0] ss:$28 sps:$4 sm:$0xff]   ;;  %v25004_v41 = vld [vmem:[#allocation24 + $0x114c] ss:$28 sps:$4 sm:$0xff]  }
 0xd99   :  { %v28075_v6 = vpack.c.bf16 %v11698_v15, %v11698_v15  ;;  %v24998_v37 = vld [vmem:[#allocation24 + $0x1114] ss:$28 sps:$4 sm:$0xff]   ;;  %v25001_v39 = vld [vmem:[#allocation24 + $0x111c] ss:$28 sps:$4 sm:$0xff]   ;;  %v25002_v4 = vld [vmem:[#allocation24 + $0x1148] ss:$28 sps:$4 sm:$0xff]  }
 0xd9a   :  { %17006 = vmatpush1.bf16.msra.mxu0 %v24950_v10  ;;  %17047 = vmatpush1.bf16.msra.mxu1 %v24953_v38  ;;  %v24999_v34 = vld [vmem:[#allocation24 + $0x1118] ss:$28 sps:$4 sm:$0xff]   ;;  %v25005_v10 = vld [vmem:[#allocation24 + $0x1150] ss:$28 sps:$4 sm:$0xff]   ;;  %v25010_v38 = vld [vmem:[#allocation24 + $0x1184] ss:$28 sps:$4 sm:$0xff]  }
 0xd9b   :  { %17007 = vmatprep.subr.bf16.mxu0 %v24958_v36  ;;  %17048 = vmatprep.subr.bf16.mxu1 %v24961_v28  ;;  %v25007_v8 = vld [vmem:[#allocation24 + $0x1154] ss:$28 sps:$4 sm:$0xff]   ;;  %v25013_v50 = vld [vmem:[#allocation24 + $0x118c] ss:$28 sps:$4 sm:$0xff]   ;;  %v25008_v35 = vld [vmem:[#allocation24 + $0x1180] ss:$28 sps:$4 sm:$0xff]  }
 0xd9c   :  { %v25011_v45 = vld [vmem:[#allocation24 + $0x1188] ss:$28 sps:$4 sm:$0xff]   ;;  %v25016_v36 = vld [vmem:[#allocation24 + $0x11bc] ss:$28 sps:$4 sm:$0xff]   ;;  %v25022_v15 = vld [vmem:[#allocation24 + $0x11f4] ss:$28 sps:$4 sm:$0xff]  }
 0xd9d   :  { %v25019_v28 = vld [vmem:[#allocation24 + $0x11c4] ss:$28 sps:$4 sm:$0xff]  }
 0xd9e   :  { %17008 = vmatpush1.bf16.msra.mxu0 %v24956_v17  ;;  %17049 = vmatpush1.bf16.msra.mxu1 %v24959_v19  ;;  %v25014_v17 = vld [vmem:[#allocation24 + $0x11b8] ss:$28 sps:$4 sm:$0xff]   ;;  %v25017_v19 = vld [vmem:[#allocation24 + $0x11c0] ss:$28 sps:$4 sm:$0xff]  }
 0xd9f   :  { %17077 = vmatprep.subr.bf16.mxu0 %v24964_v1  ;;  %23315 = vmatprep.subr.bf16.mxu1 %v25624_v11  ;;  %v25025_v1 = vld [vmem:[#allocation24 + $0x11fc] ss:$28 sps:$4 sm:$0xff]  }
 0xda1   :  { %20206 = vmatmul.mubr.msk.bf16.vlgmr.msra.gmra.mrb[68].mxu0 %vm8133_vm2, %v28075_v6  ;;  %20207 = vmatmul.mubr.msk.bf16.vlgmr.msra.gmra.mrb[64].mxu1 %vm8133_vm2, %v28075_v6 }
 0xda2   :  { %17078 = vmatpush1.bf16.msra.mxu0 %v24962_v51  ;;  %23316 = vmatpush3.bf16.msra.mxu1 %v24965_v30 }
 0xda3   :  { %17079 = vmatprep.subr.bf16.mxu0 %v24968_v52  ;;  %23317 = vmatprep.subr.bf16.mxu1 %v25624_v11 }
 0xda4   :  { %17109 = vmatprep.mubr.bf16.mxu0 %v25626_v32  ;;  %23329 = vmatprep.mubr.msk.bf16.mxu1 %vm25625_vm0, %v25624_v11 }
 0xda6   :  { %17080 = vmatpush1.bf16.msra.mxu0 %v24966_v49  ;;  %23318 = vmatpush3.bf16.msra.mxu1 %v24969_v16 }
 0xda7   :  { %17081 = vmatprep.subr.bf16.mxu0 %v24972_v0  ;;  %23319 = vmatprep.subr.bf16.mxu1 %v25624_v11 }
 0xdaa   :  { %17082 = vmatpush1.bf16.msra.mxu0 %v24970_v5  ;;  %23320 = vmatpush3.bf16.msra.mxu1 %v24973_v61 }
 0xdab   :  { %17083 = vmatprep.subr.bf16.mxu0 %v24976_v55  ;;  %23321 = vmatprep.subr.bf16.mxu1 %v25624_v11 }
 0xdae   :  { %17084 = vmatpush1.bf16.msra.mxu0 %v24974_v48  ;;  %23322 = vmatpush3.bf16.msra.mxu1 %v24977_v56  ;;  %v25020_v48 = vld [vmem:[#allocation24 + $0x11f0] ss:$28 sps:$4 sm:$0xff]   ;;  %v25023_v56 = vld [vmem:[#allocation24 + $0x11f8] ss:$28 sps:$4 sm:$0xff]  }
 0xdaf   :  { %17085 = vmatprep.subr.bf16.mxu0 %v24980_v23  ;;  %23323 = vmatprep.subr.bf16.mxu1 %v25624_v11 }
 0xdb0   :  { %v15179_v26 = vpop.f32.mrb[40].mxu0  ;;  %v15220_v29 = vpop.f32.mrb[36].mxu1 }
 0xdb1   :  { %v28090_v60 = vadd.f32 %v15179_v26, %v28045_v7  ;;  %v28093_v47 = vadd.f32 %v15220_v29, %v28048_v31  ;;  %v15181_v33 = vpop.f32.mrb[41].mxu0  ;;  %v23259_v62 = vpop.f32.mrb[37].mxu1  ;;  %v24988_v7 = vld [vmem:[#allocation24 + $0x10b4] ss:$28 sps:$4 sm:$0xff]   ;;  %v25034_v26 = vld [vmem:[#allocation24 + $0x10ec] ss:$28 sps:$4 sm:$0xff]  }
 0xdb2   :  { %v28096_v42 = vadd.f32 %v15181_v33, %v28051_v21  ;;  %v15183_v44 = vpop.f32.mrb[42].mxu0  ;;  %v15223_v59 = vpop.f32.mrb[38].mxu1  ;;  %17086 = vmatpush1.bf16.msra.mxu0 %v24978_v46  ;;  %23324 = vmatpush3.bf16.msra.mxu1 %v24981_v13  ;;  %v24986_v31 = vld [vmem:[#allocation24 + $0x10b0] ss:$28 sps:$4 sm:$0xff]   ;;  %v24992_v21 = vld [vmem:[#allocation24 + $0x10dc] ss:$28 sps:$4 sm:$0xff]  }
 0xdb3   :  { %v15184_v9 = vpop.f32.mrb[43].mxu0  ;;  %v23260_v2 = vpop.f32.mrb[39].mxu1  ;;  %17087 = vmatprep.subr.bf16.mxu0 %v24984_v53  ;;  %23325 = vmatprep.subr.bf16.mxu1 %v25624_v11  ;;  %v25028_v46 = vld [vmem:[#allocation24 + $0x122c] ss:$28 sps:$4 sm:$0xff]   ;;  %v25031_v13 = vld [vmem:[#allocation24 + $0x1234] ss:$28 sps:$4 sm:$0xff]  }
 0xdb4   :  { %v25032_v29 = vld [vmem:[#allocation24 + $0x10e8] ss:$28 sps:$4 sm:$0xff]   ;;  %v25035_v33 = vld [vmem:[#allocation24 + $0x10f0] ss:$28 sps:$4 sm:$0xff]   ;;  %v25042_v59 = vld [vmem:[#allocation24 + $0x115c] ss:$28 sps:$4 sm:$0xff]  }
 0xdb5   :  { %v25039_v44 = vld [vmem:[#allocation24 + $0x1128] ss:$28 sps:$4 sm:$0xff]   ;;  %v25046_v9 = vld [vmem:[#allocation24 + $0x1194] ss:$28 sps:$4 sm:$0xff]  }
 0xdb6   :  { %17088 = vmatpush1.bf16.msra.mxu0 %v24982_v12  ;;  %23326 = vmatpush3.bf16.msra.mxu1 %v24985_v27  ;;  %v25040_v12 = vld [vmem:[#allocation24 + $0x1158] ss:$28 sps:$4 sm:$0xff]   ;;  %v25043_v27 = vld [vmem:[#allocation24 + $0x1160] ss:$28 sps:$4 sm:$0xff]   ;;  %v25044_v2 = vld [vmem:[#allocation24 + $0x1190] ss:$28 sps:$4 sm:$0xff]  }
 0xdb7   :  { %17089 = vmatprep.subr.bf16.mxu0 %v24988_v7  ;;  %23327 = vmatprep.subr.bf16.mxu1 %v25624_v11  ;;  %v25047_v7 = vld [vmem:[#allocation24 + $0x1198] ss:$28 sps:$4 sm:$0xff]  }
 0xdba   :  { %17090 = vmatpush1.bf16.msra.mxu0 %v24986_v31  ;;  %23328 = vmatpush3.bf16.msra.mxu1 %v24989_v54  ;;  %v25050_v31 = vld [vmem:[#allocation24 + $0x11cc] ss:$28 sps:$4 sm:$0xff]  }
 0xdbb   :  { %17478 = vmatprep.subr.bf16.mxu0 %v24992_v21  ;;  %17519 = vmatprep.subr.bf16.mxu1 %v24995_v25  ;;  %v25048_v54 = vld [vmem:[#allocation24 + $0x11c8] ss:$28 sps:$4 sm:$0xff]   ;;  %v25051_v21 = vld [vmem:[#allocation24 + $0x11d0] ss:$28 sps:$4 sm:$0xff]  }
 0xdbc   :  { %v25054_v25 = vld [vmem:[#allocation24 + $0x1204] ss:$28 sps:$4 sm:$0xff]  }
 0xdbd   :  { %20208 = vmatmul.mubr.msk.bf16.vlgmr.msra.gmra.mrb[72].mxu0 %vm8133_vm2, %v28075_v6  ;;  %23330 = vmatmul.mubr.msk.bf16.vlgmr.msra.gmra.mrb[68].mxu1 %vm8133_vm2, %v28075_v6 }
 0xdbe   :  { %17479 = vmatpush1.bf16.msra.mxu0 %v24990_v22  ;;  %17520 = vmatpush1.bf16.msra.mxu1 %v24993_v20 }
 0xdbf   :  { %17480 = vmatprep.subr.bf16.mxu0 %v24998_v37  ;;  %17521 = vmatprep.subr.bf16.mxu1 %v25001_v39 }
 0xdc0   :  { %17510 = vmatprep.mubr.bf16.mxu0 %v25626_v32  ;;  %17551 = vmatprep.mubr.bf16.mxu1 %v25626_v32 }
 0xdc2   :  { %17481 = vmatpush1.bf16.msra.mxu0 %v24996_v14  ;;  %17522 = vmatpush1.bf16.msra.mxu1 %v24999_v34 }
 0xdc3   :  { %17482 = vmatprep.subr.bf16.mxu0 %v25004_v41  ;;  %17523 = vmatprep.subr.bf16.mxu1 %v25007_v8 }
 0xdc6   :  { %17483 = vmatpush1.bf16.msra.mxu0 %v25002_v4  ;;  %17524 = vmatpush1.bf16.msra.mxu1 %v25005_v10  ;;  %v25052_v10 = vld [vmem:[#allocation24 + $0x1200] ss:$28 sps:$4 sm:$0xff]  }
 0xdc7   :  { %17484 = vmatprep.subr.bf16.mxu0 %v25010_v38  ;;  %17525 = vmatprep.subr.bf16.mxu1 %v25013_v50  ;;  %v25055_v38 = vld [vmem:[#allocation24 + $0x1208] ss:$28 sps:$4 sm:$0xff]  }
 0xdca   :  { %17485 = vmatpush1.bf16.msra.mxu0 %v25008_v35  ;;  %17526 = vmatpush1.bf16.msra.mxu1 %v25011_v45  ;;  %v25059_v45 = vld [vmem:[#allocation24 + $0x1240] ss:$28 sps:$4 sm:$0xff]  }
 0xdcb   :  { %17486 = vmatprep.subr.bf16.mxu0 %v25016_v36  ;;  %17527 = vmatprep.subr.bf16.mxu1 %v25019_v28  ;;  %v25065_v36 = vld [vmem:[#allocation24 + $0x126c] ss:$28 sps:$4 sm:$0xff]   ;;  %v25060_v28 = vld [vmem:[#allocation24 + $0x1260] ss:$28 sps:$4 sm:$0xff]  }
 0xdcc   :  { %v15580_v51 = vpop.f32.mrb[44].mxu0  ;;  %v15621_v30 = vpop.f32.mrb[40].mxu1 }
 0xdcd   :  { %v28107_v6 = vadd.f32 %v15580_v51, %v28062_v57  ;;  %v28110_v52 = vadd.f32 %v15621_v30, %v28065_v58  ;;  %v15582_v49 = vpop.f32.mrb[45].mxu0  ;;  %v15623_v16 = vpop.f32.mrb[41].mxu1  ;;  %v11783_v57 = vadd.f32 %v27981_v40, %v27764_v3  ;;  %v25038_v3 = vld [vmem:[#allocation24 + $0x1124] ss:$28 sps:$4 sm:$0xff]   ;;  %v25074_v30 = vld [vmem:[#allocation24 + $0x12d4] ss:$28 sps:$4 sm:$0xff]  }
 0xdce   :  { %v28113_v0 = vadd.f32 %v15582_v49, %v28068_v43  ;;  %v28116_v5 = vadd.f32 %v15623_v16, %v28071_v63  ;;  %v15584_v61 = vpop.f32.mrb[46].mxu0  ;;  %v15625_v55 = vpop.f32.mrb[42].mxu1  ;;  %17487 = vmatpush1.bf16.msra.mxu0 %v25014_v17  ;;  %17528 = vmatpush1.bf16.msra.mxu1 %v25017_v19  ;;  %v25026_v43 = vld [vmem:[#allocation24 + $0x1228] ss:$28 sps:$4 sm:$0xff]   ;;  %v25029_v63 = vld [vmem:[#allocation24 + $0x1230] ss:$28 sps:$4 sm:$0xff]  }
 0xdcf   :  { %v15585_v23 = vpop.f32.mrb[47].mxu0  ;;  %v15626_v58 = vpop.f32.mrb[43].mxu1  ;;  %17488 = vmatprep.subr.bf16.mxu0 %v25022_v15  ;;  %17529 = vmatprep.subr.bf16.mxu1 %v25025_v1  ;;  %v11784_v53 = vmax.f32 %v11783_v57, 0.0  ;;  %v25036_v40 = vld [vmem:[#allocation24 + $0x1120] ss:$28 sps:$4 sm:$0xff]  }
 0xdd0   :  { %v25063_v17 = vld [vmem:[#allocation24 + $0x1268] ss:$28 sps:$4 sm:$0xff]   ;;  %v25068_v19 = vld [vmem:[#allocation24 + $0x129c] ss:$28 sps:$4 sm:$0xff]   ;;  %v25072_v16 = vld [vmem:[#allocation24 + $0x12d0] ss:$28 sps:$4 sm:$0xff]  }
 0xdd1   :  { %v28120_v62 = vpack.c.bf16 %v11784_v53, %v11784_v53  ;;  %v25071_v15 = vld [vmem:[#allocation24 + $0x12a4] ss:$28 sps:$4 sm:$0xff]   ;;  %v25066_v1 = vld [vmem:[#allocation24 + $0x1298] ss:$28 sps:$4 sm:$0xff]   ;;  %v25080_v55 = vld [vmem:[#allocation24 + $0x130c] ss:$28 sps:$4 sm:$0xff]  }
 0xdd2   :  { %17489 = vmatpush1.bf16.msra.mxu0 %v25020_v48  ;;  %17530 = vmatpush1.bf16.msra.mxu1 %v25023_v56  ;;  %v25069_v51 = vld [vmem:[#allocation24 + $0x12a0] ss:$28 sps:$4 sm:$0xff]   ;;  %v25075_v61 = vld [vmem:[#allocation24 + $0x12d8] ss:$28 sps:$4 sm:$0xff]   ;;  %v25078_v56 = vld [vmem:[#allocation24 + $0x1308] ss:$28 sps:$4 sm:$0xff]  }
 0xdd3   :  { %17490 = vmatprep.subr.bf16.mxu0 %v25028_v46  ;;  %17531 = vmatprep.subr.bf16.mxu1 %v25031_v13  ;;  %v25077_v49 = vld [vmem:[#allocation24 + $0x12dc] ss:$28 sps:$4 sm:$0xff]   ;;  %v25083_v48 = vld [vmem:[#allocation24 + $0x1314] ss:$28 sps:$4 sm:$0xff]   ;;  %v25086_v23 = vld [vmem:[#allocation24 + $0x1344] ss:$28 sps:$4 sm:$0xff]  }
 0xdd4   :  { %v25081_v57 = vld [vmem:[#allocation24 + $0x1310] ss:$28 sps:$4 sm:$0xff]   ;;  %v25084_v46 = vld [vmem:[#allocation24 + $0x1340] ss:$28 sps:$4 sm:$0xff]   ;;  %v25087_v13 = vld [vmem:[#allocation24 + $0x1348] ss:$28 sps:$4 sm:$0xff]  }
 0xdd5   :  { %v25089_v58 = vld [vmem:[#allocation24 + $0x134c] ss:$28 sps:$4 sm:$0xff]  }
 0xdd6   :  { %17491 = vmatpush1.bf16.msra.mxu0 %v25026_v43  ;;  %17532 = vmatpush1.bf16.msra.mxu1 %v25029_v63  ;;  %v25092_v43 = vld [vmem:[#allocation24 + $0x137c] ss:$28 sps:$4 sm:$0xff]   ;;  %v25095_v63 = vld [vmem:[#allocation24 + $0x1384] ss:$28 sps:$4 sm:$0xff]  }
 0xdd7   :  { %17560 = vmatprep.subr.bf16.mxu0 %v25034_v26  ;;  %23333 = vmatprep.subr.bf16.mxu1 %v25624_v11 }
 0xdd9   :  { %20259 = vmatmul.mubr.msk.bf16.vlgmr.msra.gmra.mrb[76].mxu0 %vm8133_vm2, %v28120_v62  ;;  %20260 = vmatmul.mubr.msk.bf16.vlgmr.msra.gmra.mrb[72].mxu1 %vm8133_vm2, %v28120_v62 }
 0xdda   :  { %17561 = vmatpush1.bf16.msra.mxu0 %v25032_v29  ;;  %23334 = vmatpush3.bf16.msra.mxu1 %v25035_v33 }
 0xddb   :  { %17562 = vmatprep.subr.bf16.mxu0 %v25038_v3  ;;  %23335 = vmatprep.subr.bf16.mxu1 %v25624_v11 }
 0xddc   :  { %17592 = vmatprep.mubr.bf16.mxu0 %v25626_v32  ;;  %23347 = vmatprep.mubr.msk.bf16.mxu1 %vm25625_vm0, %v25624_v11 }
 0xdde   :  { %17563 = vmatpush1.bf16.msra.mxu0 %v25036_v40  ;;  %23336 = vmatpush3.bf16.msra.mxu1 %v25039_v44 }
 0xddf   :  { %17564 = vmatprep.subr.bf16.mxu0 %v25042_v59  ;;  %23337 = vmatprep.subr.bf16.mxu1 %v25624_v11 }
 0xde2   :  { %17565 = vmatpush1.bf16.msra.mxu0 %v25040_v12  ;;  %23338 = vmatpush3.bf16.msra.mxu1 %v25043_v27  ;;  %v25090_v27 = vld [vmem:[#allocation24 + $0x1378] ss:$28 sps:$4 sm:$0xff]  }
 0xde3   :  { %17566 = vmatprep.subr.bf16.mxu0 %v25046_v9  ;;  %23339 = vmatprep.subr.bf16.mxu1 %v25624_v11  ;;  %v25093_v9 = vld [vmem:[#allocation24 + $0x1380] ss:$28 sps:$4 sm:$0xff]  }
 0xde6   :  { %17567 = vmatpush1.bf16.msra.mxu0 %v25044_v2  ;;  %23340 = vmatpush3.bf16.msra.mxu1 %v25047_v7  ;;  %v28163_v2 = vld [vmem:[#allocation22] ss:$0 sm:$0xff] }
 0xde7   :  { %17568 = vmatprep.subr.bf16.mxu0 %v25050_v31  ;;  %23341 = vmatprep.subr.bf16.mxu1 %v25624_v11  ;;  %v25101_v31 = vld [vmem:[#allocation24 + $0x13bc] ss:$28 sps:$4 sm:$0xff]  }
 0xde8   :  { %v15662_v22 = vpop.f32.mrb[48].mxu0  ;;  %v15703_v20 = vpop.f32.mrb[44].mxu1 }
 0xde9   :  { %v28135_v37 = vadd.f32 %v15662_v22, %v28090_v60  ;;  %v28138_v39 = vadd.f32 %v15703_v20, %v28093_v47  ;;  %v15664_v14 = vpop.f32.mrb[49].mxu0  ;;  %v23277_v34 = vpop.f32.mrb[45].mxu1  ;;  %v25058_v60 = vld [vmem:[#allocation24 + $0x123c] ss:$28 sps:$4 sm:$0xff]   ;;  %v25102_v22 = vld [vmem:[#allocation24 + $0x1270] ss:$28 sps:$4 sm:$0xff]  }
 0xdea   :  { %v28141_v41 = vadd.f32 %v15664_v14, %v28096_v42  ;;  %v15666_v8 = vpop.f32.mrb[50].mxu0  ;;  %v15706_v4 = vpop.f32.mrb[46].mxu1  ;;  %17569 = vmatpush1.bf16.msra.mxu0 %v25048_v54  ;;  %23342 = vmatpush3.bf16.msra.mxu1 %v25051_v21  ;;  %v25056_v47 = vld [vmem:[#allocation24 + $0x1238] ss:$28 sps:$4 sm:$0xff]   ;;  %v25062_v42 = vld [vmem:[#allocation24 + $0x1264] ss:$28 sps:$4 sm:$0xff]  }
 0xdeb   :  { %v15667_v50 = vpop.f32.mrb[51].mxu0  ;;  %v23278_v35 = vpop.f32.mrb[47].mxu1  ;;  %17570 = vmatprep.subr.bf16.mxu0 %v25054_v25  ;;  %23343 = vmatprep.subr.bf16.mxu1 %v25624_v11  ;;  %v25099_v54 = vld [vmem:[#allocation24 + $0x13b8] ss:$28 sps:$4 sm:$0xff]   ;;  %v25106_v34 = vld [vmem:[#allocation24 + $0x12a8] ss:$28 sps:$4 sm:$0xff]  }
 0xdec   :  { %v25104_v25 = vld [vmem:[#allocation24 + $0x1274] ss:$28 sps:$4 sm:$0xff]   ;;  %v25112_v4 = vld [vmem:[#allocation24 + $0x12e4] ss:$28 sps:$4 sm:$0xff]   ;;  %v25116_v50 = vld [vmem:[#allocation24 + $0x131c] ss:$28 sps:$4 sm:$0xff]  }
 0xded   :  { %v25105_v20 = vld [vmem:[#allocation24 + $0x1278] ss:$28 sps:$4 sm:$0xff]   ;;  %v25109_v8 = vld [vmem:[#allocation24 + $0x12b0] ss:$28 sps:$4 sm:$0xff]  }
 0xdee   :  { %17571 = vmatpush1.bf16.msra.mxu0 %v25052_v10  ;;  %23344 = vmatpush3.bf16.msra.mxu1 %v25055_v38  ;;  %v25110_v10 = vld [vmem:[#allocation24 + $0x12e0] ss:$28 sps:$4 sm:$0xff]   ;;  %v25113_v38 = vld [vmem:[#allocation24 + $0x12e8] ss:$28 sps:$4 sm:$0xff]   ;;  %v25114_v35 = vld [vmem:[#allocation24 + $0x1318] ss:$28 sps:$4 sm:$0xff]  }
 0xdef   :  { %17572 = vmatprep.subr.bf16.mxu0 %v25058_v60  ;;  %23345 = vmatprep.subr.bf16.mxu1 %v25624_v11  ;;  %v25117_v60 = vld [vmem:[#allocation24 + $0x1320] ss:$28 sps:$4 sm:$0xff]  }
 0xdf2   :  { %17573 = vmatpush1.bf16.msra.mxu0 %v25056_v47  ;;  %23346 = vmatpush3.bf16.msra.mxu1 %v25059_v45  ;;  %v25120_v47 = vld [vmem:[#allocation24 + $0x1354] ss:$28 sps:$4 sm:$0xff]  }
 0xdf3   :  { %17961 = vmatprep.subr.bf16.mxu0 %v25062_v42  ;;  %18002 = vmatprep.subr.bf16.mxu1 %v25065_v36  ;;  %v25118_v45 = vld [vmem:[#allocation24 + $0x1350] ss:$28 sps:$4 sm:$0xff]   ;;  %v25121_v42 = vld [vmem:[#allocation24 + $0x1358] ss:$28 sps:$4 sm:$0xff]  }
 0xdf4   :  { %v25124_v36 = vld [vmem:[#allocation24 + $0x138c] ss:$28 sps:$4 sm:$0xff]  }
 0xdf5   :  { %20261 = vmatmul.mubr.msk.bf16.vlgmr.msra.gmra.mrb[80].mxu0 %vm8133_vm2, %v28120_v62  ;;  %23348 = vmatmul.mubr.msk.bf16.vlgmr.msra.gmra.mrb[76].mxu1 %vm8133_vm2, %v28120_v62 }
 0xdf6   :  { %17962 = vmatpush1.bf16.msra.mxu0 %v25060_v28  ;;  %18003 = vmatpush1.bf16.msra.mxu1 %v25063_v17 }
 0xdf7   :  { %17963 = vmatprep.subr.bf16.mxu0 %v25068_v19  ;;  %18004 = vmatprep.subr.bf16.mxu1 %v25071_v15 }
 0xdf8   :  { %17993 = vmatprep.mubr.bf16.mxu0 %v25626_v32  ;;  %18034 = vmatprep.mubr.bf16.mxu1 %v25626_v32 }
 0xdfa   :  { %17964 = vmatpush1.bf16.msra.mxu0 %v25066_v1  ;;  %18005 = vmatpush1.bf16.msra.mxu1 %v25069_v51 }
 0xdfb   :  { %17965 = vmatprep.subr.bf16.mxu0 %v25074_v30  ;;  %18006 = vmatprep.subr.bf16.mxu1 %v25077_v49 }
 0xdfe   :  { %17966 = vmatpush1.bf16.msra.mxu0 %v25072_v16  ;;  %18007 = vmatpush1.bf16.msra.mxu1 %v25075_v61  ;;  %v25122_v61 = vld [vmem:[#allocation24 + $0x1388] ss:$28 sps:$4 sm:$0xff]  }
 0xdff   :  { %17967 = vmatprep.subr.bf16.mxu0 %v25080_v55  ;;  %18008 = vmatprep.subr.bf16.mxu1 %v25083_v48  ;;  %v25125_v55 = vld [vmem:[#allocation24 + $0x1390] ss:$28 sps:$4 sm:$0xff]  }
 0xe02   :  { %17968 = vmatpush1.bf16.msra.mxu0 %v25078_v56  ;;  %18009 = vmatpush1.bf16.msra.mxu1 %v25081_v57  ;;  %v25129_v57 = vld [vmem:[#allocation24 + $0x13c8] ss:$28 sps:$4 sm:$0xff]  }
 0xe03   :  { %17969 = vmatprep.subr.bf16.mxu0 %v25086_v23  ;;  %18010 = vmatprep.subr.bf16.mxu1 %v25089_v58  ;;  %v25135_v23 = vld [vmem:[#allocation24 + $0x13f4] ss:$28 sps:$4 sm:$0xff]   ;;  %v25130_v58 = vld [vmem:[#allocation24 + $0x13e8] ss:$28 sps:$4 sm:$0xff]  }
 0xe04   :  { %v16063_v53 = vpop.f32.mrb[52].mxu0  ;;  %v16104_v26 = vpop.f32.mrb[48].mxu1 }
 0xe05   :  { %v28152_v29 = vadd.f32 %v16063_v53, %v28107_v6  ;;  %v28155_v33 = vadd.f32 %v16104_v26, %v28110_v52  ;;  %v16065_v62 = vpop.f32.mrb[53].mxu0  ;;  %v16106_v3 = vpop.f32.mrb[49].mxu1  ;;  %v11820_v6 = vadd.f32 %v28163_v2, %v27782_v18  ;;  %v25108_v18 = vld [vmem:[#allocation24 + $0x12ac] ss:$28 sps:$4 sm:$0xff]   ;;  %v25144_v26 = vld [vmem:[#allocation24 + $0x145c] ss:$28 sps:$4 sm:$0xff]  }
 0xe06   :  { %v28158_v40 = vadd.f32 %v16065_v62, %v28113_v0  ;;  %v28161_v44 = vadd.f32 %v16106_v3, %v28116_v5  ;;  %v16067_v59 = vpop.f32.mrb[54].mxu0  ;;  %v16108_v12 = vpop.f32.mrb[50].mxu1  ;;  %17970 = vmatpush1.bf16.msra.mxu0 %v25084_v46  ;;  %18011 = vmatpush1.bf16.msra.mxu1 %v25087_v13  ;;  %v25098_v0 = vld [vmem:[#allocation24 + $0x13b4] ss:$28 sps:$4 sm:$0xff]   ;;  %v25138_v13 = vld [vmem:[#allocation24 + $0x1424] ss:$28 sps:$4 sm:$0xff]  }
 0xe07   :  { %v16068_v52 = vpop.f32.mrb[55].mxu0  ;;  %v16109_v7 = vpop.f32.mrb[51].mxu1  ;;  %17971 = vmatprep.subr.bf16.mxu0 %v25092_v43  ;;  %18012 = vmatprep.subr.bf16.mxu1 %v25095_v63  ;;  %v25096_v5 = vld [vmem:[#allocation24 + $0x13b0] ss:$28 sps:$4 sm:$0xff]   ;;  %v11825_v21 = vmax.f32 %v11820_v6, 0.0 }
 0xe08   :  { %v25133_v46 = vld [vmem:[#allocation24 + $0x13f0] ss:$28 sps:$4 sm:$0xff]   ;;  %v25136_v63 = vld [vmem:[#allocation24 + $0x1420] ss:$28 sps:$4 sm:$0xff]   ;;  %v25139_v53 = vld [vmem:[#allocation24 + $0x1428] ss:$28 sps:$4 sm:$0xff]  }
 0xe09   :  { %v28167_v14 = vpack.c.bf16 %v11825_v21, %v11825_v21  ;;  %v25141_v43 = vld [vmem:[#allocation24 + $0x142c] ss:$28 sps:$4 sm:$0xff]   ;;  %v25147_v62 = vld [vmem:[#allocation24 + $0x1464] ss:$28 sps:$4 sm:$0xff]   ;;  %v25142_v3 = vld [vmem:[#allocation24 + $0x1458] ss:$28 sps:$4 sm:$0xff]  }
 0xe0a   :  { %17972 = vmatpush1.bf16.msra.mxu0 %v25090_v27  ;;  %18013 = vmatpush1.bf16.msra.mxu1 %v25093_v9  ;;  %v25145_v59 = vld [vmem:[#allocation24 + $0x1460] ss:$28 sps:$4 sm:$0xff]   ;;  %v25150_v12 = vld [vmem:[#allocation24 + $0x1494] ss:$28 sps:$4 sm:$0xff]   ;;  %v25156_v52 = vld [vmem:[#allocation24 + $0x14cc] ss:$28 sps:$4 sm:$0xff]  }
 0xe0b   :  { %17973 = vmatprep.subr.bf16.mxu0 %v25098_v0  ;;  %18014 = vmatprep.subr.bf16.mxu1 %v25101_v31  ;;  %v25153_v27 = vld [vmem:[#allocation24 + $0x149c] ss:$28 sps:$4 sm:$0xff]   ;;  %v25148_v9 = vld [vmem:[#allocation24 + $0x1490] ss:$28 sps:$4 sm:$0xff]   ;;  %v25154_v0 = vld [vmem:[#allocation24 + $0x14c8] ss:$28 sps:$4 sm:$0xff]  }
 0xe0c   :  { %v25151_v6 = vld [vmem:[#allocation24 + $0x1498] ss:$28 sps:$4 sm:$0xff]   ;;  %v25157_v31 = vld [vmem:[#allocation24 + $0x14d0] ss:$28 sps:$4 sm:$0xff]  }
 0xe0d   :  { %v25159_v7 = vld [vmem:[#allocation24 + $0x14d4] ss:$28 sps:$4 sm:$0xff]  }
 0xe0e   :  { %17974 = vmatpush1.bf16.msra.mxu0 %v25096_v5  ;;  %18015 = vmatpush1.bf16.msra.mxu1 %v25099_v54  ;;  %v25162_v5 = vld [vmem:[#allocation24 + $0x1504] ss:$28 sps:$4 sm:$0xff]   ;;  %v25165_v54 = vld [vmem:[#allocation24 + $0x150c] ss:$28 sps:$4 sm:$0xff]  }
 0xe0f   :  { %18043 = vmatprep.subr.bf16.mxu0 %v25104_v25  ;;  %23351 = vmatprep.subr.bf16.mxu1 %v25624_v11 }
 0xe11   :  { %20312 = vmatmul.mubr.msk.bf16.vlgmr.msra.gmra.mrb[84].mxu0 %vm8133_vm2, %v28167_v14  ;;  %20313 = vmatmul.mubr.msk.bf16.vlgmr.msra.gmra.mrb[80].mxu1 %vm8133_vm2, %v28167_v14 }
 0xe12   :  { %18044 = vmatpush1.bf16.msra.mxu0 %v25102_v22  ;;  %23352 = vmatpush3.bf16.msra.mxu1 %v25105_v20 }
 0xe13   :  { %18045 = vmatprep.subr.bf16.mxu0 %v25108_v18  ;;  %23353 = vmatprep.subr.bf16.mxu1 %v25624_v11 }
 0xe14   :  { %18075 = vmatprep.mubr.bf16.mxu0 %v25626_v32  ;;  %23365 = vmatprep.mubr.msk.bf16.mxu1 %vm25625_vm0, %v25624_v11 }
 0xe16   :  { %18046 = vmatpush1.bf16.msra.mxu0 %v25106_v34  ;;  %23354 = vmatpush3.bf16.msra.mxu1 %v25109_v8 }
 0xe17   :  { %18047 = vmatprep.subr.bf16.mxu0 %v25112_v4  ;;  %23355 = vmatprep.subr.bf16.mxu1 %v25624_v11 }
 0xe1a   :  { %18048 = vmatpush1.bf16.msra.mxu0 %v25110_v10  ;;  %23356 = vmatpush3.bf16.msra.mxu1 %v25113_v38  ;;  %v25160_v38 = vld [vmem:[#allocation24 + $0x1500] ss:$28 sps:$4 sm:$0xff]  }
 0xe1b   :  { %18049 = vmatprep.subr.bf16.mxu0 %v25116_v50  ;;  %23357 = vmatprep.subr.bf16.mxu1 %v25624_v11  ;;  %v25163_v50 = vld [vmem:[#allocation24 + $0x1508] ss:$28 sps:$4 sm:$0xff]  }
 0xe1e   :  { %18050 = vmatpush1.bf16.msra.mxu0 %v25114_v35  ;;  %23358 = vmatpush3.bf16.msra.mxu1 %v25117_v60  ;;  %v25168_v60 = vld [vmem:[#allocation24 + $0x153c] ss:$28 sps:$4 sm:$0xff]  }
 0xe1f   :  { %18051 = vmatprep.subr.bf16.mxu0 %v25120_v47  ;;  %23359 = vmatprep.subr.bf16.mxu1 %v25624_v11  ;;  %v25171_v47 = vld [vmem:[#allocation24 + $0x1544] ss:$28 sps:$4 sm:$0xff]  }
 0xe20   :  { %v16145_v28 = vpop.f32.mrb[56].mxu0  ;;  %v16186_v17 = vpop.f32.mrb[52].mxu1 }
 0xe21   :  { %v28182_v19 = vadd.f32 %v16145_v28, %v28135_v37  ;;  %v28185_v15 = vadd.f32 %v16186_v17, %v28138_v39  ;;  %v16147_v1 = vpop.f32.mrb[57].mxu0  ;;  %v23295_v51 = vpop.f32.mrb[53].mxu1  ;;  %v25128_v37 = vld [vmem:[#allocation24 + $0x13c4] ss:$28 sps:$4 sm:$0xff]  }
 0xe22   :  { %v28188_v30 = vadd.f32 %v16147_v1, %v28141_v41  ;;  %v16149_v49 = vpop.f32.mrb[58].mxu0  ;;  %v16189_v16 = vpop.f32.mrb[54].mxu1  ;;  %18052 = vmatpush1.bf16.msra.mxu0 %v25118_v45  ;;  %23360 = vmatpush3.bf16.msra.mxu1 %v25121_v42  ;;  %v25126_v39 = vld [vmem:[#allocation24 + $0x13c0] ss:$28 sps:$4 sm:$0xff]   ;;  %v25132_v41 = vld [vmem:[#allocation24 + $0x13ec] ss:$28 sps:$4 sm:$0xff]  }
 0xe23   :  { %v16150_v48 = vpop.f32.mrb[59].mxu0  ;;  %v23296_v56 = vpop.f32.mrb[55].mxu1  ;;  %18053 = vmatprep.subr.bf16.mxu0 %v25124_v36  ;;  %23361 = vmatprep.subr.bf16.mxu1 %v25624_v11  ;;  %v25174_v42 = vld [vmem:[#allocation24 + $0x13fc] ss:$28 sps:$4 sm:$0xff]   ;;  %v25182_v51 = vld [vmem:[#allocation24 + $0x146c] ss:$28 sps:$4 sm:$0xff]  }
 0xe24   :  { %v25172_v36 = vld [vmem:[#allocation24 + $0x13f8] ss:$28 sps:$4 sm:$0xff]   ;;  %v25175_v28 = vld [vmem:[#allocation24 + $0x1400] ss:$28 sps:$4 sm:$0xff]   ;;  %v25180_v49 = vld [vmem:[#allocation24 + $0x1468] ss:$28 sps:$4 sm:$0xff]  }
 0xe25   :  { %v25179_v1 = vld [vmem:[#allocation24 + $0x1438] ss:$28 sps:$4 sm:$0xff]   ;;  %v25183_v16 = vld [vmem:[#allocation24 + $0x1470] ss:$28 sps:$4 sm:$0xff]   ;;  %v25187_v48 = vld [vmem:[#allocation24 + $0x14a8] ss:$28 sps:$4 sm:$0xff]  }
 0xe26   :  { %18054 = vmatpush1.bf16.msra.mxu0 %v25122_v61  ;;  %23362 = vmatpush3.bf16.msra.mxu1 %v25125_v55  ;;  %v25186_v61 = vld [vmem:[#allocation24 + $0x14a4] ss:$28 sps:$4 sm:$0xff]   ;;  %v25190_v56 = vld [vmem:[#allocation24 + $0x14dc] ss:$28 sps:$4 sm:$0xff]  }
 0xe27   :  { %18055 = vmatprep.subr.bf16.mxu0 %v25128_v37  ;;  %23363 = vmatprep.subr.bf16.mxu1 %v25624_v11  ;;  %v25184_v55 = vld [vmem:[#allocation24 + $0x14a0] ss:$28 sps:$4 sm:$0xff]  }
 0xe28   :  { %v25191_v37 = vld [vmem:[#allocation24 + $0x14e0] ss:$28 sps:$4 sm:$0xff]  }
 0xe2a   :  { %18056 = vmatpush1.bf16.msra.mxu0 %v25126_v39  ;;  %23364 = vmatpush3.bf16.msra.mxu1 %v25129_v57  ;;  %v25194_v39 = vld [vmem:[#allocation24 + $0x1514] ss:$28 sps:$4 sm:$0xff]  }
 0xe2b   :  { %18444 = vmatprep.subr.bf16.mxu0 %v25132_v41  ;;  %18485 = vmatprep.subr.bf16.mxu1 %v25135_v23 }
 0xe2d   :  { %20314 = vmatmul.mubr.msk.bf16.vlgmr.msra.gmra.mrb[88].mxu0 %vm8133_vm2, %v28167_v14  ;;  %23366 = vmatmul.mubr.msk.bf16.vlgmr.msra.gmra.mrb[84].mxu1 %vm8133_vm2, %v28167_v14 }
 0xe2e   :  { %18445 = vmatpush1.bf16.msra.mxu0 %v25130_v58  ;;  %18486 = vmatpush1.bf16.msra.mxu1 %v25133_v46 }
 0xe2f   :  { %18446 = vmatprep.subr.bf16.mxu0 %v25138_v13  ;;  %18487 = vmatprep.subr.bf16.mxu1 %v25141_v43 }
 0xe30   :  { %18476 = vmatprep.mubr.bf16.mxu0 %v25626_v32  ;;  %18517 = vmatprep.mubr.bf16.mxu1 %v25626_v32 }
 0xe32   :  { %18447 = vmatpush1.bf16.msra.mxu0 %v25136_v63  ;;  %18488 = vmatpush1.bf16.msra.mxu1 %v25139_v53 }
 0xe33   :  { %18448 = vmatprep.subr.bf16.mxu0 %v25144_v26  ;;  %18489 = vmatprep.subr.bf16.mxu1 %v25147_v62  ;;  %v25192_v26 = vld [vmem:[#allocation24 + $0x1510] ss:$28 sps:$4 sm:$0xff]   ;;  %v25195_v62 = vld [vmem:[#allocation24 + $0x1518] ss:$28 sps:$4 sm:$0xff]  }
 0xe36   :  { %18449 = vmatpush1.bf16.msra.mxu0 %v25142_v3  ;;  %18490 = vmatpush1.bf16.msra.mxu1 %v25145_v59 }
 0xe37   :  { %18450 = vmatprep.subr.bf16.mxu0 %v25150_v12  ;;  %18491 = vmatprep.subr.bf16.mxu1 %v25153_v27  ;;  %v25198_v12 = vld [vmem:[#allocation24 + $0x154c] ss:$28 sps:$4 sm:$0xff]  }
 0xe3a   :  { %18451 = vmatpush1.bf16.msra.mxu0 %v25148_v9  ;;  %18492 = vmatpush1.bf16.msra.mxu1 %v25151_v6 }
 0xe3b   :  { %18452 = vmatprep.subr.bf16.mxu0 %v25156_v52  ;;  %18493 = vmatprep.subr.bf16.mxu1 %v25159_v7 }
 0xe3c   :  { %v16546_v21 = vpop.f32.mrb[60].mxu0  ;;  %v16587_v25 = vpop.f32.mrb[56].mxu1 }
 0xe3d   :  { %v28199_v22 = vadd.f32 %v16546_v21, %v28152_v29  ;;  %v28202_v20 = vadd.f32 %v16587_v25, %v28155_v33  ;;  %v16548_v14 = vpop.f32.mrb[61].mxu0  ;;  %v16589_v18 = vpop.f32.mrb[57].mxu1  ;;  %v11861_v29 = vadd.f32 %v28163_v2, %v27784_v24  ;;  %v25178_v24 = vld [vmem:[#allocation24 + $0x1434] ss:$28 sps:$4 sm:$0xff]  }
 0xe3e   :  { %v28205_v34 = vadd.f32 %v16548_v14, %v28158_v40  ;;  %v28208_v8 = vadd.f32 %v16589_v18, %v28161_v44  ;;  %v16550_v4 = vpop.f32.mrb[62].mxu0  ;;  %v16591_v10 = vpop.f32.mrb[58].mxu1  ;;  %18453 = vmatpush1.bf16.msra.mxu0 %v25154_v0  ;;  %18494 = vmatpush1.bf16.msra.mxu1 %v25157_v31  ;;  %v25166_v40 = vld [vmem:[#allocation24 + $0x1538] ss:$28 sps:$4 sm:$0xff]   ;;  %v25169_v44 = vld [vmem:[#allocation24 + $0x1540] ss:$28 sps:$4 sm:$0xff]  }
 0xe3f   :  { %v16551_v35 = vpop.f32.mrb[63].mxu0  ;;  %v16592_v33 = vpop.f32.mrb[59].mxu1  ;;  %18454 = vmatprep.subr.bf16.mxu0 %v25162_v5  ;;  %18495 = vmatprep.subr.bf16.mxu1 %v25165_v54  ;;  %v11866_v45 = vmax.f32 %v11861_v29, 0.0  ;;  %v25176_v2 = vld [vmem:[#allocation24 + $0x1430] ss:$28 sps:$4 sm:$0xff]  }
 0xe41   :  { %v28212_v17 = vpack.c.bf16 %v11866_v45, %v11866_v45 }
 0xe42   :  { %18455 = vmatpush1.bf16.msra.mxu0 %v25160_v38  ;;  %18496 = vmatpush1.bf16.msra.mxu1 %v25163_v50 }
 0xe43   :  { %18456 = vmatprep.subr.bf16.mxu0 %v25168_v60  ;;  %18497 = vmatprep.subr.bf16.mxu1 %v25171_v47 }
 0xe46   :  { %18457 = vmatpush1.bf16.msra.mxu0 %v25166_v40  ;;  %18498 = vmatpush1.bf16.msra.mxu1 %v25169_v44 }
 0xe47   :  { %18526 = vmatprep.subr.bf16.mxu0 %v25174_v42  ;;  %23369 = vmatprep.subr.bf16.mxu1 %v25624_v11 }
 0xe49   :  { %20365 = vmatmul.mubr.msk.bf16.vlgmr.msra.gmra.mrb[92].mxu0 %vm8133_vm2, %v28212_v17  ;;  %20366 = vmatmul.mubr.msk.bf16.vlgmr.msra.gmra.mrb[88].mxu1 %vm8133_vm2, %v28212_v17 }
 0xe4a   :  { %18527 = vmatpush1.bf16.msra.mxu0 %v25172_v36  ;;  %23370 = vmatpush3.bf16.msra.mxu1 %v25175_v28 }
 0xe4b   :  { %18528 = vmatprep.subr.bf16.mxu0 %v25178_v24  ;;  %23371 = vmatprep.subr.bf16.mxu1 %v25624_v11 }
 0xe4c   :  { %18558 = vmatprep.mubr.bf16.mxu0 %v25626_v32  ;;  %23383 = vmatprep.mubr.msk.bf16.mxu1 %vm25625_vm0, %v25624_v11  ;;  %v25188_v32 = vld [vmem:[#allocation24 + $0x14d8] ss:$28 sps:$4 sm:$0xff]  }
 0xe4e   :  { %18529 = vmatpush1.bf16.msra.mxu0 %v25176_v2  ;;  %23372 = vmatpush3.bf16.msra.mxu1 %v25179_v1 }
 0xe4f   :  { %18530 = vmatprep.subr.bf16.mxu0 %v25182_v51  ;;  %23373 = vmatprep.subr.bf16.mxu1 %v25624_v11 }
 0xe52   :  { %18531 = vmatpush1.bf16.msra.mxu0 %v25180_v49  ;;  %23374 = vmatpush3.bf16.msra.mxu1 %v25183_v16 }
 0xe53   :  { %18532 = vmatprep.subr.bf16.mxu0 %v25186_v61  ;;  %23375 = vmatprep.subr.bf16.mxu1 %v25624_v11 }
 0xe56   :  { %18533 = vmatpush1.bf16.msra.mxu0 %v25184_v55  ;;  %23376 = vmatpush3.bf16.msra.mxu1 %v25187_v48 }
 0xe57   :  { %18534 = vmatprep.subr.bf16.mxu0 %v25190_v56  ;;  %23377 = vmatprep.subr.bf16.mxu1 %v25624_v11 }
 0xe58   :  { %v16628_v57 = vpop.f32.mrb[64].mxu0  ;;  %v16669_v41 = vpop.f32.mrb[60].mxu1 }
 0xe59   :  { %v16679_v23 = vadd.f32 %v16628_v57, %v28182_v19  ;;  %v16681_v58 = vadd.f32 %v16669_v41, %v28185_v15  ;;  %v16630_v46 = vpop.f32.mrb[65].mxu0  ;;  %v23313_v13 = vpop.f32.mrb[61].mxu1  ;;  %v25196_v19 = vld [vmem:[#allocation24 + $0x1548] ss:$28 sps:$4 sm:$0xff]   ;;  %v25199_v15 = vld [vmem:[#allocation24 + $0x1550] ss:$28 sps:$4 sm:$0xff]  }
 0xe5a   :  { %v16680_v43 = vadd.f32 %v16630_v46, %v28188_v30  ;;  %v16632_v63 = vpop.f32.mrb[66].mxu0  ;;  %v16672_v53 = vpop.f32.mrb[62].mxu1  ;;  %18535 = vmatpush1.bf16.msra.mxu0 %v25188_v32  ;;  %23378 = vmatpush3.bf16.msra.mxu1 %v25191_v37 }
 0xe5b   :  { %v16633_v3 = vpop.f32.mrb[67].mxu0  ;;  %v23314_v59 = vpop.f32.mrb[63].mxu1  ;;  %18536 = vmatprep.subr.bf16.mxu0 %v25194_v39  ;;  %23379 = vmatprep.subr.bf16.mxu1 %v25624_v11 }
 0xe5e   :  { %18537 = vmatpush1.bf16.msra.mxu0 %v25192_v26  ;;  %23380 = vmatpush3.bf16.msra.mxu1 %v25195_v62 }
 0xe5f   :  { %18538 = vmatprep.subr.bf16.mxu0 %v25198_v12  ;;  %23381 = vmatprep.subr.bf16.mxu1 %v25624_v11 }
 0xe62   :  { %18539 = vmatpush1.bf16.msra.mxu0 %v25196_v19  ;;  %23382 = vmatpush3.bf16.msra.mxu1 %v25199_v15 }
 0xe65   :  { %20367 = vmatmul.mubr.msk.bf16.vlgmr.msra.gmra.mrb[96].mxu0 %vm8133_vm2, %v28212_v17  ;;  %23384 = vmatmul.mubr.msk.bf16.vlgmr.msra.gmra.mrb[92].mxu1 %vm8133_vm2, %v28212_v17 }
 0xe74   :  { %v17029_v30 = vpop.f32.mrb[68].mxu0  ;;  %v17070_v27 = vpop.f32.mrb[64].mxu1 }
 0xe75   :  { %v17158_v9 = vadd.f32 %v17029_v30, %v28199_v22  ;;  %v17160_v6 = vadd.f32 %v17070_v27, %v28202_v20  ;;  %v17031_v52 = vpop.f32.mrb[69].mxu0  ;;  %v17072_v7 = vpop.f32.mrb[65].mxu1 }
 0xe76   :  { %v17159_v0 = vadd.f32 %v17031_v52, %v28205_v34  ;;  %v17161_v11 = vadd.f32 %v17072_v7, %v28208_v8  ;;  %v17033_v31 = vpop.f32.mrb[70].mxu0  ;;  %v17074_v5 = vpop.f32.mrb[66].mxu1  ;;  %v18616_v7 = vlaneseq }
 0xe77   :  { %v17034_v54 = vpop.f32.mrb[71].mxu0  ;;  %v17075_v21 = vpop.f32.mrb[67].mxu1  ;;  %v18614_v5 = vld [vmem:[#allocation25] sm:$0x7f] }
 0xe90   :  { %v17111_v25 = vpop.f32.mrb[72].mxu0  ;;  %v17152_v14 = vpop.f32.mrb[68].mxu1 }
 0xe91   :  { %v17162_v18 = vadd.f32 %v17111_v25, %v16679_v23  ;;  %v17164_v4 = vadd.f32 %v17152_v14, %v16681_v58  ;;  %v17113_v10 = vpop.f32.mrb[73].mxu0  ;;  %v23331_v38 = vpop.f32.mrb[69].mxu1 }
 0xe92   :  { %v17163_v50 = vadd.f32 %v17113_v10, %v16680_v43  ;;  %v17115_v22 = vpop.f32.mrb[74].mxu0  ;;  %v17155_v29 = vpop.f32.mrb[70].mxu1 }
 0xe93   :  { %v17116_v20 = vpop.f32.mrb[75].mxu0  ;;  %v23332_v35 = vpop.f32.mrb[71].mxu1 }
 0xeac   :  { %v17512_v33 = vpop.f32.mrb[76].mxu0  ;;  %v17553_v60 = vpop.f32.mrb[72].mxu1 }
 0xead   :  { %v17641_v34 = vadd.f32 %v17512_v33, %v17158_v9  ;;  %v17643_v47 = vadd.f32 %v17553_v60, %v17160_v6  ;;  %v17514_v8 = vpop.f32.mrb[77].mxu0  ;;  %v17555_v40 = vpop.f32.mrb[73].mxu1 }
 0xeae   :  { %v17642_v44 = vadd.f32 %v17514_v8, %v17159_v0  ;;  %v17644_v45 = vadd.f32 %v17555_v40, %v17161_v11  ;;  %v17516_v42 = vpop.f32.mrb[78].mxu0  ;;  %v17557_v36 = vpop.f32.mrb[74].mxu1  ;;  %v18617_v0 = vshrl.u32 %v18616_v7, 7 }
 0xeaf   :  { %v17517_v28 = vpop.f32.mrb[79].mxu0  ;;  %v17558_v17 = vpop.f32.mrb[75].mxu1 }
 0xeb0   :  { %v18618_v11 = vsub.s32 0, %v18617_v0  ;;  %v18626_v31 = vsub.s32 2, %v18617_v0  ;;  %v18622_v54 = vsub.s32 1, %v18617_v0  ;;  %v18630_v21 = vsub.s32 3, %v18617_v0 }
 0xeb1   :  { %v18634_v36 = vsub.s32 4, %v18617_v0  ;;  %v18642_v28 = vsub.s32 6, %v18617_v0  ;;  %v18638_v17 = vsub.s32 5, %v18617_v0 }
 0xeb2   :  { %v18619_v25 = vrot.slane %v18614_v5, %v18618_v11  ;;  %v18627_v14 = vrot.slane %v18614_v5, %v18626_v31  ;;  %v18623_v10 = vrot.slane %v18614_v5, %v18622_v54  ;;  %v18631_v38 = vrot.slane %v18614_v5, %v18630_v21 }
 0xec8   :  { %v17594_v24 = vpop.f32.mrb[80].mxu0  ;;  %v17635_v2 = vpop.f32.mrb[76].mxu1 }
 0xec9   :  { %v17645_v1 = vadd.f32 %v17594_v24, %v17162_v18  ;;  %v17647_v51 = vadd.f32 %v17635_v2, %v17164_v4  ;;  %v17596_v49 = vpop.f32.mrb[81].mxu0  ;;  %v23349_v16 = vpop.f32.mrb[77].mxu1  ;;  %v18635_v24 = vrot.slane %v18614_v5, %v18634_v36  ;;  %v18643_v2 = vrot.slane %v18614_v5, %v18642_v28 }
 0xeca   :  { %v17646_v61 = vadd.f32 %v17596_v49, %v17163_v50  ;;  %v17598_v55 = vpop.f32.mrb[82].mxu0  ;;  %v17638_v48 = vpop.f32.mrb[78].mxu1  ;;  %v18639_v49 = vrot.slane %v18614_v5, %v18638_v17 }
 0xecb   :  { %v17599_v56 = vpop.f32.mrb[83].mxu0  ;;  %v23350_v32 = vpop.f32.mrb[79].mxu1 }
 0xee4   :  { %v17995_v37 = vpop.f32.mrb[84].mxu0  ;;  %v18036_v39 = vpop.f32.mrb[80].mxu1 }
 0xee5   :  { %v18124_v57 = vadd.f32 %v17995_v37, %v17641_v34  ;;  %v18126_v41 = vadd.f32 %v18036_v39, %v17643_v47  ;;  %v17997_v23 = vpop.f32.mrb[85].mxu0  ;;  %v18038_v58 = vpop.f32.mrb[81].mxu1 }
 0xee6   :  { %v18125_v46 = vadd.f32 %v17997_v23, %v17642_v44  ;;  %v18127_v13 = vadd.f32 %v18038_v58, %v17644_v45  ;;  %v17999_v43 = vpop.f32.mrb[86].mxu0  ;;  %v18040_v63 = vpop.f32.mrb[82].mxu1 }
 0xee7   :  { %v18000_v53 = vpop.f32.mrb[87].mxu0  ;;  %v18041_v26 = vpop.f32.mrb[83].mxu1 }
 0xf00   :  { %v18077_v62 = vpop.f32.mrb[88].mxu0  ;;  %v18118_v3 = vpop.f32.mrb[84].mxu1 }
 0xf01   :  { %v18128_v59 = vadd.f32 %v18077_v62, %v17645_v1  ;;  %v18130_v12 = vadd.f32 %v18118_v3, %v17647_v51  ;;  %v18079_v19 = vpop.f32.mrb[89].mxu0  ;;  %v23367_v15 = vpop.f32.mrb[85].mxu1 }
 0xf02   :  { %v18129_v30 = vadd.f32 %v18079_v19, %v17646_v61  ;;  %v18081_v27 = vpop.f32.mrb[90].mxu0  ;;  %v18121_v9 = vpop.f32.mrb[86].mxu1 }
 0xf03   :  { %v18082_v6 = vpop.f32.mrb[91].mxu0  ;;  %v23368_v52 = vpop.f32.mrb[87].mxu1 }
 0xf1c   :  { %v18478_v18 = vpop.f32.mrb[92].mxu0  ;;  %v18519_v4 = vpop.f32.mrb[88].mxu1 }
 0xf1d   :  { %v18607_v50 = vadd.f32 %v18478_v18, %v18124_v57  ;;  %v18609_v22 = vadd.f32 %v18519_v4, %v18126_v41  ;;  %v18480_v29 = vpop.f32.mrb[93].mxu0  ;;  %v18521_v20 = vpop.f32.mrb[89].mxu1 }
 0xf1e   :  { %v18608_v35 = vadd.f32 %v18480_v29, %v18125_v46  ;;  %v18610_v33 = vadd.f32 %v18521_v20, %v18127_v13  ;;  %v18482_v60 = vpop.f32.mrb[94].mxu0  ;;  %v18523_v34 = vpop.f32.mrb[90].mxu1 }
 0xf1f   :  { %v18651_v47 = vadd.f32 %v18619_v25, %v18607_v50  ;;  %v18653_v8 = vadd.f32 %v18627_v14, %v18609_v22  ;;  %v18483_v40 = vpop.f32.mrb[95].mxu0  ;;  %v18524_v44 = vpop.f32.mrb[91].mxu1 }
 0xf20   :  { %v18652_v45 = vadd.f32 %v18623_v10, %v18608_v35  ;;  %v18654_v42 = vadd.f32 %v18631_v38, %v18610_v33 }
 0xf21   :  { %18658 = vst [vmem:[%s28280_s19] sm:$0xff] %v18651_v47  ;;  %18660 = vst [vmem:[%s28280_s19 + $0x10] sm:$0xff] %v18653_v8 }
 0xf22   :  { %18659 = vst [vmem:[%s28280_s19 + $0x8] sm:$0xff] %v18652_v45  ;;  %18661 = vst [vmem:[%s28280_s19 + $0x18] sm:$0xff] %v18654_v42 }
 0xf38   :  { %v18560_v1 = vpop.f32.mrb[96].mxu0  ;;  %v18601_v51 = vpop.f32.mrb[92].mxu1 }
 0xf39   :  { %v18611_v16 = vadd.f32 %v18560_v1, %v18128_v59  ;;  %v18613_v61 = vadd.f32 %v18601_v51, %v18130_v12  ;;  %v18562_v55 = vpop.f32.mrb[97].mxu0  ;;  %v23385_v48 = vpop.f32.mrb[93].mxu1 }
 0xf3a   :  { %v18612_v56 = vadd.f32 %v18562_v55, %v18129_v30  ;;  %v18564_v32 = vpop.f32.mrb[98].mxu0  ;;  %v18604_v37 = vpop.f32.mrb[94].mxu1 }
 0xf3b   :  { %v18655_v39 = vadd.f32 %v18635_v24, %v18611_v16  ;;  %v18657_v57 = vadd.f32 %v18643_v2, %v18613_v61  ;;  %v18565_v41 = vpop.f32.mrb[99].mxu0  ;;  %v23386_v23 = vpop.f32.mrb[95].mxu1 }
 0xf3c   :  { %v18656_v58 = vadd.f32 %v18639_v49, %v18612_v56 }
 0xf3d   :  { %18662 = vst [vmem:[%s28280_s19 + $0x20] sm:$0xff] %v18655_v39  ;;  %18664 = vst.msk [vmem:[%s28280_s19 + $0x30] sm:$0xff] %vm691_vm1, %v18657_v57 }
 0xf3e   :  { %18663 = vst [vmem:[%s28280_s19 + $0x28] sm:$0xff] %v18656_v58 }
 0xf3f   :  { %18669 = vsyncpa [#allocation3], 1 }
 0xf40   :  { %18670 = vsyncpa [#allocation5], 1 }
 0xf41   :  { %18671 = vsyncpa [#allocation8], 1 }
 0xf42   :  { %18672 = vsyncpa [#allocation11], 1 }
 0xf43   :  { %18673 = vsyncpa [#allocation14], 1 }
 0xf44   :  { %18674 = vsyncpa [#allocation17], 1 }
 0xf45   :  { %18675 = vsyncpa [#allocation20], 1 }
 0xf46   :  { %18676 = vsyncpa [#allocation23], 1 }
 0xf47   :  { %18677 = vsyncpa [#allocation26], 1 }

</bundles_post_ra>
